<compile_context>
chip_gen: v7x
topology: tpu7x:2x2x1
jax: 0.10.0
libtpu: 0.0.40
codegen_flags: <defaults>
</compile_context>

<pallas_src>
import functools

import jax
import jax.numpy as jnp
from jax.experimental import pallas as pl
from jax.experimental.pallas import tpu as pltpu


ENSEMBLE_SIZE = 4
NUM_CLASSES = 10
BN_EPS = 1e-5


# ----------------------------------------------------------------------------
# Fused conv block kernel: conv(+BE) -> BN stats -> BN + BE affine -> ReLU -> pool
# ----------------------------------------------------------------------------
def _conv_block_kernel(p_ref, w_ref, fm_ref, b_ref, wbe_ref, bbe_ref, o_ref,
                       y_ref, s1_ref, s2_ref, *, rhp, n_inv):
    """grid = (phase, ensemble).  phase 0: matmul + bias + stats into VMEM scratch;
    phase 1: BN normalize + BE affine + ReLU + 2x2 maxpool from the scratch slab.
    All tensors are lane-packed: P consecutive output rows live in the 128-lane dim."""
    phase = pl.program_id(0)
    e = pl.program_id(1)
    fm = fm_ref[...]                                   # (P*C, C) 0/1 fold/expand matrix

    @pl.when(phase == 0)
    def _():
        @pl.when(e == 0)
        def _():
            s1_ref[...] = jnp.zeros_like(s1_ref)
            s2_ref[...] = jnp.zeros_like(s2_ref)

        w = w_ref[0]                                   # (P*Kp, P*C) bf16, block-diagonal
        # expand the per-channel conv bias to the packed 128-lane layout (tiny matmul)
        bias = jax.lax.dot_general(b_ref[0], fm, (((1,), (1,)), ((), ())),
                                   preferred_element_type=jnp.float32)      # (1, P*C)
        part1 = jnp.zeros(s1_ref.shape, jnp.float32)
        part2 = jnp.zeros(s2_ref.shape, jnp.float32)
        for k in range(4):                             # static unroll: 2x2 pool offsets
            pk = p_ref[0, pl.ds(k * rhp, rhp), :]      # (rhp, P*Kp) bf16
            yk = jnp.dot(pk, w, preferred_element_type=jnp.float32) + bias  # (rhp, P*C)
            y_ref[e * 4 + k] = yk                      # pre-BN activations stay in VMEM
            part1 = part1 + jnp.sum(yk, axis=0, keepdims=True)
            part2 = part2 + jnp.sum(yk * yk, axis=0, keepdims=True)
        s1_ref[...] += part1
        s2_ref[...] += part2

    @pl.when(phase == 1)
    def _():
        # fold packed lane groups back to per-channel sums -> batch statistics
        s1 = jnp.dot(s1_ref[...], fm, preferred_element_type=jnp.float32)   # (1, C)
        s2 = jnp.dot(s2_ref[...], fm, preferred_element_type=jnp.float32)   # (1, C)
        mean = s1 * n_inv
        # TODO(synk): E[y^2]-E[y]^2 can cancel for large activation means; switch to
        #             centered/Welford sums if used beyond random-init smoke tests.
        var = jnp.maximum(s2 * n_inv - mean * mean, 0.0)
        scale = jax.lax.rsqrt(var + BN_EPS) * wbe_ref[0]                    # (1, C)
        shift = bbe_ref[0] - mean * scale                                   # (1, C)
        # re-expand per-channel scale/shift to the packed 128-lane layout
        scale_p = jax.lax.dot_general(scale, fm, (((1,), (1,)), ((), ())),
                                      preferred_element_type=jnp.float32)   # (1, P*C)
        shift_p = jax.lax.dot_general(shift, fm, (((1,), (1,)), ((), ())),
                                      preferred_element_type=jnp.float32)
        out = None
        for k in range(4):                             # maxpool over the 4 pool offsets
            z = jnp.maximum(y_ref[e * 4 + k] * scale_p + shift_p, 0.0)
            out = z if out is None else jnp.maximum(out, z)
        o_ref[0] = out.astype(o_ref.dtype)


def be_conv_block(x_nhwc, w_e, bias_e, wbe, bbe, ensemble_size):
    """One BE-Conv2d(3x3, pad 1) + BatchNorm(train) + BE affine + ReLU + 2x2 maxpool,
    fully fused in one pallas_call.  x_nhwc: (B, H, W, Cin) bf16; w_e: (E, Kp, Cout)
    bf16 (BE alpha/gamma folded); bias_e/wbe/bbe: (E, Cout) f32.
    Returns (B, H//2, W//2, Cout) bf16."""
    B, H, W, Cin = x_nhwc.shape
    E = ensemble_size
    reps = B // E
    Hp, Wp = H // 2, W // 2
    RH = reps * Hp * Wp                       # pooled rows per ensemble member
    Kp, Cout = w_e.shape[1], w_e.shape[2]

    # lane-packing factor: merge P consecutive output rows into the 128-lane dim
    P = 128 // Cout if (128 % Cout == 0 and RH % max(128 // Cout, 1) == 0) else 1
    rhp = RH // P

    patches = im2col_pool_major(x_nhwc, E)                         # (E, 4*RH, 9*Cin) bf16
    K = patches.shape[-1]
    if Kp != K:
        patches = jnp.pad(patches, ((0, 0), (0, 0), (0, Kp - K)))
    patches = patches.reshape(E, 4 * rhp, P * Kp)                  # pure reshape (pack)

    # block-diagonal weight so the matmul emits P row-groups into 128 lanes
    w_blk = jnp.einsum("gh,ekc->egkhc", jnp.eye(P, dtype=w_e.dtype), w_e)
    w_blk = w_blk.reshape(E, P * Kp, P * Cout)
    fold = jnp.tile(jnp.eye(Cout, dtype=jnp.float32), (P, 1))      # (P*Cout, Cout)

    n_inv = 1.0 / float(B * H * W)
    kern = functools.partial(_conv_block_kernel, rhp=rhp, n_inv=n_inv)

    pooled = pl.pallas_call(
        kern,
        out_shape=jax.ShapeDtypeStruct((E, rhp, P * Cout), jnp.bfloat16),
        grid=(2, E),                                               # (phase, ensemble)
        in_specs=[
            # patches: phase 1 maps to the last phase-0 block -> deduped, no re-DMA
            pl.BlockSpec((1, 4 * rhp, P * Kp),
                         lambda p, e: (e * (1 - p) + (E - 1) * p, 0, 0)),
            pl.BlockSpec((1, P * Kp, P * Cout), lambda p, e: (e, 0, 0)),
            pl.BlockSpec((P * Cout, Cout), lambda p, e: (0, 0)),
            pl.BlockSpec((1, 1, Cout), lambda p, e: (e, 0, 0)),
            pl.BlockSpec((1, 1, Cout), lambda p, e: (e, 0, 0)),
            pl.BlockSpec((1, 1, Cout), lambda p, e: (e, 0, 0)),
        ],
        # phase 0 never writes the output; keep its block index pinned at 0 so no
        # garbage writeback happens before the phase-1 stores.
        out_specs=pl.BlockSpec((1, rhp, P * Cout), lambda p, e: (e * p, 0, 0)),
        scratch_shapes=[
            pltpu.VMEM((4 * E, rhp, P * Cout), jnp.float32),       # pre-BN activations
            pltpu.VMEM((1, P * Cout), jnp.float32),                # sum(y)
            pltpu.VMEM((1, P * Cout), jnp.float32),                # sum(y^2)
        ],
        # stats accumulation + two-phase dependency -> both axes sequential.
        compiler_params=pltpu.CompilerParams(
            dimension_semantics=("arbitrary", "arbitrary")),
    )(patches, w_blk, fold, bias_e[:, None, :], wbe[:, None, :], bbe[:, None, :])

    # packed bytes are identical to the unpacked (B, Hp, Wp, Cout) NHWC layout
    return pooled.reshape(B, Hp, Wp, Cout)


# ----------------------------------------------------------------------------
# Fused BELinear + per-ensemble heads + ensemble mean (head folded into the weight)
# ----------------------------------------------------------------------------
def _fc_fused_kernel(x_ref, w_ref, b_ref, o_ref):
    """x_ref: (E, reps, K) bf16; w_ref: (E, K, Ncls) bf16 (alpha/gamma/head/1/E folded);
    b_ref: (1, Ncls) f32.  out = sum_e x[e] @ w[e] + b."""
    acc = jnp.zeros(o_ref.shape, jnp.float32)
    for e in range(x_ref.shape[0]):                    # static unroll over ensemble
        acc = acc + jnp.dot(x_ref[e], w_ref[e], preferred_element_type=jnp.float32)
    o_ref[...] = acc + b_ref[...]


def fc_heads_fused(x3, wc, bc):
    """x3: (E, reps, K) bf16; wc: (E, K, Ncls) bf16; bc: (1, Ncls) f32 -> (reps, Ncls)."""
    E, reps, K = x3.shape
    Ncls = wc.shape[-1]
    return pl.pallas_call(
        _fc_fused_kernel,
        out_shape=jax.ShapeDtypeStruct((reps, Ncls), jnp.float32),
    )(x3, wc, bc)


# ----------------------------------------------------------------------------
# JAX glue: im2col in pool-major order, BE/head weight folding
# ----------------------------------------------------------------------------
def _round_up(x, m):
    return ((x + m - 1) // m) * m


def im2col_pool_major(x, ensemble_size):
    """x: (B, H, W, C) -> (E, 4*reps*Hp*Wp, 9*C) patches for 3x3 / stride 1 / pad 1 conv.
    Rows ordered (pool offset k = dy*2+dx, sample-in-ensemble r, hp, wp) with
    h = 2*hp + dy, w = 2*wp + dx, so the post-conv 2x2 maxpool is a max over 4
    contiguous row chunks and pooled rows come out in (r, hp, wp) order."""
    B, H, W, C = x.shape
    E = ensemble_size
    reps = B // E
    Hp, Wp = H // 2, W // 2
    xp = jnp.pad(x, ((0, 0), (1, 1), (1, 1), (0, 0)))
    groups = []
    for dy in range(2):
        for dx in range(2):
            taps = []
            for ky in range(3):
                for kx in range(3):
                    sub = jax.lax.slice(
                        xp,
                        (0, dy + ky, dx + kx, 0),
                        (B, dy + ky + H - 1, dx + kx + W - 1, C),
                        (1, 2, 2, 1),
                    )                                              # (B, Hp, Wp, C)
                    taps.append(sub)
            g = jnp.concatenate(taps, axis=-1)                     # (B, Hp, Wp, 9*C)
            groups.append(g.reshape(E, reps, Hp * Wp, 9 * C))
    pat = jnp.stack(groups, axis=1)                                # (E, 4, reps, hpwp, 9C)
    return pat.reshape(E, 4 * reps * Hp * Wp, 9 * C)


def fold_conv_weight(conv_w, alpha, gamma):
    """conv_w: (Cout, Cin, 3, 3) torch layout; alpha: (E, Cin); gamma: (E, Cout).
    Returns per-ensemble (E, Kp, Cout) bf16 weight with BE alpha/gamma folded in,
    columns ordered (ky, kx, cin), Kp rounded to a multiple of 16 (bf16 packing)."""
    Cout, Cin = conv_w.shape[0], conv_w.shape[1]
    K = 9 * Cin
    Kp = _round_up(K, 16)
    wmat = jnp.transpose(conv_w, (2, 3, 1, 0)).reshape(K, Cout)    # (ky,kx,cin) x cout
    alpha9 = jnp.tile(alpha, (1, 9))                               # (E, 9*Cin)
    w_e = wmat[None, :, :] * alpha9[:, :, None] * gamma[:, None, :]
    if Kp != K:
        w_e = jnp.pad(w_e, ((0, 0), (0, Kp - K), (0, 0)))
    return w_e.astype(jnp.bfloat16)


def fold_fc_heads(fc_w, fc_alpha, fc_gamma, fc_bias, head_w, head_b, E, chw):
    """Fold BELinear alpha/gamma/bias, the per-ensemble head, and the 1/E ensemble mean
    into (E, K, Ncls) weights + a single (1, Ncls) bias.  Rows are re-ordered from the
    PyTorch (C, H, W) flatten order to our NHWC (H, W, C) flatten order so the conv
    output can be consumed without an activation transpose."""
    C, H, W = chw
    K = fc_w.shape[1]
    Ncls = head_w.shape[1]
    wt = fc_w.T.astype(jnp.float32)                                # (K, Nfc)
    wg = wt[None, :, :] * fc_gamma[:, None, :]                     # (E, K, Nfc)
    wc = jnp.einsum("ekn,ecn->ekc", wg, head_w)                    # (E, K, Ncls)
    wc = wc * fc_alpha[:, :, None] * (1.0 / E)
    wc = wc.reshape(E, C, H, W, Ncls).transpose(0, 2, 3, 1, 4).reshape(E, K, Ncls)
    bc = jnp.einsum("en,ecn->ec", fc_bias, head_w) + head_b        # (E, Ncls)
    bc = jnp.mean(bc, axis=0, keepdims=True)                       # (1, Ncls)
    return wc.astype(jnp.bfloat16), bc.astype(jnp.float32)


# ----------------------------------------------------------------------------
# Parameter setup + forward
# ----------------------------------------------------------------------------
def random_sign(key, shape, prob=0.5):
    return jnp.where(jax.random.uniform(key, shape) < prob, 1.0, -1.0).astype(jnp.float32)


def kaiming_normal_fan_out(key, shape, fan_out):
    std = (2.0 / fan_out) ** 0.5
    return (jax.random.normal(key, shape) * std).astype(jnp.float32)


def init_params(key, ensemble_size=ENSEMBLE_SIZE):
    ks = jax.random.split(key, 16)
    p = {}
    # conv1: 3 -> 32
    p["conv1_w"] = kaiming_normal_fan_out(ks[0], (32, 3, 3, 3), fan_out=32 * 3 * 3)
    p["conv1_alpha"] = random_sign(ks[1], (ensemble_size, 3))
    p["conv1_gamma"] = random_sign(ks[2], (ensemble_size, 32))
    p["conv1_bias"] = jnp.zeros((ensemble_size, 32), jnp.float32)
    p["bn1_wbe"] = jnp.ones((ensemble_size, 32), jnp.float32)
    p["bn1_bbe"] = jnp.zeros((ensemble_size, 32), jnp.float32)
    # conv2: 32 -> 64
    p["conv2_w"] = kaiming_normal_fan_out(ks[3], (64, 32, 3, 3), fan_out=64 * 3 * 3)
    p["conv2_alpha"] = random_sign(ks[4], (ensemble_size, 32))
    p["conv2_gamma"] = random_sign(ks[5], (ensemble_size, 64))
    p["conv2_bias"] = jnp.zeros((ensemble_size, 64), jnp.float32)
    p["bn2_wbe"] = jnp.ones((ensemble_size, 64), jnp.float32)
    p["bn2_bbe"] = jnp.zeros((ensemble_size, 64), jnp.float32)
    # shared_fc: 64*8*8 -> 128
    p["fc_w"] = kaiming_normal_fan_out(ks[6], (128, 64 * 8 * 8), fan_out=128)
    p["fc_alpha"] = random_sign(ks[7], (ensemble_size, 64 * 8 * 8))
    p["fc_gamma"] = random_sign(ks[8], (ensemble_size, 128))
    p["fc_bias"] = jnp.zeros((ensemble_size, 128), jnp.float32)
    # heads: ensemble_size independent Linear(128 -> 10)
    p["head_w"] = kaiming_normal_fan_out(
        ks[9], (ensemble_size, NUM_CLASSES, 128), fan_out=NUM_CLASSES
    )
    p["head_b"] = jnp.zeros((ensemble_size, NUM_CLASSES), jnp.float32)
    return p


@functools.partial(jax.jit, static_argnames=("ensemble_size",))
def forward(x_nchw, p, ensemble_size=ENSEMBLE_SIZE):
    E = ensemble_size
    B = x_nchw.shape[0]
    reps = B // E

    # NCHW -> NHWC; bf16 from the start (the conv matmuls are bf16 anyway).
    x = jnp.transpose(x_nchw, (0, 2, 3, 1)).astype(jnp.bfloat16)

    # block 1: BE-conv1 + bn1 + BE affine + relu + pool  (one fused Pallas kernel)
    w1_e = fold_conv_weight(p["conv1_w"], p["conv1_alpha"], p["conv1_gamma"])
    x = be_conv_block(x, w1_e, p["conv1_bias"], p["bn1_wbe"], p["bn1_bbe"], E)

    # block 2: BE-conv2 + bn2 + BE affine + relu + pool
    w2_e = fold_conv_weight(p["conv2_w"], p["conv2_alpha"], p["conv2_gamma"])
    x = be_conv_block(x, w2_e, p["conv2_bias"], p["bn2_wbe"], p["bn2_bbe"], E)
    # x: (B, 8, 8, 64) bf16, batch grouped contiguously by ensemble member

    Bc, Hc, Wc, Cc = x.shape
    x3 = x.reshape(E, reps, Hc * Wc * Cc)              # free reshape, no transpose

    # shared BELinear + per-ensemble heads + ensemble mean, head folded into the weight
    wc, bc = fold_fc_heads(p["fc_w"], p["fc_alpha"], p["fc_gamma"], p["fc_bias"],
                           p["head_w"], p["head_b"], E, (Cc, Hc, Wc))
    return fc_heads_fused(x3, wc, bc)


if __name__ == "__main__":
    key = jax.random.PRNGKey(0)
    k_param, k_x = jax.random.split(key)

    params = init_params(k_param, ENSEMBLE_SIZE)

    # Input consistent with the module: NCHW, 3 channels, 32x32 spatial so the
    # flattened feature size is 64*8*8; batch = 8 = ensemble_size * 2.
    x = jax.random.normal(k_x, (8, 3, 32, 32), dtype=jnp.float32)

    out = forward(x, params, ensemble_size=ENSEMBLE_SIZE)
    out = jax.block_until_ready(out)

    assert out.shape == (8 // ENSEMBLE_SIZE, NUM_CLASSES)
    assert bool(jnp.all(jnp.isfinite(out)))
    print("KERNEL_OK")
</pallas_src>

<mosaic_0001>
module attributes {stable_mosaic.version = 11 : i64} {
  func.func @_conv_block_kernel(%arg0: i32, %arg1: i32, %arg2: memref<1x512x128xbf16, #tpu.memory_space<vmem>>, %arg3: memref<1x128x128xbf16, #tpu.memory_space<vmem>>, %arg4: memref<128x32xf32, #tpu.memory_space<vmem>>, %arg5: memref<1x1x32xf32, #tpu.memory_space<vmem>>, %arg6: memref<1x1x32xf32, #tpu.memory_space<vmem>>, %arg7: memref<1x1x32xf32, #tpu.memory_space<vmem>>, %arg8: memref<1x128x128xbf16, #tpu.memory_space<vmem>>, %arg9: memref<16x128x128xf32, #tpu.memory_space<vmem>>, %arg10: memref<1x128xf32, #tpu.memory_space<vmem>>, %arg11: memref<1x128xf32, #tpu.memory_space<vmem>>) attributes {dimension_semantics = [#tpu.dimension_semantics<arbitrary>, #tpu.dimension_semantics<arbitrary>], iteration_bounds = array<i64: 2, 4>, scalar_prefetch = 0 : i64, scratch_operands = 3 : i64, tpu.core_type = #tpu.core_type<tc>, window_params = [{transform_indices = @transform_0, window_bounds = array<i64: 1, 512, 128>}, {transform_indices = @transform_1, window_bounds = array<i64: 1, 128, 128>}, {pipeline_mode = #tpu.pipeline_mode<synchronous>, transform_indices = @transform_2, window_bounds = array<i64: 128, 32>}, {transform_indices = @transform_3, window_bounds = array<i64: 1, 1, 32>}, {transform_indices = @transform_4, window_bounds = array<i64: 1, 1, 32>}, {transform_indices = @transform_5, window_bounds = array<i64: 1, 1, 32>}, {transform_indices = @transform_6, window_bounds = array<i64: 1, 128, 128>}]} {
    %c0 = arith.constant 0 : index
    %c0_0 = arith.constant 0 : index
    %0 = vector.load %arg4[%c0, %c0_0] : memref<128x32xf32, #tpu.memory_space<vmem>>, vector<128x32xf32>
    %c0_i32 = arith.constant 0 : i32
    %1 = arith.cmpi eq, %arg0, %c0_i32 : i32
    %2 = arith.extui %1 : i1 to i32
    %c0_i32_1 = arith.constant 0 : i32
    %3 = arith.cmpi ne, %2, %c0_i32_1 : i32
    scf.if %3 {
      %c0_i32_3 = arith.constant 0 : i32
      %7 = arith.cmpi eq, %arg1, %c0_i32_3 : i32
      %8 = arith.extui %7 : i1 to i32
      %c0_i32_4 = arith.constant 0 : i32
      %9 = arith.cmpi ne, %8, %c0_i32_4 : i32
      scf.if %9 {
        %cst_55 = arith.constant 0.000000e+00 : f32
        %95 = vector.broadcast %cst_55 : f32 to vector<1x128xf32>
        %c0_56 = arith.constant 0 : index
        %c0_57 = arith.constant 0 : index
        %96 = vector.load %arg10[%c0_56, %c0_57] : memref<1x128xf32, #tpu.memory_space<vmem>>, vector<1x128xf32>
        tpu.vector_store %arg10[%c0_56, %c0_57], %95 {strides = array<i32>} : memref<1x128xf32, #tpu.memory_space<vmem>>, vector<1x128xf32>,
        %cst_58 = arith.constant 0.000000e+00 : f32
        %97 = vector.broadcast %cst_58 : f32 to vector<1x128xf32>
        %c0_59 = arith.constant 0 : index
        %c0_60 = arith.constant 0 : index
        %98 = vector.load %arg11[%c0_59, %c0_60] : memref<1x128xf32, #tpu.memory_space<vmem>>, vector<1x128xf32>
        tpu.vector_store %arg11[%c0_59, %c0_60], %97 {strides = array<i32>} : memref<1x128xf32, #tpu.memory_space<vmem>>, vector<1x128xf32>,
      } else {
      }
      %c0_5 = arith.constant 0 : index
      %c0_6 = arith.constant 0 : index
      %c0_7 = arith.constant 0 : index
      %10 = vector.load %arg3[%c0_5, %c0_6, %c0_7] : memref<1x128x128xbf16, #tpu.memory_space<vmem>>, vector<1x128x128xbf16>
      %11 = vector.shape_cast %10 : vector<1x128x128xbf16> to vector<128x128xbf16>
      %c0_8 = arith.constant 0 : index
      %c0_9 = arith.constant 0 : index
      %c0_10 = arith.constant 0 : index
      %12 = vector.load %arg5[%c0_8, %c0_9, %c0_10] : memref<1x1x32xf32, #tpu.memory_space<vmem>>, vector<1x1x32xf32>
      %13 = vector.shape_cast %12 : vector<1x1x32xf32> to vector<1x32xf32>
      %cst = arith.constant dense<0.000000e+00> : vector<1x128xf32>
      %14 = tpu.matmul %13, %0, %cst {dimension_numbers = #tpu.dot_dimension_numbers<[1], [1], [0], [0], [0, 0, 1, 0], [], []>} : vector<1x32xf32>, vector<128x32xf32>, vector<1x128xf32> -> vector<1x128xf32>
      %cst_11 = arith.constant 0.000000e+00 : f32
      %15 = vector.broadcast %cst_11 : f32 to vector<1x128xf32>
      %cst_12 = arith.constant 0.000000e+00 : f32
      %16 = vector.broadcast %cst_12 : f32 to vector<1x128xf32>
      %c0_13 = arith.constant 0 : index
      %c0_14 = arith.constant 0 : index
      %c0_15 = arith.constant 0 : index
      %17 = vector.load %arg2[%c0_13, %c0_14, %c0_15] : memref<1x512x128xbf16, #tpu.memory_space<vmem>>, vector<1x128x128xbf16>
      %18 = vector.shape_cast %17 : vector<1x128x128xbf16> to vector<128x128xbf16>
      %cst_16 = arith.constant dense<0.000000e+00> : vector<128x128xf32>
      %19 = tpu.matmul %18, %11, %cst_16 {dimension_numbers = #tpu.dot_dimension_numbers<[1], [0], [0], [1], [0, 0, 1, 1], [], []>} : vector<128x128xbf16>, vector<128x128xbf16>, vector<128x128xf32> -> vector<128x128xf32>
      %20 = vector.broadcast %14 : vector<1x128xf32> to vector<128x128xf32>
      %21 = arith.addf %19, %20 : vector<128x128xf32>
      %c4_i32 = arith.constant 4 : i32
      %22 = arith.muli %arg1, %c4_i32 : i32
      %c0_i32_17 = arith.constant 0 : i32
      %23 = arith.addi %22, %c0_i32_17 : i32
      %24 = arith.index_cast %23 : i32 to index
      %c0_18 = arith.constant 0 : index
      %c0_19 = arith.constant 0 : index
      %25 = vector.load %arg9[%24, %c0_18, %c0_19] : memref<16x128x128xf32, #tpu.memory_space<vmem>>, vector<1x128x128xf32>
      %26 = vector.shape_cast %25 : vector<1x128x128xf32> to vector<128x128xf32>
      %27 = vector.shape_cast %21 : vector<128x128xf32> to vector<1x128x128xf32>
      tpu.vector_store %arg9[%24, %c0_18, %c0_19], %27 {strides = array<i32>} : memref<16x128x128xf32, #tpu.memory_space<vmem>>, vector<1x128x128xf32>,
      %cst_20 = arith.constant dense<0.000000e+00> : vector<128xf32>
      %28 = vector.multi_reduction <add>, %21, %cst_20 [0] : vector<128x128xf32> to vector<128xf32>
      %29 = vector.shape_cast %28 : vector<128xf32> to vector<1x128xf32>
      %30 = arith.addf %15, %29 : vector<1x128xf32>
      %31 = arith.mulf %21, %21 : vector<128x128xf32>
      %cst_21 = arith.constant dense<0.000000e+00> : vector<128xf32>
      %32 = vector.multi_reduction <add>, %31, %cst_21 [0] : vector<128x128xf32> to vector<128xf32>
      %33 = vector.shape_cast %32 : vector<128xf32> to vector<1x128xf32>
      %34 = arith.addf %16, %33 : vector<1x128xf32>
      %c0_22 = arith.constant 0 : index
      %c128 = arith.constant 128 : index
      %c0_23 = arith.constant 0 : index
      %35 = vector.load %arg2[%c0_22, %c128, %c0_23] : memref<1x512x128xbf16, #tpu.memory_space<vmem>>, vector<1x128x128xbf16>
      %36 = vector.shape_cast %35 : vector<1x128x128xbf16> to vector<128x128xbf16>
      %cst_24 = arith.constant dense<0.000000e+00> : vector<128x128xf32>
      %37 = tpu.matmul %36, %11, %cst_24 {dimension_numbers = #tpu.dot_dimension_numbers<[1], [0], [0], [1], [0, 0, 1, 1], [], []>} : vector<128x128xbf16>, vector<128x128xbf16>, vector<128x128xf32> -> vector<128x128xf32>
      %38 = vector.broadcast %14 : vector<1x128xf32> to vector<128x128xf32>
      %39 = arith.addf %37, %38 : vector<128x128xf32>
      %c4_i32_25 = arith.constant 4 : i32
      %40 = arith.muli %arg1, %c4_i32_25 : i32
      %c1_i32_26 = arith.constant 1 : i32
      %41 = arith.addi %40, %c1_i32_26 : i32
      %42 = arith.index_cast %41 : i32 to index
      %c0_27 = arith.constant 0 : index
      %c0_28 = arith.constant 0 : index
      %43 = vector.load %arg9[%42, %c0_27, %c0_28] : memref<16x128x128xf32, #tpu.memory_space<vmem>>, vector<1x128x128xf32>
      %44 = vector.shape_cast %43 : vector<1x128x128xf32> to vector<128x128xf32>
      %45 = vector.shape_cast %39 : vector<128x128xf32> to vector<1x128x128xf32>
      tpu.vector_store %arg9[%42, %c0_27, %c0_28], %45 {strides = array<i32>} : memref<16x128x128xf32, #tpu.memory_space<vmem>>, vector<1x128x128xf32>,
      %cst_29 = arith.constant dense<0.000000e+00> : vector<128xf32>
      %46 = vector.multi_reduction <add>, %39, %cst_29 [0] : vector<128x128xf32> to vector<128xf32>
      %47 = vector.shape_cast %46 : vector<128xf32> to vector<1x128xf32>
      %48 = arith.addf %30, %47 : vector<1x128xf32>
      %49 = arith.mulf %39, %39 : vector<128x128xf32>
      %cst_30 = arith.constant dense<0.000000e+00> : vector<128xf32>
      %50 = vector.multi_reduction <add>, %49, %cst_30 [0] : vector<128x128xf32> to vector<128xf32>
      %51 = vector.shape_cast %50 : vector<128xf32> to vector<1x128xf32>
      %52 = arith.addf %34, %51 : vector<1x128xf32>
      %c0_31 = arith.constant 0 : index
      %c256 = arith.constant 256 : index
      %c0_32 = arith.constant 0 : index
      %53 = vector.load %arg2[%c0_31, %c256, %c0_32] : memref<1x512x128xbf16, #tpu.memory_space<vmem>>, vector<1x128x128xbf16>
      %54 = vector.shape_cast %53 : vector<1x128x128xbf16> to vector<128x128xbf16>
      %cst_33 = arith.constant dense<0.000000e+00> : vector<128x128xf32>
      %55 = tpu.matmul %54, %11, %cst_33 {dimension_numbers = #tpu.dot_dimension_numbers<[1], [0], [0], [1], [0, 0, 1, 1], [], []>} : vector<128x128xbf16>, vector<128x128xbf16>, vector<128x128xf32> -> vector<128x128xf32>
      %56 = vector.broadcast %14 : vector<1x128xf32> to vector<128x128xf32>
      %57 = arith.addf %55, %56 : vector<128x128xf32>
      %c4_i32_34 = arith.constant 4 : i32
      %58 = arith.muli %arg1, %c4_i32_34 : i32
      %c2_i32 = arith.constant 2 : i32
      %59 = arith.addi %58, %c2_i32 : i32
      %60 = arith.index_cast %59 : i32 to index
      %c0_35 = arith.constant 0 : index
      %c0_36 = arith.constant 0 : index
      %61 = vector.load %arg9[%60, %c0_35, %c0_36] : memref<16x128x128xf32, #tpu.memory_space<vmem>>, vector<1x128x128xf32>
      %62 = vector.shape_cast %61 : vector<1x128x128xf32> to vector<128x128xf32>
      %63 = vector.shape_cast %57 : vector<128x128xf32> to vector<1x128x128xf32>
      tpu.vector_store %arg9[%60, %c0_35, %c0_36], %63 {strides = array<i32>} : memref<16x128x128xf32, #tpu.memory_space<vmem>>, vector<1x128x128xf32>,
      %cst_37 = arith.constant dense<0.000000e+00> : vector<128xf32>
      %64 = vector.multi_reduction <add>, %57, %cst_37 [0] : vector<128x128xf32> to vector<128xf32>
      %65 = vector.shape_cast %64 : vector<128xf32> to vector<1x128xf32>
      %66 = arith.addf %48, %65 : vector<1x128xf32>
      %67 = arith.mulf %57, %57 : vector<128x128xf32>
      %cst_38 = arith.constant dense<0.000000e+00> : vector<128xf32>
      %68 = vector.multi_reduction <add>, %67, %cst_38 [0] : vector<128x128xf32> to vector<128xf32>
      %69 = vector.shape_cast %68 : vector<128xf32> to vector<1x128xf32>
      %70 = arith.addf %52, %69 : vector<1x128xf32>
      %c0_39 = arith.constant 0 : index
      %c384 = arith.constant 384 : index
      %c0_40 = arith.constant 0 : index
      %71 = vector.load %arg2[%c0_39, %c384, %c0_40] : memref<1x512x128xbf16, #tpu.memory_space<vmem>>, vector<1x128x128xbf16>
      %72 = vector.shape_cast %71 : vector<1x128x128xbf16> to vector<128x128xbf16>
      %cst_41 = arith.constant dense<0.000000e+00> : vector<128x128xf32>
      %73 = tpu.matmul %72, %11, %cst_41 {dimension_numbers = #tpu.dot_dimension_numbers<[1], [0], [0], [1], [0, 0, 1, 1], [], []>} : vector<128x128xbf16>, vector<128x128xbf16>, vector<128x128xf32> -> vector<128x128xf32>
      %74 = vector.broadcast %14 : vector<1x128xf32> to vector<128x128xf32>
      %75 = arith.addf %73, %74 : vector<128x128xf32>
      %c4_i32_42 = arith.constant 4 : i32
      %76 = arith.muli %arg1, %c4_i32_42 : i32
      %c3_i32 = arith.constant 3 : i32
      %77 = arith.addi %76, %c3_i32 : i32
      %78 = arith.index_cast %77 : i32 to index
      %c0_43 = arith.constant 0 : index
      %c0_44 = arith.constant 0 : index
      %79 = vector.load %arg9[%78, %c0_43, %c0_44] : memref<16x128x128xf32, #tpu.memory_space<vmem>>, vector<1x128x128xf32>
      %80 = vector.shape_cast %79 : vector<1x128x128xf32> to vector<128x128xf32>
      %81 = vector.shape_cast %75 : vector<128x128xf32> to vector<1x128x128xf32>
      tpu.vector_store %arg9[%78, %c0_43, %c0_44], %81 {strides = array<i32>} : memref<16x128x128xf32, #tpu.memory_space<vmem>>, vector<1x128x128xf32>,
      %cst_45 = arith.constant dense<0.000000e+00> : vector<128xf32>
      %82 = vector.multi_reduction <add>, %75, %cst_45 [0] : vector<128x128xf32> to vector<128xf32>
      %83 = vector.shape_cast %82 : vector<128xf32> to vector<1x128xf32>
      %84 = arith.addf %66, %83 : vector<1x128xf32>
      %85 = arith.mulf %75, %75 : vector<128x128xf32>
      %cst_46 = arith.constant dense<0.000000e+00> : vector<128xf32>
      %86 = vector.multi_reduction <add>, %85, %cst_46 [0] : vector<128x128xf32> to vector<128xf32>
      %87 = vector.shape_cast %86 : vector<128xf32> to vector<1x128xf32>
      %88 = arith.addf %70, %87 : vector<1x128xf32>
      %c0_47 = arith.constant 0 : index
      %c0_48 = arith.constant 0 : index
      %89 = vector.load %arg10[%c0_47, %c0_48] : memref<1x128xf32, #tpu.memory_space<vmem>>, vector<1x128xf32>
      %90 = arith.addf %89, %84 : vector<1x128xf32>
      %c0_49 = arith.constant 0 : index
      %c0_50 = arith.constant 0 : index
      %91 = vector.load %arg10[%c0_49, %c0_50] : memref<1x128xf32, #tpu.memory_space<vmem>>, vector<1x128xf32>
      tpu.vector_store %arg10[%c0_49, %c0_50], %90 {strides = array<i32>} : memref<1x128xf32, #tpu.memory_space<vmem>>, vector<1x128xf32>,
      %c0_51 = arith.constant 0 : index
      %c0_52 = arith.constant 0 : index
      %92 = vector.load %arg11[%c0_51, %c0_52] : memref<1x128xf32, #tpu.memory_space<vmem>>, vector<1x128xf32>
      %93 = arith.addf %92, %88 : vector<1x128xf32>
      %c0_53 = arith.constant 0 : index
      %c0_54 = arith.constant 0 : index
      %94 = vector.load %arg11[%c0_53, %c0_54] : memref<1x128xf32, #tpu.memory_space<vmem>>, vector<1x128xf32>
      tpu.vector_store %arg11[%c0_53, %c0_54], %93 {strides = array<i32>} : memref<1x128xf32, #tpu.memory_space<vmem>>, vector<1x128xf32>,
    } else {
    }
    %c1_i32 = arith.constant 1 : i32
    %4 = arith.cmpi eq, %arg0, %c1_i32 : i32
    %5 = arith.extui %4 : i1 to i32
    %c0_i32_2 = arith.constant 0 : i32
    %6 = arith.cmpi ne, %5, %c0_i32_2 : i32
    scf.if %6 {
      %c0_3 = arith.constant 0 : index
      %c0_4 = arith.constant 0 : index
      %7 = vector.load %arg10[%c0_3, %c0_4] : memref<1x128xf32, #tpu.memory_space<vmem>>, vector<1x128xf32>
      %cst = arith.constant dense<0.000000e+00> : vector<1x32xf32>
      %8 = tpu.matmul %7, %0, %cst {dimension_numbers = #tpu.dot_dimension_numbers<[1], [0], [0], [1], [0, 0, 1, 1], [], []>} : vector<1x128xf32>, vector<128x32xf32>, vector<1x32xf32> -> vector<1x32xf32>
      %c0_5 = arith.constant 0 : index
      %c0_6 = arith.constant 0 : index
      %9 = vector.load %arg11[%c0_5, %c0_6] : memref<1x128xf32, #tpu.memory_space<vmem>>, vector<1x128xf32>
      %cst_7 = arith.constant dense<0.000000e+00> : vector<1x32xf32>
      %10 = tpu.matmul %9, %0, %cst_7 {dimension_numbers = #tpu.dot_dimension_numbers<[1], [0], [0], [1], [0, 0, 1, 1], [], []>} : vector<1x128xf32>, vector<128x32xf32>, vector<1x32xf32> -> vector<1x32xf32>
      %cst_8 = arith.constant 1.22070313E-4 : f32
      %11 = vector.broadcast %cst_8 : f32 to vector<1x32xf32>
      %12 = arith.mulf %8, %11 : vector<1x32xf32>
      %cst_9 = arith.constant 1.22070313E-4 : f32
      %13 = vector.broadcast %cst_9 : f32 to vector<1x32xf32>
      %14 = arith.mulf %10, %13 : vector<1x32xf32>
      %15 = arith.mulf %12, %12 : vector<1x32xf32>
      %16 = arith.subf %14, %15 : vector<1x32xf32>
      %cst_10 = arith.constant 0.000000e+00 : f32
      %17 = vector.broadcast %cst_10 : f32 to vector<1x32xf32>
      %18 = arith.maximumf %16, %17 : vector<1x32xf32>
      %cst_11 = arith.constant 9.99999974E-6 : f32
      %19 = vector.broadcast %cst_11 : f32 to vector<1x32xf32>
      %20 = arith.addf %18, %19 : vector<1x32xf32>
      %21 = math.rsqrt %20 : vector<1x32xf32>
      %c0_12 = arith.constant 0 : index
      %c0_13 = arith.constant 0 : index
      %c0_14 = arith.constant 0 : index
      %22 = vector.load %arg6[%c0_12, %c0_13, %c0_14] : memref<1x1x32xf32, #tpu.memory_space<vmem>>, vector<1x1x32xf32>
      %23 = vector.shape_cast %22 : vector<1x1x32xf32> to vector<1x32xf32>
      %24 = arith.mulf %21, %23 : vector<1x32xf32>
      %c0_15 = arith.constant 0 : index
      %c0_16 = arith.constant 0 : index
      %c0_17 = arith.constant 0 : index
      %25 = vector.load %arg7[%c0_15, %c0_16, %c0_17] : memref<1x1x32xf32, #tpu.memory_space<vmem>>, vector<1x1x32xf32>
      %26 = vector.shape_cast %25 : vector<1x1x32xf32> to vector<1x32xf32>
      %27 = arith.mulf %12, %24 : vector<1x32xf32>
      %28 = arith.subf %26, %27 : vector<1x32xf32>
      %cst_18 = arith.constant dense<0.000000e+00> : vector<1x128xf32>
      %29 = tpu.matmul %24, %0, %cst_18 {dimension_numbers = #tpu.dot_dimension_numbers<[1], [1], [0], [0], [0, 0, 1, 0], [], []>} : vector<1x32xf32>, vector<128x32xf32>, vector<1x128xf32> -> vector<1x128xf32>
      %cst_19 = arith.constant dense<0.000000e+00> : vector<1x128xf32>
      %30 = tpu.matmul %28, %0, %cst_19 {dimension_numbers = #tpu.dot_dimension_numbers<[1], [1], [0], [0], [0, 0, 1, 0], [], []>} : vector<1x32xf32>, vector<128x32xf32>, vector<1x128xf32> -> vector<1x128xf32>
      %c4_i32 = arith.constant 4 : i32
      %31 = arith.muli %arg1, %c4_i32 : i32
      %c0_i32_20 = arith.constant 0 : i32
      %32 = arith.addi %31, %c0_i32_20 : i32
      %33 = arith.index_cast %32 : i32 to index
      %c0_21 = arith.constant 0 : index
      %c0_22 = arith.constant 0 : index
      %34 = vector.load %arg9[%33, %c0_21, %c0_22] : memref<16x128x128xf32, #tpu.memory_space<vmem>>, vector<1x128x128xf32>
      %35 = vector.shape_cast %34 : vector<1x128x128xf32> to vector<128x128xf32>
      %36 = vector.broadcast %29 : vector<1x128xf32> to vector<128x128xf32>
      %37 = arith.mulf %35, %36 : vector<128x128xf32>
      %38 = vector.broadcast %30 : vector<1x128xf32> to vector<128x128xf32>
      %39 = arith.addf %37, %38 : vector<128x128xf32>
      %cst_23 = arith.constant 0.000000e+00 : f32
      %40 = vector.broadcast %cst_23 : f32 to vector<128x128xf32>
      %41 = arith.maximumf %39, %40 : vector<128x128xf32>
      %c4_i32_24 = arith.constant 4 : i32
      %42 = arith.muli %arg1, %c4_i32_24 : i32
      %c1_i32_25 = arith.constant 1 : i32
      %43 = arith.addi %42, %c1_i32_25 : i32
      %44 = arith.index_cast %43 : i32 to index
      %c0_26 = arith.constant 0 : index
      %c0_27 = arith.constant 0 : index
      %45 = vector.load %arg9[%44, %c0_26, %c0_27] : memref<16x128x128xf32, #tpu.memory_space<vmem>>, vector<1x128x128xf32>
      %46 = vector.shape_cast %45 : vector<1x128x128xf32> to vector<128x128xf32>
      %47 = vector.broadcast %29 : vector<1x128xf32> to vector<128x128xf32>
      %48 = arith.mulf %46, %47 : vector<128x128xf32>
      %49 = vector.broadcast %30 : vector<1x128xf32> to vector<128x128xf32>
      %50 = arith.addf %48, %49 : vector<128x128xf32>
      %cst_28 = arith.constant 0.000000e+00 : f32
      %51 = vector.broadcast %cst_28 : f32 to vector<128x128xf32>
      %52 = arith.maximumf %50, %51 : vector<128x128xf32>
      %53 = arith.maximumf %41, %52 : vector<128x128xf32>
      %c4_i32_29 = arith.constant 4 : i32
      %54 = arith.muli %arg1, %c4_i32_29 : i32
      %c2_i32 = arith.constant 2 : i32
      %55 = arith.addi %54, %c2_i32 : i32
      %56 = arith.index_cast %55 : i32 to index
      %c0_30 = arith.constant 0 : index
      %c0_31 = arith.constant 0 : index
      %57 = vector.load %arg9[%56, %c0_30, %c0_31] : memref<16x128x128xf32, #tpu.memory_space<vmem>>, vector<1x128x128xf32>
      %58 = vector.shape_cast %57 : vector<1x128x128xf32> to vector<128x128xf32>
      %59 = vector.broadcast %29 : vector<1x128xf32> to vector<128x128xf32>
      %60 = arith.mulf %58, %59 : vector<128x128xf32>
      %61 = vector.broadcast %30 : vector<1x128xf32> to vector<128x128xf32>
      %62 = arith.addf %60, %61 : vector<128x128xf32>
      %cst_32 = arith.constant 0.000000e+00 : f32
      %63 = vector.broadcast %cst_32 : f32 to vector<128x128xf32>
      %64 = arith.maximumf %62, %63 : vector<128x128xf32>
      %65 = arith.maximumf %53, %64 : vector<128x128xf32>
      %c4_i32_33 = arith.constant 4 : i32
      %66 = arith.muli %arg1, %c4_i32_33 : i32
      %c3_i32 = arith.constant 3 : i32
      %67 = arith.addi %66, %c3_i32 : i32
      %68 = arith.index_cast %67 : i32 to index
      %c0_34 = arith.constant 0 : index
      %c0_35 = arith.constant 0 : index
      %69 = vector.load %arg9[%68, %c0_34, %c0_35] : memref<16x128x128xf32, #tpu.memory_space<vmem>>, vector<1x128x128xf32>
      %70 = vector.shape_cast %69 : vector<1x128x128xf32> to vector<128x128xf32>
      %71 = vector.broadcast %29 : vector<1x128xf32> to vector<128x128xf32>
      %72 = arith.mulf %70, %71 : vector<128x128xf32>
      %73 = vector.broadcast %30 : vector<1x128xf32> to vector<128x128xf32>
      %74 = arith.addf %72, %73 : vector<128x128xf32>
      %cst_36 = arith.constant 0.000000e+00 : f32
      %75 = vector.broadcast %cst_36 : f32 to vector<128x128xf32>
      %76 = arith.maximumf %74, %75 : vector<128x128xf32>
      %77 = arith.maximumf %65, %76 : vector<128x128xf32>
      %78 = arith.truncf %77 : vector<128x128xf32> to vector<128x128xbf16>
      %c0_37 = arith.constant 0 : index
      %c0_38 = arith.constant 0 : index
      %c0_39 = arith.constant 0 : index
      %79 = vector.load %arg8[%c0_37, %c0_38, %c0_39] : memref<1x128x128xbf16, #tpu.memory_space<vmem>>, vector<1x128x128xbf16>
      %80 = vector.shape_cast %79 : vector<1x128x128xbf16> to vector<128x128xbf16>
      %81 = vector.shape_cast %78 : vector<128x128xbf16> to vector<1x128x128xbf16>
      tpu.vector_store %arg8[%c0_37, %c0_38, %c0_39], %81 {strides = array<i32>} : memref<1x128x128xbf16, #tpu.memory_space<vmem>>, vector<1x128x128xbf16>,
    } else {
    }
    return
  }
  func.func @transform_0(%arg0: i32, %arg1: i32) -> (i32, i32, i32) {
    %c1_i32 = arith.constant 1 : i32
    %0 = arith.subi %c1_i32, %arg0 : i32
    %1 = arith.muli %arg1, %0 : i32
    %c3_i32 = arith.constant 3 : i32
    %2 = arith.muli %c3_i32, %arg0 : i32
    %3 = arith.addi %1, %2 : i32
    %c0_i32 = arith.constant 0 : i32
    %c0_i32_0 = arith.constant 0 : i32
    %c0_i32_1 = arith.constant 0 : i32
    return %3, %c0_i32, %c0_i32_0 : i32, i32, i32
  }
  func.func @transform_1(%arg0: i32, %arg1: i32) -> (i32, i32, i32) {
    %c0_i32 = arith.constant 0 : i32
    %c0_i32_0 = arith.constant 0 : i32
    %c0_i32_1 = arith.constant 0 : i32
    return %arg1, %c0_i32, %c0_i32_0 : i32, i32, i32
  }
  func.func @transform_2(%arg0: i32, %arg1: i32) -> (i32, i32) {
    %c0_i32 = arith.constant 0 : i32
    %c0_i32_0 = arith.constant 0 : i32
    %c0_i32_1 = arith.constant 0 : i32
    return %c0_i32, %c0_i32_0 : i32, i32
  }
  func.func @transform_3(%arg0: i32, %arg1: i32) -> (i32, i32, i32) {
    %c0_i32 = arith.constant 0 : i32
    %c0_i32_0 = arith.constant 0 : i32
    %c0_i32_1 = arith.constant 0 : i32
    return %arg1, %c0_i32, %c0_i32_0 : i32, i32, i32
  }
  func.func @transform_4(%arg0: i32, %arg1: i32) -> (i32, i32, i32) {
    %c0_i32 = arith.constant 0 : i32
    %c0_i32_0 = arith.constant 0 : i32
    %c0_i32_1 = arith.constant 0 : i32
    return %arg1, %c0_i32, %c0_i32_0 : i32, i32, i32
  }
  func.func @transform_5(%arg0: i32, %arg1: i32) -> (i32, i32, i32) {
    %c0_i32 = arith.constant 0 : i32
    %c0_i32_0 = arith.constant 0 : i32
    %c0_i32_1 = arith.constant 0 : i32
    return %arg1, %c0_i32, %c0_i32_0 : i32, i32, i32
  }
  func.func @transform_6(%arg0: i32, %arg1: i32) -> (i32, i32, i32) {
    %0 = arith.muli %arg1, %arg0 : i32
    %c0_i32 = arith.constant 0 : i32
    %c0_i32_0 = arith.constant 0 : i32
    %c0_i32_1 = arith.constant 0 : i32
    return %0, %c0_i32, %c0_i32_0 : i32, i32, i32
  }
}

module attributes {stable_mosaic.version = 11 : i64} {
  func.func @_conv_block_kernel(%arg0: i32, %arg1: i32, %arg2: memref<1x256x576xbf16, #tpu.memory_space<vmem>>, %arg3: memref<1x576x128xbf16, #tpu.memory_space<vmem>>, %arg4: memref<128x64xf32, #tpu.memory_space<vmem>>, %arg5: memref<1x1x64xf32, #tpu.memory_space<vmem>>, %arg6: memref<1x1x64xf32, #tpu.memory_space<vmem>>, %arg7: memref<1x1x64xf32, #tpu.memory_space<vmem>>, %arg8: memref<1x64x128xbf16, #tpu.memory_space<vmem>>, %arg9: memref<16x64x128xf32, #tpu.memory_space<vmem>>, %arg10: memref<1x128xf32, #tpu.memory_space<vmem>>, %arg11: memref<1x128xf32, #tpu.memory_space<vmem>>) attributes {dimension_semantics = [#tpu.dimension_semantics<arbitrary>, #tpu.dimension_semantics<arbitrary>], iteration_bounds = array<i64: 2, 4>, scalar_prefetch = 0 : i64, scratch_operands = 3 : i64, tpu.core_type = #tpu.core_type<tc>, window_params = [{transform_indices = @transform_0, window_bounds = array<i64: 1, 256, 576>}, {transform_indices = @transform_1, window_bounds = array<i64: 1, 576, 128>}, {pipeline_mode = #tpu.pipeline_mode<synchronous>, transform_indices = @transform_2, window_bounds = array<i64: 128, 64>}, {transform_indices = @transform_3, window_bounds = array<i64: 1, 1, 64>}, {transform_indices = @transform_4, window_bounds = array<i64: 1, 1, 64>}, {transform_indices = @transform_5, window_bounds = array<i64: 1, 1, 64>}, {transform_indices = @transform_6, window_bounds = array<i64: 1, 64, 128>}]} {
    %c0 = arith.constant 0 : index
    %c0_0 = arith.constant 0 : index
    %0 = vector.load %arg4[%c0, %c0_0] : memref<128x64xf32, #tpu.memory_space<vmem>>, vector<128x64xf32>
    %c0_i32 = arith.constant 0 : i32
    %1 = arith.cmpi eq, %arg0, %c0_i32 : i32
    %2 = arith.extui %1 : i1 to i32
    %c0_i32_1 = arith.constant 0 : i32
    %3 = arith.cmpi ne, %2, %c0_i32_1 : i32
    scf.if %3 {
      %c0_i32_3 = arith.constant 0 : i32
      %7 = arith.cmpi eq, %arg1, %c0_i32_3 : i32
      %8 = arith.extui %7 : i1 to i32
      %c0_i32_4 = arith.constant 0 : i32
      %9 = arith.cmpi ne, %8, %c0_i32_4 : i32
      scf.if %9 {
        %cst_55 = arith.constant 0.000000e+00 : f32
        %95 = vector.broadcast %cst_55 : f32 to vector<1x128xf32>
        %c0_56 = arith.constant 0 : index
        %c0_57 = arith.constant 0 : index
        %96 = vector.load %arg10[%c0_56, %c0_57] : memref<1x128xf32, #tpu.memory_space<vmem>>, vector<1x128xf32>
        tpu.vector_store %arg10[%c0_56, %c0_57], %95 {strides = array<i32>} : memref<1x128xf32, #tpu.memory_space<vmem>>, vector<1x128xf32>,
        %cst_58 = arith.constant 0.000000e+00 : f32
        %97 = vector.broadcast %cst_58 : f32 to vector<1x128xf32>
        %c0_59 = arith.constant 0 : index
        %c0_60 = arith.constant 0 : index
        %98 = vector.load %arg11[%c0_59, %c0_60] : memref<1x128xf32, #tpu.memory_space<vmem>>, vector<1x128xf32>
        tpu.vector_store %arg11[%c0_59, %c0_60], %97 {strides = array<i32>} : memref<1x128xf32, #tpu.memory_space<vmem>>, vector<1x128xf32>,
      } else {
      }
      %c0_5 = arith.constant 0 : index
      %c0_6 = arith.constant 0 : index
      %c0_7 = arith.constant 0 : index
      %10 = vector.load %arg3[%c0_5, %c0_6, %c0_7] : memref<1x576x128xbf16, #tpu.memory_space<vmem>>, vector<1x576x128xbf16>
      %11 = vector.shape_cast %10 : vector<1x576x128xbf16> to vector<576x128xbf16>
      %c0_8 = arith.constant 0 : index
      %c0_9 = arith.constant 0 : index
      %c0_10 = arith.constant 0 : index
      %12 = vector.load %arg5[%c0_8, %c0_9, %c0_10] : memref<1x1x64xf32, #tpu.memory_space<vmem>>, vector<1x1x64xf32>
      %13 = vector.shape_cast %12 : vector<1x1x64xf32> to vector<1x64xf32>
      %cst = arith.constant dense<0.000000e+00> : vector<1x128xf32>
      %14 = tpu.matmul %13, %0, %cst {dimension_numbers = #tpu.dot_dimension_numbers<[1], [1], [0], [0], [0, 0, 1, 0], [], []>} : vector<1x64xf32>, vector<128x64xf32>, vector<1x128xf32> -> vector<1x128xf32>
      %cst_11 = arith.constant 0.000000e+00 : f32
      %15 = vector.broadcast %cst_11 : f32 to vector<1x128xf32>
      %cst_12 = arith.constant 0.000000e+00 : f32
      %16 = vector.broadcast %cst_12 : f32 to vector<1x128xf32>
      %c0_13 = arith.constant 0 : index
      %c0_14 = arith.constant 0 : index
      %c0_15 = arith.constant 0 : index
      %17 = vector.load %arg2[%c0_13, %c0_14, %c0_15] : memref<1x256x576xbf16, #tpu.memory_space<vmem>>, vector<1x64x576xbf16>
      %18 = vector.shape_cast %17 : vector<1x64x576xbf16> to vector<64x576xbf16>
      %cst_16 = arith.constant dense<0.000000e+00> : vector<64x128xf32>
      %19 = tpu.matmul %18, %11, %cst_16 {dimension_numbers = #tpu.dot_dimension_numbers<[1], [0], [0], [1], [0, 0, 1, 1], [], []>} : vector<64x576xbf16>, vector<576x128xbf16>, vector<64x128xf32> -> vector<64x128xf32>
      %20 = vector.broadcast %14 : vector<1x128xf32> to vector<64x128xf32>
      %21 = arith.addf %19, %20 : vector<64x128xf32>
      %c4_i32 = arith.constant 4 : i32
      %22 = arith.muli %arg1, %c4_i32 : i32
      %c0_i32_17 = arith.constant 0 : i32
      %23 = arith.addi %22, %c0_i32_17 : i32
      %24 = arith.index_cast %23 : i32 to index
      %c0_18 = arith.constant 0 : index
      %c0_19 = arith.constant 0 : index
      %25 = vector.load %arg9[%24, %c0_18, %c0_19] : memref<16x64x128xf32, #tpu.memory_space<vmem>>, vector<1x64x128xf32>
      %26 = vector.shape_cast %25 : vector<1x64x128xf32> to vector<64x128xf32>
      %27 = vector.shape_cast %21 : vector<64x128xf32> to vector<1x64x128xf32>
      tpu.vector_store %arg9[%24, %c0_18, %c0_19], %27 {strides = array<i32>} : memref<16x64x128xf32, #tpu.memory_space<vmem>>, vector<1x64x128xf32>,
      %cst_20 = arith.constant dense<0.000000e+00> : vector<128xf32>
      %28 = vector.multi_reduction <add>, %21, %cst_20 [0] : vector<64x128xf32> to vector<128xf32>
      %29 = vector.shape_cast %28 : vector<128xf32> to vector<1x128xf32>
      %30 = arith.addf %15, %29 : vector<1x128xf32>
      %31 = arith.mulf %21, %21 : vector<64x128xf32>
      %cst_21 = arith.constant dense<0.000000e+00> : vector<128xf32>
      %32 = vector.multi_reduction <add>, %31, %cst_21 [0] : vector<64x128xf32> to vector<128xf32>
      %33 = vector.shape_cast %32 : vector<128xf32> to vector<1x128xf32>
      %34 = arith.addf %16, %33 : vector<1x128xf32>
      %c0_22 = arith.constant 0 : index
      %c64 = arith.constant 64 : index
      %c0_23 = arith.constant 0 : index
      %35 = vector.load %arg2[%c0_22, %c64, %c0_23] : memref<1x256x576xbf16, #tpu.memory_space<vmem>>, vector<1x64x576xbf16>
      %36 = vector.shape_cast %35 : vector<1x64x576xbf16> to vector<64x576xbf16>
      %cst_24 = arith.constant dense<0.000000e+00> : vector<64x128xf32>
      %37 = tpu.matmul %36, %11, %cst_24 {dimension_numbers = #tpu.dot_dimension_numbers<[1], [0], [0], [1], [0, 0, 1, 1], [], []>} : vector<64x576xbf16>, vector<576x128xbf16>, vector<64x128xf32> -> vector<64x128xf32>
      %38 = vector.broadcast %14 : vector<1x128xf32> to vector<64x128xf32>
      %39 = arith.addf %37, %38 : vector<64x128xf32>
      %c4_i32_25 = arith.constant 4 : i32
      %40 = arith.muli %arg1, %c4_i32_25 : i32
      %c1_i32_26 = arith.constant 1 : i32
      %41 = arith.addi %40, %c1_i32_26 : i32
      %42 = arith.index_cast %41 : i32 to index
      %c0_27 = arith.constant 0 : index
      %c0_28 = arith.constant 0 : index
      %43 = vector.load %arg9[%42, %c0_27, %c0_28] : memref<16x64x128xf32, #tpu.memory_space<vmem>>, vector<1x64x128xf32>
      %44 = vector.shape_cast %43 : vector<1x64x128xf32> to vector<64x128xf32>
      %45 = vector.shape_cast %39 : vector<64x128xf32> to vector<1x64x128xf32>
      tpu.vector_store %arg9[%42, %c0_27, %c0_28], %45 {strides = array<i32>} : memref<16x64x128xf32, #tpu.memory_space<vmem>>, vector<1x64x128xf32>,
      %cst_29 = arith.constant dense<0.000000e+00> : vector<128xf32>
      %46 = vector.multi_reduction <add>, %39, %cst_29 [0] : vector<64x128xf32> to vector<128xf32>
      %47 = vector.shape_cast %46 : vector<128xf32> to vector<1x128xf32>
      %48 = arith.addf %30, %47 : vector<1x128xf32>
      %49 = arith.mulf %39, %39 : vector<64x128xf32>
      %cst_30 = arith.constant dense<0.000000e+00> : vector<128xf32>
      %50 = vector.multi_reduction <add>, %49, %cst_30 [0] : vector<64x128xf32> to vector<128xf32>
      %51 = vector.shape_cast %50 : vector<128xf32> to vector<1x128xf32>
      %52 = arith.addf %34, %51 : vector<1x128xf32>
      %c0_31 = arith.constant 0 : index
      %c128 = arith.constant 128 : index
      %c0_32 = arith.constant 0 : index
      %53 = vector.load %arg2[%c0_31, %c128, %c0_32] : memref<1x256x576xbf16, #tpu.memory_space<vmem>>, vector<1x64x576xbf16>
      %54 = vector.shape_cast %53 : vector<1x64x576xbf16> to vector<64x576xbf16>
      %cst_33 = arith.constant dense<0.000000e+00> : vector<64x128xf32>
      %55 = tpu.matmul %54, %11, %cst_33 {dimension_numbers = #tpu.dot_dimension_numbers<[1], [0], [0], [1], [0, 0, 1, 1], [], []>} : vector<64x576xbf16>, vector<576x128xbf16>, vector<64x128xf32> -> vector<64x128xf32>
      %56 = vector.broadcast %14 : vector<1x128xf32> to vector<64x128xf32>
      %57 = arith.addf %55, %56 : vector<64x128xf32>
      %c4_i32_34 = arith.constant 4 : i32
      %58 = arith.muli %arg1, %c4_i32_34 : i32
      %c2_i32 = arith.constant 2 : i32
      %59 = arith.addi %58, %c2_i32 : i32
      %60 = arith.index_cast %59 : i32 to index
      %c0_35 = arith.constant 0 : index
      %c0_36 = arith.constant 0 : index
      %61 = vector.load %arg9[%60, %c0_35, %c0_36] : memref<16x64x128xf32, #tpu.memory_space<vmem>>, vector<1x64x128xf32>
      %62 = vector.shape_cast %61 : vector<1x64x128xf32> to vector<64x128xf32>
      %63 = vector.shape_cast %57 : vector<64x128xf32> to vector<1x64x128xf32>
      tpu.vector_store %arg9[%60, %c0_35, %c0_36], %63 {strides = array<i32>} : memref<16x64x128xf32, #tpu.memory_space<vmem>>, vector<1x64x128xf32>,
      %cst_37 = arith.constant dense<0.000000e+00> : vector<128xf32>
      %64 = vector.multi_reduction <add>, %57, %cst_37 [0] : vector<64x128xf32> to vector<128xf32>
      %65 = vector.shape_cast %64 : vector<128xf32> to vector<1x128xf32>
      %66 = arith.addf %48, %65 : vector<1x128xf32>
      %67 = arith.mulf %57, %57 : vector<64x128xf32>
      %cst_38 = arith.constant dense<0.000000e+00> : vector<128xf32>
      %68 = vector.multi_reduction <add>, %67, %cst_38 [0] : vector<64x128xf32> to vector<128xf32>
      %69 = vector.shape_cast %68 : vector<128xf32> to vector<1x128xf32>
      %70 = arith.addf %52, %69 : vector<1x128xf32>
      %c0_39 = arith.constant 0 : index
      %c192 = arith.constant 192 : index
      %c0_40 = arith.constant 0 : index
      %71 = vector.load %arg2[%c0_39, %c192, %c0_40] : memref<1x256x576xbf16, #tpu.memory_space<vmem>>, vector<1x64x576xbf16>
      %72 = vector.shape_cast %71 : vector<1x64x576xbf16> to vector<64x576xbf16>
      %cst_41 = arith.constant dense<0.000000e+00> : vector<64x128xf32>
      %73 = tpu.matmul %72, %11, %cst_41 {dimension_numbers = #tpu.dot_dimension_numbers<[1], [0], [0], [1], [0, 0, 1, 1], [], []>} : vector<64x576xbf16>, vector<576x128xbf16>, vector<64x128xf32> -> vector<64x128xf32>
      %74 = vector.broadcast %14 : vector<1x128xf32> to vector<64x128xf32>
      %75 = arith.addf %73, %74 : vector<64x128xf32>
      %c4_i32_42 = arith.constant 4 : i32
      %76 = arith.muli %arg1, %c4_i32_42 : i32
      %c3_i32 = arith.constant 3 : i32
      %77 = arith.addi %76, %c3_i32 : i32
      %78 = arith.index_cast %77 : i32 to index
      %c0_43 = arith.constant 0 : index
      %c0_44 = arith.constant 0 : index
      %79 = vector.load %arg9[%78, %c0_43, %c0_44] : memref<16x64x128xf32, #tpu.memory_space<vmem>>, vector<1x64x128xf32>
      %80 = vector.shape_cast %79 : vector<1x64x128xf32> to vector<64x128xf32>
      %81 = vector.shape_cast %75 : vector<64x128xf32> to vector<1x64x128xf32>
      tpu.vector_store %arg9[%78, %c0_43, %c0_44], %81 {strides = array<i32>} : memref<16x64x128xf32, #tpu.memory_space<vmem>>, vector<1x64x128xf32>,
      %cst_45 = arith.constant dense<0.000000e+00> : vector<128xf32>
      %82 = vector.multi_reduction <add>, %75, %cst_45 [0] : vector<64x128xf32> to vector<128xf32>
      %83 = vector.shape_cast %82 : vector<128xf32> to vector<1x128xf32>
      %84 = arith.addf %66, %83 : vector<1x128xf32>
      %85 = arith.mulf %75, %75 : vector<64x128xf32>
      %cst_46 = arith.constant dense<0.000000e+00> : vector<128xf32>
      %86 = vector.multi_reduction <add>, %85, %cst_46 [0] : vector<64x128xf32> to vector<128xf32>
      %87 = vector.shape_cast %86 : vector<128xf32> to vector<1x128xf32>
      %88 = arith.addf %70, %87 : vector<1x128xf32>
      %c0_47 = arith.constant 0 : index
      %c0_48 = arith.constant 0 : index
      %89 = vector.load %arg10[%c0_47, %c0_48] : memref<1x128xf32, #tpu.memory_space<vmem>>, vector<1x128xf32>
      %90 = arith.addf %89, %84 : vector<1x128xf32>
      %c0_49 = arith.constant 0 : index
      %c0_50 = arith.constant 0 : index
      %91 = vector.load %arg10[%c0_49, %c0_50] : memref<1x128xf32, #tpu.memory_space<vmem>>, vector<1x128xf32>
      tpu.vector_store %arg10[%c0_49, %c0_50], %90 {strides = array<i32>} : memref<1x128xf32, #tpu.memory_space<vmem>>, vector<1x128xf32>,
      %c0_51 = arith.constant 0 : index
      %c0_52 = arith.constant 0 : index
      %92 = vector.load %arg11[%c0_51, %c0_52] : memref<1x128xf32, #tpu.memory_space<vmem>>, vector<1x128xf32>
      %93 = arith.addf %92, %88 : vector<1x128xf32>
      %c0_53 = arith.constant 0 : index
      %c0_54 = arith.constant 0 : index
      %94 = vector.load %arg11[%c0_53, %c0_54] : memref<1x128xf32, #tpu.memory_space<vmem>>, vector<1x128xf32>
      tpu.vector_store %arg11[%c0_53, %c0_54], %93 {strides = array<i32>} : memref<1x128xf32, #tpu.memory_space<vmem>>, vector<1x128xf32>,
    } else {
    }
    %c1_i32 = arith.constant 1 : i32
    %4 = arith.cmpi eq, %arg0, %c1_i32 : i32
    %5 = arith.extui %4 : i1 to i32
    %c0_i32_2 = arith.constant 0 : i32
    %6 = arith.cmpi ne, %5, %c0_i32_2 : i32
    scf.if %6 {
      %c0_3 = arith.constant 0 : index
      %c0_4 = arith.constant 0 : index
      %7 = vector.load %arg10[%c0_3, %c0_4] : memref<1x128xf32, #tpu.memory_space<vmem>>, vector<1x128xf32>
      %cst = arith.constant dense<0.000000e+00> : vector<1x64xf32>
      %8 = tpu.matmul %7, %0, %cst {dimension_numbers = #tpu.dot_dimension_numbers<[1], [0], [0], [1], [0, 0, 1, 1], [], []>} : vector<1x128xf32>, vector<128x64xf32>, vector<1x64xf32> -> vector<1x64xf32>
      %c0_5 = arith.constant 0 : index
      %c0_6 = arith.constant 0 : index
      %9 = vector.load %arg11[%c0_5, %c0_6] : memref<1x128xf32, #tpu.memory_space<vmem>>, vector<1x128xf32>
      %cst_7 = arith.constant dense<0.000000e+00> : vector<1x64xf32>
      %10 = tpu.matmul %9, %0, %cst_7 {dimension_numbers = #tpu.dot_dimension_numbers<[1], [0], [0], [1], [0, 0, 1, 1], [], []>} : vector<1x128xf32>, vector<128x64xf32>, vector<1x64xf32> -> vector<1x64xf32>
      %cst_8 = arith.constant 4.8828125E-4 : f32
      %11 = vector.broadcast %cst_8 : f32 to vector<1x64xf32>
      %12 = arith.mulf %8, %11 : vector<1x64xf32>
      %cst_9 = arith.constant 4.8828125E-4 : f32
      %13 = vector.broadcast %cst_9 : f32 to vector<1x64xf32>
      %14 = arith.mulf %10, %13 : vector<1x64xf32>
      %15 = arith.mulf %12, %12 : vector<1x64xf32>
      %16 = arith.subf %14, %15 : vector<1x64xf32>
      %cst_10 = arith.constant 0.000000e+00 : f32
      %17 = vector.broadcast %cst_10 : f32 to vector<1x64xf32>
      %18 = arith.maximumf %16, %17 : vector<1x64xf32>
      %cst_11 = arith.constant 9.99999974E-6 : f32
      %19 = vector.broadcast %cst_11 : f32 to vector<1x64xf32>
      %20 = arith.addf %18, %19 : vector<1x64xf32>
      %21 = math.rsqrt %20 : vector<1x64xf32>
      %c0_12 = arith.constant 0 : index
      %c0_13 = arith.constant 0 : index
      %c0_14 = arith.constant 0 : index
      %22 = vector.load %arg6[%c0_12, %c0_13, %c0_14] : memref<1x1x64xf32, #tpu.memory_space<vmem>>, vector<1x1x64xf32>
      %23 = vector.shape_cast %22 : vector<1x1x64xf32> to vector<1x64xf32>
      %24 = arith.mulf %21, %23 : vector<1x64xf32>
      %c0_15 = arith.constant 0 : index
      %c0_16 = arith.constant 0 : index
      %c0_17 = arith.constant 0 : index
      %25 = vector.load %arg7[%c0_15, %c0_16, %c0_17] : memref<1x1x64xf32, #tpu.memory_space<vmem>>, vector<1x1x64xf32>
      %26 = vector.shape_cast %25 : vector<1x1x64xf32> to vector<1x64xf32>
      %27 = arith.mulf %12, %24 : vector<1x64xf32>
      %28 = arith.subf %26, %27 : vector<1x64xf32>
      %cst_18 = arith.constant dense<0.000000e+00> : vector<1x128xf32>
      %29 = tpu.matmul %24, %0, %cst_18 {dimension_numbers = #tpu.dot_dimension_numbers<[1], [1], [0], [0], [0, 0, 1, 0], [], []>} : vector<1x64xf32>, vector<128x64xf32>, vector<1x128xf32> -> vector<1x128xf32>
      %cst_19 = arith.constant dense<0.000000e+00> : vector<1x128xf32>
      %30 = tpu.matmul %28, %0, %cst_19 {dimension_numbers = #tpu.dot_dimension_numbers<[1], [1], [0], [0], [0, 0, 1, 0], [], []>} : vector<1x64xf32>, vector<128x64xf32>, vector<1x128xf32> -> vector<1x128xf32>
      %c4_i32 = arith.constant 4 : i32
      %31 = arith.muli %arg1, %c4_i32 : i32
      %c0_i32_20 = arith.constant 0 : i32
      %32 = arith.addi %31, %c0_i32_20 : i32
      %33 = arith.index_cast %32 : i32 to index
      %c0_21 = arith.constant 0 : index
      %c0_22 = arith.constant 0 : index
      %34 = vector.load %arg9[%33, %c0_21, %c0_22] : memref<16x64x128xf32, #tpu.memory_space<vmem>>, vector<1x64x128xf32>
      %35 = vector.shape_cast %34 : vector<1x64x128xf32> to vector<64x128xf32>
      %36 = vector.broadcast %29 : vector<1x128xf32> to vector<64x128xf32>
      %37 = arith.mulf %35, %36 : vector<64x128xf32>
      %38 = vector.broadcast %30 : vector<1x128xf32> to vector<64x128xf32>
      %39 = arith.addf %37, %38 : vector<64x128xf32>
      %cst_23 = arith.constant 0.000000e+00 : f32
      %40 = vector.broadcast %cst_23 : f32 to vector<64x128xf32>
      %41 = arith.maximumf %39, %40 : vector<64x128xf32>
      %c4_i32_24 = arith.constant 4 : i32
      %42 = arith.muli %arg1, %c4_i32_24 : i32
      %c1_i32_25 = arith.constant 1 : i32
      %43 = arith.addi %42, %c1_i32_25 : i32
      %44 = arith.index_cast %43 : i32 to index
      %c0_26 = arith.constant 0 : index
      %c0_27 = arith.constant 0 : index
      %45 = vector.load %arg9[%44, %c0_26, %c0_27] : memref<16x64x128xf32, #tpu.memory_space<vmem>>, vector<1x64x128xf32>
      %46 = vector.shape_cast %45 : vector<1x64x128xf32> to vector<64x128xf32>
      %47 = vector.broadcast %29 : vector<1x128xf32> to vector<64x128xf32>
      %48 = arith.mulf %46, %47 : vector<64x128xf32>
      %49 = vector.broadcast %30 : vector<1x128xf32> to vector<64x128xf32>
      %50 = arith.addf %48, %49 : vector<64x128xf32>
      %cst_28 = arith.constant 0.000000e+00 : f32
      %51 = vector.broadcast %cst_28 : f32 to vector<64x128xf32>
      %52 = arith.maximumf %50, %51 : vector<64x128xf32>
      %53 = arith.maximumf %41, %52 : vector<64x128xf32>
      %c4_i32_29 = arith.constant 4 : i32
      %54 = arith.muli %arg1, %c4_i32_29 : i32
      %c2_i32 = arith.constant 2 : i32
      %55 = arith.addi %54, %c2_i32 : i32
      %56 = arith.index_cast %55 : i32 to index
      %c0_30 = arith.constant 0 : index
      %c0_31 = arith.constant 0 : index
      %57 = vector.load %arg9[%56, %c0_30, %c0_31] : memref<16x64x128xf32, #tpu.memory_space<vmem>>, vector<1x64x128xf32>
      %58 = vector.shape_cast %57 : vector<1x64x128xf32> to vector<64x128xf32>
      %59 = vector.broadcast %29 : vector<1x128xf32> to vector<64x128xf32>
      %60 = arith.mulf %58, %59 : vector<64x128xf32>
      %61 = vector.broadcast %30 : vector<1x128xf32> to vector<64x128xf32>
      %62 = arith.addf %60, %61 : vector<64x128xf32>
      %cst_32 = arith.constant 0.000000e+00 : f32
      %63 = vector.broadcast %cst_32 : f32 to vector<64x128xf32>
      %64 = arith.maximumf %62, %63 : vector<64x128xf32>
      %65 = arith.maximumf %53, %64 : vector<64x128xf32>
      %c4_i32_33 = arith.constant 4 : i32
      %66 = arith.muli %arg1, %c4_i32_33 : i32
      %c3_i32 = arith.constant 3 : i32
      %67 = arith.addi %66, %c3_i32 : i32
      %68 = arith.index_cast %67 : i32 to index
      %c0_34 = arith.constant 0 : index
      %c0_35 = arith.constant 0 : index
      %69 = vector.load %arg9[%68, %c0_34, %c0_35] : memref<16x64x128xf32, #tpu.memory_space<vmem>>, vector<1x64x128xf32>
      %70 = vector.shape_cast %69 : vector<1x64x128xf32> to vector<64x128xf32>
      %71 = vector.broadcast %29 : vector<1x128xf32> to vector<64x128xf32>
      %72 = arith.mulf %70, %71 : vector<64x128xf32>
      %73 = vector.broadcast %30 : vector<1x128xf32> to vector<64x128xf32>
      %74 = arith.addf %72, %73 : vector<64x128xf32>
      %cst_36 = arith.constant 0.000000e+00 : f32
      %75 = vector.broadcast %cst_36 : f32 to vector<64x128xf32>
      %76 = arith.maximumf %74, %75 : vector<64x128xf32>
      %77 = arith.maximumf %65, %76 : vector<64x128xf32>
      %78 = arith.truncf %77 : vector<64x128xf32> to vector<64x128xbf16>
      %c0_37 = arith.constant 0 : index
      %c0_38 = arith.constant 0 : index
      %c0_39 = arith.constant 0 : index
      %79 = vector.load %arg8[%c0_37, %c0_38, %c0_39] : memref<1x64x128xbf16, #tpu.memory_space<vmem>>, vector<1x64x128xbf16>
      %80 = vector.shape_cast %79 : vector<1x64x128xbf16> to vector<64x128xbf16>
      %81 = vector.shape_cast %78 : vector<64x128xbf16> to vector<1x64x128xbf16>
      tpu.vector_store %arg8[%c0_37, %c0_38, %c0_39], %81 {strides = array<i32>} : memref<1x64x128xbf16, #tpu.memory_space<vmem>>, vector<1x64x128xbf16>,
    } else {
    }
    return
  }
  func.func @transform_0(%arg0: i32, %arg1: i32) -> (i32, i32, i32) {
    %c1_i32 = arith.constant 1 : i32
    %0 = arith.subi %c1_i32, %arg0 : i32
    %1 = arith.muli %arg1, %0 : i32
    %c3_i32 = arith.constant 3 : i32
    %2 = arith.muli %c3_i32, %arg0 : i32
    %3 = arith.addi %1, %2 : i32
    %c0_i32 = arith.constant 0 : i32
    %c0_i32_0 = arith.constant 0 : i32
    %c0_i32_1 = arith.constant 0 : i32
    return %3, %c0_i32, %c0_i32_0 : i32, i32, i32
  }
  func.func @transform_1(%arg0: i32, %arg1: i32) -> (i32, i32, i32) {
    %c0_i32 = arith.constant 0 : i32
    %c0_i32_0 = arith.constant 0 : i32
    %c0_i32_1 = arith.constant 0 : i32
    return %arg1, %c0_i32, %c0_i32_0 : i32, i32, i32
  }
  func.func @transform_2(%arg0: i32, %arg1: i32) -> (i32, i32) {
    %c0_i32 = arith.constant 0 : i32
    %c0_i32_0 = arith.constant 0 : i32
    %c0_i32_1 = arith.constant 0 : i32
    return %c0_i32, %c0_i32_0 : i32, i32
  }
  func.func @transform_3(%arg0: i32, %arg1: i32) -> (i32, i32, i32) {
    %c0_i32 = arith.constant 0 : i32
    %c0_i32_0 = arith.constant 0 : i32
    %c0_i32_1 = arith.constant 0 : i32
    return %arg1, %c0_i32, %c0_i32_0 : i32, i32, i32
  }
  func.func @transform_4(%arg0: i32, %arg1: i32) -> (i32, i32, i32) {
    %c0_i32 = arith.constant 0 : i32
    %c0_i32_0 = arith.constant 0 : i32
    %c0_i32_1 = arith.constant 0 : i32
    return %arg1, %c0_i32, %c0_i32_0 : i32, i32, i32
  }
  func.func @transform_5(%arg0: i32, %arg1: i32) -> (i32, i32, i32) {
    %c0_i32 = arith.constant 0 : i32
    %c0_i32_0 = arith.constant 0 : i32
    %c0_i32_1 = arith.constant 0 : i32
    return %arg1, %c0_i32, %c0_i32_0 : i32, i32, i32
  }
  func.func @transform_6(%arg0: i32, %arg1: i32) -> (i32, i32, i32) {
    %0 = arith.muli %arg1, %arg0 : i32
    %c0_i32 = arith.constant 0 : i32
    %c0_i32_0 = arith.constant 0 : i32
    %c0_i32_1 = arith.constant 0 : i32
    return %0, %c0_i32, %c0_i32_0 : i32, i32, i32
  }
}

module attributes {stable_mosaic.version = 11 : i64} {
  func.func @_fc_fused_kernel(%arg0: memref<4x2x4096xbf16, #tpu.memory_space<vmem>>, %arg1: memref<4x4096x10xbf16, #tpu.memory_space<vmem>>, %arg2: memref<1x10xf32, #tpu.memory_space<vmem>>, %arg3: memref<2x10xf32, #tpu.memory_space<vmem>>) attributes {dimension_semantics = [], scalar_prefetch = 0 : i64, scratch_operands = 0 : i64, tpu.core_type = #tpu.core_type<tc>} {
    %cst = arith.constant 0.000000e+00 : f32
    %0 = vector.broadcast %cst : f32 to vector<2x10xf32>
    %c0 = arith.constant 0 : index
    %c0_0 = arith.constant 0 : index
    %c0_1 = arith.constant 0 : index
    %1 = vector.load %arg0[%c0, %c0_0, %c0_1] : memref<4x2x4096xbf16, #tpu.memory_space<vmem>>, vector<1x2x4096xbf16>
    %2 = vector.shape_cast %1 : vector<1x2x4096xbf16> to vector<2x4096xbf16>
    %c0_2 = arith.constant 0 : index
    %c0_3 = arith.constant 0 : index
    %c0_4 = arith.constant 0 : index
    %3 = vector.load %arg1[%c0_2, %c0_3, %c0_4] : memref<4x4096x10xbf16, #tpu.memory_space<vmem>>, vector<1x4096x10xbf16>
    %4 = vector.shape_cast %3 : vector<1x4096x10xbf16> to vector<4096x10xbf16>
    %cst_5 = arith.constant dense<0.000000e+00> : vector<2x10xf32>
    %5 = tpu.matmul %2, %4, %cst_5 {dimension_numbers = #tpu.dot_dimension_numbers<[1], [0], [0], [1], [0, 0, 1, 1], [], []>} : vector<2x4096xbf16>, vector<4096x10xbf16>, vector<2x10xf32> -> vector<2x10xf32>
    %6 = arith.addf %0, %5 : vector<2x10xf32>
    %c1 = arith.constant 1 : index
    %c0_6 = arith.constant 0 : index
    %c0_7 = arith.constant 0 : index
    %7 = vector.load %arg0[%c1, %c0_6, %c0_7] : memref<4x2x4096xbf16, #tpu.memory_space<vmem>>, vector<1x2x4096xbf16>
    %8 = vector.shape_cast %7 : vector<1x2x4096xbf16> to vector<2x4096xbf16>
    %c1_8 = arith.constant 1 : index
    %c0_9 = arith.constant 0 : index
    %c0_10 = arith.constant 0 : index
    %9 = vector.load %arg1[%c1_8, %c0_9, %c0_10] : memref<4x4096x10xbf16, #tpu.memory_space<vmem>>, vector<1x4096x10xbf16>
    %10 = vector.shape_cast %9 : vector<1x4096x10xbf16> to vector<4096x10xbf16>
    %cst_11 = arith.constant dense<0.000000e+00> : vector<2x10xf32>
    %11 = tpu.matmul %8, %10, %cst_11 {dimension_numbers = #tpu.dot_dimension_numbers<[1], [0], [0], [1], [0, 0, 1, 1], [], []>} : vector<2x4096xbf16>, vector<4096x10xbf16>, vector<2x10xf32> -> vector<2x10xf32>
    %12 = arith.addf %6, %11 : vector<2x10xf32>
    %c2 = arith.constant 2 : index
    %c0_12 = arith.constant 0 : index
    %c0_13 = arith.constant 0 : index
    %13 = vector.load %arg0[%c2, %c0_12, %c0_13] : memref<4x2x4096xbf16, #tpu.memory_space<vmem>>, vector<1x2x4096xbf16>
    %14 = vector.shape_cast %13 : vector<1x2x4096xbf16> to vector<2x4096xbf16>
    %c2_14 = arith.constant 2 : index
    %c0_15 = arith.constant 0 : index
    %c0_16 = arith.constant 0 : index
    %15 = vector.load %arg1[%c2_14, %c0_15, %c0_16] : memref<4x4096x10xbf16, #tpu.memory_space<vmem>>, vector<1x4096x10xbf16>
    %16 = vector.shape_cast %15 : vector<1x4096x10xbf16> to vector<4096x10xbf16>
    %cst_17 = arith.constant dense<0.000000e+00> : vector<2x10xf32>
    %17 = tpu.matmul %14, %16, %cst_17 {dimension_numbers = #tpu.dot_dimension_numbers<[1], [0], [0], [1], [0, 0, 1, 1], [], []>} : vector<2x4096xbf16>, vector<4096x10xbf16>, vector<2x10xf32> -> vector<2x10xf32>
    %18 = arith.addf %12, %17 : vector<2x10xf32>
    %c3 = arith.constant 3 : index
    %c0_18 = arith.constant 0 : index
    %c0_19 = arith.constant 0 : index
    %19 = vector.load %arg0[%c3, %c0_18, %c0_19] : memref<4x2x4096xbf16, #tpu.memory_space<vmem>>, vector<1x2x4096xbf16>
    %20 = vector.shape_cast %19 : vector<1x2x4096xbf16> to vector<2x4096xbf16>
    %c3_20 = arith.constant 3 : index
    %c0_21 = arith.constant 0 : index
    %c0_22 = arith.constant 0 : index
    %21 = vector.load %arg1[%c3_20, %c0_21, %c0_22] : memref<4x4096x10xbf16, #tpu.memory_space<vmem>>, vector<1x4096x10xbf16>
    %22 = vector.shape_cast %21 : vector<1x4096x10xbf16> to vector<4096x10xbf16>
    %cst_23 = arith.constant dense<0.000000e+00> : vector<2x10xf32>
    %23 = tpu.matmul %20, %22, %cst_23 {dimension_numbers = #tpu.dot_dimension_numbers<[1], [0], [0], [1], [0, 0, 1, 1], [], []>} : vector<2x4096xbf16>, vector<4096x10xbf16>, vector<2x10xf32> -> vector<2x10xf32>
    %24 = arith.addf %18, %23 : vector<2x10xf32>
    %c0_24 = arith.constant 0 : index
    %c0_25 = arith.constant 0 : index
    %25 = vector.load %arg2[%c0_24, %c0_25] : memref<1x10xf32, #tpu.memory_space<vmem>>, vector<1x10xf32>
    %26 = vector.broadcast %25 : vector<1x10xf32> to vector<2x10xf32>
    %27 = arith.addf %24, %26 : vector<2x10xf32>
    %c0_26 = arith.constant 0 : index
    %c0_27 = arith.constant 0 : index
    %28 = vector.load %arg3[%c0_26, %c0_27] : memref<2x10xf32, #tpu.memory_space<vmem>>, vector<2x10xf32>
    tpu.vector_store %arg3[%c0_26, %c0_27], %27 {strides = array<i32>} : memref<2x10xf32, #tpu.memory_space<vmem>>, vector<2x10xf32>,
    return
  }
}

</mosaic_0001>

<bundles_post_ra>
// kernel: mul.37
= control target key start
LH: loop header
LB: loop body
LE: loop exit
PB: predicated region body
PF: predicated region fallthrough
CT: control target
= control target key end

     0   :  { %vm46_vm0 = vcmask 261120   ;;  %s184_s0 = inlined_call_operand.vmem [shape: f32[3,3,3,32], index: 0, kind: input, shape index: {}]   ;;  %s185_s1 = inlined_call_operand.vmem [shape: f32[27,32], index: 1, kind: output, shape index: {}]  }
   0x1   :  { %v95_v0 = vld [vmem:[%s184_s0 + $0x20] sm:$0xf]  ;;  %v96_v1 = vld [vmem:[%s184_s0 + $0x1c] sm:$0xf]  ;;  %v97_v2 = vld [vmem:[%s184_s0 + $0x18] sm:$0xf] }
   0x2   :  { %8 = vst [vmem:[#allocation0 + $0x40] sm:$0xf] %v95_v0  ;;  %13 = vst [vmem:[#allocation0 + $0x38] sm:$0xf] %v96_v1  ;;  %v98_v3 = vld [vmem:[%s184_s0 + $0x14] sm:$0xf] }
   0x3   :  { %18 = vst [vmem:[#allocation0 + $0x30] sm:$0xf] %v97_v2  ;;  %v99_v4 = vld [vmem:[%s184_s0 + $0x10] sm:$0xf]  ;;  %v100_v5 = vld [vmem:[%s184_s0 + $0xc] sm:$0xf] }
   0x4   :  { %23 = vst [vmem:[#allocation0 + $0x28] sm:$0xf] %v98_v3  ;;  %28 = vst [vmem:[#allocation0 + $0x20] sm:$0xf] %v99_v4  ;;  %v101_v6 = vld [vmem:[%s184_s0 + $0x8] sm:$0xf] }
   0x5   :  { %33 = vst [vmem:[#allocation0 + $0x18] sm:$0xf] %v100_v5  ;;  %v102_v7 = vld [vmem:[%s184_s0 + $0x4] sm:$0xf]  ;;  %v43_v8 = vld [vmem:[%s184_s0] sm:$0xf] }
   0x6   :  { %38 = vst [vmem:[#allocation0 + $0x10] sm:$0xf] %v101_v6  ;;  %42 = vst [vmem:[#allocation0 + $0x8] sm:$0xf] %v102_v7 }
   0x7   :  { %44 = vst [vmem:[#allocation0] sm:$0xf] %v43_v8 }
   0x9   :  { %v79_v10 = vld [vmem:[#allocation0 + $0x38] sm:$0x7]   ;;  %v84_v11 = vld [vmem:[#allocation0 + $0x40] sm:$0x7]  }
   0xa   :  { %v74_v9 = vld [vmem:[#allocation0 + $0x30] sm:$0x7]   ;;  %109 = vst.msk [vmem:[%s185_s1 + $0x15] sm:$0x7] %vm46_vm0, %v79_v10   ;;  %110 = vst.msk [vmem:[%s185_s1 + $0x18] sm:$0x7] %vm46_vm0, %v84_v11  }
   0xb   :  { %v64_v13 = vld [vmem:[#allocation0 + $0x20] sm:$0x7]   ;;  %v69_v14 = vld [vmem:[#allocation0 + $0x28] sm:$0x7]   ;;  %108 = vst.msk [vmem:[%s185_s1 + $0x12] sm:$0x7] %vm46_vm0, %v74_v9  }
   0xc   :  { %v59_v12 = vld [vmem:[#allocation0 + $0x18] sm:$0x7]   ;;  %106 = vst.msk [vmem:[%s185_s1 + $0xc] sm:$0x7] %vm46_vm0, %v64_v13   ;;  %107 = vst.msk [vmem:[%s185_s1 + $0xf] sm:$0x7] %vm46_vm0, %v69_v14  }
   0xd   :  { %v49_v16 = vld [vmem:[#allocation0 + $0x8] sm:$0x7]   ;;  %v54_v17 = vld [vmem:[#allocation0 + $0x10] sm:$0x7]   ;;  %105 = vst.msk [vmem:[%s185_s1 + $0x9] sm:$0x7] %vm46_vm0, %v59_v12  }
   0xe   :  { %v45_v15 = vld [vmem:[#allocation0] sm:$0x7]   ;;  %103 = vst.msk [vmem:[%s185_s1 + $0x3] sm:$0x7] %vm46_vm0, %v49_v16   ;;  %104 = vst.msk [vmem:[%s185_s1 + $0x6] sm:$0x7] %vm46_vm0, %v54_v17  }
   0xf   :  { %47 = vst.msk [vmem:[%s185_s1] sm:$0x7] %vm46_vm0, %v45_v15  }

// kernel: forward.3
= control target key start
LH: loop header
LB: loop body
LE: loop exit
PB: predicated region body
PF: predicated region fallthrough
CT: control target
= control target key end

     0   :  { %s3513_s21 = smov 0   ;;  %s3515_s22 = smov 0   ;;  %s4672_s0 = inlined_call_operand.vmem [shape: bf16[4,512,128], index: 0, kind: input, shape index: {}]   ;;  %s4673_s1 = inlined_call_operand.vmem [shape: bf16[4,128,128], index: 1, kind: input, shape index: {}]   ;;  %s4674_s2 = inlined_call_operand.vmem [shape: f32[128,32], index: 2, kind: input, shape index: {}]   ;;  %s4675_s3 = inlined_call_operand.vmem [shape: f32[4,1,32], index: 3, kind: input, shape index: {}]   ;;  %s4676_s4 = inlined_call_operand.vmem [shape: f32[4,1,32], index: 4, kind: input, shape index: {}]   ;;  %s4677_s5 = inlined_call_operand.vmem [shape: f32[4,1,32], index: 5, kind: input, shape index: {}]   ;;  %s4678_s6 = inlined_call_operand.vmem [shape: bf16[4,128,128], index: 6, kind: output, shape index: {}]  }
   0x1   :  { %4680 = sst [smem:[#allocation27_spill]] %s4674_s2  ;;  %s3517_s23 = smov 0  }
   0x2   :  { %s3519_s24 = smov 0   ;;  %s3521_s25 = smov 0  }
   0x3 LB: > { %s25_s26 = sadd.s32 1, %s3461_s23  ;;  %s28_s27 = sadd.s32 1, %s3465_s24  ;;  %s3469_s25 = sphi %s3521_s25, %s16_s25   ;;  %s3465_s24 = sphi %s3519_s24, %s4734_s24   ;;  %s3461_s23 = sphi %s3517_s23, %s4733_s23   ;;  %s3457_s22 = sphi %s3515_s22, %s4732_s22   ;;  %s3453_s21 = sphi %s3513_s21, %s4731_s21  }
   0x4   : > { %p26_p0 = scmp.ge.s32.totalorder %s25_s26, 4  ;;  %p2441_p1 = scmp.ge.s32.totalorder %s3469_s25, 1 }
   0x5   : > { %p276_p2 = scmp.lt.s32.totalorder %s3469_s25, 9 }
   0x6   : > { %s4736_s26 = smov (%p26_p0, %s25_s26), 0  ;;  %s4738_s27 = smov (!%p26_p0, %s28_s27), %s3465_s24 }
   0x7   : > { %p277_p3 = pnand %p2441_p1, %p276_p2  ;;  %p30_p4 = scmp.ge.s32.totalorder %s4738_s27, 2 }
   0x8   : > { %s325_s28 = ssub.s32 (!%p277_p3), 1, %s3457_s22  ;;  %s327_s29 = smul.u32 (!%p277_p3), 3, %s3457_s22 }
   0x9   : > { %s4740_s27 = smov (%p30_p4, %s4738_s27), 0  ;;  %280 = sbr.rel (%p277_p3) target bundleno = 971 (0x3cb), region = 44 }
   0xa   : > { %4681 = sst [smem:[#allocation5_spill]] %s4740_s27  ;;  %s4682_s2 = sld [smem:[#allocation27_spill]] (!%p277_p3) }
   0xb   : > { %s326_s12 = smul.u32 (!%p277_p3), %s3453_s21, %s325_s28  ;;  %p338_p5 = scmp.lt.s32.totalorder (!%p277_p3), %s3453_s21, 3 }
   0xc   : > { %s352_s19 = smul.u32 (!%p277_p3), %s3453_s21, %s3457_s22  ;;  %p2448_p8 = scmp.ne.s32.totalorder (!%p277_p3), %s3457_s22, 0 }
   0xd   : > { %s328_s10 = sadd.s32 (!%p277_p3), %s327_s29, %s326_s12 }
   0xe   : > { %p329_p6 = scmp.lt.s32.totalorder (!%p277_p3), %s328_s10, 3  ;;  %p353_p7 = scmp.lt.s32.totalorder (!%p277_p3), %s352_s19, 3 }
  0x10   : > { %v3552_v0 = vld [vmem:[%s4682_s2] sm:$0xff]  ;;  %v3557_v1 = vld [vmem:[%s4682_s2 + $0x8] sm:$0xff]  ;;  %v3562_v2 = vld [vmem:[%s4682_s2 + $0x10] sm:$0xff]  ;;  %s3631_s7 = scalar_select %p338_p5, %s3453_s21, 3 }
  0x11   : > { %v3569_v3 = vld [vmem:[%s4682_s2 + $0x18] sm:$0xff]  ;;  %v3574_v4 = vld [vmem:[%s4682_s2 + $0x20] sm:$0xff]  ;;  %v3579_v5 = vld [vmem:[%s4682_s2 + $0x28] sm:$0xff]  ;;  %s4742_s10 = smov (!%p329_p6, %s328_s10), 3  ;;  %s4744_s19 = smov (!%p353_p7, %s352_s19), 3 }
  0x12   : > { %v3586_v6 = vld [vmem:[%s4682_s2 + $0x30] sm:$0xff]  ;;  %v3591_v7 = vld [vmem:[%s4682_s2 + $0x38] sm:$0xff]  ;;  %v3596_v8 = vld [vmem:[%s4682_s2 + $0x40] sm:$0xff]  ;;  %s2673_s11 = sshll.u32 %s3631_s7, 6  ;;  %s345_s15 = scalar_lea.vmem %s4675_s3, %s3631_s7 }
  0x13   : > { %v3601_v9 = vld [vmem:[%s4682_s2 + $0x48] sm:$0xff]  ;;  %v3606_v10 = vld [vmem:[%s4682_s2 + $0x50] sm:$0xff]  ;;  %v3611_v11 = vld [vmem:[%s4682_s2 + $0x58] sm:$0xff]  ;;  %s2672_s16 = sshll.u32 %s4742_s10, 8  ;;  %s3646_s20 = scalar_lea.vmem %s4673_s1, %s2673_s11 }
  0x14   : > { %v3616_v12 = vld [vmem:[%s4682_s2 + $0x60] sm:$0xff]  ;;  %v3621_v13 = vld [vmem:[%s4682_s2 + $0x68] sm:$0xff]  ;;  %v3626_v14 = vld [vmem:[%s4682_s2 + $0x70] sm:$0xff]  ;;  %s3651_s28 = scalar_lea.vmem %s4672_s0, %s2672_s16  ;;  %s348_s9 = scalar_lea.vmem %s4676_s4, %s3631_s7 }
  0x15   : > { %v3636_v15 = vld [vmem:[%s4682_s2 + $0x78] sm:$0xff]  ;;  %s351_s13 = scalar_lea.vmem %s4677_s5, %s3631_s7  ;;  %s2674_s10 = sshll.u32 %s4744_s19, 6 }
  0x16   : > { %s3665_s11 = scalar_lea.vmem %s4678_s6, %s2674_s10  ;;  %379 = sbr.rel (%p2448_p8) target bundleno = 411 (0x19b), region = 48 }
  0x17   : > { %p2449_p9 = scmp.ne.s32.totalorder (!%p2448_p8), %s3453_s21, 0 }
  0x1d   : > { %383 = sbr.rel (%p2449_p9) target bundleno = 36 (0x24), region = 52  ;;  %v3471_v16 = vmov (!%p2449_p9), 0.0  }
  0x1e   : > { %384 = vst [vmem:[#allocation3] sm:$0x1] (!%p2449_p9), %v3471_v16  ;;  %385 = vst [vmem:[#allocation4] sm:$0x1] (!%p2449_p9), %v3471_v16 }
  0x24 PF: > { %vm403_vm0 = vcmask 261120   ;;  %v3199_v17 = vpack.c.bf16 %v3557_v1, %v3552_v0  ;;  %v3472_v18 = vmov 0.0|0.0   ;;  %v3679_v20 = vld [vmem:[%s3646_s20] sm:$0xff]   ;;  %v3684_v21 = vld [vmem:[%s3646_s20 + $0x8] sm:$0xff]   ;;  %vm3473_vm2 = vmmov 0   ;;  %v3691_v23 = vld [vmem:[%s3646_s20 + $0x10] sm:$0xff]  }
  0x25   : > { %3198 = vmatprep.subr.bf16.mxu0 %v3472_v18  ;;  %vm3674_vm1 = vmpackc.low %vm403_vm0, %vm403_vm0  ;;  %2930 = vmatprep.subr.bf16.mxu1 %v3679_v20  ;;  %v3474_v22 = vmov 0.0   ;;  %v3203_v24 = vpack.c.bf16 %v3569_v3, %v3562_v2  ;;  %v3697_v25 = vld [vmem:[%s3646_s20 + $0x18] sm:$0xff]   ;;  %v3397_v26 = vld [vmem:[%s3651_s28] sm:$0xff]   ;;  %v3207_v28 = vpack.c.bf16 %v3579_v5, %v3574_v4  ;;  %v3211_v31 = vpack.c.bf16 %v3591_v7, %v3586_v6  ;;  %s2675_s19 = sshll.u32 %s3453_s21, 9 }
  0x26   : > { %3201 = vmatpush3.bf16.xpose.msk.msra.mxu0 %vm3674_vm1, %v3199_v17  ;;  %2931 = vmatpush3.bf16.msra.mxu1 %v3679_v20  ;;  %v3707_v27 = vld [vmem:[%s3646_s20 + $0x20] sm:$0xff]   ;;  %v3714_v29 = vld [vmem:[%s3646_s20 + $0x28] sm:$0xff]   ;;  %v3722_v30 = vld [vmem:[%s3646_s20 + $0x30] sm:$0xff]   ;;  %v3215_v33 = vpack.c.bf16 %v3601_v9, %v3596_v8  ;;  %v3219_v36 = vpack.c.bf16 %v3611_v11, %v3606_v10  ;;  %v3223_v39 = vpack.c.bf16 %v3621_v13, %v3616_v12 }
  0x27   : > { %3202 = vmatprep.subr.bf16.mxu0 %v3472_v18  ;;  %2927 = vmatprep.mubr.msk.f32.mxu0 %vm3473_vm2, %v3474_v22  ;;  %v3729_v32 = vld [vmem:[%s3646_s20 + $0x38] sm:$0xff]   ;;  %v3398_v34 = vld [vmem:[%s3651_s28 + $0x8] sm:$0xff]   ;;  %v3399_v35 = vld [vmem:[%s3651_s28 + $0x10] sm:$0xff]   ;;  %v3227_v42 = vpack.c.bf16 %v3636_v15, %v3626_v14 }
  0x28   : > { %2932 = vmatprep.subr.bf16.mxu1 %v3684_v21  ;;  %2946 = vmatprep.mubr.bf16.mxu1 %v3397_v26  ;;  %v3400_v37 = vld [vmem:[%s3651_s28 + $0x18] sm:$0xff]   ;;  %v3401_v38 = vld [vmem:[%s3651_s28 + $0x20] sm:$0xff]   ;;  %v3402_v40 = vld [vmem:[%s3651_s28 + $0x28] sm:$0xff]  }
  0x29   : > { %v3403_v41 = vld [vmem:[%s3651_s28 + $0x30] sm:$0xff]   ;;  %v3404_v43 = vld [vmem:[%s3651_s28 + $0x38] sm:$0xff]   ;;  %v3405_v44 = vld [vmem:[%s3651_s28 + $0x40] sm:$0xff]  }
  0x2a   : > { %2933 = vmatpush3.bf16.msra.mxu1 %v3684_v21  ;;  %v402_v45 = vld [vmem:[%s345_s15] sm:$0x1]  ;;  %v3406_v47 = vld [vmem:[%s3651_s28 + $0x48] sm:$0xff]   ;;  %v3407_v48 = vld [vmem:[%s3651_s28 + $0x50] sm:$0xff]   ;;  %s3864_s15 = scalar_lea.vmem [#allocation2], %s2675_s19 }
  0x2b   : > { %2934 = vmatprep.subr.bf16.mxu1 %v3691_v23  ;;  %v3413_v46 = vld [vmem:[%s3651_s28 + $0x80] sm:$0xff]   ;;  %v3408_v49 = vld [vmem:[%s3651_s28 + $0x58] sm:$0xff]   ;;  %v3410_v51 = vld [vmem:[%s3651_s28 + $0x68] sm:$0xff]  }
  0x2c   : > { %v3409_v50 = vld [vmem:[%s3651_s28 + $0x60] sm:$0xff]   ;;  %v3411_v52 = vld [vmem:[%s3651_s28 + $0x70] sm:$0xff]   ;;  %v3412_v53 = vld [vmem:[%s3651_s28 + $0x78] sm:$0xff]  }
  0x2d   : > { %v3415_v54 = vld [vmem:[%s3651_s28 + $0xc0] sm:$0xff]   ;;  %v3414_v55 = vld [vmem:[%s3651_s28 + $0x88] sm:$0xff]   ;;  %v3417_v56 = vld [vmem:[%s3651_s28 + $0x90] sm:$0xff]  }
  0x2e   : > { %3205 = vmatpush3.bf16.xpose.msk.msra.mxu0 %vm3674_vm1, %v3203_v24  ;;  %2935 = vmatpush3.bf16.msra.mxu1 %v3691_v23  ;;  %v3416_v57 = vld [vmem:[%s3651_s28 + $0xc8] sm:$0xff]   ;;  %v3419_v58 = vld [vmem:[%s3651_s28 + $0xd0] sm:$0xff]   ;;  %v3418_v59 = vld [vmem:[%s3651_s28 + $0x98] sm:$0xff]  }
  0x2f   : > { %3206 = vmatprep.subr.bf16.mxu0 %v3472_v18  ;;  %2936 = vmatprep.subr.bf16.mxu1 %v3697_v25  ;;  %v3421_v60 = vld [vmem:[%s3651_s28 + $0xa0] sm:$0xff]   ;;  %v3420_v61 = vld [vmem:[%s3651_s28 + $0xd8] sm:$0xff]   ;;  %v3422_v63 = vld [vmem:[%s3651_s28 + $0xa8] sm:$0xff]  }
  0x30   : > { %v3423_v62 = vld [vmem:[%s3651_s28 + $0xe0] sm:$0xff]   ;;  %v3425_v16 = vld [vmem:[%s3651_s28 + $0xb0] sm:$0xff]   ;;  %v3424_v17 = vld [vmem:[%s3651_s28 + $0xe8] sm:$0xff]  }
  0x31   : > { %v3426_v19 = vld [vmem:[%s3651_s28 + $0xb8] sm:$0xff]  }
  0x32   : > { %2937 = vmatpush3.bf16.msra.mxu1 %v3697_v25 }
  0x33   : > { %2938 = vmatprep.subr.bf16.mxu1 %v3707_v27 }
  0x36   : > { %3209 = vmatpush3.bf16.xpose.msk.msra.mxu0 %vm3674_vm1, %v3207_v28  ;;  %2939 = vmatpush3.bf16.msra.mxu1 %v3707_v27 }
  0x37   : > { %3210 = vmatprep.subr.bf16.mxu0 %v3472_v18  ;;  %2940 = vmatprep.subr.bf16.mxu1 %v3714_v29 }
  0x3a   : > { %2941 = vmatpush3.bf16.msra.mxu1 %v3714_v29 }
  0x3b   : > { %2942 = vmatprep.subr.bf16.mxu1 %v3722_v30 }
  0x3e   : > { %3213 = vmatpush3.bf16.xpose.msk.msra.mxu0 %vm3674_vm1, %v3211_v31  ;;  %2943 = vmatpush3.bf16.msra.mxu1 %v3722_v30 }
  0x3f   : > { %3214 = vmatprep.subr.bf16.mxu0 %v3472_v18  ;;  %2944 = vmatprep.subr.bf16.mxu1 %v3729_v32 }
  0x42   : > { %2945 = vmatpush3.bf16.msra.mxu1 %v3729_v32 }
  0x43   : > { %2962 = vmatprep.subr.bf16.mxu1 %v3679_v20 }
  0x45   : > { %2947 = vmatmul.mubr.bf16.vlgmr.msra.gmra.mrb[0].mxu1 %v3398_v34 }
  0x46   : > { %3217 = vmatpush3.bf16.xpose.msk.msra.mxu0 %vm3674_vm1, %v3215_v33  ;;  %2963 = vmatpush3.bf16.msra.mxu1 %v3679_v20  ;;  %v541_v33 = vlaneseq }
  0x47   : > { %3218 = vmatprep.subr.bf16.mxu0 %v3472_v18  ;;  %2950 = vmatprep.mubr.bf16.mxu1 %v3399_v35 }
  0x48   : > { %2964 = vmatprep.subr.bf16.mxu1 %v3684_v21  ;;  %v542_v34 = vshrl.u32 %v541_v33, 7 }
  0x4a   : > { %2965 = vmatpush3.bf16.msra.mxu1 %v3684_v21 }
  0x4b   : > { %2966 = vmatprep.subr.bf16.mxu1 %v3691_v23 }
  0x4d   : > { %2951 = vmatmul.mubr.bf16.gmra.mrb[4].mxu1 %v3400_v37 }
  0x4e   : > { %3221 = vmatpush3.bf16.xpose.msk.msra.mxu0 %vm3674_vm1, %v3219_v36  ;;  %2967 = vmatpush3.bf16.msra.mxu1 %v3691_v23 }
  0x4f   : > { %3222 = vmatprep.subr.bf16.mxu0 %v3472_v18  ;;  %2954 = vmatprep.mubr.bf16.mxu1 %v3401_v38 }
  0x50   : > { %2968 = vmatprep.subr.bf16.mxu1 %v3697_v25 }
  0x52   : > { %2969 = vmatpush3.bf16.msra.mxu1 %v3697_v25 }
  0x53   : > { %2970 = vmatprep.subr.bf16.mxu1 %v3707_v27 }
  0x55   : > { %2955 = vmatmul.mubr.bf16.gmra.mrb[8].mxu1 %v3402_v40 }
  0x56   : > { %3225 = vmatpush3.bf16.xpose.msk.msra.mxu0 %vm3674_vm1, %v3223_v39  ;;  %2971 = vmatpush3.bf16.msra.mxu1 %v3707_v27  ;;  %v543_v39 = vsub.s32 0, %v542_v34 }
  0x57   : > { %3226 = vmatprep.subr.bf16.mxu0 %v3472_v18  ;;  %2958 = vmatprep.mubr.bf16.mxu1 %v3403_v41  ;;  %v3427_v18 = vld [vmem:[%s3651_s28 + $0xf0] sm:$0xff]  }
  0x58   : > { %2972 = vmatprep.subr.bf16.mxu1 %v3714_v29 }
  0x5a   : > { %2973 = vmatpush3.bf16.msra.mxu1 %v3714_v29 }
  0x5b   : > { %2974 = vmatprep.subr.bf16.mxu1 %v3722_v30 }
  0x5d   : > { %2959 = vmatmul.mubr.bf16.gmra.mrb[12].mxu1 %v3404_v43 }
  0x5e   : > { %3229 = vmatpush3.bf16.xpose.msk.msra.mxu0 %vm3674_vm1, %v3227_v42  ;;  %2975 = vmatpush3.bf16.msra.mxu1 %v3722_v30 }
  0x5f   : > { %2994 = vmatprep.subr.bf16.mxu0 %v3679_v20  ;;  %2978 = vmatprep.mubr.bf16.mxu1 %v3405_v44 }
  0x60   : > { %2976 = vmatprep.subr.bf16.mxu1 %v3729_v32 }
  0x62   : > { %2977 = vmatpush3.bf16.msra.mxu1 %v3729_v32 }
  0x63   : > { %3026 = vmatprep.subr.bf16.mxu1 %v3679_v20 }
  0x65   : > { %2928 = vmatmul.mubr.msk.f32.vlgmr.msra.gmra.mrb[0].mxu0 %vm403_vm0, %v402_v45  ;;  %2979 = vmatmul.mubr.bf16.vlgmr.msra.gmra.mrb[16].mxu1 %v3406_v47 }
  0x66   : > { %2995 = vmatpush3.bf16.msra.mxu0 %v3679_v20  ;;  %3010 = vmatprep.mubr.bf16.mxu0 %v3413_v46 }
  0x67   : > { %2996 = vmatprep.subr.bf16.mxu0 %v3684_v21  ;;  %3027 = vmatpush3.bf16.msra.mxu1 %v3679_v20  ;;  %v3428_v20 = vld [vmem:[%s3651_s28 + $0xf8] sm:$0xff]  }
  0x68   : > { %2982 = vmatprep.mubr.bf16.mxu1 %v3407_v48  ;;  %3028 = vmatprep.subr.bf16.mxu1 %v3684_v21 }
  0x6a   : > { %2997 = vmatpush3.bf16.msra.mxu0 %v3684_v21 }
  0x6b   : > { %2998 = vmatprep.subr.bf16.mxu0 %v3691_v23  ;;  %3029 = vmatpush3.bf16.msra.mxu1 %v3684_v21 }
  0x6c   : > { %3030 = vmatprep.subr.bf16.mxu1 %v3691_v23 }
  0x6d   : > { %2983 = vmatmul.mubr.bf16.gmra.mrb[20].mxu1 %v3408_v49 }
  0x6e   : > { %2999 = vmatpush3.bf16.msra.mxu0 %v3691_v23  ;;  %2986 = vmatprep.mubr.bf16.mxu1 %v3409_v50 }
  0x6f   : > { %3000 = vmatprep.subr.bf16.mxu0 %v3697_v25  ;;  %3031 = vmatpush3.bf16.msra.mxu1 %v3691_v23 }
  0x70   : > { %3032 = vmatprep.subr.bf16.mxu1 %v3697_v25 }
  0x72   : > { %3001 = vmatpush3.bf16.msra.mxu0 %v3697_v25 }
  0x73   : > { %3002 = vmatprep.subr.bf16.mxu0 %v3707_v27  ;;  %3033 = vmatpush3.bf16.msra.mxu1 %v3697_v25 }
  0x74   : > { %3034 = vmatprep.subr.bf16.mxu1 %v3707_v27 }
  0x75   : > { %2987 = vmatmul.mubr.bf16.gmra.mrb[24].mxu1 %v3410_v51 }
  0x76   : > { %3003 = vmatpush3.bf16.msra.mxu0 %v3707_v27  ;;  %2990 = vmatprep.mubr.bf16.mxu1 %v3411_v52 }
  0x77   : > { %3004 = vmatprep.subr.bf16.mxu0 %v3714_v29  ;;  %3035 = vmatpush3.bf16.msra.mxu1 %v3707_v27 }
  0x78   : > { %3036 = vmatprep.subr.bf16.mxu1 %v3714_v29 }
  0x7a   : > { %3005 = vmatpush3.bf16.msra.mxu0 %v3714_v29 }
  0x7b   : > { %3006 = vmatprep.subr.bf16.mxu0 %v3722_v30  ;;  %3037 = vmatpush3.bf16.msra.mxu1 %v3714_v29 }
  0x7c   : > { %3038 = vmatprep.subr.bf16.mxu1 %v3722_v30 }
  0x7d   : > { %2991 = vmatmul.mubr.bf16.gmra.mrb[28].mxu1 %v3412_v53 }
  0x7e   : > { %3007 = vmatpush3.bf16.msra.mxu0 %v3722_v30  ;;  %3042 = vmatprep.mubr.bf16.mxu1 %v3415_v54 }
  0x7f   : > { %3008 = vmatprep.subr.bf16.mxu0 %v3729_v32  ;;  %3039 = vmatpush3.bf16.msra.mxu1 %v3722_v30 }
  0x80   : > { %3040 = vmatprep.subr.bf16.mxu1 %v3729_v32 }
  0x82   : > { %3009 = vmatpush3.bf16.msra.mxu0 %v3729_v32 }
  0x83   : > { %3041 = vmatpush3.bf16.msra.mxu1 %v3729_v32 }
  0x85   : > { %3011 = vmatmul.mubr.bf16.vlgmr.msra.gmra.mrb[4].mxu0 %v3414_v55 }
  0x86   : > { %3014 = vmatprep.mubr.bf16.mxu0 %v3417_v56  ;;  %3043 = vmatmul.mubr.bf16.vlgmr.msra.gmra.mrb[32].mxu1 %v3416_v57 }
  0x87   : > { %3046 = vmatprep.mubr.bf16.mxu1 %v3419_v58 }
  0x8d   : > { %3015 = vmatmul.mubr.bf16.gmra.mrb[8].mxu0 %v3418_v59 }
  0x8e   : > { %3018 = vmatprep.mubr.bf16.mxu0 %v3421_v60  ;;  %3047 = vmatmul.mubr.bf16.gmra.mrb[36].mxu1 %v3420_v61 }
  0x8f   : > { %3050 = vmatprep.mubr.bf16.mxu1 %v3423_v62 }
  0x95   : > { %3019 = vmatmul.mubr.bf16.gmra.mrb[12].mxu0 %v3422_v63 }
  0x96   : > { %3022 = vmatprep.mubr.bf16.mxu0 %v3425_v16  ;;  %3051 = vmatmul.mubr.bf16.gmra.mrb[40].mxu1 %v3424_v17 }
  0x97   : > { %3054 = vmatprep.mubr.bf16.mxu1 %v3427_v18 }
  0x9d   : > { %3023 = vmatmul.mubr.bf16.gmra.mrb[16].mxu0 %v3426_v19 }
  0x9e   : > { %3055 = vmatmul.mubr.bf16.gmra.mrb[44].mxu1 %v3428_v20 }
 0x118   : > { %v2948_v21 = vpop.f32.mrb[0].mxu1 }
 0x119   : > { %v675_v22 = vpop.f32.mrb[1].mxu1 }
 0x11a   : > { %v2949_v23 = vpop.f32.mrb[2].mxu1 }
 0x11b   : > { %v678_v24 = vpop.f32.mrb[3].mxu1 }
 0x120   : > { %v2952_v25 = vpop.f32.mrb[4].mxu1 }
 0x121   : > { %v691_v26 = vpop.f32.mrb[5].mxu1 }
 0x122   : > { %v2953_v27 = vpop.f32.mrb[6].mxu1 }
 0x123   : > { %v694_v28 = vpop.f32.mrb[7].mxu1 }
 0x128   : > { %v2956_v29 = vpop.f32.mrb[8].mxu1 }
 0x129   : > { %v707_v30 = vpop.f32.mrb[9].mxu1 }
 0x12a   : > { %v2957_v31 = vpop.f32.mrb[10].mxu1 }
 0x12b   : > { %v710_v32 = vpop.f32.mrb[11].mxu1 }
 0x130   : > { %v2960_v35 = vpop.f32.mrb[12].mxu1 }
 0x131   : > { %v723_v36 = vpop.f32.mrb[13].mxu1 }
 0x132   : > { %v2961_v37 = vpop.f32.mrb[14].mxu1 }
 0x133   : > { %v726_v38 = vpop.f32.mrb[15].mxu1 }
 0x138   : > { %v521_v40 = vpop.f32.mrb[0].mxu0  ;;  %v2980_v43 = vpop.f32.mrb[16].mxu1 }
 0x139   : > { %v3842_v41 = vrot.slane %v521_v40, %v543_v39  ;;  %v2929_v42 = vpop.f32.mrb[1].mxu0  ;;  %v915_v45 = vpop.f32.mrb[17].mxu1 }
 0x13a   : > { %v2981_v50 = vpop.f32.mrb[18].mxu1 }
 0x13b   : > { %v924_v44 = vadd.f32 %v2980_v43, %v3842_v41  ;;  %v3846_v46 = vadd.f32 %v675_v22, %v3842_v41  ;;  %v3849_v47 = vadd.f32 %v2948_v21, %v3842_v41  ;;  %v3852_v48 = vadd.f32 %v678_v24, %v3842_v41  ;;  %v918_v55 = vpop.f32.mrb[19].mxu1 }
 0x13c   : > { %v916_v49 = vadd.f32 %v915_v45, %v3842_v41  ;;  %v3856_v51 = vadd.f32 %v2949_v23, %v3842_v41  ;;  %v3859_v52 = vadd.f32 %v691_v26, %v3842_v41  ;;  %v3862_v53 = vadd.f32 %v2952_v25, %v3842_v41 }
 0x13d   : > { %2497 = vst [vmem:[%s3864_s15 + $0x90] sm:$0xff] %v924_v44  ;;  %v927_v54 = vadd.f32 %v2981_v50, %v3842_v41  ;;  %v3869_v56 = vadd.f32 %v694_v28, %v3842_v41  ;;  %v3872_v57 = vadd.f32 %v2953_v27, %v3842_v41  ;;  %741 = vst [vmem:[%s3864_s15] sm:$0xff] %v3846_v46 }
 0x13e   : > { %742 = vst [vmem:[%s3864_s15 + $0x8] sm:$0xff] %v3852_v48  ;;  %743 = vst [vmem:[%s3864_s15 + $0x10] sm:$0xff] %v3849_v47  ;;  %v919_v58 = vadd.f32 %v918_v55, %v3842_v41  ;;  %v3883_v59 = vadd.f32 %v707_v30, %v3842_v41  ;;  %v3886_v60 = vadd.f32 %v2956_v29, %v3842_v41 }
 0x13f   : > { %2495 = vst [vmem:[%s3864_s15 + $0x80] sm:$0xff] %v916_v49  ;;  %744 = vst [vmem:[%s3864_s15 + $0x18] sm:$0xff] %v3856_v51  ;;  %v1019_v61 = vmul.f32 %v916_v49, %v916_v49  ;;  %v3896_v62 = vadd.f32 %v710_v32, %v3842_v41  ;;  %v3899_v63 = vadd.f32 %v2957_v31, %v3842_v41 }
 0x140   : > { %745 = vst [vmem:[%s3864_s15 + $0x20] sm:$0xff] %v3859_v52  ;;  %747 = vst [vmem:[%s3864_s15 + $0x30] sm:$0xff] %v3862_v53  ;;  %v3902_v16 = vadd.f32 %v723_v36, %v3842_v41  ;;  %v997_v17 = vadd.f32 %v919_v58, %v916_v49  ;;  %v1020_v18 = vmul.f32 %v919_v58, %v919_v58  ;;  %v2984_v26 = vpop.f32.mrb[20].mxu1 }
 0x141   : > { %2498 = vst [vmem:[%s3864_s15 + $0x98] sm:$0xff] %v927_v54  ;;  %746 = vst [vmem:[%s3864_s15 + $0x28] sm:$0xff] %v3869_v56  ;;  %v3910_v19 = vadd.f32 %v2960_v35, %v3842_v41  ;;  %v3913_v20 = vadd.f32 %v726_v38, %v3842_v41  ;;  %v3920_v21 = vadd.f32 %v2961_v37, %v3842_v41  ;;  %v931_v28 = vpop.f32.mrb[21].mxu1 }
 0x142   : > { %748 = vst [vmem:[%s3864_s15 + $0x38] sm:$0xff] %v3872_v57  ;;  %2496 = vst [vmem:[%s3864_s15 + $0x88] sm:$0xff] %v919_v58  ;;  %v757_v22 = vadd.f32 %v3852_v48, %v3846_v46  ;;  %v1021_v23 = vmul.f32 %v924_v44, %v924_v44  ;;  %v998_v24 = vadd.f32 %v997_v17, %v924_v44  ;;  %v2985_v34 = vpop.f32.mrb[22].mxu1 }
 0x143   : > { %749 = vst [vmem:[%s3864_s15 + $0x40] sm:$0xff] %v3883_v59  ;;  %751 = vst [vmem:[%s3864_s15 + $0x50] sm:$0xff] %v3886_v60  ;;  %v1035_v25 = vadd.f32 %v1020_v18, %v1019_v61  ;;  %v940_v27 = vadd.f32 %v2984_v26, %v3842_v41  ;;  %v1022_v30 = vmul.f32 %v927_v54, %v927_v54  ;;  %v934_v36 = vpop.f32.mrb[23].mxu1 }
 0x144   : > { %750 = vst [vmem:[%s3864_s15 + $0x48] sm:$0xff] %v3896_v62  ;;  %752 = vst [vmem:[%s3864_s15 + $0x58] sm:$0xff] %v3899_v63  ;;  %v758_v29 = vadd.f32 %v757_v22, %v3849_v47  ;;  %v932_v32 = vadd.f32 %v931_v28, %v3842_v41  ;;  %v999_v33 = vadd.f32 %v998_v24, %v927_v54 }
 0x145   : > { %753 = vst [vmem:[%s3864_s15 + $0x60] sm:$0xff] %v3902_v16  ;;  %754 = vst [vmem:[%s3864_s15 + $0x68] sm:$0xff] %v3913_v20  ;;  %v1036_v31 = vadd.f32 %v1035_v25, %v1021_v23  ;;  %v943_v35 = vadd.f32 %v2985_v34, %v3842_v41  ;;  %v935_v42 = vadd.f32 %v934_v36, %v3842_v41 }
 0x146   : > { %755 = vst [vmem:[%s3864_s15 + $0x70] sm:$0xff] %v3910_v19  ;;  %756 = vst [vmem:[%s3864_s15 + $0x78] sm:$0xff] %v3920_v21  ;;  %v759_v37 = vadd.f32 %v758_v29, %v3856_v51  ;;  %v1000_v38 = vadd.f32 %v999_v33, %v932_v32  ;;  %v1023_v39 = vmul.f32 %v932_v32, %v932_v32 }
 0x147   : > { %2501 = vst [vmem:[%s3864_s15 + $0xb0] sm:$0xff] %v940_v27  ;;  %2499 = vst [vmem:[%s3864_s15 + $0xa0] sm:$0xff] %v932_v32  ;;  %v1037_v40 = vadd.f32 %v1036_v31, %v1022_v30  ;;  %v779_v44 = vmul.f32 %v3846_v46, %v3846_v46  ;;  %v780_v45 = vmul.f32 %v3852_v48, %v3852_v48 }
 0x148   : > { %2502 = vst [vmem:[%s3864_s15 + $0xb8] sm:$0xff] %v943_v35  ;;  %v760_v43 = vadd.f32 %v759_v37, %v3859_v52  ;;  %2500 = vst [vmem:[%s3864_s15 + $0xa8] sm:$0xff] %v935_v42  ;;  %v1001_v50 = vadd.f32 %v1000_v38, %v935_v42  ;;  %v1024_v54 = vmul.f32 %v935_v42, %v935_v42  ;;  %v2988_v18 = vpop.f32.mrb[24].mxu1 }
 0x149   : > { %v1038_v49 = vadd.f32 %v1037_v40, %v1023_v39  ;;  %v1025_v58 = vmul.f32 %v940_v27, %v940_v27  ;;  %v956_v22 = vadd.f32 %v2988_v18, %v3842_v41  ;;  %v947_v23 = vpop.f32.mrb[25].mxu1  ;;  %v781_v48 = vmul.f32 %v3849_v47, %v3849_v47 }
 0x14a   : > { %v761_v55 = vadd.f32 %v760_v43, %v3869_v56  ;;  %v1002_v61 = vadd.f32 %v1001_v50, %v940_v27  ;;  %v795_v24 = vadd.f32 %v780_v45, %v779_v44  ;;  %v1026_v25 = vmul.f32 %v943_v35, %v943_v35  ;;  %v2989_v30 = vpop.f32.mrb[26].mxu1 }
 0x14b   : > { %v1039_v17 = vadd.f32 %v1038_v49, %v1024_v54  ;;  %v948_v28 = vadd.f32 %v947_v23, %v3842_v41  ;;  %2505 = vst [vmem:[%s3864_s15 + $0xd0] sm:$0xff] %v956_v22  ;;  %v959_v27 = vadd.f32 %v2989_v30, %v3842_v41  ;;  %v950_v31 = vpop.f32.mrb[27].mxu1  ;;  %v782_v33 = vmul.f32 %v3856_v51, %v3856_v51 }
 0x14c   : > { %v762_v46 = vadd.f32 %v761_v55, %v3862_v53  ;;  %v1003_v29 = vadd.f32 %v1002_v61, %v943_v35  ;;  %v796_v34 = vadd.f32 %v795_v24, %v781_v48  ;;  %v951_v38 = vadd.f32 %v950_v31, %v3842_v41 }
 0x14d   : > { %v1040_v26 = vadd.f32 %v1039_v17, %v1025_v58  ;;  %2503 = vst [vmem:[%s3864_s15 + $0xc0] sm:$0xff] %v948_v28  ;;  %v1027_v36 = vmul.f32 %v948_v28, %v948_v28  ;;  %2506 = vst [vmem:[%s3864_s15 + $0xd8] sm:$0xff] %v959_v27  ;;  %v783_v39 = vmul.f32 %v3859_v52, %v3859_v52 }
 0x14e   : > { %v763_v32 = vadd.f32 %v762_v46, %v3872_v57  ;;  %v1004_v47 = vadd.f32 %v1003_v29, %v948_v28  ;;  %v797_v40 = vadd.f32 %v796_v34, %v782_v33  ;;  %2504 = vst [vmem:[%s3864_s15 + $0xc8] sm:$0xff] %v951_v38  ;;  %v1028_v44 = vmul.f32 %v951_v38, %v951_v38 }
 0x14f   : > { %v1041_v37 = vadd.f32 %v1040_v26, %v1026_v25  ;;  %v784_v51 = vmul.f32 %v3869_v56, %v3869_v56  ;;  %v785_v49 = vmul.f32 %v3862_v53, %v3862_v53  ;;  %v786_v50 = vmul.f32 %v3872_v57, %v3872_v57 }
 0x150   : > { %v764_v35 = vadd.f32 %v763_v32, %v3883_v59  ;;  %v1005_v43 = vadd.f32 %v1004_v47, %v951_v38  ;;  %v798_v54 = vadd.f32 %v797_v40, %v783_v39  ;;  %v1029_v55 = vmul.f32 %v956_v22, %v956_v22  ;;  %v2992_v61 = vpop.f32.mrb[28].mxu1 }
 0x151   : > { %v1042_v42 = vadd.f32 %v1041_v37, %v1027_v36  ;;  %v787_v17 = vmul.f32 %v3883_v59, %v3883_v59  ;;  %v972_v18 = vadd.f32 %v2992_v61, %v3842_v41  ;;  %v963_v56 = vpop.f32.mrb[29].mxu1  ;;  %v788_v53 = vmul.f32 %v3896_v62, %v3896_v62 }
 0x152   : > { %v765_v45 = vadd.f32 %v764_v35, %v3896_v62  ;;  %v1006_v52 = vadd.f32 %v1005_v43, %v956_v22  ;;  %v799_v46 = vadd.f32 %v798_v54, %v784_v51  ;;  %v1030_v57 = vmul.f32 %v959_v27, %v959_v27  ;;  %v2993_v25 = vpop.f32.mrb[30].mxu1 }
 0x153   : > { %v1043_v58 = vadd.f32 %v1042_v42, %v1028_v44  ;;  %v964_v22 = vadd.f32 %v963_v56, %v3842_v41  ;;  %2509 = vst [vmem:[%s3864_s15 + $0xf0] sm:$0xff] %v972_v18  ;;  %v975_v59 = vadd.f32 %v2993_v25, %v3842_v41  ;;  %v789_v28 = vmul.f32 %v3886_v60, %v3886_v60  ;;  %v966_v30 = vpop.f32.mrb[31].mxu1 }
 0x154   : > { %v766_v23 = vadd.f32 %v765_v45, %v3886_v60  ;;  %v1007_v24 = vadd.f32 %v1006_v52, %v959_v27  ;;  %v800_v29 = vadd.f32 %v799_v46, %v785_v49  ;;  %v967_v33 = vadd.f32 %v966_v30, %v3842_v41 }
 0x155   : > { %v1044_v48 = vadd.f32 %v1043_v58, %v1029_v55  ;;  %2507 = vst [vmem:[%s3864_s15 + $0xe0] sm:$0xff] %v964_v22  ;;  %v1031_v31 = vmul.f32 %v964_v22, %v964_v22  ;;  %2510 = vst [vmem:[%s3864_s15 + $0xf8] sm:$0xff] %v975_v59  ;;  %v790_v34 = vmul.f32 %v3899_v63, %v3899_v63 }
 0x156   : > { %v767_v26 = vadd.f32 %v766_v23, %v3899_v63  ;;  %v1008_v62 = vadd.f32 %v1007_v24, %v964_v22  ;;  %v791_v47 = vmul.f32 %v3902_v16, %v3902_v16  ;;  %v801_v36 = vadd.f32 %v800_v29, %v786_v50  ;;  %2508 = vst [vmem:[%s3864_s15 + $0xe8] sm:$0xff] %v967_v33 }
 0x157   : > { %v1045_v32 = vadd.f32 %v1044_v48, %v1030_v57  ;;  %v3998_v60 = vmul.f32 %v3913_v20, %v3913_v20  ;;  %v1032_v35 = vmul.f32 %v967_v33, %v967_v33  ;;  %v4004_v42 = vmul.f32 %v3910_v19, %v3910_v19 }
 0x158   : > { %v768_v27 = vadd.f32 %v767_v26, %v3902_v16  ;;  %v1009_v38 = vadd.f32 %v1008_v62, %v967_v33  ;;  %v3012_v39 = vpop.f32.mrb[4].mxu0  ;;  %v802_v63 = vadd.f32 %v801_v36, %v787_v17  ;;  %v1033_v44 = vmul.f32 %v972_v18, %v972_v18 }
 0x159   : > { %v1046_v37 = vadd.f32 %v1045_v32, %v1031_v31  ;;  %v1164_v16 = vadd.f32 %v3012_v39, %v3842_v41  ;;  %v1155_v43 = vpop.f32.mrb[5].mxu0  ;;  %v3044_v54 = vpop.f32.mrb[32].mxu1 }
 0x15a   : > { %v769_v40 = vadd.f32 %v768_v27, %v3913_v20  ;;  %v1010_v51 = vadd.f32 %v1009_v38, %v972_v18  ;;  %v1156_v49 = vadd.f32 %v1155_v43, %v3842_v41  ;;  %v3013_v50 = vpop.f32.mrb[6].mxu0  ;;  %v4011_v20 = vmul.f32 %v3920_v21, %v3920_v21  ;;  %v1395_v17 = vpop.f32.mrb[33].mxu1 }
 0x15b   : > { %v1047_v45 = vadd.f32 %v1046_v37, %v1032_v35  ;;  %v803_v52 = vadd.f32 %v802_v63, %v788_v53  ;;  %2523 = vst [vmem:[%s3864_s15 + $0x110] sm:$0xff] %v1164_v16  ;;  %v4015_v58 = vadd.f32 %v3013_v50, %v3842_v41  ;;  %v1158_v61 = vpop.f32.mrb[7].mxu0  ;;  %v1034_v18 = vmul.f32 %v975_v59, %v975_v59  ;;  %v3045_v46 = vpop.f32.mrb[34].mxu1 }
 0x15c   : > { %v770_v55 = vadd.f32 %v769_v40, %v3910_v19  ;;  %v1011_v56 = vadd.f32 %v1010_v51, %v975_v59  ;;  %2521 = vst [vmem:[%s3864_s15 + $0x100] sm:$0xff] %v1156_v49  ;;  %v1404_v19 = vadd.f32 %v3044_v54, %v3842_v41  ;;  %v1261_v22 = vmul.f32 %v1164_v16, %v1164_v16  ;;  %v1398_v24 = vpop.f32.mrb[35].mxu1 }
 0x15d   : > { %v1048_v23 = vadd.f32 %v1047_v45, %v1033_v44  ;;  %v804_v48 = vadd.f32 %v803_v52, %v789_v28  ;;  %2524 = vst [vmem:[%s3864_s15 + $0x118] sm:$0xff] %v4015_v58  ;;  %v1159_v53 = vadd.f32 %v1158_v61, %v3842_v41  ;;  %v1259_v29 = vmul.f32 %v1156_v49, %v1156_v49 }
 0x15e   : > { %v771_v57 = vadd.f32 %v770_v55, %v3920_v21  ;;  %v1012_v25 = vrot.slane %v1011_v56, 4  ;;  %2549 = vst [vmem:[%s3864_s15 + $0x190] sm:$0xff] %v1404_v19  ;;  %v1396_v59 = vadd.f32 %v1395_v17, %v3842_v41  ;;  %v1262_v33 = vmul.f32 %v4015_v58, %v4015_v58 }
 0x15f   : > { %v1049_v26 = vadd.f32 %v1048_v23, %v1034_v18  ;;  %v805_v62 = vadd.f32 %v804_v48, %v790_v34  ;;  %2522 = vst [vmem:[%s3864_s15 + $0x108] sm:$0xff] %v1159_v53  ;;  %v1237_v31 = vadd.f32 %v1159_v53, %v1156_v49  ;;  %v1260_v21 = vmul.f32 %v1159_v53, %v1159_v53 }
 0x160   : > { %v772_v30 = vrot.slane %v771_v57, 4  ;;  %v1013_v28 = vadd.f32 %v1012_v25, %v1011_v56  ;;  %2547 = vst [vmem:[%s3864_s15 + $0x180] sm:$0xff] %v1396_v59  ;;  %v4030_v27 = vadd.f32 %v3045_v46, %v3842_v41  ;;  %v3016_v36 = vpop.f32.mrb[8].mxu0  ;;  %v1499_v43 = vmul.f32 %v1396_v59, %v1396_v59 }
 0x161   : > { %v1050_v32 = vrot.slane %v1049_v26, 4  ;;  %v806_v38 = vadd.f32 %v805_v62, %v791_v47  ;;  %v1238_v35 = vadd.f32 %v1237_v31, %v1164_v16  ;;  %v1275_v39 = vadd.f32 %v1260_v21, %v1259_v29  ;;  %v1171_v40 = vpop.f32.mrb[9].mxu0  ;;  %v3048_v45 = vpop.f32.mrb[36].mxu1 }
 0x162   : > { %v773_v37 = vadd.f32 %v772_v30, %v771_v57  ;;  %v1014_v34 = vrot.slane %v1013_v28, 2  ;;  %2550 = vst [vmem:[%s3864_s15 + $0x198] sm:$0xff] %v4030_v27  ;;  %v1399_v44 = vadd.f32 %v1398_v24, %v3842_v41  ;;  %v3017_v51 = vpop.f32.mrb[10].mxu0  ;;  %v1180_v47 = vadd.f32 %v3016_v36, %v3842_v41  ;;  %v1411_v55 = vpop.f32.mrb[37].mxu1 }
 0x163   : > { %v1051_v63 = vadd.f32 %v1050_v32, %v1049_v26  ;;  %v807_v50 = vadd.f32 %v806_v38, %v3998_v60  ;;  %v1276_v54 = vadd.f32 %v1275_v39, %v1261_v22  ;;  %v1174_v16 = vpop.f32.mrb[11].mxu0  ;;  %v3049_v56 = vpop.f32.mrb[38].mxu1  ;;  %v1501_v57 = vmul.f32 %v1404_v19, %v1404_v19 }
 0x164   : > { %v774_v49 = vrot.slane %v773_v37, 2  ;;  %v1015_v52 = vadd.f32 %v1014_v34, %v1013_v28  ;;  %2548 = vst [vmem:[%s3864_s15 + $0x188] sm:$0xff] %v1399_v44  ;;  %v1477_v17 = vadd.f32 %v1399_v44, %v1396_v59  ;;  %v1500_v18 = vmul.f32 %v1399_v44, %v1399_v44  ;;  %2527 = vst [vmem:[%s3864_s15 + $0x130] sm:$0xff] %v1180_v47  ;;  %v1414_v60 = vpop.f32.mrb[39].mxu1 }
 0x165   : > { %v1052_v61 = vrot.slane %v1051_v63, 2  ;;  %v808_v46 = vadd.f32 %v807_v50, %v4004_v42  ;;  %v1172_v48 = vadd.f32 %v1171_v40, %v3842_v41  ;;  %v1239_v59 = vadd.f32 %v1238_v35, %v4015_v58 }
 0x166   : > { %v775_v23 = vadd.f32 %v774_v49, %v773_v37  ;;  %v1016_v22 = vrot.slane %v1015_v52, 1  ;;  %v1478_v24 = vadd.f32 %v1477_v17, %v1404_v19  ;;  %v1515_v25 = vadd.f32 %v1500_v18, %v1499_v43 }
 0x167   : > { %v1053_v53 = vadd.f32 %v1052_v61, %v1051_v63  ;;  %v809_v29 = vadd.f32 %v808_v46, %v4011_v20  ;;  %2525 = vst [vmem:[%s3864_s15 + $0x120] sm:$0xff] %v1172_v48  ;;  %v1263_v30 = vmul.f32 %v1172_v48, %v1172_v48  ;;  %v1277_v42 = vadd.f32 %v1276_v54, %v1262_v33 }
 0x168   : > { %v776_v26 = vrot.slane %v775_v23, 1  ;;  %v1017_v62 = vadd.f32 %v1016_v22, %v1015_v52  ;;  %v1516_v21 = vadd.f32 %v1515_v25, %v1501_v57  ;;  %v3020_v28 = vpop.f32.mrb[12].mxu0  ;;  %v1240_v37 = vadd.f32 %v1239_v59, %v1172_v48 }
 0x169   : > { %v1054_v31 = vrot.slane %v1053_v53, 1  ;;  %v810_v36 = vrot.slane %v809_v29, 4  ;;  %v1183_v38 = vadd.f32 %v3017_v51, %v3842_v41  ;;  %v1187_v19 = vpop.f32.mrb[13].mxu0  ;;  %v1502_v20 = vmul.f32 %v4030_v27, %v4030_v27  ;;  %v3052_v33 = vpop.f32.mrb[40].mxu1 }
 0x16a   : > { %v777_v32 = vadd.f32 %v776_v26, %v775_v23  ;;  %v1278_v39 = vadd.f32 %v1277_v42, %v1263_v30  ;;  %v1420_v58 = vadd.f32 %v3048_v45, %v3842_v41  ;;  %v1175_v35 = vadd.f32 %v1174_v16, %v3842_v41  ;;  %v3021_v40 = vpop.f32.mrb[14].mxu0  ;;  %v1427_v49 = vpop.f32.mrb[41].mxu1 }
 0x16b   : > { %v811_v34 = vadd.f32 %v810_v36, %v809_v29  ;;  %v1265_v43 = vmul.f32 %v1180_v47, %v1180_v47  ;;  %2528 = vst [vmem:[%s3864_s15 + $0x138] sm:$0xff] %v1183_v38  ;;  %v1412_v44 = vadd.f32 %v1411_v55, %v3842_v41  ;;  %v1190_v51 = vpop.f32.mrb[15].mxu0  ;;  %v1055_v50 = vadd.f32 %v1054_v31, %v1053_v53  ;;  %v3053_v16 = vpop.f32.mrb[42].mxu1 }
 0x16c   : > { %v4049_v63 = vadd.f32 %v1017_v62, %v777_v32  ;;  %2553 = vst [vmem:[%s3864_s15 + $0x1b0] sm:$0xff] %v1420_v58  ;;  %2526 = vst [vmem:[%s3864_s15 + $0x128] sm:$0xff] %v1175_v35  ;;  %v1241_v54 = vadd.f32 %v1240_v37, %v1175_v35  ;;  %v1264_v52 = vmul.f32 %v1175_v35, %v1175_v35  ;;  %v1430_v46 = vpop.f32.mrb[43].mxu1 }
 0x16d   : > { %v1479_v45 = vadd.f32 %v1478_v24, %v4030_v27  ;;  %v812_v61 = vrot.slane %v811_v34, 2  ;;  %2551 = vst [vmem:[%s3864_s15 + $0x1a0] sm:$0xff] %v1412_v44  ;;  %v1503_v17 = vmul.f32 %v1412_v44, %v1412_v44  ;;  %v1517_v18 = vadd.f32 %v1516_v21, %v1502_v20 }
 0x16e   : > { %v1423_v23 = vadd.f32 %v3049_v56, %v3842_v41  ;;  %v1242_v55 = vadd.f32 %v1241_v54, %v1180_v47  ;;  %v1279_v57 = vadd.f32 %v1278_v39, %v1264_v52  ;;  %v1415_v22 = vadd.f32 %v1414_v60, %v3842_v41 }
 0x16f   : > { %v1480_v48 = vadd.f32 %v1479_v45, %v1412_v44  ;;  %v813_v53 = vadd.f32 %v812_v61, %v811_v34  ;;  %v1266_v25 = vmul.f32 %v1183_v38, %v1183_v38  ;;  %v1518_v26 = vadd.f32 %v1517_v18, %v1503_v17 }
 0x170   : > { %2554 = vst [vmem:[%s3864_s15 + $0x1b8] sm:$0xff] %v1423_v23  ;;  %v1196_v27 = vadd.f32 %v3020_v28, %v3842_v41  ;;  %v1280_v24 = vadd.f32 %v1279_v57, %v1265_v43  ;;  %2552 = vst [vmem:[%s3864_s15 + $0x1a8] sm:$0xff] %v1415_v22  ;;  %v1504_v59 = vmul.f32 %v1415_v22, %v1415_v22  ;;  %v3024_v30 = vpop.f32.mrb[16].mxu0 }
 0x171   : > { %v1481_v29 = vadd.f32 %v1480_v48, %v1415_v22  ;;  %v1188_v56 = vadd.f32 %v1187_v19, %v3842_v41  ;;  %v814_v47 = vrot.slane %v813_v53, 1  ;;  %v1505_v62 = vmul.f32 %v1420_v58, %v1420_v58  ;;  %v1203_v21 = vpop.f32.mrb[17].mxu0  ;;  %v3056_v20 = vpop.f32.mrb[44].mxu1 }
 0x172   : > { %2531 = vst [vmem:[%s3864_s15 + $0x150] sm:$0xff] %v1196_v27  ;;  %v1243_v31 = vadd.f32 %v1242_v55, %v1183_v38  ;;  %v1199_v60 = vadd.f32 %v3021_v40, %v3842_v41  ;;  %v1519_v32 = vadd.f32 %v1518_v26, %v1504_v59  ;;  %v1281_v28 = vadd.f32 %v1280_v24, %v1266_v25  ;;  %v3025_v37 = vpop.f32.mrb[18].mxu0  ;;  %v1443_v43 = vpop.f32.mrb[45].mxu1 }
 0x173   : > { %v1482_v42 = vadd.f32 %v1481_v29, %v1420_v58  ;;  %2529 = vst [vmem:[%s3864_s15 + $0x140] sm:$0xff] %v1188_v56  ;;  %v1267_v36 = vmul.f32 %v1188_v56, %v1188_v56  ;;  %v815_v39 = vadd.f32 %v814_v47, %v813_v53  ;;  %v1506_v35 = vmul.f32 %v1423_v23, %v1423_v23  ;;  %v1206_v38 = vpop.f32.mrb[19].mxu0  ;;  %v3057_v52 = vpop.f32.mrb[46].mxu1 }
 0x174   : > { %v1244_v19 = vadd.f32 %v1243_v31, %v1188_v56  ;;  %2532 = vst [vmem:[%s3864_s15 + $0x158] sm:$0xff] %v1199_v60  ;;  %v1436_v34 = vadd.f32 %v3052_v33, %v3842_v41  ;;  %v1520_v40 = vadd.f32 %v1519_v32, %v1505_v62  ;;  %v1191_v58 = vadd.f32 %v1190_v51, %v3842_v41  ;;  %v1446_v18 = vpop.f32.mrb[47].mxu1 }
 0x175   : > { %v1282_v44 = vadd.f32 %v1281_v28, %v1267_v36  ;;  %v1428_v54 = vadd.f32 %v1427_v49, %v3842_v41  ;;  %v4070_v45 = vadd.f32 %v1055_v50, %v815_v39  ;;  %v1483_v61 = vadd.f32 %v1482_v42, %v1423_v23 }
 0x176   : > { %2557 = vst [vmem:[%s3864_s15 + $0x1d0] sm:$0xff] %v1436_v34  ;;  %v1439_v17 = vadd.f32 %v3053_v16, %v3842_v41  ;;  %2530 = vst [vmem:[%s3864_s15 + $0x148] sm:$0xff] %v1191_v58  ;;  %v1245_v33 = vadd.f32 %v1244_v19, %v1191_v58  ;;  %v1268_v55 = vmul.f32 %v1191_v58, %v1191_v58 }
 0x177   : > { %2555 = vst [vmem:[%s3864_s15 + $0x1c0] sm:$0xff] %v1428_v54  ;;  %v1507_v57 = vmul.f32 %v1428_v54, %v1428_v54  ;;  %v1521_v48 = vadd.f32 %v1520_v40, %v1506_v35  ;;  %v1269_v51 = vmul.f32 %v1196_v27, %v1196_v27  ;;  %v1484_v22 = vadd.f32 %v1483_v61, %v1428_v54 }
 0x178   : > { %2558 = vst [vmem:[%s3864_s15 + $0x1d8] sm:$0xff] %v1439_v17  ;;  %v1431_v49 = vadd.f32 %v1430_v46, %v3842_v41  ;;  %v1212_v50 = vadd.f32 %v3024_v30, %v3842_v41  ;;  %v1246_v23 = vadd.f32 %v1245_v33, %v1196_v27  ;;  %v1283_v53 = vadd.f32 %v1282_v44, %v1268_v55 }
 0x179   : > { %v1522_v16 = vadd.f32 %v1521_v48, %v1507_v57  ;;  %v1204_v25 = vadd.f32 %v1203_v21, %v3842_v41  ;;  %v1270_v26 = vmul.f32 %v1199_v60, %v1199_v60  ;;  %v1215_v59 = vadd.f32 %v3025_v37, %v3842_v41 }
 0x17a   : > { %2556 = vst [vmem:[%s3864_s15 + $0x1c8] sm:$0xff] %v1431_v49  ;;  %v1485_v24 = vadd.f32 %v1484_v22, %v1431_v49  ;;  %v1508_v29 = vmul.f32 %v1431_v49, %v1431_v49  ;;  %2535 = vst [vmem:[%s3864_s15 + $0x170] sm:$0xff] %v1212_v50  ;;  %v1284_v56 = vadd.f32 %v1283_v53, %v1269_v51 }
 0x17b   : > { %2533 = vst [vmem:[%s3864_s15 + $0x160] sm:$0xff] %v1204_v25  ;;  %v1247_v46 = vadd.f32 %v1246_v23, %v1199_v60  ;;  %v1271_v47 = vmul.f32 %v1204_v25, %v1204_v25  ;;  %v1452_v27 = vadd.f32 %v3056_v20, %v3842_v41  ;;  %v1509_v30 = vmul.f32 %v1436_v34, %v1436_v34 }
 0x17c   : > { %v1486_v62 = vadd.f32 %v1485_v24, %v1436_v34  ;;  %v1523_v31 = vadd.f32 %v1522_v16, %v1508_v29  ;;  %2536 = vst [vmem:[%s3864_s15 + $0x178] sm:$0xff] %v1215_v59  ;;  %v1207_v21 = vadd.f32 %v1206_v38, %v3842_v41  ;;  %v1510_v42 = vmul.f32 %v1439_v17, %v1439_v17 }
 0x17d   : > { %v1248_v32 = vadd.f32 %v1247_v46, %v1204_v25  ;;  %v1285_v36 = vadd.f32 %v1284_v56, %v1270_v26  ;;  %2561 = vst [vmem:[%s3864_s15 + $0x1f0] sm:$0xff] %v1452_v27  ;;  %v1444_v28 = vadd.f32 %v1443_v43, %v3842_v41  ;;  %v1455_v20 = vadd.f32 %v3057_v52, %v3842_v41 }
 0x17e   : > { %v1524_v37 = vadd.f32 %v1523_v31, %v1509_v30  ;;  %2534 = vst [vmem:[%s3864_s15 + $0x168] sm:$0xff] %v1207_v21  ;;  %v1272_v60 = vmul.f32 %v1207_v21, %v1207_v21  ;;  %v1487_v39 = vadd.f32 %v1486_v62, %v1439_v17  ;;  %v1447_v38 = vadd.f32 %v1446_v18, %v3842_v41 }
 0x17f   : > { %v1286_v35 = vadd.f32 %v1285_v36, %v1271_v47  ;;  %v1249_v19 = vadd.f32 %v1248_v32, %v1207_v21  ;;  %2559 = vst [vmem:[%s3864_s15 + $0x1e0] sm:$0xff] %v1444_v28  ;;  %v1511_v34 = vmul.f32 %v1444_v28, %v1444_v28  ;;  %2562 = vst [vmem:[%s3864_s15 + $0x1f8] sm:$0xff] %v1455_v20 }
 0x180   : > { %v1488_v40 = vadd.f32 %v1487_v39, %v1444_v28  ;;  %v1525_v44 = vadd.f32 %v1524_v37, %v1510_v42  ;;  %v1273_v58 = vmul.f32 %v1212_v50, %v1212_v50  ;;  %2560 = vst [vmem:[%s3864_s15 + $0x1e8] sm:$0xff] %v1447_v38  ;;  %v1512_v43 = vmul.f32 %v1447_v38, %v1447_v38 }
 0x181   : > { %v1250_v54 = vadd.f32 %v1249_v19, %v1212_v50  ;;  %v1287_v61 = vadd.f32 %v1286_v35, %v1272_v60  ;;  %v1274_v57 = vmul.f32 %v1215_v59, %v1215_v59  ;;  %v1513_v52 = vmul.f32 %v1452_v27, %v1452_v27 }
 0x182   : > { %v1526_v33 = vadd.f32 %v1525_v44, %v1511_v34  ;;  %v1489_v55 = vadd.f32 %v1488_v40, %v1447_v38  ;;  %v1514_v53 = vmul.f32 %v1455_v20, %v1455_v20  ;;  %v1537_v34 = vld [vmem:[#allocation3] sm:$0x1]  ;;  %v1540_v44 = vld [vmem:[#allocation4] sm:$0x1] }
 0x183   : > { %v1251_v17 = vadd.f32 %v1250_v54, %v1215_v59  ;;  %v1288_v48 = vadd.f32 %v1287_v61, %v1273_v58 }
 0x184   : > { %v1490_v51 = vadd.f32 %v1489_v55, %v1452_v27  ;;  %v1527_v22 = vadd.f32 %v1526_v33, %v1512_v43 }
 0x185   : > { %v1252_v49 = vrot.slane %v1251_v17, 4  ;;  %v1289_v23 = vadd.f32 %v1288_v48, %v1274_v57 }
 0x186   : > { %v1491_v41 = vadd.f32 %v1490_v51, %v1455_v20  ;;  %v1528_v18 = vadd.f32 %v1527_v22, %v1513_v52 }
 0x187   : > { %v1253_v16 = vadd.f32 %v1252_v49, %v1251_v17  ;;  %v1290_v25 = vrot.slane %v1289_v23, 4 }
 0x188   : > { %v1492_v26 = vrot.slane %v1491_v41, 4  ;;  %v1529_v50 = vadd.f32 %v1528_v18, %v1514_v53 }
 0x189   : > { %v1254_v24 = vrot.slane %v1253_v16, 2  ;;  %v1291_v29 = vadd.f32 %v1290_v25, %v1289_v23 }
 0x18a   : > { %v1493_v56 = vadd.f32 %v1492_v26, %v1491_v41  ;;  %v1530_v46 = vrot.slane %v1529_v50, 4 }
 0x18b   : > { %v1255_v47 = vadd.f32 %v1254_v24, %v1253_v16  ;;  %v1292_v30 = vrot.slane %v1291_v29, 2 }
 0x18c   : > { %v1494_v59 = vrot.slane %v1493_v56, 2  ;;  %v1531_v62 = vadd.f32 %v1530_v46, %v1529_v50 }
 0x18d   : > { %v1256_v31 = vrot.slane %v1255_v47, 1  ;;  %v1293_v27 = vadd.f32 %v1292_v30, %v1291_v29 }
 0x18e   : > { %v1495_v21 = vadd.f32 %v1494_v59, %v1493_v56  ;;  %v1532_v42 = vrot.slane %v1531_v62, 2 }
 0x18f   : > { %v1257_v32 = vadd.f32 %v1256_v31, %v1255_v47  ;;  %v1294_v36 = vrot.slane %v1293_v27, 1 }
 0x190   : > { %v1496_v28 = vrot.slane %v1495_v21, 1  ;;  %v1533_v37 = vadd.f32 %v1532_v42, %v1531_v62 }
 0x191   : > { %v1258_v60 = vadd.f32 %v1257_v32, %v4049_v63  ;;  %v1295_v39 = vadd.f32 %v1294_v36, %v1293_v27 }
 0x192   : > { %v1497_v20 = vadd.f32 %v1496_v28, %v1495_v21  ;;  %v1534_v35 = vrot.slane %v1533_v37, 1 }
 0x193   : > { %v1296_v19 = vadd.f32 %v1295_v39, %v4070_v45 }
 0x194   : > { %v1498_v38 = vadd.f32 %v1497_v20, %v1258_v60  ;;  %v1535_v40 = vadd.f32 %v1534_v35, %v1533_v37 }
 0x196   : > { %v1536_v58 = vadd.f32 %v1535_v40, %v1296_v19  ;;  %v1538_v54 = vadd.f32 %v1537_v34, %v1498_v38 }
 0x198   : > { %1539 = vst [vmem:[#allocation3] sm:$0x1] %v1538_v54  ;;  %v1541_v61 = vadd.f32 %v1540_v44, %v1536_v58 }
 0x19a   : > { %1542 = vst [vmem:[#allocation4] sm:$0x1] %v1541_v61 }
 0x19b PF: > { %p2563_p10 = scmp.ne.s32.totalorder %s3457_s22, 1 }
 0x19d   : > { %1546 = sbr.rel (%p2563_p10) target bundleno = 971 (0x3cb), region = 56 }
 0x1a4   : > { %v3231_v63 = vpack.c.bf16 %v3557_v1, %v3552_v0  ;;  %v3475_v43 = vmov 0.0|0.0   ;;  %v3234_v45 = vpack.c.bf16 %v3569_v3, %v3562_v2  ;;  %vm3476_vm3 = vmmov 0   ;;  %v1696_v48 = vld [vmem:[%s348_s9] sm:$0x1]  ;;  %s2679_s29 = sshll.u32 %s3453_s21, 9 }
 0x1a5   : > { %3230 = vmatprep.subr.bf16.mxu0 %v3475_v43  ;;  %3254 = vmatprep.subr.bf16.mxu1 %v3475_v43  ;;  %v3477_v33 = vmov 0.0   ;;  %v3237_v0 = vpack.c.bf16 %v3579_v5, %v3574_v4  ;;  %v3240_v1 = vpack.c.bf16 %v3591_v7, %v3586_v6  ;;  %v3243_v2 = vpack.c.bf16 %v3601_v9, %v3596_v8  ;;  %v1547_v6 = vld [vmem:[#allocation3] sm:$0x1]  ;;  %v1618_v7 = vld [vmem:[#allocation4] sm:$0x1]  ;;  %s4204_s12 = scalar_lea.vmem [#allocation2], %s2679_s29 }
 0x1a6   : > { %3232 = vmatpush3.bf16.msra.mxu0 %v3231_v63  ;;  %3256 = vmatpush3.bf16.msra.mxu1 %v3231_v63  ;;  %v3246_v3 = vpack.c.bf16 %v3611_v11, %v3606_v10  ;;  %v3249_v4 = vpack.c.bf16 %v3621_v13, %v3616_v12  ;;  %v3252_v5 = vpack.c.bf16 %v3636_v15, %v3626_v14  ;;  %vm1701_vm4 = vcmask 261120   ;;  %v1698_v22 = vld [vmem:[%s351_s13] sm:$0x1]  ;;  %v1900_v26 = vld [vmem:[%s4204_s12 + $0x8] sm:$0xff]  ;;  %v1901_v50 = vld [vmem:[%s4204_s12 + $0x10] sm:$0xff] }
 0x1a7   : > { %3233 = vmatprep.subr.bf16.mxu0 %v3475_v43  ;;  %3257 = vmatprep.subr.bf16.mxu1 %v3475_v43  ;;  %vm4138_vm5 = vmpackc.low %vm1701_vm4, %vm1701_vm4  ;;  %v1915_v53 = vlaneseq  ;;  %v1899_v16 = vld [vmem:[%s4204_s12] sm:$0xff]  ;;  %v1902_v24 = vld [vmem:[%s4204_s12 + $0x18] sm:$0xff] }
 0x1a8   : > { %3090 = vmatprep.mubr.msk.f32.mxu0 %vm3476_vm3, %v3477_v33  ;;  %3125 = vmatprep.mubr.msk.f32.mxu1 %vm3476_vm3, %v3477_v33  ;;  %v1903_v29 = vld [vmem:[%s4204_s12 + $0x20] sm:$0xff]  ;;  %v1904_v56 = vld [vmem:[%s4204_s12 + $0x28] sm:$0xff]  ;;  %v1905_v46 = vld [vmem:[%s4204_s12 + $0x30] sm:$0xff] }
 0x1a9   : > { %v4201_v41 = vshrl.u32 %v1915_v53, 7  ;;  %v1906_v47 = vld [vmem:[%s4204_s12 + $0x38] sm:$0xff]  ;;  %v1907_v30 = vld [vmem:[%s4204_s12 + $0x40] sm:$0xff]  ;;  %v1908_v31 = vld [vmem:[%s4204_s12 + $0x48] sm:$0xff] }
 0x1aa   : > { %3235 = vmatpush3.bf16.msra.mxu0 %v3234_v45  ;;  %3259 = vmatpush3.bf16.msra.mxu1 %v3234_v45  ;;  %v1909_v27 = vld [vmem:[%s4204_s12 + $0x50] sm:$0xff]  ;;  %v1910_v21 = vld [vmem:[%s4204_s12 + $0x58] sm:$0xff]  ;;  %v1911_v42 = vld [vmem:[%s4204_s12 + $0x60] sm:$0xff] }
 0x1ab   : > { %3236 = vmatprep.subr.bf16.mxu0 %v3475_v43  ;;  %3260 = vmatprep.subr.bf16.mxu1 %v3475_v43  ;;  %v4679_v18 = vsub.s32 0, %v4201_v41  ;;  %v1912_v32 = vld [vmem:[%s4204_s12 + $0x68] sm:$0xff]  ;;  %v1913_v36 = vld [vmem:[%s4204_s12 + $0x70] sm:$0xff]  ;;  %v1914_v28 = vld [vmem:[%s4204_s12 + $0x78] sm:$0xff] }
 0x1ac   : > { %v2602_v37 = vld [vmem:[%s4204_s12 + $0x80] sm:$0xff]  ;;  %v2603_v39 = vld [vmem:[%s4204_s12 + $0x88] sm:$0xff]  ;;  %v2604_v20 = vld [vmem:[%s4204_s12 + $0x90] sm:$0xff] }
 0x1ad   : > { %v2605_v35 = vld [vmem:[%s4204_s12 + $0x98] sm:$0xff]  ;;  %v2606_v19 = vld [vmem:[%s4204_s12 + $0xa0] sm:$0xff]  ;;  %v2607_v54 = vld [vmem:[%s4204_s12 + $0xa8] sm:$0xff] }
 0x1ae   : > { %3238 = vmatpush3.bf16.msra.mxu0 %v3237_v0  ;;  %3262 = vmatpush3.bf16.msra.mxu1 %v3237_v0  ;;  %v2608_v61 = vld [vmem:[%s4204_s12 + $0xb0] sm:$0xff] }
 0x1af   : > { %3239 = vmatprep.subr.bf16.mxu0 %v3475_v43  ;;  %3263 = vmatprep.subr.bf16.mxu1 %v3475_v43 }
 0x1b2   : > { %3241 = vmatpush3.bf16.msra.mxu0 %v3240_v1  ;;  %3265 = vmatpush3.bf16.msra.mxu1 %v3240_v1 }
 0x1b3   : > { %3242 = vmatprep.subr.bf16.mxu0 %v3475_v43  ;;  %3266 = vmatprep.subr.bf16.mxu1 %v3475_v43 }
 0x1b6   : > { %3244 = vmatpush3.bf16.msra.mxu0 %v3243_v2  ;;  %3268 = vmatpush3.bf16.msra.mxu1 %v3243_v2 }
 0x1b7   : > { %3245 = vmatprep.subr.bf16.mxu0 %v3475_v43  ;;  %3269 = vmatprep.subr.bf16.mxu1 %v3475_v43 }
 0x1ba   : > { %3247 = vmatpush3.bf16.msra.mxu0 %v3246_v3  ;;  %3271 = vmatpush3.bf16.msra.mxu1 %v3246_v3 }
 0x1bb   : > { %3248 = vmatprep.subr.bf16.mxu0 %v3475_v43  ;;  %3272 = vmatprep.subr.bf16.mxu1 %v3475_v43 }
 0x1be   : > { %3250 = vmatpush3.bf16.msra.mxu0 %v3249_v4  ;;  %3274 = vmatpush3.bf16.msra.mxu1 %v3249_v4 }
 0x1bf   : > { %3251 = vmatprep.subr.bf16.mxu0 %v3475_v43  ;;  %3275 = vmatprep.subr.bf16.mxu1 %v3475_v43 }
 0x1c2   : > { %3253 = vmatpush3.bf16.msra.mxu0 %v3252_v5  ;;  %3277 = vmatpush3.bf16.msra.mxu1 %v3252_v5 }
 0x1c3   : > { %3278 = vmatprep.subr.bf16.mxu0 %v3475_v43  ;;  %3310 = vmatprep.subr.bf16.mxu1 %v3475_v43 }
 0x1c5   : > { %3091 = vmatmul.mubr.f32.vlgmr.msra.gmra.mrb[0].mxu0 %v1547_v6  ;;  %3126 = vmatmul.mubr.f32.vlgmr.msra.gmra.mrb[0].mxu1 %v1618_v7  ;;  %v2614_v6 = vld [vmem:[%s4204_s12 + $0xe0] sm:$0xff] }
 0x1c6   : > { %3160 = vmatprep.mubr.msk.f32.mxu0 %vm3476_vm3, %v3477_v33  ;;  %3195 = vmatprep.mubr.msk.f32.mxu1 %vm3476_vm3, %v3477_v33 }
 0x1cb   : > { %3281 = vmatpush3.bf16.xpose.msk.msra.mxu0 %vm4138_vm5, %v3231_v63  ;;  %3313 = vmatpush3.bf16.xpose.msk.msra.mxu1 %vm4138_vm5, %v3231_v63  ;;  %v2609_v63 = vld [vmem:[%s4204_s12 + $0xb8] sm:$0xff] }
 0x1cc   : > { %3282 = vmatprep.subr.bf16.mxu0 %v3475_v43  ;;  %3314 = vmatprep.subr.bf16.mxu1 %v3475_v43 }
 0x1d3   : > { %3285 = vmatpush3.bf16.xpose.msk.msra.mxu0 %vm4138_vm5, %v3234_v45  ;;  %3317 = vmatpush3.bf16.xpose.msk.msra.mxu1 %vm4138_vm5, %v3234_v45 }
 0x1d4   : > { %3286 = vmatprep.subr.bf16.mxu0 %v3475_v43  ;;  %3318 = vmatprep.subr.bf16.mxu1 %v3475_v43 }
 0x1db   : > { %3289 = vmatpush3.bf16.xpose.msk.msra.mxu0 %vm4138_vm5, %v3237_v0  ;;  %3321 = vmatpush3.bf16.xpose.msk.msra.mxu1 %vm4138_vm5, %v3237_v0 }
 0x1dc   : > { %3290 = vmatprep.subr.bf16.mxu0 %v3475_v43  ;;  %3322 = vmatprep.subr.bf16.mxu1 %v3475_v43 }
 0x1e3   : > { %3293 = vmatpush3.bf16.xpose.msk.msra.mxu0 %vm4138_vm5, %v3240_v1  ;;  %3325 = vmatpush3.bf16.xpose.msk.msra.mxu1 %vm4138_vm5, %v3240_v1 }
 0x1e4   : > { %3294 = vmatprep.subr.bf16.mxu0 %v3475_v43  ;;  %3326 = vmatprep.subr.bf16.mxu1 %v3475_v43 }
 0x1eb   : > { %3297 = vmatpush3.bf16.xpose.msk.msra.mxu0 %vm4138_vm5, %v3243_v2  ;;  %3329 = vmatpush3.bf16.xpose.msk.msra.mxu1 %vm4138_vm5, %v3243_v2 }
 0x1ec   : > { %3298 = vmatprep.subr.bf16.mxu0 %v3475_v43  ;;  %3330 = vmatprep.subr.bf16.mxu1 %v3475_v43 }
 0x1f3   : > { %3301 = vmatpush3.bf16.xpose.msk.msra.mxu0 %vm4138_vm5, %v3246_v3  ;;  %3333 = vmatpush3.bf16.xpose.msk.msra.mxu1 %vm4138_vm5, %v3246_v3  ;;  %v2611_v3 = vld [vmem:[%s4204_s12 + $0xc8] sm:$0xff] }
 0x1f4   : > { %3302 = vmatprep.subr.bf16.mxu0 %v3475_v43  ;;  %3334 = vmatprep.subr.bf16.mxu1 %v3475_v43 }
 0x1fb   : > { %3305 = vmatpush3.bf16.xpose.msk.msra.mxu0 %vm4138_vm5, %v3249_v4  ;;  %3337 = vmatpush3.bf16.xpose.msk.msra.mxu1 %vm4138_vm5, %v3249_v4  ;;  %v2612_v4 = vld [vmem:[%s4204_s12 + $0xd0] sm:$0xff] }
 0x1fc   : > { %3306 = vmatprep.subr.bf16.mxu0 %v3475_v43  ;;  %3338 = vmatprep.subr.bf16.mxu1 %v3475_v43  ;;  %v2610_v43 = vld [vmem:[%s4204_s12 + $0xc0] sm:$0xff] }
 0x203   : > { %3309 = vmatpush3.bf16.xpose.msk.msra.mxu0 %vm4138_vm5, %v3252_v5  ;;  %3341 = vmatpush3.bf16.xpose.msk.msra.mxu1 %vm4138_vm5, %v3252_v5  ;;  %v2613_v5 = vld [vmem:[%s4204_s12 + $0xd8] sm:$0xff] }
 0x298   : > { %v1614_v9 = vpop.f32.mrb[0].mxu0  ;;  %v1685_v10 = vpop.f32.mrb[0].mxu1 }
 0x299   : > { %v1689_v11 = vmul.f32 0.00012207031, %v1614_v9  ;;  %v3092_v12 = vpop.f32.mrb[1].mxu0  ;;  %v1690_v13 = vmul.f32 0.00012207031, %v1685_v10  ;;  %v3127_v14 = vpop.f32.mrb[1].mxu1 }
 0x29a   : > { %v2616_v12 = vld [vmem:[%s4204_s12 + $0xf0] sm:$0xff]  ;;  %v2620_v14 = vld [vmem:[%s4204_s12 + $0x100] sm:$0xff] }
 0x29b   : > { %v1691_v15 = vmul.f32 %v1689_v11, %v1689_v11 }
 0x29d   : > { %v1692_v55 = vsub.f32 %v1690_v13, %v1691_v15  ;;  %v2617_v13 = vld [vmem:[%s4204_s12 + $0xf8] sm:$0xff] }
 0x29f   : > { %v1693_v57 = vmax.f32 %v1692_v55, 0.0 }
 0x2a1   : > { %v1694_v17 = vadd.f32 1e-05, %v1693_v57 }
 0x2a3   : > { %3429 = vrsqrt.f32 %v1694_v17 }
 0x2ad   : > { %v3430_v52 = vpop.eup %3429 }
 0x2ae   : > { %v1697_v51 = vmul.f32 %v3430_v52, %v1696_v48  ;;  %v2621_v48 = vld [vmem:[%s4204_s12 + $0x108] sm:$0xff]  ;;  %v2622_v52 = vld [vmem:[%s4204_s12 + $0x110] sm:$0xff] }
 0x2b0   : > { %3161 = vmatmul.mubr.msk.f32.vlgmr.msra.gmra.mrb[2].mxu0 %vm1701_vm4, %v1697_v51  ;;  %v1699_v49 = vmul.f32 %v1697_v51, %v1689_v11  ;;  %v2615_v11 = vld [vmem:[%s4204_s12 + $0xe8] sm:$0xff]  ;;  %v2623_v51 = vld [vmem:[%s4204_s12 + $0x118] sm:$0xff] }
 0x2b2   : > { %v1700_v23 = vsub.f32 %v1698_v22, %v1699_v49  ;;  %v2624_v22 = vld [vmem:[%s4204_s12 + $0x120] sm:$0xff] }
 0x2b4   : > { %3196 = vmatmul.mubr.msk.f32.vlgmr.msra.gmra.mrb[2].mxu1 %vm1701_vm4, %v1700_v23 }
 0x383   : > { %v1819_v25 = vpop.f32.mrb[2].mxu0 }
 0x384   : > { %v4217_v59 = vrot.slane %v1819_v25, %v4679_v18  ;;  %v3162_v62 = vpop.f32.mrb[3].mxu0  ;;  %v2625_v25 = vld [vmem:[%s4204_s12 + $0x128] sm:$0xff]  ;;  %v2646_v18 = vld [vmem:[%s4204_s12 + $0x1c0] sm:$0xff] }
 0x385   : > { %v2630_v62 = vld [vmem:[%s4204_s12 + $0x150] sm:$0xff] }
 0x386   : > { %v4228_v60 = vmul.f32 %v4217_v59, %v1899_v16  ;;  %v4237_v38 = vmul.f32 %v4217_v59, %v1900_v26  ;;  %v4240_v40 = vmul.f32 %v4217_v59, %v1901_v50  ;;  %v4243_v44 = vmul.f32 %v4217_v59, %v1902_v24  ;;  %v2626_v26 = vld [vmem:[%s4204_s12 + $0x130] sm:$0xff]  ;;  %v2627_v50 = vld [vmem:[%s4204_s12 + $0x138] sm:$0xff] }
 0x387   : > { %v4234_v34 = vpop.f32.mrb[2].mxu1  ;;  %v4246_v58 = vmul.f32 %v4217_v59, %v1903_v29  ;;  %v4253_v33 = vmul.f32 %v4217_v59, %v1904_v56  ;;  %v4256_v0 = vmul.f32 %v4217_v59, %v1905_v46  ;;  %v4259_v1 = vmul.f32 %v4217_v59, %v1906_v47  ;;  %v2628_v47 = vld [vmem:[%s4204_s12 + $0x140] sm:$0xff] }
 0x388   : > { %v3197_v45 = vpop.f32.mrb[3].mxu1  ;;  %v4262_v2 = vmul.f32 %v4217_v59, %v1907_v30  ;;  %v4269_v7 = vmul.f32 %v4217_v59, %v1908_v31  ;;  %v4272_v8 = vmul.f32 %v4217_v59, %v1909_v27  ;;  %v4275_v9 = vmul.f32 %v4217_v59, %v1910_v21  ;;  %v2629_v30 = vld [vmem:[%s4204_s12 + $0x148] sm:$0xff] }
 0x389   : > { %v4278_v10 = vmul.f32 %v4217_v59, %v1911_v42  ;;  %v4285_v15 = vmul.f32 %v4217_v59, %v1912_v32  ;;  %v4288_v55 = vmul.f32 %v4217_v59, %v1913_v36  ;;  %v4291_v57 = vmul.f32 %v4217_v59, %v1914_v28  ;;  %v2631_v32 = vld [vmem:[%s4204_s12 + $0x158] sm:$0xff]  ;;  %v2632_v36 = vld [vmem:[%s4204_s12 + $0x160] sm:$0xff]  ;;  %v2633_v28 = vld [vmem:[%s4204_s12 + $0x168] sm:$0xff] }
 0x38a   : > { %v4294_v17 = vmul.f32 %v2602_v37, %v4217_v59  ;;  %v4301_v49 = vmul.f32 %v2603_v39, %v4217_v59  ;;  %v4304_v23 = vmul.f32 %v2604_v20, %v4217_v59  ;;  %v4307_v53 = vmul.f32 %v2605_v35, %v4217_v59  ;;  %v2634_v35 = vld [vmem:[%s4204_s12 + $0x170] sm:$0xff] }
 0x38b   : > { %v4310_v16 = vmul.f32 %v2606_v19, %v4217_v59  ;;  %v4316_v24 = vmul.f32 %v2607_v54, %v4217_v59  ;;  %v4319_v29 = vmul.f32 %v2608_v61, %v4217_v59  ;;  %v4322_v56 = vmul.f32 %v2609_v63, %v4217_v59  ;;  %v2635_v19 = vld [vmem:[%s4204_s12 + $0x178] sm:$0xff]  ;;  %v2638_v61 = vld [vmem:[%s4204_s12 + $0x180] sm:$0xff] }
 0x38c   : > { %v4325_v46 = vmul.f32 %v2610_v43, %v4217_v59  ;;  %v4331_v31 = vmul.f32 %v2611_v3, %v4217_v59  ;;  %v4334_v27 = vmul.f32 %v2612_v4, %v4217_v59  ;;  %v4337_v21 = vmul.f32 %v2613_v5, %v4217_v59  ;;  %v2639_v4 = vld [vmem:[%s4204_s12 + $0x188] sm:$0xff]  ;;  %v2640_v5 = vld [vmem:[%s4204_s12 + $0x190] sm:$0xff] }
 0x38d   : > { %v4340_v42 = vmul.f32 %v2614_v6, %v4217_v59  ;;  %v4346_v37 = vmul.f32 %v2615_v11, %v4217_v59  ;;  %v4349_v39 = vmul.f32 %v2616_v12, %v4217_v59  ;;  %v4352_v20 = vmul.f32 %v2617_v13, %v4217_v59  ;;  %v2641_v6 = vld [vmem:[%s4204_s12 + $0x198] sm:$0xff] }
 0x38e   : > { %v4357_v54 = vmul.f32 %v2620_v14, %v4217_v59  ;;  %v4361_v63 = vmul.f32 %v2621_v48, %v4217_v59  ;;  %v4364_v43 = vmul.f32 %v2622_v52, %v4217_v59  ;;  %v4367_v45 = vmul.f32 %v2623_v51, %v4217_v59  ;;  %v2642_v48 = vld [vmem:[%s4204_s12 + $0x1a0] sm:$0xff]  ;;  %v2643_v52 = vld [vmem:[%s4204_s12 + $0x1a8] sm:$0xff]  ;;  %v2644_v51 = vld [vmem:[%s4204_s12 + $0x1b0] sm:$0xff] }
 0x38f   : > { %v4370_v3 = vmul.f32 %v2624_v22, %v4217_v59  ;;  %v4376_v11 = vmul.f32 %v2625_v25, %v4217_v59  ;;  %v4379_v12 = vmul.f32 %v2626_v26, %v4217_v59  ;;  %v4382_v13 = vmul.f32 %v2627_v50, %v4217_v59 }
 0x390   : > { %v4385_v14 = vmul.f32 %v2628_v47, %v4217_v59  ;;  %v4391_v22 = vmul.f32 %v2629_v30, %v4217_v59  ;;  %v4394_v25 = vmul.f32 %v2630_v62, %v4217_v59  ;;  %v4397_v26 = vmul.f32 %v2631_v32, %v4217_v59  ;;  %v2645_v47 = vld [vmem:[%s4204_s12 + $0x1b8] sm:$0xff]  ;;  %v2648_v62 = vld [vmem:[%s4204_s12 + $0x1d0] sm:$0xff] }
 0x391   : > { %4687 = vst [vmem:[#allocation6_spill] sm:$0xff] %v4376_v11  ;;  %4688 = vst [vmem:[#allocation7_spill] sm:$0xff] %v4379_v12  ;;  %v4400_v50 = vmul.f32 %v2632_v36, %v4217_v59  ;;  %v4409_v12 = vmul.f32 %v2634_v35, %v4217_v59  ;;  %v4412_v30 = vmul.f32 %v2635_v19, %v4217_v59  ;;  %v2651_v36 = vld [vmem:[%s4204_s12 + $0x1e8] sm:$0xff] }
 0x392   : > { %4689 = vst [vmem:[#allocation8_spill] sm:$0xff] %v4382_v13  ;;  %4690 = vst [vmem:[#allocation9_spill] sm:$0xff] %v4385_v14  ;;  %v2647_v14 = vld [vmem:[%s4204_s12 + $0x1c8] sm:$0xff]  ;;  %v4406_v13 = vmul.f32 %v2633_v28, %v4217_v59  ;;  %v4418_v32 = vmul.f32 %v2638_v61, %v4217_v59  ;;  %v4424_v11 = vmul.f32 %v2639_v4, %v4217_v59 }
 0x393   : > { %4691 = vst [vmem:[#allocation10_spill] sm:$0xff] %v4391_v22  ;;  %4692 = vst [vmem:[#allocation11_spill] sm:$0xff] %v4394_v25  ;;  %v2649_v25 = vld [vmem:[%s4204_s12 + $0x1d8] sm:$0xff]  ;;  %v2650_v22 = vld [vmem:[%s4204_s12 + $0x1e0] sm:$0xff]  ;;  %v4427_v28 = vmul.f32 %v2640_v5, %v4217_v59  ;;  %v4430_v35 = vmul.f32 %v2641_v6, %v4217_v59  ;;  %v4433_v19 = vmul.f32 %v2642_v48, %v4217_v59 }
 0x394   : > { %4693 = vst [vmem:[#allocation12_spill] sm:$0xff] %v4397_v26  ;;  %4694 = vst [vmem:[#allocation13_spill] sm:$0xff] %v4400_v50  ;;  %v2652_v50 = vld [vmem:[%s4204_s12 + $0x1f0] sm:$0xff]  ;;  %v2653_v26 = vld [vmem:[%s4204_s12 + $0x1f8] sm:$0xff]  ;;  %v4439_v61 = vmul.f32 %v2644_v51, %v4217_v59  ;;  %v4445_v4 = vmul.f32 %v2646_v18, %v4217_v59  ;;  %v4448_v5 = vmul.f32 %v2647_v14, %v4217_v59 }
 0x395   : > { %4695 = vst [vmem:[#allocation14_spill] sm:$0xff] %v4412_v30  ;;  %4696 = vst [vmem:[#allocation15_spill] sm:$0xff] %v4418_v32  ;;  %v4436_v30 = vmul.f32 %v2643_v52, %v4217_v59  ;;  %v4442_v32 = vmul.f32 %v2645_v47, %v4217_v59  ;;  %v4451_v6 = vmul.f32 %v2648_v62, %v4217_v59  ;;  %v4704_v52 = vsub.s32 0, %v4201_v41 }
 0x396   : > { %4698 = vst [vmem:[#allocation17_spill] sm:$0xff] %v4439_v61  ;;  %4700 = vst [vmem:[#allocation19_spill] sm:$0xff] %v4445_v4  ;;  %v4454_v48 = vmul.f32 %v2649_v25, %v4217_v59  ;;  %v4462_v47 = vmul.f32 %v2650_v22, %v4217_v59  ;;  %v4465_v18 = vmul.f32 %v2651_v36, %v4217_v59 }
 0x397   : > { %4697 = vst [vmem:[#allocation16_spill] sm:$0xff] %v4436_v30  ;;  %4699 = vst [vmem:[#allocation18_spill] sm:$0xff] %v4442_v32  ;;  %v4459_v51 = vrot.slane %v4234_v34, %v4704_v52  ;;  %v4468_v14 = vmul.f32 %v2652_v50, %v4217_v59  ;;  %v4471_v62 = vmul.f32 %v2653_v26, %v4217_v59 }
 0x398   : > { %4701 = vst [vmem:[#allocation20_spill] sm:$0xff] %v4448_v5  ;;  %4702 = vst [vmem:[#allocation21_spill] sm:$0xff] %v4451_v6 }
 0x399   : > { %4703 = vst [vmem:[#allocation22_spill] sm:$0xff] %v4454_v48  ;;  %4705 = vst [vmem:[#allocation23_spill] sm:$0xff] %v4462_v47  ;;  %v4475_v25 = vadd.f32 %v4459_v51, %v4228_v60  ;;  %v4479_v41 = vadd.f32 %v4459_v51, %v4237_v38  ;;  %v4483_v34 = vadd.f32 %v4459_v51, %v4240_v40 }
 0x39a   : > { %4706 = vst [vmem:[#allocation24_spill] sm:$0xff] %v4465_v18  ;;  %4707 = vst [vmem:[#allocation25_spill] sm:$0xff] %v4468_v14  ;;  %v4487_v22 = vadd.f32 %v4459_v51, %v4243_v44  ;;  %v4491_v59 = vadd.f32 %v4459_v51, %v4246_v58  ;;  %v4495_v60 = vadd.f32 %v4459_v51, %v4253_v33 }
 0x39b   : > { %4708 = vst [vmem:[#allocation26_spill] sm:$0xff] %v4471_v62  ;;  %v4499_v38 = vadd.f32 %v4459_v51, %v4256_v0  ;;  %v4503_v40 = vadd.f32 %v4459_v51, %v4259_v1  ;;  %v4507_v44 = vadd.f32 %v4459_v51, %v4262_v2  ;;  %v4511_v58 = vadd.f32 %v4459_v51, %v4269_v7 }
 0x39c   : > { %v4515_v33 = vadd.f32 %v4459_v51, %v4272_v8  ;;  %v4519_v0 = vadd.f32 %v4459_v51, %v4275_v9  ;;  %v4523_v1 = vadd.f32 %v4459_v51, %v4278_v10  ;;  %v4527_v2 = vadd.f32 %v4459_v51, %v4285_v15 }
 0x39d   : > { %v4531_v7 = vadd.f32 %v4459_v51, %v4288_v55  ;;  %v4535_v8 = vadd.f32 %v4459_v51, %v4291_v57  ;;  %v1955_v26 = vmax.f32 %v4475_v25, 0.0  ;;  %v1956_v9 = vmax.f32 %v4479_v41, 0.0 }
 0x39e   : > { %v1957_v50 = vmax.f32 %v4483_v34, 0.0  ;;  %v1958_v10 = vmax.f32 %v4487_v22, 0.0  ;;  %v1959_v36 = vmax.f32 %v4491_v59, 0.0  ;;  %v1960_v15 = vmax.f32 %v4495_v60, 0.0 }
 0x39f   : > { %v1961_v52 = vmax.f32 %v4499_v38, 0.0  ;;  %v1962_v55 = vmax.f32 %v4503_v40, 0.0  ;;  %v1963_v62 = vmax.f32 %v4507_v44, 0.0  ;;  %v1964_v57 = vmax.f32 %v4511_v58, 0.0 }
 0x3a0   : > { %v1965_v25 = vmax.f32 %v4515_v33, 0.0  ;;  %v1966_v41 = vmax.f32 %v4519_v0, 0.0  ;;  %v1967_v34 = vmax.f32 %v4523_v1, 0.0  ;;  %v1968_v22 = vmax.f32 %v4527_v2, 0.0 }
 0x3a1   : > { %v1969_v59 = vmax.f32 %v4531_v7, 0.0  ;;  %v1970_v60 = vmax.f32 %v4535_v8, 0.0  ;;  %v2006_v38 = vadd.f32 %v4294_v17, %v4459_v51  ;;  %v2007_v40 = vadd.f32 %v4301_v49, %v4459_v51 }
 0x3a2   : > { %v2008_v44 = vadd.f32 %v4304_v23, %v4459_v51  ;;  %v2009_v58 = vadd.f32 %v4307_v53, %v4459_v51  ;;  %v2010_v33 = vadd.f32 %v4310_v16, %v4459_v51  ;;  %v2011_v0 = vadd.f32 %v4316_v24, %v4459_v51 }
 0x3a3   : > { %v2012_v1 = vadd.f32 %v4319_v29, %v4459_v51  ;;  %v2013_v17 = vadd.f32 %v4322_v56, %v4459_v51  ;;  %v2014_v49 = vadd.f32 %v4325_v46, %v4459_v51  ;;  %v2015_v23 = vadd.f32 %v4331_v31, %v4459_v51 }
 0x3a4   : > { %v2016_v53 = vadd.f32 %v4334_v27, %v4459_v51  ;;  %v2017_v16 = vadd.f32 %v4337_v21, %v4459_v51  ;;  %v2018_v24 = vadd.f32 %v4340_v42, %v4459_v51  ;;  %v2019_v29 = vadd.f32 %v4346_v37, %v4459_v51 }
 0x3a5   : > { %v2020_v56 = vadd.f32 %v4349_v39, %v4459_v51  ;;  %v2021_v46 = vadd.f32 %v4352_v20, %v4459_v51  ;;  %v2022_v2 = vmax.f32 %v2006_v38, 0.0  ;;  %v2023_v31 = vmax.f32 %v2007_v40, 0.0 }
 0x3a6   : > { %v2024_v7 = vmax.f32 %v2008_v44, 0.0  ;;  %v2025_v8 = vmax.f32 %v2009_v58, 0.0  ;;  %v2026_v27 = vmax.f32 %v2010_v33, 0.0  ;;  %v2027_v14 = vmax.f32 %v2011_v0, 0.0 }
 0x3a7   : > { %v2028_v18 = vmax.f32 %v2012_v1, 0.0  ;;  %v2029_v21 = vmax.f32 %v2013_v17, 0.0  ;;  %v2030_v47 = vmax.f32 %v2014_v49, 0.0  ;;  %v2031_v48 = vmax.f32 %v2015_v23, 0.0 }
 0x3a8   : > { %v2032_v42 = vmax.f32 %v2016_v53, 0.0  ;;  %v2033_v6 = vmax.f32 %v2017_v16, 0.0  ;;  %v2034_v5 = vmax.f32 %v2018_v24, 0.0  ;;  %v2035_v37 = vmax.f32 %v2019_v29, 0.0 }
 0x3a9   : > { %v2036_v4 = vmax.f32 %v2020_v56, 0.0  ;;  %v2037_v32 = vmax.f32 %v2021_v46, 0.0  ;;  %v2038_v39 = vmax.f32 %v1955_v26, %v2022_v2  ;;  %v2039_v61 = vmax.f32 %v1956_v9, %v2023_v31 }
 0x3aa   : > { %v2040_v30 = vmax.f32 %v1957_v50, %v2024_v7  ;;  %v2041_v20 = vmax.f32 %v1958_v10, %v2025_v8  ;;  %v2042_v38 = vmax.f32 %v1959_v36, %v2026_v27  ;;  %v2043_v40 = vmax.f32 %v1960_v15, %v2027_v14  ;;  %v4716_v36 = vld [vmem:[#allocation13_spill] sm:$0xff] }
 0x3ab   : > { %v2044_v44 = vmax.f32 %v1961_v52, %v2028_v18  ;;  %v2045_v58 = vmax.f32 %v1962_v55, %v2029_v21  ;;  %v2046_v33 = vmax.f32 %v1963_v62, %v2030_v47  ;;  %v2047_v0 = vmax.f32 %v1964_v57, %v2031_v48  ;;  %v4717_v57 = vld [vmem:[#allocation14_spill] sm:$0xff] }
 0x3ac   : > { %v2048_v1 = vmax.f32 %v1965_v25, %v2032_v42  ;;  %v2049_v17 = vmax.f32 %v1966_v41, %v2033_v6  ;;  %v2050_v49 = vmax.f32 %v1967_v34, %v2034_v5  ;;  %v2051_v23 = vmax.f32 %v1968_v22, %v2035_v37  ;;  %v4709_v5 = vld [vmem:[#allocation6_spill] sm:$0xff] }
 0x3ad   : > { %v2052_v53 = vmax.f32 %v1969_v59, %v2036_v4  ;;  %v2053_v16 = vmax.f32 %v1970_v60, %v2037_v32  ;;  %v2089_v24 = vadd.f32 %v4357_v54, %v4459_v51  ;;  %v2090_v26 = vadd.f32 %v4361_v63, %v4459_v51  ;;  %v4710_v32 = vld [vmem:[#allocation7_spill] sm:$0xff]  ;;  %v4711_v54 = vld [vmem:[#allocation8_spill] sm:$0xff]  ;;  %v4712_v63 = vld [vmem:[#allocation9_spill] sm:$0xff] }
 0x3ae   : > { %v2091_v9 = vadd.f32 %v4364_v43, %v4459_v51  ;;  %v2092_v18 = vadd.f32 %v4367_v45, %v4459_v51  ;;  %v2093_v48 = vadd.f32 %v4370_v3, %v4459_v51  ;;  %v2094_v6 = vadd.f32 %v4709_v5, %v4459_v51  ;;  %v4713_v43 = vld [vmem:[#allocation10_spill] sm:$0xff]  ;;  %v4714_v45 = vld [vmem:[#allocation11_spill] sm:$0xff]  ;;  %v4715_v3 = vld [vmem:[#allocation12_spill] sm:$0xff] }
 0x3af   : > { %v2095_v4 = vadd.f32 %v4710_v32, %v4459_v51  ;;  %v2096_v47 = vadd.f32 %v4711_v54, %v4459_v51  ;;  %v2097_v14 = vadd.f32 %v4712_v63, %v4459_v51  ;;  %v2098_v62 = vadd.f32 %v4713_v43, %v4459_v51 }
 0x3b0   : > { %v2099_v50 = vadd.f32 %v4714_v45, %v4459_v51  ;;  %v2100_v10 = vadd.f32 %v4715_v3, %v4459_v51  ;;  %v2101_v15 = vadd.f32 %v4716_v36, %v4459_v51  ;;  %v2102_v52 = vadd.f32 %v4406_v13, %v4459_v51 }
 0x3b1   : > { %v2103_v55 = vadd.f32 %v4409_v12, %v4459_v51  ;;  %v2104_v25 = vadd.f32 %v4717_v57, %v4459_v51  ;;  %v2105_v41 = vmax.f32 %v2089_v24, 0.0  ;;  %v2106_v34 = vmax.f32 %v2090_v26, 0.0 }
 0x3b2   : > { %v2107_v22 = vmax.f32 %v2091_v9, 0.0  ;;  %v2108_v59 = vmax.f32 %v2092_v18, 0.0  ;;  %v2109_v60 = vmax.f32 %v2093_v48, 0.0  ;;  %v2110_v29 = vmax.f32 %v2094_v6, 0.0 }
 0x3b3   : > { %v2111_v56 = vmax.f32 %v2095_v4, 0.0  ;;  %v2112_v46 = vmax.f32 %v2096_v47, 0.0  ;;  %v2113_v2 = vmax.f32 %v2097_v14, 0.0  ;;  %v2114_v31 = vmax.f32 %v2098_v62, 0.0  ;;  %v4718_v62 = vld [vmem:[#allocation15_spill] sm:$0xff] }
 0x3b4   : > { %v2115_v7 = vmax.f32 %v2099_v50, 0.0  ;;  %v2116_v8 = vmax.f32 %v2100_v10, 0.0  ;;  %v2117_v27 = vmax.f32 %v2101_v15, 0.0  ;;  %v2118_v13 = vmax.f32 %v2102_v52, 0.0  ;;  %v4727_v50 = vld [vmem:[#allocation24_spill] sm:$0xff]  ;;  %v4728_v10 = vld [vmem:[#allocation25_spill] sm:$0xff] }
 0x3b5   : > { %v2119_v21 = vmax.f32 %v2103_v55, 0.0  ;;  %v2120_v42 = vmax.f32 %v2104_v25, 0.0  ;;  %v2121_v12 = vmax.f32 %v2038_v39, %v2105_v41  ;;  %v2122_v37 = vmax.f32 %v2039_v61, %v2106_v34  ;;  %v4729_v15 = vld [vmem:[#allocation26_spill] sm:$0xff] }
 0x3b6   : > { %v2123_v5 = vmax.f32 %v2040_v30, %v2107_v22  ;;  %v2124_v32 = vmax.f32 %v2041_v20, %v2108_v59  ;;  %v2125_v24 = vmax.f32 %v2042_v38, %v2109_v60  ;;  %v2126_v26 = vmax.f32 %v2043_v40, %v2110_v29  ;;  %v4719_v38 = vld [vmem:[#allocation16_spill] sm:$0xff] }
 0x3b7   : > { %v2127_v9 = vmax.f32 %v2044_v44, %v2111_v56  ;;  %v2128_v18 = vmax.f32 %v2045_v58, %v2112_v46  ;;  %v2129_v48 = vmax.f32 %v2046_v33, %v2113_v2  ;;  %v2130_v6 = vmax.f32 %v2047_v0, %v2114_v31  ;;  %v4720_v44 = vld [vmem:[#allocation17_spill] sm:$0xff]  ;;  %v4721_v33 = vld [vmem:[#allocation18_spill] sm:$0xff] }
 0x3b8   : > { %v2131_v4 = vmax.f32 %v2048_v1, %v2115_v7  ;;  %v2132_v54 = vmax.f32 %v2049_v17, %v2116_v8  ;;  %v2133_v47 = vmax.f32 %v2050_v49, %v2117_v27  ;;  %v2134_v63 = vmax.f32 %v2051_v23, %v2118_v13 }
 0x3b9   : > { %v2135_v14 = vmax.f32 %v2052_v53, %v2119_v21  ;;  %v2136_v43 = vmax.f32 %v2053_v16, %v2120_v42  ;;  %v2172_v45 = vadd.f32 %v4718_v62, %v4459_v51  ;;  %v2173_v61 = vadd.f32 %v4424_v11, %v4459_v51  ;;  %v4722_v11 = vld [vmem:[#allocation19_spill] sm:$0xff] }
 0x3ba   : > { %v2174_v30 = vadd.f32 %v4427_v28, %v4459_v51  ;;  %v2175_v39 = vadd.f32 %v4430_v35, %v4459_v51  ;;  %v2176_v20 = vadd.f32 %v4433_v19, %v4459_v51  ;;  %v2177_v40 = vadd.f32 %v4719_v38, %v4459_v51  ;;  %v4723_v28 = vld [vmem:[#allocation20_spill] sm:$0xff]  ;;  %v4724_v35 = vld [vmem:[#allocation21_spill] sm:$0xff]  ;;  %v4725_v19 = vld [vmem:[#allocation22_spill] sm:$0xff] }
 0x3bb   : > { %v2178_v58 = vadd.f32 %v4720_v44, %v4459_v51  ;;  %v2179_v0 = vadd.f32 %v4721_v33, %v4459_v51  ;;  %v2180_v1 = vadd.f32 %v4722_v11, %v4459_v51  ;;  %v2181_v17 = vadd.f32 %v4723_v28, %v4459_v51  ;;  %v4726_v53 = vld [vmem:[#allocation23_spill] sm:$0xff] }
 0x3bc   : > { %v2182_v49 = vadd.f32 %v4724_v35, %v4459_v51  ;;  %v2183_v23 = vadd.f32 %v4725_v19, %v4459_v51  ;;  %v2184_v16 = vadd.f32 %v4726_v53, %v4459_v51  ;;  %v2185_v3 = vadd.f32 %v4727_v50, %v4459_v51 }
 0x3bd   : > { %v2186_v36 = vadd.f32 %v4728_v10, %v4459_v51  ;;  %v2187_v52 = vadd.f32 %v4729_v15, %v4459_v51  ;;  %v2188_v55 = vmax.f32 %v2172_v45, 0.0  ;;  %v2189_v57 = vmax.f32 %v2173_v61, 0.0 }
 0x3be   : > { %v2190_v25 = vmax.f32 %v2174_v30, 0.0  ;;  %v2191_v41 = vmax.f32 %v2175_v39, 0.0  ;;  %v2192_v34 = vmax.f32 %v2176_v20, 0.0  ;;  %v2193_v22 = vmax.f32 %v2177_v40, 0.0 }
 0x3bf   : > { %v2194_v59 = vmax.f32 %v2178_v58, 0.0  ;;  %v2195_v60 = vmax.f32 %v2179_v0, 0.0  ;;  %v2196_v29 = vmax.f32 %v2180_v1, 0.0  ;;  %v2197_v56 = vmax.f32 %v2181_v17, 0.0 }
 0x3c0   : > { %v2198_v46 = vmax.f32 %v2182_v49, 0.0  ;;  %v2199_v2 = vmax.f32 %v2183_v23, 0.0  ;;  %v2200_v31 = vmax.f32 %v2184_v16, 0.0  ;;  %v2201_v7 = vmax.f32 %v2185_v3, 0.0 }
 0x3c1   : > { %v2202_v8 = vmax.f32 %v2186_v36, 0.0  ;;  %v2203_v27 = vmax.f32 %v2187_v52, 0.0  ;;  %v2204_v13 = vmax.f32 %v2121_v12, %v2188_v55  ;;  %v2205_v21 = vmax.f32 %v2122_v37, %v2189_v57 }
 0x3c2   : > { %v2206_v42 = vmax.f32 %v2123_v5, %v2190_v25  ;;  %v2207_v51 = vmax.f32 %v2124_v32, %v2191_v41  ;;  %v2208_v62 = vmax.f32 %v2125_v24, %v2192_v34  ;;  %v2209_v45 = vmax.f32 %v2126_v26, %v2193_v22 }
 0x3c3   : > { %v2210_v61 = vmax.f32 %v2127_v9, %v2194_v59  ;;  %v2211_v30 = vmax.f32 %v2128_v18, %v2195_v60  ;;  %v2212_v39 = vmax.f32 %v2129_v48, %v2196_v29  ;;  %v2213_v20 = vmax.f32 %v2130_v6, %v2197_v56 }
 0x3c4   : > { %v2214_v38 = vmax.f32 %v2131_v4, %v2198_v46  ;;  %v2215_v40 = vmax.f32 %v2132_v54, %v2199_v2  ;;  %v2216_v44 = vmax.f32 %v2133_v47, %v2200_v31  ;;  %v2217_v58 = vmax.f32 %v2134_v63, %v2201_v7 }
 0x3c5   : > { %v2218_v12 = vmax.f32 %v2135_v14, %v2202_v8  ;;  %v2219_v37 = vmax.f32 %v2136_v43, %v2203_v27  ;;  %v2702_v5 = vpack.c.bf16 %v2205_v21, %v2204_v13  ;;  %v2707_v32 = vpack.c.bf16 %v2207_v51, %v2206_v42 }
 0x3c6   : > { %v2712_v24 = vpack.c.bf16 %v2209_v45, %v2208_v62  ;;  %v2717_v26 = vpack.c.bf16 %v2211_v30, %v2210_v61  ;;  %v2722_v9 = vpack.c.bf16 %v2213_v20, %v2212_v39  ;;  %v2727_v18 = vpack.c.bf16 %v2215_v40, %v2214_v38 }
 0x3c7   : > { %v2732_v48 = vpack.c.bf16 %v2217_v58, %v2216_v44  ;;  %v2737_v6 = vpack.c.bf16 %v2219_v37, %v2218_v12  ;;  %2703 = vst [vmem:[%s3665_s11] sm:$0xff] %v2702_v5   ;;  %2739 = vst [vmem:[%s3665_s11 + $0x8] sm:$0xff] %v2707_v32  }
 0x3c8   : > { %2740 = vst [vmem:[%s3665_s11 + $0x10] sm:$0xff] %v2712_v24   ;;  %2741 = vst [vmem:[%s3665_s11 + $0x18] sm:$0xff] %v2717_v26  }
 0x3c9   : > { %2742 = vst [vmem:[%s3665_s11 + $0x20] sm:$0xff] %v2722_v9   ;;  %2743 = vst [vmem:[%s3665_s11 + $0x28] sm:$0xff] %v2727_v18  }
 0x3ca   : > { %2744 = vst [vmem:[%s3665_s11 + $0x30] sm:$0xff] %v2732_v48   ;;  %2745 = vst [vmem:[%s3665_s11 + $0x38] sm:$0xff] %v2737_v6  }
 0x3cb PF: > { %s16_s25 = sadd.s32 1, %s3469_s25   ;;  %s4730_s7 = sld [smem:[#allocation5_spill]] }
 0x3cc   : > { %p13_p11 = scmp.ge.s32.totalorder %s16_s25, 10   ;;  %s4731_s21 = smov %s3461_s23 }
 0x3cd   : > { %s4732_s22 = smov %s3465_s24  ;;  %s4733_s23 = smov %s4736_s26 }
 0x3ce   :  { %15 = sbr.rel (!%p13_p11) target bundleno = 3 (0x3), region = 106 }
 0x3d1   : > { %s4734_s24 = smov %s4730_s7 }

// kernel: forward.4
= control target key start
LH: loop header
LB: loop body
LE: loop exit
PB: predicated region body
PF: predicated region fallthrough
CT: control target
= control target key end

     0   :  { %s4431_s21 = smov 0   ;;  %s4433_s22 = smov 0   ;;  %s5323_s0 = inlined_call_operand.vmem [shape: bf16[4,256,576], index: 0, kind: input, shape index: {}]   ;;  %s5324_s1 = inlined_call_operand.vmem [shape: bf16[4,576,128], index: 1, kind: input, shape index: {}]   ;;  %s5325_s2 = inlined_call_operand.vmem [shape: f32[128,64], index: 2, kind: input, shape index: {}]   ;;  %s5326_s3 = inlined_call_operand.vmem [shape: f32[4,1,64], index: 3, kind: input, shape index: {}]   ;;  %s5327_s4 = inlined_call_operand.vmem [shape: f32[4,1,64], index: 4, kind: input, shape index: {}]   ;;  %s5328_s5 = inlined_call_operand.vmem [shape: f32[4,1,64], index: 5, kind: input, shape index: {}]   ;;  %s5329_s6 = inlined_call_operand.vmem [shape: bf16[4,64,128], index: 6, kind: output, shape index: {}]  }
   0x1   :  { %5330 = sst [smem:[#allocation7_spill]] %s5325_s2  ;;  %s4435_s23 = smov 0  }
   0x2   :  { %s4437_s24 = smov 0   ;;  %s4439_s25 = smov 0  }
   0x3 LB: > { %s25_s26 = sadd.s32 1, %s4379_s23  ;;  %s28_s27 = sadd.s32 1, %s4383_s24  ;;  %s4387_s25 = sphi %s4439_s25, %s16_s25   ;;  %s4383_s24 = sphi %s4437_s24, %s5343_s24   ;;  %s4379_s23 = sphi %s4435_s23, %s5342_s23   ;;  %s4375_s22 = sphi %s4433_s22, %s5341_s22   ;;  %s4371_s21 = sphi %s4431_s21, %s5340_s21  }
   0x4   : > { %p26_p0 = scmp.ge.s32.totalorder %s25_s26, 4  ;;  %p3025_p1 = scmp.ge.s32.totalorder %s4387_s25, 1 }
   0x5   : > { %p276_p2 = scmp.lt.s32.totalorder %s4387_s25, 9 }
   0x6   : > { %s5345_s26 = smov (%p26_p0, %s25_s26), 0  ;;  %s5347_s27 = smov (!%p26_p0, %s28_s27), %s4383_s24 }
   0x7   : > { %5331 = sst [smem:[#allocation5_spill]] %s5345_s26  ;;  %p277_p3 = pnand %p3025_p1, %p276_p2 }
   0x8   : > { %p30_p4 = scmp.ge.s32.totalorder %s5347_s27, 2  ;;  %s325_s28 = ssub.s32 (!%p277_p3), 1, %s4375_s22 }
   0x9   : > { %280 = sbr.rel (%p277_p3) target bundleno = 1032 (0x408), region = 44  ;;  %s5333_s2 = sld [smem:[#allocation7_spill]] (!%p277_p3) }
   0xa   : > { %s5349_s27 = smov (%p30_p4, %s5347_s27), 0  ;;  %s327_s29 = smul.u32 (!%p277_p3), 3, %s4375_s22 }
   0xb   : > { %5332 = sst [smem:[#allocation6_spill]] %s5349_s27  ;;  %s326_s12 = smul.u32 (!%p277_p3), %s4371_s21, %s325_s28 }
   0xc   : > { %p338_p5 = scmp.lt.s32.totalorder (!%p277_p3), %s4371_s21, 3  ;;  %s352_s19 = smul.u32 (!%p277_p3), %s4371_s21, %s4375_s22 }
   0xd   : > { %s328_s10 = sadd.s32 (!%p277_p3), %s327_s29, %s326_s12  ;;  %p3030_p8 = scmp.ne.s32.totalorder (!%p277_p3), %s4375_s22, 0 }
   0xe   : > { %p329_p6 = scmp.lt.s32.totalorder (!%p277_p3), %s328_s10, 3  ;;  %p353_p7 = scmp.lt.s32.totalorder (!%p277_p3), %s352_s19, 3 }
   0xf   : > { %v4470_v0 = vld [vmem:[%s5333_s2] sm:$0xff] (!%p277_p3)  ;;  %v4475_v1 = vld [vmem:[%s5333_s2 + $0x8] sm:$0xff] (!%p277_p3)  ;;  %v4480_v2 = vld [vmem:[%s5333_s2 + $0x10] sm:$0xff] (!%p277_p3) }
  0x10   : > { %v4487_v3 = vld [vmem:[%s5333_s2 + $0x18] sm:$0xff]  ;;  %v4492_v4 = vld [vmem:[%s5333_s2 + $0x20] sm:$0xff]  ;;  %v4497_v5 = vld [vmem:[%s5333_s2 + $0x28] sm:$0xff]  ;;  %s4549_s7 = scalar_select %p338_p5, %s4371_s21, 3 }
  0x11   : > { %v4504_v6 = vld [vmem:[%s5333_s2 + $0x30] sm:$0xff]  ;;  %v4509_v7 = vld [vmem:[%s5333_s2 + $0x38] sm:$0xff]  ;;  %v4514_v8 = vld [vmem:[%s5333_s2 + $0x40] sm:$0xff]  ;;  %s5351_s10 = smov (!%p329_p6, %s328_s10), 3  ;;  %s5353_s19 = smov (!%p353_p7, %s352_s19), 3 }
  0x12   : > { %v4519_v9 = vld [vmem:[%s5333_s2 + $0x48] sm:$0xff]  ;;  %v4524_v10 = vld [vmem:[%s5333_s2 + $0x50] sm:$0xff]  ;;  %v4529_v11 = vld [vmem:[%s5333_s2 + $0x58] sm:$0xff]  ;;  %s4151_s11 = smul.u32 288, %s4549_s7  ;;  %s345_s15 = scalar_lea.vmem %s5326_s3, %s4549_s7 }
  0x13   : > { %v4534_v12 = vld [vmem:[%s5333_s2 + $0x60] sm:$0xff]  ;;  %v4539_v13 = vld [vmem:[%s5333_s2 + $0x68] sm:$0xff]  ;;  %v4544_v14 = vld [vmem:[%s5333_s2 + $0x70] sm:$0xff]  ;;  %s4150_s16 = smul.u32 640, %s5351_s10  ;;  %s348_s20 = scalar_lea.vmem %s5327_s4, %s4549_s7 }
  0x14   : > { %v4554_v15 = vld [vmem:[%s5333_s2 + $0x78] sm:$0xff]  ;;  %s4568_s28 = scalar_lea.vmem %s5324_s1, %s4151_s11  ;;  %s351_s9 = scalar_lea.vmem %s5328_s5, %s4549_s7 }
  0x15   : > { %s4577_s26 = scalar_lea.vmem %s5323_s0, %s4150_s16  ;;  %s3290_s10 = sshll.u32 %s5353_s19, 5 }
  0x16   : > { %s4583_s17 = scalar_lea.vmem %s5329_s6, %s3290_s10  ;;  %379 = sbr.rel (%p3030_p8) target bundleno = 514 (0x202), region = 48 }
  0x17   : > { %p3031_p9 = scmp.ne.s32.totalorder (!%p3030_p8), %s4371_s21, 0 }
  0x1d   : > { %383 = sbr.rel (%p3031_p9) target bundleno = 36 (0x24), region = 52  ;;  %v4389_v16 = vmov (!%p3031_p9), 0.0  }
  0x1e   : > { %384 = vst [vmem:[#allocation3] sm:$0x1] (!%p3031_p9), %v4389_v16  ;;  %385 = vst [vmem:[#allocation4] sm:$0x1] (!%p3031_p9), %v4389_v16 }
  0x24 PF: > { %vm459_vm0 = vcmask 523264   ;;  %v4007_v17 = vpack.c.bf16 %v4475_v1, %v4470_v0  ;;  %v4390_v18 = vmov 0.0|0.0   ;;  %v4597_v20 = vld [vmem:[%s4568_s28 + $0x40] sm:$0xff]   ;;  %v4606_v22 = vld [vmem:[%s4568_s28 + $0x48] sm:$0xff]   ;;  %vm4391_vm2 = vmmov 0   ;;  %v4615_v25 = vld [vmem:[%s4568_s28 + $0x50] sm:$0xff]  }
  0x25   : > { %4006 = vmatprep.subr.bf16.mxu0 %v4390_v18  ;;  %vm4592_vm1 = vmpackc.low %vm459_vm0, %vm459_vm0  ;;  %v4602_v21 = vld [vmem:[%s4568_s28] sm:$0xff]   ;;  %3347 = vmatprep.subr.bf16.mxu1 %v4597_v20  ;;  %v4611_v23 = vld [vmem:[%s4568_s28 + $0x8] sm:$0xff]   ;;  %v4392_v24 = vmov 0.0   ;;  %v4011_v26 = vpack.c.bf16 %v4487_v3, %v4480_v2  ;;  %v4015_v31 = vpack.c.bf16 %v4497_v5, %v4492_v4  ;;  %v4019_v37 = vpack.c.bf16 %v4509_v7, %v4504_v6 }
  0x26   : > { %4009 = vmatpush3.bf16.xpose.msk.msra.mxu0 %vm4592_vm1, %v4007_v17  ;;  %3348 = vmatpush3.bf16.msra.mxu1 %v4602_v21  ;;  %v4621_v27 = vld [vmem:[%s4568_s28 + $0x10] sm:$0xff]   ;;  %v4625_v28 = vld [vmem:[%s4568_s28 + $0x58] sm:$0xff]   ;;  %v4636_v30 = vld [vmem:[%s4568_s28 + $0x60] sm:$0xff]   ;;  %v4023_v42 = vpack.c.bf16 %v4519_v9, %v4514_v8  ;;  %v4027_v49 = vpack.c.bf16 %v4529_v11, %v4524_v10  ;;  %v4031_v56 = vpack.c.bf16 %v4539_v13, %v4534_v12 }
  0x27   : > { %4010 = vmatprep.subr.bf16.mxu0 %v4390_v18  ;;  %3799 = vmatprep.mubr.msk.f32.mxu0 %vm4391_vm2, %v4392_v24  ;;  %v4632_v29 = vld [vmem:[%s4568_s28 + $0x18] sm:$0xff]   ;;  %v4642_v32 = vld [vmem:[%s4568_s28 + $0x20] sm:$0xff]   ;;  %v4646_v33 = vld [vmem:[%s4568_s28 + $0x68] sm:$0xff]   ;;  %v4035_v63 = vpack.c.bf16 %v4554_v15, %v4544_v14 }
  0x28   : > { %3349 = vmatprep.subr.bf16.mxu1 %v4606_v22  ;;  %v4217_v34 = vld [vmem:[%s4577_s26 + $0x4] ss:$20 sps:$4 sm:$0xff]   ;;  %v4654_v35 = vld [vmem:[%s4568_s28 + $0x28] sm:$0xff]   ;;  %v4658_v36 = vld [vmem:[%s4568_s28 + $0x70] sm:$0xff]  }
  0x29   : > { %969 = vmatprep.mubr.bf16.mxu1 %v4217_v34  ;;  %v4664_v38 = vld [vmem:[%s4568_s28 + $0x30] sm:$0xff]   ;;  %v4668_v39 = vld [vmem:[%s4568_s28 + $0x78] sm:$0xff]   ;;  %v4679_v41 = vld [vmem:[%s4568_s28 + $0xc0] sm:$0xff]  }
  0x2a   : > { %3350 = vmatpush3.bf16.msra.mxu1 %v4611_v23  ;;  %v4675_v40 = vld [vmem:[%s4568_s28 + $0x38] sm:$0xff]   ;;  %v4215_v43 = vld [vmem:[%s4577_s26] ss:$20 sps:$4 sm:$0xff]   ;;  %v4691_v46 = vld [vmem:[%s4568_s28 + $0xc8] sm:$0xff]  }
  0x2b   : > { %3351 = vmatprep.subr.bf16.mxu1 %v4615_v25  ;;  %v4685_v44 = vld [vmem:[%s4568_s28 + $0x80] sm:$0xff]   ;;  %v4698_v47 = vld [vmem:[%s4568_s28 + $0x88] sm:$0xff]   ;;  %v4702_v48 = vld [vmem:[%s4568_s28 + $0xd0] sm:$0xff]  }
  0x2c   : > { %v4222_v45 = vld [vmem:[%s4577_s26 + $0x2c] ss:$20 sps:$4 sm:$0xff]   ;;  %v4224_v50 = vld [vmem:[%s4577_s26 + $0x28] ss:$20 sps:$4 sm:$0xff]   ;;  %v4709_v51 = vld [vmem:[%s4568_s28 + $0x90] sm:$0xff]  }
  0x2d   : > { %v4229_v52 = vld [vmem:[%s4577_s26 + $0x54] ss:$20 sps:$4 sm:$0xff]   ;;  %v4714_v53 = vld [vmem:[%s4568_s28 + $0xd8] sm:$0xff]   ;;  %v4725_v55 = vld [vmem:[%s4568_s28 + $0xe0] sm:$0xff]  }
  0x2e   : > { %4013 = vmatpush3.bf16.xpose.msk.msra.mxu0 %vm4592_vm1, %v4011_v26  ;;  %3352 = vmatpush3.bf16.msra.mxu1 %v4621_v27  ;;  %v4721_v54 = vld [vmem:[%s4568_s28 + $0x98] sm:$0xff]   ;;  %v4231_v57 = vld [vmem:[%s4577_s26 + $0x50] ss:$20 sps:$4 sm:$0xff]   ;;  %v4737_v60 = vld [vmem:[%s4568_s28 + $0xe8] sm:$0xff]  }
  0x2f   : > { %4014 = vmatprep.subr.bf16.mxu0 %v4390_v18  ;;  %3353 = vmatprep.subr.bf16.mxu1 %v4625_v28  ;;  %v4731_v58 = vld [vmem:[%s4568_s28 + $0xa0] sm:$0xff]   ;;  %v4236_v59 = vld [vmem:[%s4577_s26 + $0x7c] ss:$20 sps:$4 sm:$0xff]   ;;  %v4744_v61 = vld [vmem:[%s4568_s28 + $0xa8] sm:$0xff]  }
  0x30   : > { %v4748_v62 = vld [vmem:[%s4568_s28 + $0xf0] sm:$0xff]   ;;  %v4238_v16 = vld [vmem:[%s4577_s26 + $0x78] ss:$20 sps:$4 sm:$0xff]   ;;  %v4754_v17 = vld [vmem:[%s4568_s28 + $0x100] sm:$0xff]  }
  0x31   : > { %v4246_v24 = vld [vmem:[%s4577_s26 + $0xc] ss:$20 sps:$4 sm:$0xff]   ;;  %v4763_v26 = vld [vmem:[%s4568_s28 + $0xf8] sm:$0xff]  }
  0x32   : > { %3354 = vmatpush3.bf16.msra.mxu1 %v4632_v29  ;;  %v458_v34 = vld [vmem:[%s345_s15] sm:$0x1]  ;;  %v4781_v19 = vld [vmem:[%s4568_s28 + $0x108] sm:$0xff]  }
  0x33   : > { %3355 = vmatprep.subr.bf16.mxu1 %v4636_v30 }
  0x36   : > { %4017 = vmatpush3.bf16.xpose.msk.msra.mxu0 %vm4592_vm1, %v4015_v31  ;;  %3356 = vmatpush3.bf16.msra.mxu1 %v4642_v32  ;;  %v4770_v31 = vld [vmem:[%s4568_s28 + $0xb8] sm:$0xff]  }
  0x37   : > { %4018 = vmatprep.subr.bf16.mxu0 %v4390_v18  ;;  %3357 = vmatprep.subr.bf16.mxu1 %v4646_v33 }
  0x3a   : > { %3358 = vmatpush3.bf16.msra.mxu1 %v4654_v35 }
  0x3b   : > { %3359 = vmatprep.subr.bf16.mxu1 %v4658_v36 }
  0x3e   : > { %4021 = vmatpush3.bf16.xpose.msk.msra.mxu0 %vm4592_vm1, %v4019_v37  ;;  %3360 = vmatpush3.bf16.msra.mxu1 %v4664_v38  ;;  %v4244_v37 = vld [vmem:[%s4577_s26 + $0x8] ss:$20 sps:$4 sm:$0xff]  }
  0x3f   : > { %4022 = vmatprep.subr.bf16.mxu0 %v4390_v18  ;;  %3361 = vmatprep.subr.bf16.mxu1 %v4668_v39 }
  0x42   : > { %3362 = vmatpush3.bf16.msra.mxu1 %v4675_v40 }
  0x43   : > { %3387 = vmatprep.subr.bf16.mxu1 %v4679_v41 }
  0x45   : > { %970 = vmatmul.mubr.bf16.vlgmr.msra.gmra.mrb[0].mxu1 %v4215_v43  ;;  %v4249_v43 = vld [vmem:[%s4577_s26 + $0x34] ss:$20 sps:$4 sm:$0xff]  }
  0x46   : > { %4025 = vmatpush3.bf16.xpose.msk.msra.mxu0 %vm4592_vm1, %v4023_v42  ;;  %3388 = vmatpush3.bf16.msra.mxu1 %v4685_v44  ;;  %v4253_v42 = vld [vmem:[%s4577_s26 + $0x10] ss:$20 sps:$4 sm:$0xff]  }
  0x47   : > { %4026 = vmatprep.subr.bf16.mxu0 %v4390_v18  ;;  %977 = vmatprep.mubr.bf16.mxu1 %v4222_v45  ;;  %v4791_v45 = vld [vmem:[%s4568_s28 + $0x110] sm:$0xff]  }
  0x48   : > { %3389 = vmatprep.subr.bf16.mxu1 %v4691_v46 }
  0x4a   : > { %3390 = vmatpush3.bf16.msra.mxu1 %v4698_v47 }
  0x4b   : > { %3391 = vmatprep.subr.bf16.mxu1 %v4702_v48 }
  0x4d   : > { %978 = vmatmul.mubr.bf16.gmra.mrb[4].mxu1 %v4224_v50  ;;  %v4799_v50 = vld [vmem:[%s4568_s28 + $0x118] sm:$0xff]  }
  0x4e   : > { %4029 = vmatpush3.bf16.xpose.msk.msra.mxu0 %vm4592_vm1, %v4027_v49  ;;  %3392 = vmatpush3.bf16.msra.mxu1 %v4709_v51  ;;  %v4251_v49 = vld [vmem:[%s4577_s26 + $0x30] ss:$20 sps:$4 sm:$0xff]  }
  0x4f   : > { %4030 = vmatprep.subr.bf16.mxu0 %v4390_v18  ;;  %985 = vmatprep.mubr.bf16.mxu1 %v4229_v52  ;;  %v4255_v52 = vld [vmem:[%s4577_s26 + $0x5c] ss:$20 sps:$4 sm:$0xff]  }
  0x50   : > { %3393 = vmatprep.subr.bf16.mxu1 %v4714_v53 }
  0x52   : > { %3394 = vmatpush3.bf16.msra.mxu1 %v4721_v54 }
  0x53   : > { %3395 = vmatprep.subr.bf16.mxu1 %v4725_v55 }
  0x55   : > { %986 = vmatmul.mubr.bf16.gmra.mrb[8].mxu1 %v4231_v57  ;;  %v4258_v57 = vld [vmem:[%s4577_s26 + $0x60] ss:$20 sps:$4 sm:$0xff]  }
  0x56   : > { %4033 = vmatpush3.bf16.xpose.msk.msra.mxu0 %vm4592_vm1, %v4031_v56  ;;  %3396 = vmatpush3.bf16.msra.mxu1 %v4731_v58  ;;  %v4254_v56 = vld [vmem:[%s4577_s26 + $0x38] ss:$20 sps:$4 sm:$0xff]  }
  0x57   : > { %4034 = vmatprep.subr.bf16.mxu0 %v4390_v18  ;;  %993 = vmatprep.mubr.bf16.mxu1 %v4236_v59  ;;  %v4758_v18 = vld [vmem:[%s4568_s28 + $0xb0] sm:$0xff]   ;;  %v4257_v59 = vld [vmem:[%s4577_s26 + $0x58] ss:$20 sps:$4 sm:$0xff]  }
  0x58   : > { %3397 = vmatprep.subr.bf16.mxu1 %v4737_v60 }
  0x5a   : > { %3398 = vmatpush3.bf16.msra.mxu1 %v4744_v61 }
  0x5b   : > { %3399 = vmatprep.subr.bf16.mxu1 %v4748_v62 }
  0x5d   : > { %994 = vmatmul.mubr.bf16.gmra.mrb[12].mxu1 %v4238_v16  ;;  %v4259_v16 = vld [vmem:[%s4577_s26 + $0x88] ss:$20 sps:$4 sm:$0xff]  }
  0x5e   : > { %4037 = vmatpush3.bf16.xpose.msk.msra.mxu0 %vm4592_vm1, %v4035_v63  ;;  %3400 = vmatpush3.bf16.msra.mxu1 %v4758_v18  ;;  %v4260_v63 = vld [vmem:[%s4577_s26 + $0x84] ss:$20 sps:$4 sm:$0xff]  }
  0x5f   : > { %3802 = vmatprep.subr.bf16.mxu0 %v4754_v17  ;;  %1034 = vmatprep.mubr.bf16.mxu1 %v4246_v24  ;;  %v4271_v24 = vld [vmem:[%s4577_s26 + $0xac] ss:$20 sps:$4 sm:$0xff]  }
  0x60   : > { %3401 = vmatprep.subr.bf16.mxu1 %v4763_v26 }
  0x62   : > { %3402 = vmatpush3.bf16.msra.mxu1 %v4770_v31 }
  0x63   : > { %3435 = vmatprep.subr.bf16.mxu1 %v4597_v20 }
  0x65   : > { %3800 = vmatmul.mubr.msk.f32.vlgmr.msra.gmra.mrb[0].mxu0 %vm459_vm0, %v458_v34  ;;  %1035 = vmatmul.mubr.bf16.vlgmr.msra.gmra.mrb[16].mxu1 %v4244_v37  ;;  %v4262_v34 = vld [vmem:[%s4577_s26 + $0x80] ss:$20 sps:$4 sm:$0xff]   ;;  %v4265_v37 = vld [vmem:[%s4577_s26 + $0xa4] ss:$20 sps:$4 sm:$0xff]  }
  0x66   : > { %3803 = vmatpush3.bf16.msra.mxu0 %v4754_v17  ;;  %3810 = vmatprep.mubr.msk.bf16.mxu0 %vm459_vm0, %v4253_v42  ;;  %v4263_v42 = vld [vmem:[%s4577_s26 + $0xa0] ss:$20 sps:$4 sm:$0xff]  }
  0x67   : > { %3804 = vmatprep.subr.bf16.mxu0 %v4781_v19  ;;  %3436 = vmatpush3.bf16.msra.mxu1 %v4602_v21 }
  0x68   : > { %1042 = vmatprep.mubr.bf16.mxu1 %v4249_v43  ;;  %3437 = vmatprep.subr.bf16.mxu1 %v4606_v22  ;;  %v4266_v43 = vld [vmem:[%s4577_s26 + $0xcc] ss:$20 sps:$4 sm:$0xff]  }
  0x6a   : > { %3805 = vmatpush3.bf16.msra.mxu0 %v4781_v19 }
  0x6b   : > { %3806 = vmatprep.subr.bf16.mxu0 %v4791_v45  ;;  %3438 = vmatpush3.bf16.msra.mxu1 %v4611_v23 }
  0x6c   : > { %3439 = vmatprep.subr.bf16.mxu1 %v4615_v25 }
  0x6d   : > { %1043 = vmatmul.mubr.bf16.gmra.mrb[20].mxu1 %v4251_v49  ;;  %v4268_v49 = vld [vmem:[%s4577_s26 + $0xc8] ss:$20 sps:$4 sm:$0xff]  }
  0x6e   : > { %3807 = vmatpush3.bf16.msra.mxu0 %v4791_v45  ;;  %1050 = vmatprep.mubr.bf16.mxu1 %v4255_v52  ;;  %v4272_v52 = vld [vmem:[%s4577_s26 + $0xf4] ss:$20 sps:$4 sm:$0xff]  }
  0x6f   : > { %3808 = vmatprep.subr.bf16.mxu0 %v4799_v50  ;;  %3440 = vmatpush3.bf16.msra.mxu1 %v4621_v27 }
  0x70   : > { %3441 = vmatprep.subr.bf16.mxu1 %v4625_v28 }
  0x72   : > { %3809 = vmatpush3.bf16.msra.mxu0 %v4799_v50 }
  0x73   : > { %3475 = vmatprep.subr.bf16.mxu0 %v4679_v41  ;;  %3442 = vmatpush3.bf16.msra.mxu1 %v4632_v29 }
  0x74   : > { %3443 = vmatprep.subr.bf16.mxu1 %v4636_v30 }
  0x75   : > { %3811 = vmatmul.mubr.msk.bf16.vlgmr.msra.gmra.mrb[4].mxu0 %vm459_vm0, %v4254_v56  ;;  %1051 = vmatmul.mubr.bf16.gmra.mrb[24].mxu1 %v4257_v59  ;;  %v4269_v56 = vld [vmem:[%s4577_s26 + $0xa8] ss:$20 sps:$4 sm:$0xff]   ;;  %v4274_v59 = vld [vmem:[%s4577_s26 + $0xf0] ss:$20 sps:$4 sm:$0xff]  }
  0x76   : > { %3476 = vmatpush3.bf16.msra.mxu0 %v4685_v44  ;;  %3814 = vmatprep.mubr.msk.bf16.mxu0 %vm459_vm0, %v4258_v57  ;;  %v4275_v57 = vld [vmem:[%s4577_s26 + $0xd4] ss:$20 sps:$4 sm:$0xff]  }
  0x77   : > { %3477 = vmatprep.subr.bf16.mxu0 %v4691_v46  ;;  %3444 = vmatpush3.bf16.msra.mxu1 %v4642_v32 }
  0x78   : > { %1058 = vmatprep.mubr.bf16.mxu1 %v4260_v63  ;;  %3445 = vmatprep.subr.bf16.mxu1 %v4646_v33  ;;  %v4278_v63 = vld [vmem:[%s4577_s26 + $0x11c] ss:$20 sps:$4 sm:$0xff]  }
  0x7a   : > { %3478 = vmatpush3.bf16.msra.mxu0 %v4698_v47 }
  0x7b   : > { %3479 = vmatprep.subr.bf16.mxu0 %v4702_v48  ;;  %3446 = vmatpush3.bf16.msra.mxu1 %v4654_v35 }
  0x7c   : > { %3447 = vmatprep.subr.bf16.mxu1 %v4658_v36 }
  0x7d   : > { %3815 = vmatmul.mubr.msk.bf16.gmra.mrb[8].mxu0 %vm459_vm0, %v4259_v16  ;;  %1059 = vmatmul.mubr.bf16.gmra.mrb[28].mxu1 %v4262_v34  ;;  %v4277_v16 = vld [vmem:[%s4577_s26 + $0xd0] ss:$20 sps:$4 sm:$0xff]   ;;  %v4280_v34 = vld [vmem:[%s4577_s26 + $0x118] ss:$20 sps:$4 sm:$0xff]  }
  0x7e   : > { %3480 = vmatpush3.bf16.msra.mxu0 %v4709_v51  ;;  %1412 = vmatprep.mubr.bf16.mxu0 %v4271_v24  ;;  %v4281_v24 = vld [vmem:[%s4577_s26 + $0xfc] ss:$20 sps:$4 sm:$0xff]  }
  0x7f   : > { %3481 = vmatprep.subr.bf16.mxu0 %v4714_v53  ;;  %3448 = vmatpush3.bf16.msra.mxu1 %v4664_v38 }
  0x80   : > { %1347 = vmatprep.mubr.bf16.mxu1 %v4265_v37  ;;  %3449 = vmatprep.subr.bf16.mxu1 %v4668_v39  ;;  %v4284_v37 = vld [vmem:[%s4577_s26 + $0xb0] ss:$20 sps:$4 sm:$0xff]  }
  0x82   : > { %3482 = vmatpush3.bf16.msra.mxu0 %v4721_v54 }
  0x83   : > { %3483 = vmatprep.subr.bf16.mxu0 %v4725_v55  ;;  %3450 = vmatpush3.bf16.msra.mxu1 %v4675_v40 }
  0x84   : > { %3818 = vmatprep.subr.bf16.mxu1 %v4754_v17 }
  0x86   : > { %3484 = vmatpush3.bf16.msra.mxu0 %v4731_v58  ;;  %1348 = vmatmul.mubr.bf16.vlgmr.msra.gmra.mrb[32].mxu1 %v4263_v42  ;;  %v4283_v42 = vld [vmem:[%s4577_s26 + $0xf8] ss:$20 sps:$4 sm:$0xff]  }
  0x87   : > { %3485 = vmatprep.subr.bf16.mxu0 %v4737_v60  ;;  %3819 = vmatpush3.bf16.msra.mxu1 %v4754_v17 }
  0x88   : > { %1355 = vmatprep.mubr.bf16.mxu1 %v4266_v43  ;;  %3820 = vmatprep.subr.bf16.mxu1 %v4781_v19  ;;  %v4286_v43 = vld [vmem:[%s4577_s26 + $0x124] ss:$20 sps:$4 sm:$0xff]  }
  0x8a   : > { %3486 = vmatpush3.bf16.msra.mxu0 %v4744_v61 }
  0x8b   : > { %3487 = vmatprep.subr.bf16.mxu0 %v4748_v62  ;;  %3821 = vmatpush3.bf16.msra.mxu1 %v4781_v19 }
  0x8c   : > { %3822 = vmatprep.subr.bf16.mxu1 %v4791_v45 }
  0x8e   : > { %3488 = vmatpush3.bf16.msra.mxu0 %v4758_v18  ;;  %1356 = vmatmul.mubr.bf16.gmra.mrb[36].mxu1 %v4268_v49  ;;  %v4285_v49 = vld [vmem:[%s4577_s26 + $0xd8] ss:$20 sps:$4 sm:$0xff]  }
  0x8f   : > { %3489 = vmatprep.subr.bf16.mxu0 %v4763_v26  ;;  %1363 = vmatprep.mubr.bf16.mxu1 %v4272_v52  ;;  %v4289_v52 = vld [vmem:[%s4577_s26 + $0x100] ss:$20 sps:$4 sm:$0xff]  }
  0x90   : > { %3823 = vmatpush3.bf16.msra.mxu1 %v4791_v45 }
  0x91   : > { %3824 = vmatprep.subr.bf16.mxu1 %v4799_v50 }
  0x92   : > { %3490 = vmatpush3.bf16.msra.mxu0 %v4770_v31 }
  0x93   : > { %3523 = vmatprep.subr.bf16.mxu0 %v4597_v20 }
  0x94   : > { %3825 = vmatpush3.bf16.msra.mxu1 %v4799_v50 }
  0x95   : > { %1413 = vmatmul.mubr.bf16.vlgmr.msra.gmra.mrb[12].mxu0 %v4269_v56  ;;  %3563 = vmatprep.subr.bf16.mxu1 %v4679_v41  ;;  %v4288_v56 = vld [vmem:[%s4577_s26 + $0x120] ss:$20 sps:$4 sm:$0xff]  }
  0x96   : > { %3524 = vmatpush3.bf16.msra.mxu0 %v4602_v21  ;;  %1420 = vmatprep.mubr.bf16.mxu0 %v4275_v57  ;;  %v4293_v57 = vld [vmem:[%s4577_s26 + $0x144] ss:$20 sps:$4 sm:$0xff]  }
  0x97   : > { %1364 = vmatmul.mubr.bf16.gmra.mrb[40].mxu1 %v4274_v59  ;;  %3525 = vmatprep.subr.bf16.mxu0 %v4606_v22  ;;  %v4290_v59 = vld [vmem:[%s4577_s26 + $0x128] ss:$20 sps:$4 sm:$0xff]  }
  0x98   : > { %1371 = vmatprep.mubr.bf16.mxu1 %v4278_v63  ;;  %v4302_v63 = vld [vmem:[%s4577_s26 + $0x14c] ss:$20 sps:$4 sm:$0xff]  }
  0x9a   : > { %3526 = vmatpush3.bf16.msra.mxu0 %v4611_v23 }
  0x9b   : > { %3527 = vmatprep.subr.bf16.mxu0 %v4615_v25 }
  0x9d   : > { %1421 = vmatmul.mubr.bf16.gmra.mrb[16].mxu0 %v4277_v16  ;;  %v4291_v16 = vld [vmem:[%s4577_s26 + $0x140] ss:$20 sps:$4 sm:$0xff]  }
  0x9e   : > { %3528 = vmatpush3.bf16.msra.mxu0 %v4621_v27  ;;  %1428 = vmatprep.mubr.bf16.mxu0 %v4281_v24  ;;  %v4294_v24 = vld [vmem:[%s4577_s26 + $0x16c] ss:$20 sps:$4 sm:$0xff]  }
  0x9f   : > { %1372 = vmatmul.mubr.bf16.gmra.mrb[44].mxu1 %v4280_v34  ;;  %3529 = vmatprep.subr.bf16.mxu0 %v4625_v28  ;;  %v4296_v34 = vld [vmem:[%s4577_s26 + $0x168] ss:$20 sps:$4 sm:$0xff]  }
  0xa0   : > { %3826 = vmatprep.mubr.msk.bf16.mxu1 %vm459_vm0, %v4284_v37  ;;  %v4297_v37 = vld [vmem:[%s4577_s26 + $0x194] ss:$20 sps:$4 sm:$0xff]  }
  0xa2   : > { %3530 = vmatpush3.bf16.msra.mxu0 %v4632_v29 }
  0xa3   : > { %3531 = vmatprep.subr.bf16.mxu0 %v4636_v30 }
  0xa5   : > { %1429 = vmatmul.mubr.bf16.gmra.mrb[20].mxu0 %v4283_v42  ;;  %v4299_v42 = vld [vmem:[%s4577_s26 + $0x190] ss:$20 sps:$4 sm:$0xff]  }
  0xa6   : > { %3532 = vmatpush3.bf16.msra.mxu0 %v4642_v32  ;;  %1436 = vmatprep.mubr.bf16.mxu0 %v4286_v43  ;;  %v4303_v43 = vld [vmem:[%s4577_s26 + $0x1bc] ss:$20 sps:$4 sm:$0xff]  }
  0xa7   : > { %3827 = vmatmul.mubr.msk.bf16.vlgmr.msra.gmra.mrb[48].mxu1 %vm459_vm0, %v4285_v49  ;;  %3533 = vmatprep.subr.bf16.mxu0 %v4646_v33  ;;  %v4300_v49 = vld [vmem:[%s4577_s26 + $0x148] ss:$20 sps:$4 sm:$0xff]  }
  0xa8   : > { %3564 = vmatpush3.bf16.msra.mxu1 %v4685_v44  ;;  %3830 = vmatprep.mubr.msk.bf16.mxu1 %vm459_vm0, %v4289_v52  ;;  %v4306_v52 = vld [vmem:[%s4577_s26 + $0x174] ss:$20 sps:$4 sm:$0xff]  }
  0xa9   : > { %3565 = vmatprep.subr.bf16.mxu1 %v4691_v46 }
  0xaa   : > { %3534 = vmatpush3.bf16.msra.mxu0 %v4654_v35 }
  0xab   : > { %3535 = vmatprep.subr.bf16.mxu0 %v4658_v36 }
  0xac   : > { %3566 = vmatpush3.bf16.msra.mxu1 %v4698_v47 }
  0xad   : > { %1437 = vmatmul.mubr.bf16.gmra.mrb[24].mxu0 %v4288_v56  ;;  %3567 = vmatprep.subr.bf16.mxu1 %v4702_v48  ;;  %v4305_v56 = vld [vmem:[%s4577_s26 + $0x1b8] ss:$20 sps:$4 sm:$0xff]  }
  0xae   : > { %3536 = vmatpush3.bf16.msra.mxu0 %v4664_v38  ;;  %1725 = vmatprep.mubr.bf16.mxu0 %v4293_v57  ;;  %v4309_v57 = vld [vmem:[%s4577_s26 + $0x150] ss:$20 sps:$4 sm:$0xff]  }
  0xaf   : > { %3831 = vmatmul.mubr.msk.bf16.gmra.mrb[52].mxu1 %vm459_vm0, %v4290_v59  ;;  %3537 = vmatprep.subr.bf16.mxu0 %v4668_v39  ;;  %v4310_v59 = vld [vmem:[%s4577_s26 + $0x19c] ss:$20 sps:$4 sm:$0xff]  }
  0xb0   : > { %3568 = vmatpush3.bf16.msra.mxu1 %v4709_v51  ;;  %1790 = vmatprep.mubr.bf16.mxu1 %v4302_v63 }
  0xb1   : > { %3569 = vmatprep.subr.bf16.mxu1 %v4714_v53 }
  0xb2   : > { %3538 = vmatpush3.bf16.msra.mxu0 %v4675_v40 }
  0xb3   : > { %3834 = vmatprep.subr.bf16.mxu0 %v4754_v17 }
  0xb4   : > { %3570 = vmatpush3.bf16.msra.mxu1 %v4721_v54 }
  0xb5   : > { %1726 = vmatmul.mubr.bf16.vlgmr.msra.gmra.mrb[28].mxu0 %v4291_v16  ;;  %3571 = vmatprep.subr.bf16.mxu1 %v4725_v55 }
  0xb6   : > { %3835 = vmatpush3.bf16.msra.mxu0 %v4754_v17  ;;  %1733 = vmatprep.mubr.bf16.mxu0 %v4294_v24 }
  0xb7   : > { %3836 = vmatprep.subr.bf16.mxu0 %v4781_v19 }
  0xb8   : > { %3572 = vmatpush3.bf16.msra.mxu1 %v4731_v58 }
  0xb9   : > { %3573 = vmatprep.subr.bf16.mxu1 %v4737_v60 }
  0xba   : > { %3837 = vmatpush3.bf16.msra.mxu0 %v4781_v19 }
  0xbb   : > { %3838 = vmatprep.subr.bf16.mxu0 %v4791_v45 }
  0xbc   : > { %3574 = vmatpush3.bf16.msra.mxu1 %v4744_v61 }
  0xbd   : > { %1734 = vmatmul.mubr.bf16.gmra.mrb[32].mxu0 %v4296_v34  ;;  %3575 = vmatprep.subr.bf16.mxu1 %v4748_v62 }
  0xbe   : > { %1741 = vmatprep.mubr.bf16.mxu0 %v4297_v37  ;;  %3839 = vmatpush3.bf16.msra.mxu0 %v4791_v45 }
  0xbf   : > { %3840 = vmatprep.subr.bf16.mxu0 %v4799_v50 }
  0xc0   : > { %3576 = vmatpush3.bf16.msra.mxu1 %v4758_v18 }
  0xc1   : > { %3577 = vmatprep.subr.bf16.mxu1 %v4763_v26 }
  0xc2   : > { %3841 = vmatpush3.bf16.msra.mxu0 %v4799_v50 }
  0xc3   : > { %3651 = vmatprep.subr.bf16.mxu0 %v4679_v41  ;;  %v4308_v41 = vld [vmem:[%s4577_s26 + $0x170] ss:$20 sps:$4 sm:$0xff]  }
  0xc4   : > { %3578 = vmatpush3.bf16.msra.mxu1 %v4770_v31 }
  0xc5   : > { %1742 = vmatmul.mubr.bf16.gmra.mrb[36].mxu0 %v4299_v42  ;;  %3611 = vmatprep.subr.bf16.mxu1 %v4597_v20  ;;  %v4312_v20 = vld [vmem:[%s4577_s26 + $0x178] ss:$20 sps:$4 sm:$0xff]  }
  0xc6   : > { %1749 = vmatprep.mubr.bf16.mxu0 %v4303_v43 }
  0xc7   : > { %1791 = vmatmul.mubr.bf16.vlgmr.msra.gmra.mrb[56].mxu1 %v4300_v49 }
  0xc8   : > { %3612 = vmatpush3.bf16.msra.mxu1 %v4602_v21  ;;  %1798 = vmatprep.mubr.bf16.mxu1 %v4306_v52  ;;  %v4314_v21 = vld [vmem:[%s4577_s26 + $0x1a0] ss:$20 sps:$4 sm:$0xff]   ;;  %v605_v52 = vlaneseq }
  0xc9   : > { %3613 = vmatprep.subr.bf16.mxu1 %v4606_v22  ;;  %v4313_v22 = vld [vmem:[%s4577_s26 + $0x198] ss:$20 sps:$4 sm:$0xff]  }
  0xcc   : > { %3614 = vmatpush3.bf16.msra.mxu1 %v4611_v23  ;;  %v4315_v23 = vld [vmem:[%s4577_s26 + $0x1c4] ss:$20 sps:$4 sm:$0xff]  }
  0xcd   : > { %1750 = vmatmul.mubr.bf16.gmra.mrb[40].mxu0 %v4305_v56  ;;  %3615 = vmatprep.subr.bf16.mxu1 %v4615_v25  ;;  %v4317_v25 = vld [vmem:[%s4577_s26 + $0x1c8] ss:$20 sps:$4 sm:$0xff]  }
  0xce   : > { %3842 = vmatprep.mubr.msk.bf16.mxu0 %vm459_vm0, %v4309_v57  ;;  %v606_v57 = vshrl.u32 %v605_v52, 7 }
  0xcf   : > { %1799 = vmatmul.mubr.bf16.gmra.mrb[60].mxu1 %v4308_v41 }
  0xd0   : > { %3616 = vmatpush3.bf16.msra.mxu1 %v4621_v27  ;;  %1806 = vmatprep.mubr.bf16.mxu1 %v4310_v59  ;;  %v4327_v27 = vld [vmem:[%s4577_s26 + $0x1ec] ss:$20 sps:$4 sm:$0xff]  }
  0xd1   : > { %3617 = vmatprep.subr.bf16.mxu1 %v4625_v28  ;;  %v4318_v28 = vld [vmem:[%s4577_s26 + $0x1c0] ss:$20 sps:$4 sm:$0xff]  }
  0xd4   : > { %3618 = vmatpush3.bf16.msra.mxu1 %v4632_v29  ;;  %v4321_v29 = vld [vmem:[%s4577_s26 + $0x1e4] ss:$20 sps:$4 sm:$0xff]  }
  0xd5   : > { %3843 = vmatmul.mubr.msk.bf16.vlgmr.msra.gmra.mrb[44].mxu0 %vm459_vm0, %v4312_v20  ;;  %3619 = vmatprep.subr.bf16.mxu1 %v4636_v30  ;;  %v4319_v30 = vld [vmem:[%s4577_s26 + $0x1e0] ss:$20 sps:$4 sm:$0xff]  }
  0xd6   : > { %3652 = vmatpush3.bf16.msra.mxu0 %v4685_v44  ;;  %3846 = vmatprep.mubr.msk.bf16.mxu0 %vm459_vm0, %v4314_v21  ;;  %v4333_v44 = vld [vmem:[%s4577_s26 + $0x210] ss:$20 sps:$4 sm:$0xff]  }
  0xd7   : > { %1807 = vmatmul.mubr.bf16.gmra.mrb[64].mxu1 %v4313_v22  ;;  %3653 = vmatprep.subr.bf16.mxu0 %v4691_v46  ;;  %v4337_v46 = vld [vmem:[%s4577_s26 + $0x23c] ss:$20 sps:$4 sm:$0xff]  }
  0xd8   : > { %3620 = vmatpush3.bf16.msra.mxu1 %v4642_v32  ;;  %1814 = vmatprep.mubr.bf16.mxu1 %v4315_v23  ;;  %v4322_v32 = vld [vmem:[%s4577_s26 + $0x20c] ss:$20 sps:$4 sm:$0xff]   ;;  %v607_v23 = vsub.s32 0, %v606_v57 }
  0xd9   : > { %3621 = vmatprep.subr.bf16.mxu1 %v4646_v33  ;;  %v4324_v33 = vld [vmem:[%s4577_s26 + $0x208] ss:$20 sps:$4 sm:$0xff]  }
  0xda   : > { %3654 = vmatpush3.bf16.msra.mxu0 %v4698_v47  ;;  %v4336_v47 = vld [vmem:[%s4577_s26 + $0x258] ss:$20 sps:$4 sm:$0xff]  }
  0xdb   : > { %3655 = vmatprep.subr.bf16.mxu0 %v4702_v48  ;;  %v4340_v48 = vld [vmem:[%s4577_s26 + $0x1f0] ss:$20 sps:$4 sm:$0xff]  }
  0xdc   : > { %3622 = vmatpush3.bf16.msra.mxu1 %v4654_v35  ;;  %v4328_v35 = vld [vmem:[%s4577_s26 + $0x234] ss:$20 sps:$4 sm:$0xff]  }
  0xdd   : > { %3847 = vmatmul.mubr.msk.bf16.gmra.mrb[48].mxu0 %vm459_vm0, %v4317_v25  ;;  %3623 = vmatprep.subr.bf16.mxu1 %v4658_v36  ;;  %v4325_v36 = vld [vmem:[%s4577_s26 + $0x1e8] ss:$20 sps:$4 sm:$0xff]  }
  0xde   : > { %3656 = vmatpush3.bf16.msra.mxu0 %v4709_v51  ;;  %2168 = vmatprep.mubr.bf16.mxu0 %v4327_v27  ;;  %v4339_v51 = vld [vmem:[%s4577_s26 + $0x238] ss:$20 sps:$4 sm:$0xff]  }
  0xdf   : > { %1815 = vmatmul.mubr.bf16.gmra.mrb[68].mxu1 %v4318_v28  ;;  %3657 = vmatprep.subr.bf16.mxu0 %v4714_v53  ;;  %v4342_v53 = vld [vmem:[%s4577_s26 + $0x264] ss:$20 sps:$4 sm:$0xff]  }
  0xe0   : > { %3624 = vmatpush3.bf16.msra.mxu1 %v4664_v38  ;;  %2103 = vmatprep.mubr.bf16.mxu1 %v4321_v29  ;;  %v4331_v38 = vld [vmem:[%s4577_s26 + $0x214] ss:$20 sps:$4 sm:$0xff]  }
  0xe1   : > { %3625 = vmatprep.subr.bf16.mxu1 %v4668_v39  ;;  %v4330_v39 = vld [vmem:[%s4577_s26 + $0x230] ss:$20 sps:$4 sm:$0xff]  }
  0xe2   : > { %3658 = vmatpush3.bf16.msra.mxu0 %v4721_v54  ;;  %v4341_v54 = vld [vmem:[%s4577_s26 + $0x218] ss:$20 sps:$4 sm:$0xff]  }
  0xe3   : > { %3659 = vmatprep.subr.bf16.mxu0 %v4725_v55  ;;  %v4345_v55 = vld [vmem:[%s4577_s26 + $0x240] ss:$20 sps:$4 sm:$0xff]  }
  0xe4   : > { %3626 = vmatpush3.bf16.msra.mxu1 %v4675_v40  ;;  %v4334_v40 = vld [vmem:[%s4577_s26 + $0x25c] ss:$20 sps:$4 sm:$0xff]  }
  0xe5   : > { %3850 = vmatprep.subr.bf16.mxu1 %v4754_v17 }
  0xe6   : > { %3660 = vmatpush3.bf16.msra.mxu0 %v4731_v58  ;;  %v4344_v58 = vld [vmem:[%s4577_s26 + $0x260] ss:$20 sps:$4 sm:$0xff]  }
  0xe7   : > { %2104 = vmatmul.mubr.bf16.vlgmr.msra.gmra.mrb[72].mxu1 %v4319_v30  ;;  %3661 = vmatprep.subr.bf16.mxu0 %v4737_v60  ;;  %v4346_v60 = vld [vmem:[%s4577_s26 + $0x268] ss:$20 sps:$4 sm:$0xff]   ;;  %s3291_s26 = sshll.u32 %s4371_s21, 8 }
  0xe8   : > { %3851 = vmatpush3.bf16.msra.mxu1 %v4754_v17  ;;  %2111 = vmatprep.mubr.bf16.mxu1 %v4322_v32  ;;  %s5014_s19 = scalar_lea.vmem [#allocation2], %s3291_s26 }
  0xe9   : > { %3852 = vmatprep.subr.bf16.mxu1 %v4781_v19 }
  0xea   : > { %3662 = vmatpush3.bf16.msra.mxu0 %v4744_v61 }
  0xeb   : > { %3663 = vmatprep.subr.bf16.mxu0 %v4748_v62 }
  0xec   : > { %3853 = vmatpush3.bf16.msra.mxu1 %v4781_v19 }
  0xed   : > { %3854 = vmatprep.subr.bf16.mxu1 %v4791_v45 }
  0xee   : > { %3664 = vmatpush3.bf16.msra.mxu0 %v4758_v18 }
  0xef   : > { %2112 = vmatmul.mubr.bf16.gmra.mrb[76].mxu1 %v4324_v33  ;;  %3665 = vmatprep.subr.bf16.mxu0 %v4763_v26 }
  0xf0   : > { %2119 = vmatprep.mubr.bf16.mxu1 %v4328_v35  ;;  %3855 = vmatpush3.bf16.msra.mxu1 %v4791_v45 }
  0xf1   : > { %3856 = vmatprep.subr.bf16.mxu1 %v4799_v50 }
  0xf2   : > { %3666 = vmatpush3.bf16.msra.mxu0 %v4770_v31 }
  0xf4   : > { %3857 = vmatpush3.bf16.msra.mxu1 %v4799_v50 }
  0xf5   : > { %2169 = vmatmul.mubr.bf16.vlgmr.msra.gmra.mrb[52].mxu0 %v4325_v36 }
  0xf6   : > { %2176 = vmatprep.mubr.bf16.mxu0 %v4331_v38 }
  0xf7   : > { %2120 = vmatmul.mubr.bf16.gmra.mrb[80].mxu1 %v4330_v39 }
  0xf8   : > { %2127 = vmatprep.mubr.bf16.mxu1 %v4334_v40 }
  0xfd   : > { %2177 = vmatmul.mubr.bf16.gmra.mrb[56].mxu0 %v4333_v44 }
  0xfe   : > { %2184 = vmatprep.mubr.bf16.mxu0 %v4337_v46 }
  0xff   : > { %2128 = vmatmul.mubr.bf16.gmra.mrb[84].mxu1 %v4336_v47 }
 0x100   : > { %3858 = vmatprep.mubr.msk.bf16.mxu1 %vm459_vm0, %v4340_v48 }
 0x105   : > { %2185 = vmatmul.mubr.bf16.gmra.mrb[60].mxu0 %v4339_v51 }
 0x106   : > { %2192 = vmatprep.mubr.bf16.mxu0 %v4342_v53 }
 0x107   : > { %3859 = vmatmul.mubr.msk.bf16.vlgmr.msra.gmra.mrb[88].mxu1 %vm459_vm0, %v4341_v54 }
 0x108   : > { %3862 = vmatprep.mubr.msk.bf16.mxu1 %vm459_vm0, %v4345_v55 }
 0x10d   : > { %2193 = vmatmul.mubr.bf16.gmra.mrb[64].mxu0 %v4344_v58 }
 0x10f   : > { %3863 = vmatmul.mubr.msk.bf16.gmra.mrb[92].mxu1 %vm459_vm0, %v4346_v60 }
 0x118   : > { %v3363_v61 = vpop.f32.mrb[0].mxu1 }
 0x119   : > { %v3364_v62 = vpop.f32.mrb[1].mxu1 }
 0x11a   : > { %v3365_v17 = vadd.f32 %v3364_v62, %v3363_v61  ;;  %v3366_v18 = vpop.f32.mrb[2].mxu1 }
 0x11b   : > { %v3367_v26 = vpop.f32.mrb[3].mxu1 }
 0x11c   : > { %v3368_v31 = vadd.f32 %v3367_v26, %v3366_v18 }
 0x120   : > { %v3369_v19 = vpop.f32.mrb[4].mxu1 }
 0x121   : > { %v3370_v45 = vpop.f32.mrb[5].mxu1 }
 0x122   : > { %v3371_v50 = vadd.f32 %v3370_v45, %v3369_v19  ;;  %v3372_v63 = vpop.f32.mrb[6].mxu1 }
 0x123   : > { %v3373_v16 = vpop.f32.mrb[7].mxu1 }
 0x124   : > { %v3374_v24 = vadd.f32 %v3373_v16, %v3372_v63 }
 0x128   : > { %v3375_v34 = vpop.f32.mrb[8].mxu1 }
 0x129   : > { %v3376_v37 = vpop.f32.mrb[9].mxu1 }
 0x12a   : > { %v3377_v42 = vadd.f32 %v3376_v37, %v3375_v34  ;;  %v3378_v43 = vpop.f32.mrb[10].mxu1 }
 0x12b   : > { %v3379_v49 = vpop.f32.mrb[11].mxu1 }
 0x12c   : > { %v3380_v56 = vadd.f32 %v3379_v49, %v3378_v43 }
 0x130   : > { %v3381_v41 = vpop.f32.mrb[12].mxu1 }
 0x131   : > { %v3382_v59 = vpop.f32.mrb[13].mxu1 }
 0x132   : > { %v5003_v20 = vadd.f32 %v3382_v59, %v3381_v41  ;;  %v3384_v21 = vpop.f32.mrb[14].mxu1 }
 0x133   : > { %v3385_v22 = vpop.f32.mrb[15].mxu1 }
 0x134   : > { %v5005_v25 = vadd.f32 %v3385_v22, %v3384_v21 }
 0x138   : > { %v577_v27 = vpop.f32.mrb[0].mxu0  ;;  %v3403_v30 = vpop.f32.mrb[16].mxu1 }
 0x139   : > { %v5007_v28 = vrot.slane %v577_v27, %v607_v23  ;;  %v3801_v29 = vpop.f32.mrb[1].mxu0  ;;  %v3404_v32 = vpop.f32.mrb[17].mxu1 }
 0x13a   : > { %v3405_v35 = vadd.f32 %v3404_v32, %v3403_v30  ;;  %v3406_v36 = vpop.f32.mrb[18].mxu1 }
 0x13b   : > { %v972_v33 = vadd.f32 %v3365_v17, %v5007_v28  ;;  %v3407_v38 = vpop.f32.mrb[19].mxu1  ;;  %v975_v44 = vadd.f32 %v3368_v31, %v5007_v28  ;;  %v980_v54 = vadd.f32 %v3371_v50, %v5007_v28  ;;  %v983_v61 = vadd.f32 %v3374_v24, %v5007_v28 }
 0x13c   : > { %v3408_v39 = vadd.f32 %v3407_v38, %v3406_v36  ;;  %v988_v43 = vadd.f32 %v3377_v42, %v5007_v28  ;;  %v991_v57 = vadd.f32 %v3380_v56, %v5007_v28  ;;  %v996_v56 = vadd.f32 %v5003_v20, %v5007_v28 }
 0x13d   : > { %v1037_v40 = vadd.f32 %v3405_v35, %v972_v33 }
 0x13e   : > { %v1040_v46 = vadd.f32 %v3408_v39, %v975_v44 }
 0x140   : > { %v3409_v47 = vpop.f32.mrb[20].mxu1 }
 0x141   : > { %v3410_v48 = vpop.f32.mrb[21].mxu1 }
 0x142   : > { %v3411_v51 = vadd.f32 %v3410_v48, %v3409_v47  ;;  %v3412_v53 = vpop.f32.mrb[22].mxu1 }
 0x143   : > { %v3413_v55 = vpop.f32.mrb[23].mxu1 }
 0x144   : > { %v3414_v58 = vadd.f32 %v3413_v55, %v3412_v53  ;;  %v1045_v60 = vadd.f32 %v3411_v51, %v980_v54 }
 0x146   : > { %v1048_v17 = vadd.f32 %v3414_v58, %v983_v61 }
 0x148   : > { %v3812_v62 = vpop.f32.mrb[4].mxu0  ;;  %v3415_v45 = vpop.f32.mrb[24].mxu1 }
 0x149   : > { %v1110_v18 = vadd.f32 %v3812_v62, %v1045_v60  ;;  %v1101_v26 = vpop.f32.mrb[5].mxu0  ;;  %v3416_v63 = vpop.f32.mrb[25].mxu1  ;;  %v999_v62 = vadd.f32 %v5005_v25, %v5007_v28 }
 0x14a   : > { %v1102_v19 = vadd.f32 %v1101_v26, %v1037_v40  ;;  %v3813_v31 = vpop.f32.mrb[6].mxu0  ;;  %v3417_v34 = vadd.f32 %v3416_v63, %v3415_v45  ;;  %v3418_v37 = vpop.f32.mrb[26].mxu1 }
 0x14b   : > { %1137 = vst [vmem:[%s5014_s19 + $0x10] sm:$0xff] %v1110_v18  ;;  %v1113_v50 = vadd.f32 %v3813_v31, %v1048_v17  ;;  %v1104_v16 = vpop.f32.mrb[7].mxu0  ;;  %v3419_v52 = vpop.f32.mrb[27].mxu1  ;;  %v1159_v23 = vmul.f32 %v1110_v18, %v1110_v18 }
 0x14c   : > { %1135 = vst [vmem:[%s5014_s19] sm:$0xff] %v1102_v19  ;;  %v1105_v24 = vadd.f32 %v1104_v16, %v1040_v46  ;;  %v1157_v49 = vmul.f32 %v1102_v19, %v1102_v19  ;;  %v3420_v21 = vadd.f32 %v3419_v52, %v3418_v37  ;;  %v1053_v22 = vadd.f32 %v3417_v34, %v988_v43 }
 0x14d   : > { %1138 = vst [vmem:[%s5014_s19 + $0x18] sm:$0xff] %v1113_v50  ;;  %v1160_v35 = vmul.f32 %v1113_v50, %v1113_v50 }
 0x14e   : > { %1136 = vst [vmem:[%s5014_s19 + $0x8] sm:$0xff] %v1105_v24  ;;  %v1143_v41 = vadd.f32 %v1105_v24, %v1102_v19  ;;  %v1158_v59 = vmul.f32 %v1105_v24, %v1105_v24  ;;  %v1056_v32 = vadd.f32 %v3420_v21, %v991_v57 }
 0x150   : > { %v1144_v27 = vadd.f32 %v1143_v41, %v1110_v18  ;;  %v1165_v29 = vadd.f32 %v1158_v59, %v1157_v49  ;;  %v3816_v30 = vpop.f32.mrb[8].mxu0  ;;  %v3421_v39 = vpop.f32.mrb[28].mxu1 }
 0x151   : > { %v1117_v33 = vpop.f32.mrb[9].mxu0  ;;  %v3422_v44 = vpop.f32.mrb[29].mxu1 }
 0x152   : > { %v1166_v36 = vadd.f32 %v1165_v29, %v1159_v23  ;;  %v1118_v42 = vadd.f32 %v1117_v33, %v1053_v22  ;;  %v1145_v38 = vadd.f32 %v1144_v27, %v1113_v50  ;;  %v3817_v40 = vpop.f32.mrb[10].mxu0  ;;  %v3423_v53 = vadd.f32 %v3422_v44, %v3421_v39  ;;  %v3424_v54 = vpop.f32.mrb[30].mxu1 }
 0x153   : > { %v1120_v46 = vpop.f32.mrb[11].mxu0  ;;  %v3425_v58 = vpop.f32.mrb[31].mxu1 }
 0x154   : > { %1139 = vst [vmem:[%s5014_s19 + $0x20] sm:$0xff] %v1118_v42  ;;  %v1146_v47 = vadd.f32 %v1145_v38, %v1118_v42  ;;  %v1161_v48 = vmul.f32 %v1118_v42, %v1118_v42  ;;  %v1167_v51 = vadd.f32 %v1166_v36, %v1160_v35  ;;  %v1121_v55 = vadd.f32 %v1120_v46, %v1056_v32 }
 0x155   : > { %v1061_v61 = vadd.f32 %v3423_v53, %v996_v56  ;;  %v3426_v17 = vadd.f32 %v3425_v58, %v3424_v54 }
 0x156   : > { %v1168_v60 = vadd.f32 %v1167_v51, %v1161_v48  ;;  %1140 = vst [vmem:[%s5014_s19 + $0x28] sm:$0xff] %v1121_v55  ;;  %v1147_v20 = vadd.f32 %v1146_v47, %v1121_v55  ;;  %v1162_v18 = vmul.f32 %v1121_v55, %v1121_v55 }
 0x157   : > { %v1126_v26 = vadd.f32 %v3816_v30, %v1061_v61  ;;  %v1064_v19 = vadd.f32 %v3426_v17, %v999_v62 }
 0x158   : > { %v1169_v45 = vadd.f32 %v1168_v60, %v1162_v18 }
 0x159   : > { %1141 = vst [vmem:[%s5014_s19 + $0x30] sm:$0xff] %v1126_v26  ;;  %v1163_v31 = vmul.f32 %v1126_v26, %v1126_v26  ;;  %v1148_v50 = vadd.f32 %v1147_v20, %v1126_v26  ;;  %v1129_v63 = vadd.f32 %v3817_v40, %v1064_v19  ;;  %v3451_v16 = vpop.f32.mrb[32].mxu1 }
 0x15a   : > { %v3452_v34 = vpop.f32.mrb[33].mxu1 }
 0x15b   : > { %v1170_v24 = vadd.f32 %v1169_v45, %v1163_v31  ;;  %1142 = vst [vmem:[%s5014_s19 + $0x38] sm:$0xff] %v1129_v63  ;;  %v5030_v37 = vadd.f32 %v1148_v50, %v1129_v63  ;;  %v1164_v43 = vmul.f32 %v1129_v63, %v1129_v63  ;;  %v3453_v49 = vadd.f32 %v3452_v34, %v3451_v16  ;;  %v3454_v25 = vpop.f32.mrb[34].mxu1 }
 0x15c   : > { %v3455_v52 = vpop.f32.mrb[35].mxu1 }
 0x15d   : > { %v5032_v57 = vadd.f32 %v1170_v24, %v1164_v43  ;;  %v3456_v41 = vadd.f32 %v3455_v52, %v3454_v25  ;;  %v1350_v33 = vadd.f32 %v3453_v49, %v5007_v28 }
 0x15f   : > { %v1353_v40 = vadd.f32 %v3456_v41, %v5007_v28 }
 0x161   : > { %v3457_v59 = vpop.f32.mrb[36].mxu1 }
 0x162   : > { %v3458_v21 = vpop.f32.mrb[37].mxu1 }
 0x163   : > { %v3459_v22 = vadd.f32 %v3458_v21, %v3457_v59  ;;  %v3460_v23 = vpop.f32.mrb[38].mxu1 }
 0x164   : > { %v3461_v27 = vpop.f32.mrb[39].mxu1 }
 0x165   : > { %v3462_v29 = vadd.f32 %v3461_v27, %v3460_v23  ;;  %v1358_v58 = vadd.f32 %v3459_v22, %v5007_v28 }
 0x167   : > { %v1361_v18 = vadd.f32 %v3462_v29, %v5007_v28 }
 0x168   : > { %v3491_v30 = vpop.f32.mrb[12].mxu0 }
 0x169   : > { %v3492_v32 = vpop.f32.mrb[13].mxu0 }
 0x16a   : > { %v3493_v35 = vadd.f32 %v3492_v32, %v3491_v30  ;;  %v3463_v36 = vpop.f32.mrb[40].mxu1  ;;  %v3494_v42 = vpop.f32.mrb[14].mxu0 }
 0x16b   : > { %v3464_v38 = vpop.f32.mrb[41].mxu1  ;;  %v3495_v39 = vpop.f32.mrb[15].mxu0 }
 0x16c   : > { %v3465_v56 = vadd.f32 %v3464_v38, %v3463_v36  ;;  %v3496_v44 = vadd.f32 %v3495_v39, %v3494_v42  ;;  %v3466_v46 = vpop.f32.mrb[42].mxu1  ;;  %v1415_v47 = vadd.f32 %v3493_v35, %v1350_v33 }
 0x16d   : > { %v3467_v48 = vpop.f32.mrb[43].mxu1 }
 0x16e   : > { %v3468_v51 = vadd.f32 %v3467_v48, %v3466_v46  ;;  %v1418_v53 = vadd.f32 %v3496_v44, %v1353_v40  ;;  %v1366_v43 = vadd.f32 %v3465_v56, %v5007_v28 }
 0x170   : > { %v3497_v54 = vpop.f32.mrb[16].mxu0  ;;  %v1369_v22 = vadd.f32 %v3468_v51, %v5007_v28 }
 0x171   : > { %v3498_v55 = vpop.f32.mrb[17].mxu0 }
 0x172   : > { %v3499_v60 = vadd.f32 %v3498_v55, %v3497_v54  ;;  %v3469_v61 = vpop.f32.mrb[44].mxu1  ;;  %v3500_v62 = vpop.f32.mrb[18].mxu0 }
 0x173   : > { %v3470_v17 = vpop.f32.mrb[45].mxu1  ;;  %v3501_v20 = vpop.f32.mrb[19].mxu0 }
 0x174   : > { %v3471_v26 = vadd.f32 %v3470_v17, %v3469_v61  ;;  %v3502_v19 = vadd.f32 %v3501_v20, %v3500_v62  ;;  %v3472_v45 = vpop.f32.mrb[46].mxu1  ;;  %v1423_v31 = vadd.f32 %v3499_v60, %v1358_v58 }
 0x175   : > { %v3473_v50 = vpop.f32.mrb[47].mxu1 }
 0x176   : > { %v3474_v63 = vadd.f32 %v3473_v50, %v3472_v45  ;;  %v1426_v16 = vadd.f32 %v3502_v19, %v1361_v18  ;;  %v1374_v56 = vadd.f32 %v3471_v26, %v5007_v28  ;;  %v1150_v26 = vrot.slane %v5030_v37, 4 }
 0x178   : > { %v3503_v34 = vpop.f32.mrb[20].mxu0  ;;  %v1377_v58 = vadd.f32 %v3474_v63, %v5007_v28 }
 0x179   : > { %v3504_v24 = vpop.f32.mrb[21].mxu0 }
 0x17a   : > { %v3505_v49 = vadd.f32 %v3504_v24, %v3503_v34  ;;  %v3506_v25 = vpop.f32.mrb[22].mxu0  ;;  %v3828_v52 = vpop.f32.mrb[48].mxu1  ;;  %v1172_v24 = vrot.slane %v5032_v57, 4 }
 0x17b   : > { %v1488_v41 = vadd.f32 %v3828_v52, %v1423_v31  ;;  %v3507_v59 = vpop.f32.mrb[23].mxu0  ;;  %v1479_v21 = vpop.f32.mrb[49].mxu1 }
 0x17c   : > { %v3508_v23 = vadd.f32 %v3507_v59, %v3506_v25  ;;  %v1480_v27 = vadd.f32 %v1479_v21, %v1415_v47  ;;  %v3829_v29 = vpop.f32.mrb[50].mxu1  ;;  %v1431_v30 = vadd.f32 %v3505_v49, %v1366_v43  ;;  %v1151_v59 = vadd.f32 %v1150_v26, %v5030_v37 }
 0x17d   : > { %3139 = vst [vmem:[%s5014_s19 + $0x50] sm:$0xff] %v1488_v41  ;;  %v1491_v32 = vadd.f32 %v3829_v29, %v1426_v16  ;;  %v1482_v33 = vpop.f32.mrb[51].mxu1  ;;  %v1537_v46 = vmul.f32 %v1488_v41, %v1488_v41 }
 0x17e   : > { %3137 = vst [vmem:[%s5014_s19 + $0x40] sm:$0xff] %v1480_v27  ;;  %v1483_v35 = vadd.f32 %v1482_v33, %v1418_v53  ;;  %v1434_v36 = vadd.f32 %v3508_v23, %v1369_v22  ;;  %v1535_v42 = vmul.f32 %v1480_v27, %v1480_v27 }
 0x17f   : > { %3140 = vst [vmem:[%s5014_s19 + $0x58] sm:$0xff] %v1491_v32  ;;  %v1538_v53 = vmul.f32 %v1491_v32, %v1491_v32 }
 0x180   : > { %3138 = vst [vmem:[%s5014_s19 + $0x48] sm:$0xff] %v1483_v35  ;;  %v1521_v38 = vadd.f32 %v1483_v35, %v1480_v27  ;;  %v1536_v39 = vmul.f32 %v1483_v35, %v1483_v35  ;;  %v3509_v40 = vpop.f32.mrb[24].mxu0 }
 0x181   : > { %v3510_v44 = vpop.f32.mrb[25].mxu0 }
 0x182   : > { %v1522_v48 = vadd.f32 %v1521_v38, %v1488_v41  ;;  %v1543_v47 = vadd.f32 %v1536_v39, %v1535_v42  ;;  %v3511_v51 = vadd.f32 %v3510_v44, %v3509_v40  ;;  %v3512_v54 = vpop.f32.mrb[26].mxu0  ;;  %v3832_v55 = vpop.f32.mrb[52].mxu1  ;;  %v1152_v39 = vrot.slane %v1151_v59, 2 }
 0x183   : > { %v3513_v60 = vpop.f32.mrb[27].mxu0  ;;  %v1495_v61 = vpop.f32.mrb[53].mxu1 }
 0x184   : > { %v1544_v62 = vadd.f32 %v1543_v47, %v1537_v46  ;;  %v1439_v17 = vadd.f32 %v3511_v51, %v1374_v56  ;;  %v3514_v20 = vadd.f32 %v3513_v60, %v3512_v54  ;;  %v1496_v18 = vadd.f32 %v1495_v61, %v1431_v30  ;;  %v3833_v19 = vpop.f32.mrb[54].mxu1 }
 0x185   : > { %v1523_v45 = vadd.f32 %v1522_v48, %v1491_v32  ;;  %v1498_v31 = vpop.f32.mrb[55].mxu1  ;;  %v1173_v32 = vadd.f32 %v1172_v24, %v5032_v57  ;;  %v1153_v47 = vadd.f32 %v1152_v39, %v1151_v59 }
 0x186   : > { %v1504_v50 = vadd.f32 %v3832_v55, %v1439_v17  ;;  %3141 = vst [vmem:[%s5014_s19 + $0x60] sm:$0xff] %v1496_v18  ;;  %v1539_v16 = vmul.f32 %v1496_v18, %v1496_v18  ;;  %v1545_v34 = vadd.f32 %v1544_v62, %v1538_v53  ;;  %v1442_v63 = vadd.f32 %v3514_v20, %v1377_v58 }
 0x187   : > { %v1524_v43 = vadd.f32 %v1523_v45, %v1496_v18  ;;  %v1499_v49 = vadd.f32 %v1498_v31, %v1434_v36  ;;  %v1174_v44 = vrot.slane %v1173_v32, 2  ;;  %v1154_v20 = vrot.slane %v1153_v47, 1 }
 0x188   : > { %3143 = vst [vmem:[%s5014_s19 + $0x70] sm:$0xff] %v1504_v50  ;;  %v1546_v25 = vadd.f32 %v1545_v34, %v1539_v16  ;;  %v1507_v52 = vadd.f32 %v3833_v19, %v1442_v63  ;;  %v3539_v41 = vpop.f32.mrb[28].mxu0  ;;  %v1541_v21 = vmul.f32 %v1504_v50, %v1504_v50 }
 0x189   : > { %3142 = vst [vmem:[%s5014_s19 + $0x68] sm:$0xff] %v1499_v49  ;;  %v1525_v22 = vadd.f32 %v1524_v43, %v1499_v49  ;;  %v1540_v23 = vmul.f32 %v1499_v49, %v1499_v49  ;;  %v3540_v27 = vpop.f32.mrb[29].mxu0  ;;  %v1175_v60 = vadd.f32 %v1174_v44, %v1173_v32  ;;  %v1155_v16 = vadd.f32 %v1154_v20, %v1153_v47 }
 0x18a   : > { %3144 = vst [vmem:[%s5014_s19 + $0x78] sm:$0xff] %v1507_v52  ;;  %v3541_v29 = vadd.f32 %v3540_v27, %v3539_v41  ;;  %v3542_v30 = vpop.f32.mrb[30].mxu0  ;;  %v1542_v33 = vmul.f32 %v1507_v52, %v1507_v52 }
 0x18b   : > { %v1526_v35 = vadd.f32 %v1525_v22, %v1504_v50  ;;  %v1547_v42 = vadd.f32 %v1546_v25, %v1540_v23  ;;  %v3543_v36 = vpop.f32.mrb[31].mxu0  ;;  %v1176_v26 = vrot.slane %v1175_v60, 1 }
 0x18c   : > { %v3544_v38 = vadd.f32 %v3543_v36, %v3542_v30  ;;  %v1728_v23 = vadd.f32 %v3541_v29, %v5007_v28 }
 0x18d   : > { %v1527_v40 = vadd.f32 %v1526_v35, %v1507_v52  ;;  %v1548_v56 = vadd.f32 %v1547_v42, %v1541_v21  ;;  %v1177_v52 = vadd.f32 %v1176_v26, %v1175_v60 }
 0x18e   : > { %v1731_v42 = vadd.f32 %v3544_v38, %v5007_v28 }
 0x18f   : > { %v1528_v37 = vrot.slane %v1527_v40, 4  ;;  %v1549_v46 = vadd.f32 %v1548_v56, %v1542_v33 }
 0x190   : > { %v3545_v48 = vpop.f32.mrb[32].mxu0 }
 0x191   : > { %v1529_v51 = vadd.f32 %v1528_v37, %v1527_v40  ;;  %v1550_v54 = vrot.slane %v1549_v46, 4  ;;  %v3546_v55 = vpop.f32.mrb[33].mxu0 }
 0x192   : > { %v3547_v58 = vadd.f32 %v3546_v55, %v3545_v48  ;;  %v3548_v53 = vpop.f32.mrb[34].mxu0 }
 0x193   : > { %v1530_v57 = vrot.slane %v1529_v51, 2  ;;  %v1551_v61 = vadd.f32 %v1550_v54, %v1549_v46  ;;  %v3549_v62 = vpop.f32.mrb[35].mxu0 }
 0x194   : > { %v3550_v17 = vadd.f32 %v3549_v62, %v3548_v53  ;;  %v1736_v29 = vadd.f32 %v3547_v58, %v5007_v28 }
 0x195   : > { %v1531_v18 = vadd.f32 %v1530_v57, %v1529_v51  ;;  %v1552_v19 = vrot.slane %v1551_v61, 2 }
 0x196   : > { %v1739_v38 = vadd.f32 %v3550_v17, %v5007_v28 }
 0x197   : > { %v1532_v45 = vrot.slane %v1531_v18, 1  ;;  %v1553_v31 = vadd.f32 %v1552_v19, %v1551_v61 }
 0x198   : > { %v3551_v50 = vpop.f32.mrb[36].mxu0 }
 0x199   : > { %v1533_v34 = vadd.f32 %v1532_v45, %v1531_v18  ;;  %v1554_v63 = vrot.slane %v1553_v31, 1  ;;  %v3552_v24 = vpop.f32.mrb[37].mxu0 }
 0x19a   : > { %v3553_v43 = vadd.f32 %v3552_v24, %v3551_v50  ;;  %v3579_v49 = vpop.f32.mrb[56].mxu1  ;;  %v3554_v25 = vpop.f32.mrb[38].mxu0 }
 0x19b   : > { %v5054_v41 = vadd.f32 %v1533_v34, %v1155_v16  ;;  %v1555_v59 = vadd.f32 %v1554_v63, %v1553_v31  ;;  %v3580_v21 = vpop.f32.mrb[57].mxu1  ;;  %v3555_v22 = vpop.f32.mrb[39].mxu0 }
 0x19c   : > { %v3581_v27 = vadd.f32 %v3580_v21, %v3579_v49  ;;  %v3556_v30 = vadd.f32 %v3555_v22, %v3554_v25  ;;  %v3582_v32 = vpop.f32.mrb[58].mxu1  ;;  %v1744_v34 = vadd.f32 %v3553_v43, %v5007_v28 }
 0x19d   : > { %v5057_v33 = vadd.f32 %v1555_v59, %v1177_v52  ;;  %v3583_v35 = vpop.f32.mrb[59].mxu1 }
 0x19e   : > { %v3584_v36 = vadd.f32 %v3583_v35, %v3582_v32  ;;  %v1793_v39 = vadd.f32 %v3581_v27, %v1728_v23  ;;  %v1747_v49 = vadd.f32 %v3556_v30, %v5007_v28 }
 0x1a0   : > { %v3557_v40 = vpop.f32.mrb[40].mxu0  ;;  %v1796_v56 = vadd.f32 %v3584_v36, %v1731_v42 }
 0x1a1   : > { %v3558_v44 = vpop.f32.mrb[41].mxu0 }
 0x1a2   : > { %v3559_v37 = vadd.f32 %v3558_v44, %v3557_v40  ;;  %v3585_v46 = vpop.f32.mrb[60].mxu1  ;;  %v3560_v48 = vpop.f32.mrb[42].mxu0 }
 0x1a3   : > { %v3586_v47 = vpop.f32.mrb[61].mxu1  ;;  %v3561_v51 = vpop.f32.mrb[43].mxu0 }
 0x1a4   : > { %v3587_v54 = vadd.f32 %v3586_v47, %v3585_v46  ;;  %v3562_v55 = vadd.f32 %v3561_v51, %v3560_v48  ;;  %v3588_v53 = vpop.f32.mrb[62].mxu1  ;;  %v1752_v48 = vadd.f32 %v3559_v37, %v5007_v28 }
 0x1a5   : > { %v3589_v60 = vpop.f32.mrb[63].mxu1 }
 0x1a6   : > { %v3590_v57 = vadd.f32 %v3589_v60, %v3588_v53  ;;  %v1801_v61 = vadd.f32 %v3587_v54, %v1736_v29 }
 0x1a8   : > { %v3844_v62 = vpop.f32.mrb[44].mxu0  ;;  %v1804_v20 = vadd.f32 %v3590_v57, %v1739_v38 }
 0x1a9   : > { %v1866_v18 = vadd.f32 %v3844_v62, %v1801_v61  ;;  %v1857_v19 = vpop.f32.mrb[45].mxu0  ;;  %v1755_v62 = vadd.f32 %v3562_v55, %v5007_v28 }
 0x1aa   : > { %v3591_v26 = vpop.f32.mrb[64].mxu1  ;;  %v1858_v45 = vadd.f32 %v1857_v19, %v1793_v39  ;;  %v3845_v31 = vpop.f32.mrb[46].mxu0 }
 0x1ab   : > { %3173 = vst [vmem:[%s5014_s19 + $0x90] sm:$0xff] %v1866_v18  ;;  %v3592_v58 = vpop.f32.mrb[65].mxu1  ;;  %v1869_v50 = vadd.f32 %v3845_v31, %v1804_v20  ;;  %v1860_v16 = vpop.f32.mrb[47].mxu0  ;;  %v1915_v27 = vmul.f32 %v1866_v18, %v1866_v18 }
 0x1ac   : > { %3171 = vst [vmem:[%s5014_s19 + $0x80] sm:$0xff] %v1858_v45  ;;  %v3593_v63 = vadd.f32 %v3592_v58, %v3591_v26  ;;  %v3594_v17 = vpop.f32.mrb[66].mxu1  ;;  %v1861_v24 = vadd.f32 %v1860_v16, %v1796_v56  ;;  %v1913_v25 = vmul.f32 %v1858_v45, %v1858_v45 }
 0x1ad   : > { %3174 = vst [vmem:[%s5014_s19 + $0x98] sm:$0xff] %v1869_v50  ;;  %v3595_v52 = vpop.f32.mrb[67].mxu1  ;;  %v1916_v39 = vmul.f32 %v1869_v50, %v1869_v50 }
 0x1ae   : > { %3172 = vst [vmem:[%s5014_s19 + $0x88] sm:$0xff] %v1861_v24  ;;  %v1899_v59 = vadd.f32 %v1861_v24, %v1858_v45  ;;  %v1914_v21 = vmul.f32 %v1861_v24, %v1861_v24  ;;  %v3596_v22 = vadd.f32 %v3595_v52, %v3594_v17  ;;  %v1809_v23 = vadd.f32 %v3593_v63, %v1744_v34 }
 0x1b0   : > { %v1900_v32 = vadd.f32 %v1899_v59, %v1866_v18  ;;  %v1921_v35 = vadd.f32 %v1914_v21, %v1913_v25  ;;  %v3848_v42 = vpop.f32.mrb[48].mxu0  ;;  %v1812_v43 = vadd.f32 %v3596_v22, %v1747_v49 }
 0x1b1   : > { %v1873_v36 = vpop.f32.mrb[49].mxu0 }
 0x1b2   : > { %v1922_v40 = vadd.f32 %v1921_v35, %v1915_v27  ;;  %v3597_v56 = vpop.f32.mrb[68].mxu1  ;;  %v1874_v44 = vadd.f32 %v1873_v36, %v1809_v23  ;;  %v1901_v30 = vadd.f32 %v1900_v32, %v1869_v50  ;;  %v3849_v46 = vpop.f32.mrb[50].mxu0 }
 0x1b3   : > { %v3598_v47 = vpop.f32.mrb[69].mxu1  ;;  %v1876_v51 = vpop.f32.mrb[51].mxu0 }
 0x1b4   : > { %3175 = vst [vmem:[%s5014_s19 + $0xa0] sm:$0xff] %v1874_v44  ;;  %v1902_v29 = vadd.f32 %v1901_v30, %v1874_v44  ;;  %v1917_v54 = vmul.f32 %v1874_v44, %v1874_v44  ;;  %v1923_v53 = vadd.f32 %v1922_v40, %v1916_v39  ;;  %v3599_v60 = vadd.f32 %v3598_v47, %v3597_v56  ;;  %v3600_v38 = vpop.f32.mrb[70].mxu1 }
 0x1b5   : > { %v1877_v57 = vadd.f32 %v1876_v51, %v1812_v43  ;;  %v3601_v61 = vpop.f32.mrb[71].mxu1 }
 0x1b6   : > { %v1924_v20 = vadd.f32 %v1923_v53, %v1917_v54  ;;  %v1817_v18 = vadd.f32 %v3599_v60, %v1752_v48  ;;  %v3602_v19 = vadd.f32 %v3601_v61, %v3600_v38 }
 0x1b7   : > { %3176 = vst [vmem:[%s5014_s19 + $0xa8] sm:$0xff] %v1877_v57  ;;  %v1903_v26 = vadd.f32 %v1902_v29, %v1877_v57  ;;  %v1918_v37 = vmul.f32 %v1877_v57, %v1877_v57 }
 0x1b8   : > { %v1882_v45 = vadd.f32 %v3848_v42, %v1817_v18  ;;  %v1820_v31 = vadd.f32 %v3602_v19, %v1755_v62 }
 0x1b9   : > { %v1925_v58 = vadd.f32 %v1924_v20, %v1918_v37 }
 0x1ba   : > { %3177 = vst [vmem:[%s5014_s19 + $0xb0] sm:$0xff] %v1882_v45  ;;  %v1919_v50 = vmul.f32 %v1882_v45, %v1882_v45  ;;  %v1904_v16 = vadd.f32 %v1903_v26, %v1882_v45  ;;  %v1885_v34 = vadd.f32 %v3849_v46, %v1820_v31  ;;  %v3627_v63 = vpop.f32.mrb[72].mxu1 }
 0x1bb   : > { %v3628_v17 = vpop.f32.mrb[73].mxu1 }
 0x1bc   : > { %v1926_v24 = vadd.f32 %v1925_v58, %v1919_v50  ;;  %3178 = vst [vmem:[%s5014_s19 + $0xb8] sm:$0xff] %v1885_v34  ;;  %v1905_v49 = vadd.f32 %v1904_v16, %v1885_v34  ;;  %v1920_v55 = vmul.f32 %v1885_v34, %v1885_v34  ;;  %v3629_v25 = vadd.f32 %v3628_v17, %v3627_v63  ;;  %v3630_v52 = vpop.f32.mrb[74].mxu1 }
 0x1bd   : > { %v3631_v59 = vpop.f32.mrb[75].mxu1 }
 0x1be   : > { %v1906_v21 = vrot.slane %v1905_v49, 4  ;;  %v1927_v22 = vadd.f32 %v1926_v24, %v1920_v55  ;;  %v3632_v23 = vadd.f32 %v3631_v59, %v3630_v52  ;;  %v2106_v57 = vadd.f32 %v3629_v25, %v5007_v28 }
 0x1c0   : > { %v1907_v27 = vadd.f32 %v1906_v21, %v1905_v49  ;;  %v1928_v32 = vrot.slane %v1927_v22, 4  ;;  %v2109_v18 = vadd.f32 %v3632_v23, %v5007_v28 }
 0x1c2   : > { %v1908_v35 = vrot.slane %v1907_v27, 2  ;;  %v1929_v42 = vadd.f32 %v1928_v32, %v1927_v22  ;;  %v3633_v43 = vpop.f32.mrb[76].mxu1 }
 0x1c3   : > { %v3634_v36 = vpop.f32.mrb[77].mxu1 }
 0x1c4   : > { %v1909_v39 = vadd.f32 %v1908_v35, %v1907_v27  ;;  %v1930_v40 = vrot.slane %v1929_v42, 2  ;;  %v3635_v56 = vadd.f32 %v3634_v36, %v3633_v43  ;;  %v3636_v44 = vpop.f32.mrb[78].mxu1 }
 0x1c5   : > { %v3637_v30 = vpop.f32.mrb[79].mxu1 }
 0x1c6   : > { %v1910_v46 = vrot.slane %v1909_v39, 1  ;;  %v1931_v48 = vadd.f32 %v1930_v40, %v1929_v42  ;;  %v3638_v47 = vadd.f32 %v3637_v30, %v3636_v44  ;;  %v2114_v24 = vadd.f32 %v3635_v56, %v5007_v28 }
 0x1c8   : > { %v1911_v51 = vadd.f32 %v1910_v46, %v1909_v39  ;;  %v1932_v29 = vrot.slane %v1931_v48, 1  ;;  %v3667_v54 = vpop.f32.mrb[52].mxu0  ;;  %v2117_v21 = vadd.f32 %v3638_v47, %v5007_v28 }
 0x1c9   : > { %v3668_v53 = vpop.f32.mrb[53].mxu0 }
 0x1ca   : > { %v5075_v60 = vadd.f32 %v1911_v51, %v5054_v41  ;;  %v1933_v38 = vadd.f32 %v1932_v29, %v1931_v48  ;;  %v3669_v61 = vadd.f32 %v3668_v53, %v3667_v54  ;;  %v3639_v62 = vpop.f32.mrb[80].mxu1  ;;  %v3670_v20 = vpop.f32.mrb[54].mxu0 }
 0x1cb   : > { %v3640_v19 = vpop.f32.mrb[81].mxu1  ;;  %v3671_v26 = vpop.f32.mrb[55].mxu0 }
 0x1cc   : > { %v5080_v37 = vadd.f32 %v1933_v38, %v5057_v33  ;;  %v3641_v45 = vadd.f32 %v3640_v19, %v3639_v62  ;;  %v3672_v31 = vadd.f32 %v3671_v26, %v3670_v20  ;;  %v3642_v58 = vpop.f32.mrb[82].mxu1  ;;  %v2171_v50 = vadd.f32 %v3669_v61, %v2106_v57 }
 0x1cd   : > { %v3643_v16 = vpop.f32.mrb[83].mxu1 }
 0x1ce   : > { %v3644_v41 = vadd.f32 %v3643_v16, %v3642_v58  ;;  %v2174_v34 = vadd.f32 %v3672_v31, %v2109_v18  ;;  %v2122_v39 = vadd.f32 %v3641_v45, %v5007_v28 }
 0x1d0   : > { %v3673_v63 = vpop.f32.mrb[56].mxu0  ;;  %v2125_v47 = vadd.f32 %v3644_v41, %v5007_v28 }
 0x1d1   : > { %v3674_v17 = vpop.f32.mrb[57].mxu0 }
 0x1d2   : > { %v3675_v49 = vadd.f32 %v3674_v17, %v3673_v63  ;;  %v3645_v55 = vpop.f32.mrb[84].mxu1  ;;  %v3676_v25 = vpop.f32.mrb[58].mxu0 }
 0x1d3   : > { %v3646_v52 = vpop.f32.mrb[85].mxu1  ;;  %v3677_v59 = vpop.f32.mrb[59].mxu0 }
 0x1d4   : > { %v3647_v33 = vadd.f32 %v3646_v52, %v3645_v55  ;;  %v3678_v22 = vadd.f32 %v3677_v59, %v3676_v25  ;;  %v3648_v23 = vpop.f32.mrb[86].mxu1  ;;  %v2179_v27 = vadd.f32 %v3675_v49, %v2114_v24 }
 0x1d5   : > { %v3649_v32 = vpop.f32.mrb[87].mxu1 }
 0x1d6   : > { %v3650_v35 = vadd.f32 %v3649_v32, %v3648_v23  ;;  %v2182_v42 = vadd.f32 %v3678_v22, %v2117_v21  ;;  %v2130_v45 = vadd.f32 %v3647_v33, %v5007_v28 }
 0x1d8   : > { %v3679_v43 = vpop.f32.mrb[60].mxu0  ;;  %v2133_v24 = vadd.f32 %v3650_v35, %v5007_v28 }
 0x1d9   : > { %v3680_v36 = vpop.f32.mrb[61].mxu0 }
 0x1da   : > { %v3681_v40 = vadd.f32 %v3680_v36, %v3679_v43  ;;  %v3682_v56 = vpop.f32.mrb[62].mxu0  ;;  %v3860_v44 = vpop.f32.mrb[88].mxu1 }
 0x1db   : > { %v2244_v30 = vadd.f32 %v3860_v44, %v2179_v27  ;;  %v3683_v46 = vpop.f32.mrb[63].mxu0  ;;  %v2235_v48 = vpop.f32.mrb[89].mxu1 }
 0x1dc   : > { %v3684_v51 = vadd.f32 %v3683_v46, %v3682_v56  ;;  %v2236_v29 = vadd.f32 %v2235_v48, %v2171_v50  ;;  %v3861_v54 = vpop.f32.mrb[90].mxu1  ;;  %v2187_v53 = vadd.f32 %v3681_v40, %v2122_v39 }
 0x1dd   : > { %3207 = vst [vmem:[%s5014_s19 + $0xd0] sm:$0xff] %v2244_v30  ;;  %v2247_v38 = vadd.f32 %v3861_v54, %v2182_v42  ;;  %v2238_v57 = vpop.f32.mrb[91].mxu1  ;;  %v2293_v58 = vmul.f32 %v2244_v30, %v2244_v30 }
 0x1de   : > { %3205 = vst [vmem:[%s5014_s19 + $0xc0] sm:$0xff] %v2236_v29  ;;  %v2239_v61 = vadd.f32 %v2238_v57, %v2174_v34  ;;  %v2190_v62 = vadd.f32 %v3684_v51, %v2125_v47  ;;  %v2291_v20 = vmul.f32 %v2236_v29, %v2236_v29 }
 0x1df   : > { %3208 = vst [vmem:[%s5014_s19 + $0xd8] sm:$0xff] %v2247_v38  ;;  %v2294_v34 = vmul.f32 %v2247_v38, %v2247_v38 }
 0x1e0   : > { %3206 = vst [vmem:[%s5014_s19 + $0xc8] sm:$0xff] %v2239_v61  ;;  %v2277_v18 = vadd.f32 %v2239_v61, %v2236_v29  ;;  %v2292_v19 = vmul.f32 %v2239_v61, %v2239_v61  ;;  %v3685_v26 = vpop.f32.mrb[64].mxu0 }
 0x1e1   : > { %v3686_v31 = vpop.f32.mrb[65].mxu0 }
 0x1e2   : > { %v2278_v16 = vadd.f32 %v2277_v18, %v2244_v30  ;;  %v2299_v50 = vadd.f32 %v2292_v19, %v2291_v20  ;;  %v3687_v41 = vadd.f32 %v3686_v31, %v3685_v26  ;;  %v3688_v63 = vpop.f32.mrb[66].mxu0  ;;  %v3864_v17 = vpop.f32.mrb[92].mxu1  ;;  %v2313_v31 = vld [vmem:[#allocation3] sm:$0x1] }
 0x1e3   : > { %v3689_v49 = vpop.f32.mrb[67].mxu0  ;;  %v2251_v55 = vpop.f32.mrb[93].mxu1 }
 0x1e4   : > { %v2300_v25 = vadd.f32 %v2299_v50, %v2293_v58  ;;  %v2195_v52 = vadd.f32 %v3687_v41, %v2130_v45  ;;  %v3690_v59 = vadd.f32 %v3689_v49, %v3688_v63  ;;  %v2252_v21 = vadd.f32 %v2251_v55, %v2187_v53  ;;  %v3865_v33 = vpop.f32.mrb[94].mxu1  ;;  %v2316_v50 = vld [vmem:[#allocation4] sm:$0x1] }
 0x1e5   : > { %v2279_v22 = vadd.f32 %v2278_v16, %v2247_v38  ;;  %v2254_v23 = vpop.f32.mrb[95].mxu1 }
 0x1e6   : > { %v2260_v27 = vadd.f32 %v3864_v17, %v2195_v52  ;;  %3209 = vst [vmem:[%s5014_s19 + $0xe0] sm:$0xff] %v2252_v21  ;;  %v2295_v32 = vmul.f32 %v2252_v21, %v2252_v21  ;;  %v2301_v42 = vadd.f32 %v2300_v25, %v2294_v34  ;;  %v2198_v43 = vadd.f32 %v3690_v59, %v2133_v24 }
 0x1e7   : > { %v2280_v36 = vadd.f32 %v2279_v22, %v2252_v21  ;;  %v2255_v28 = vadd.f32 %v2254_v23, %v2190_v62 }
 0x1e8   : > { %3211 = vst [vmem:[%s5014_s19 + $0xf0] sm:$0xff] %v2260_v27  ;;  %v2302_v35 = vadd.f32 %v2301_v42, %v2295_v32  ;;  %v2263_v39 = vadd.f32 %v3865_v33, %v2198_v43  ;;  %v2297_v40 = vmul.f32 %v2260_v27, %v2260_v27 }
 0x1e9   : > { %3210 = vst [vmem:[%s5014_s19 + $0xe8] sm:$0xff] %v2255_v28  ;;  %v2281_v56 = vadd.f32 %v2280_v36, %v2255_v28  ;;  %v2296_v44 = vmul.f32 %v2255_v28, %v2255_v28 }
 0x1ea   : > { %3212 = vst [vmem:[%s5014_s19 + $0xf8] sm:$0xff] %v2263_v39  ;;  %v2298_v30 = vmul.f32 %v2263_v39, %v2263_v39 }
 0x1eb   : > { %v2282_v46 = vadd.f32 %v2281_v56, %v2260_v27  ;;  %v2303_v48 = vadd.f32 %v2302_v35, %v2296_v44 }
 0x1ed   : > { %v2283_v47 = vadd.f32 %v2282_v46, %v2263_v39  ;;  %v2304_v51 = vadd.f32 %v2303_v48, %v2297_v40 }
 0x1ef   : > { %v2284_v29 = vrot.slane %v2283_v47, 4  ;;  %v2305_v54 = vadd.f32 %v2304_v51, %v2298_v30 }
 0x1f1   : > { %v2285_v53 = vadd.f32 %v2284_v29, %v2283_v47  ;;  %v2306_v38 = vrot.slane %v2305_v54, 4 }
 0x1f3   : > { %v2286_v57 = vrot.slane %v2285_v53, 2  ;;  %v2307_v61 = vadd.f32 %v2306_v38, %v2305_v54 }
 0x1f5   : > { %v2287_v62 = vadd.f32 %v2286_v57, %v2285_v53  ;;  %v2308_v20 = vrot.slane %v2307_v61, 2 }
 0x1f7   : > { %v2288_v18 = vrot.slane %v2287_v62, 1  ;;  %v2309_v19 = vadd.f32 %v2308_v20, %v2307_v61 }
 0x1f9   : > { %v2289_v26 = vadd.f32 %v2288_v18, %v2287_v62  ;;  %v2310_v45 = vrot.slane %v2309_v19, 1 }
 0x1fb   : > { %v2290_v58 = vadd.f32 %v2289_v26, %v5075_v60  ;;  %v2311_v16 = vadd.f32 %v2310_v45, %v2309_v19 }
 0x1fd   : > { %v2312_v41 = vadd.f32 %v2311_v16, %v5080_v37  ;;  %v2314_v63 = vadd.f32 %v2313_v31, %v2290_v58 }
 0x1ff   : > { %2315 = vst [vmem:[#allocation3] sm:$0x1] %v2314_v63  ;;  %v2317_v17 = vadd.f32 %v2316_v50, %v2312_v41 }
 0x201   : > { %2318 = vst [vmem:[#allocation4] sm:$0x1] %v2317_v17 }
 0x202 PF: > { %p3213_p10 = scmp.ne.s32.totalorder %s4375_s22, 1 }
 0x203   : > { %v4039_v24 = vpack.c.bf16 (!%p3213_p10), %v4475_v1, %v4470_v0  ;;  %v4393_v34 = vmov (!%p3213_p10), 0.0|0.0   ;;  %v4042_v60 = vpack.c.bf16 (!%p3213_p10), %v4487_v3, %v4480_v2  ;;  %vm4394_vm3 = vmmov (!%p3213_p10), 0   ;;  %v2472_v52 = vld [vmem:[%s348_s20] sm:$0x1] (!%p3213_p10)  ;;  %s3295_s18 = sshll.u32 (!%p3213_p10), %s4371_s21, 8 }
 0x204   : > { %2322 = sbr.rel (%p3213_p10) target bundleno = 1032 (0x408), region = 56  ;;  %4038 = vmatprep.subr.bf16.mxu0 (!%p3213_p10), %v4393_v34  ;;  %4062 = vmatprep.subr.bf16.mxu1 (!%p3213_p10), %v4393_v34  ;;  %v4395_v37 = vmov (!%p3213_p10), 0.0   ;;  %v4045_v0 = vpack.c.bf16 (!%p3213_p10), %v4497_v5, %v4492_v4  ;;  %v4048_v1 = vpack.c.bf16 (!%p3213_p10), %v4509_v7, %v4504_v6  ;;  %v4051_v2 = vpack.c.bf16 (!%p3213_p10), %v4519_v9, %v4514_v8  ;;  %v2474_v33 = vld [vmem:[%s351_s9] sm:$0x1] (!%p3213_p10)  ;;  %s5205_s20 = scalar_lea.vmem (!%p3213_p10), [#allocation2], %s3295_s18 }
 0x205   : > { %4040 = vmatpush3.bf16.msra.mxu0 (!%p3213_p10), %v4039_v24  ;;  %4064 = vmatpush3.bf16.msra.mxu1 (!%p3213_p10), %v4039_v24  ;;  %v4054_v3 = vpack.c.bf16 (!%p3213_p10), %v4529_v11, %v4524_v10  ;;  %v4057_v4 = vpack.c.bf16 (!%p3213_p10), %v4539_v13, %v4534_v12  ;;  %v4060_v5 = vpack.c.bf16 (!%p3213_p10), %v4554_v15, %v4544_v14  ;;  %vm2477_vm4 = vcmask (!%p3213_p10), 523264   ;;  %v2675_v43 = vld [vmem:[%s5205_s20] sm:$0xff] (!%p3213_p10)  ;;  %v2676_v28 = vld [vmem:[%s5205_s20 + $0x8] sm:$0xff] (!%p3213_p10)  ;;  %v2677_v35 = vld [vmem:[%s5205_s20 + $0x10] sm:$0xff] (!%p3213_p10) }
 0x206   : > { %4041 = vmatprep.subr.bf16.mxu0 (!%p3213_p10), %v4393_v34  ;;  %4065 = vmatprep.subr.bf16.mxu1 (!%p3213_p10), %v4393_v34  ;;  %v2323_v6 = vld [vmem:[#allocation3] sm:$0x1] (!%p3213_p10)  ;;  %vm5139_vm5 = vmpackc.low (!%p3213_p10), %vm2477_vm4, %vm2477_vm4  ;;  %v2683_v27 = vlaneseq (!%p3213_p10)  ;;  %v2678_v39 = vld [vmem:[%s5205_s20 + $0x18] sm:$0xff] (!%p3213_p10) }
 0x207   : > { %3898 = vmatprep.mubr.msk.f32.mxu0 (!%p3213_p10), %vm4394_vm3, %v4395_v37  ;;  %3933 = vmatprep.mubr.msk.f32.mxu1 (!%p3213_p10), %vm4394_vm3, %v4395_v37  ;;  %v2679_v40 = vld [vmem:[%s5205_s20 + $0x20] sm:$0xff] (!%p3213_p10)  ;;  %v2680_v56 = vld [vmem:[%s5205_s20 + $0x28] sm:$0xff] (!%p3213_p10)  ;;  %v2681_v44 = vld [vmem:[%s5205_s20 + $0x30] sm:$0xff] (!%p3213_p10) }
 0x208   : > { %v2394_v7 = vld [vmem:[#allocation4] sm:$0x1] (!%p3213_p10)  ;;  %v5202_v32 = vshrl.u32 (!%p3213_p10), %v2683_v27, 7  ;;  %v2682_v30 = vld [vmem:[%s5205_s20 + $0x38] sm:$0xff] (!%p3213_p10)  ;;  %v3253_v51 = vld [vmem:[%s5205_s20 + $0x48] sm:$0xff] (!%p3213_p10) }
 0x209   : > { %4043 = vmatpush3.bf16.msra.mxu0 (!%p3213_p10), %v4042_v60  ;;  %4067 = vmatpush3.bf16.msra.mxu1 (!%p3213_p10), %v4042_v60  ;;  %v3252_v47 = vld [vmem:[%s5205_s20 + $0x40] sm:$0xff] (!%p3213_p10)  ;;  %v3254_v29 = vld [vmem:[%s5205_s20 + $0x50] sm:$0xff] (!%p3213_p10)  ;;  %v3255_v54 = vld [vmem:[%s5205_s20 + $0x58] sm:$0xff] (!%p3213_p10) }
 0x20a   : > { %4044 = vmatprep.subr.bf16.mxu0 (!%p3213_p10), %v4393_v34  ;;  %4068 = vmatprep.subr.bf16.mxu1 (!%p3213_p10), %v4393_v34  ;;  %v2685_v42 = vsub.s32 (!%p3213_p10), 0, %v5202_v32  ;;  %v3256_v53 = vld [vmem:[%s5205_s20 + $0x60] sm:$0xff] (!%p3213_p10)  ;;  %v3257_v38 = vld [vmem:[%s5205_s20 + $0x68] sm:$0xff] (!%p3213_p10)  ;;  %v3258_v61 = vld [vmem:[%s5205_s20 + $0x70] sm:$0xff] (!%p3213_p10) }
 0x20b   : > { %v3259_v62 = vld [vmem:[%s5205_s20 + $0x78] sm:$0xff]  ;;  %v3262_v20 = vld [vmem:[%s5205_s20 + $0x80] sm:$0xff]  ;;  %v3263_v58 = vld [vmem:[%s5205_s20 + $0x88] sm:$0xff] }
 0x20c   : > { %v3264_v16 = vld [vmem:[%s5205_s20 + $0x90] sm:$0xff]  ;;  %v3265_v50 = vld [vmem:[%s5205_s20 + $0x98] sm:$0xff] }
 0x20d   : > { %4046 = vmatpush3.bf16.msra.mxu0 %v4045_v0  ;;  %4070 = vmatpush3.bf16.msra.mxu1 %v4045_v0 }
 0x20e   : > { %4047 = vmatprep.subr.bf16.mxu0 %v4393_v34  ;;  %4071 = vmatprep.subr.bf16.mxu1 %v4393_v34 }
 0x211   : > { %4049 = vmatpush3.bf16.msra.mxu0 %v4048_v1  ;;  %4073 = vmatpush3.bf16.msra.mxu1 %v4048_v1 }
 0x212   : > { %4050 = vmatprep.subr.bf16.mxu0 %v4393_v34  ;;  %4074 = vmatprep.subr.bf16.mxu1 %v4393_v34 }
 0x215   : > { %4052 = vmatpush3.bf16.msra.mxu0 %v4051_v2  ;;  %4076 = vmatpush3.bf16.msra.mxu1 %v4051_v2 }
 0x216   : > { %4053 = vmatprep.subr.bf16.mxu0 %v4393_v34  ;;  %4077 = vmatprep.subr.bf16.mxu1 %v4393_v34 }
 0x219   : > { %4055 = vmatpush3.bf16.msra.mxu0 %v4054_v3  ;;  %4079 = vmatpush3.bf16.msra.mxu1 %v4054_v3 }
 0x21a   : > { %4056 = vmatprep.subr.bf16.mxu0 %v4393_v34  ;;  %4080 = vmatprep.subr.bf16.mxu1 %v4393_v34 }
 0x21d   : > { %4058 = vmatpush3.bf16.msra.mxu0 %v4057_v4  ;;  %4082 = vmatpush3.bf16.msra.mxu1 %v4057_v4 }
 0x21e   : > { %4059 = vmatprep.subr.bf16.mxu0 %v4393_v34  ;;  %4083 = vmatprep.subr.bf16.mxu1 %v4393_v34 }
 0x221   : > { %4061 = vmatpush3.bf16.msra.mxu0 %v4060_v5  ;;  %4085 = vmatpush3.bf16.msra.mxu1 %v4060_v5 }
 0x222   : > { %4086 = vmatprep.subr.bf16.mxu0 %v4393_v34  ;;  %4118 = vmatprep.subr.bf16.mxu1 %v4393_v34 }
 0x224   : > { %3899 = vmatmul.mubr.f32.vlgmr.msra.gmra.mrb[0].mxu0 %v2323_v6  ;;  %3934 = vmatmul.mubr.f32.vlgmr.msra.gmra.mrb[0].mxu1 %v2394_v7  ;;  %v3272_v6 = vld [vmem:[%s5205_s20 + $0xc0] sm:$0xff]  ;;  %v3273_v7 = vld [vmem:[%s5205_s20 + $0xc8] sm:$0xff] }
 0x225   : > { %3968 = vmatprep.mubr.msk.f32.mxu0 %vm4394_vm3, %v4395_v37  ;;  %4003 = vmatprep.mubr.msk.f32.mxu1 %vm4394_vm3, %v4395_v37  ;;  %v3267_v37 = vld [vmem:[%s5205_s20 + $0xa8] sm:$0xff] }
 0x22a   : > { %4089 = vmatpush3.bf16.xpose.msk.msra.mxu0 %vm5139_vm5, %v4039_v24  ;;  %4121 = vmatpush3.bf16.xpose.msk.msra.mxu1 %vm5139_vm5, %v4039_v24 }
 0x22b   : > { %4090 = vmatprep.subr.bf16.mxu0 %v4393_v34  ;;  %4122 = vmatprep.subr.bf16.mxu1 %v4393_v34 }
 0x232   : > { %4093 = vmatpush3.bf16.xpose.msk.msra.mxu0 %vm5139_vm5, %v4042_v60  ;;  %4125 = vmatpush3.bf16.xpose.msk.msra.mxu1 %vm5139_vm5, %v4042_v60  ;;  %v3266_v60 = vld [vmem:[%s5205_s20 + $0xa0] sm:$0xff] }
 0x233   : > { %4094 = vmatprep.subr.bf16.mxu0 %v4393_v34  ;;  %4126 = vmatprep.subr.bf16.mxu1 %v4393_v34 }
 0x23a   : > { %4097 = vmatpush3.bf16.xpose.msk.msra.mxu0 %vm5139_vm5, %v4045_v0  ;;  %4129 = vmatpush3.bf16.xpose.msk.msra.mxu1 %vm5139_vm5, %v4045_v0  ;;  %v3268_v0 = vld [vmem:[%s5205_s20 + $0xb0] sm:$0xff] }
 0x23b   : > { %4098 = vmatprep.subr.bf16.mxu0 %v4393_v34  ;;  %4130 = vmatprep.subr.bf16.mxu1 %v4393_v34 }
 0x242   : > { %4101 = vmatpush3.bf16.xpose.msk.msra.mxu0 %vm5139_vm5, %v4048_v1  ;;  %4133 = vmatpush3.bf16.xpose.msk.msra.mxu1 %vm5139_vm5, %v4048_v1 }
 0x243   : > { %4102 = vmatprep.subr.bf16.mxu0 %v4393_v34  ;;  %4134 = vmatprep.subr.bf16.mxu1 %v4393_v34 }
 0x24a   : > { %4105 = vmatpush3.bf16.xpose.msk.msra.mxu0 %vm5139_vm5, %v4051_v2  ;;  %4137 = vmatpush3.bf16.xpose.msk.msra.mxu1 %vm5139_vm5, %v4051_v2 }
 0x24b   : > { %4106 = vmatprep.subr.bf16.mxu0 %v4393_v34  ;;  %4138 = vmatprep.subr.bf16.mxu1 %v4393_v34 }
 0x252   : > { %4109 = vmatpush3.bf16.xpose.msk.msra.mxu0 %vm5139_vm5, %v4054_v3  ;;  %4141 = vmatpush3.bf16.xpose.msk.msra.mxu1 %vm5139_vm5, %v4054_v3 }
 0x253   : > { %4110 = vmatprep.subr.bf16.mxu0 %v4393_v34  ;;  %4142 = vmatprep.subr.bf16.mxu1 %v4393_v34 }
 0x25a   : > { %4113 = vmatpush3.bf16.xpose.msk.msra.mxu0 %vm5139_vm5, %v4057_v4  ;;  %4145 = vmatpush3.bf16.xpose.msk.msra.mxu1 %vm5139_vm5, %v4057_v4 }
 0x25b   : > { %4114 = vmatprep.subr.bf16.mxu0 %v4393_v34  ;;  %4146 = vmatprep.subr.bf16.mxu1 %v4393_v34 }
 0x262   : > { %4117 = vmatpush3.bf16.xpose.msk.msra.mxu0 %vm5139_vm5, %v4060_v5  ;;  %4149 = vmatpush3.bf16.xpose.msk.msra.mxu1 %vm5139_vm5, %v4060_v5  ;;  %v3269_v5 = vld [vmem:[%s5205_s20 + $0xb8] sm:$0xff] }
 0x2f7   : > { %v2390_v9 = vpop.f32.mrb[0].mxu0  ;;  %v2461_v10 = vpop.f32.mrb[0].mxu1 }
 0x2f8   : > { %v2465_v11 = vmul.f32 0.00048828125, %v2390_v9  ;;  %v3900_v12 = vpop.f32.mrb[1].mxu0  ;;  %v2466_v13 = vmul.f32 0.00048828125, %v2461_v10  ;;  %v3935_v14 = vpop.f32.mrb[1].mxu1 }
 0x2f9   : > { %v3274_v12 = vld [vmem:[%s5205_s20 + $0xd0] sm:$0xff]  ;;  %v3276_v14 = vld [vmem:[%s5205_s20 + $0xe0] sm:$0xff] }
 0x2fa   : > { %v2467_v15 = vmul.f32 %v2465_v11, %v2465_v11 }
 0x2fc   : > { %v2468_v49 = vsub.f32 %v2466_v13, %v2467_v15  ;;  %v3275_v13 = vld [vmem:[%s5205_s20 + $0xd8] sm:$0xff] }
 0x2fe   : > { %v2469_v55 = vmax.f32 %v2468_v49, 0.0 }
 0x300   : > { %v2470_v25 = vadd.f32 1e-05, %v2469_v55 }
 0x302   : > { %4347 = vrsqrt.f32 %v2470_v25 }
 0x30c   : > { %v4348_v59 = vpop.eup %4347 }
 0x30d   : > { %v2473_v21 = vmul.f32 %v4348_v59, %v2472_v52  ;;  %v3277_v52 = vld [vmem:[%s5205_s20 + $0xe8] sm:$0xff]  ;;  %v3278_v59 = vld [vmem:[%s5205_s20 + $0xf0] sm:$0xff] }
 0x30f   : > { %3969 = vmatmul.mubr.msk.f32.vlgmr.msra.gmra.mrb[2].mxu0 %vm2477_vm4, %v2473_v21  ;;  %v2475_v22 = vmul.f32 %v2473_v21, %v2465_v11  ;;  %v3279_v21 = vld [vmem:[%s5205_s20 + $0xf8] sm:$0xff] }
 0x311   : > { %v2476_v23 = vsub.f32 %v2474_v33, %v2475_v22 }
 0x313   : > { %4004 = vmatmul.mubr.msk.f32.vlgmr.msra.gmra.mrb[2].mxu1 %vm2477_vm4, %v2476_v23 }
 0x3e2   : > { %v2595_v36 = vpop.f32.mrb[2].mxu0 }
 0x3e3   : > { %v2686_v46 = vrot.slane %v2595_v36, %v2685_v42  ;;  %v3970_v48 = vpop.f32.mrb[3].mxu0 }
 0x3e5   : > { %v2687_v57 = vmul.f32 %v2686_v46, %v2675_v43  ;;  %v2688_v19 = vmul.f32 %v2686_v46, %v2676_v28  ;;  %v2689_v26 = vmul.f32 %v2686_v46, %v2677_v35  ;;  %v2690_v45 = vmul.f32 %v2686_v46, %v2678_v39 }
 0x3e6   : > { %v2668_v18 = vpop.f32.mrb[2].mxu1  ;;  %v2691_v31 = vmul.f32 %v2686_v46, %v2679_v40  ;;  %v2692_v63 = vmul.f32 %v2686_v46, %v2680_v56  ;;  %v2693_v17 = vmul.f32 %v2686_v46, %v2681_v44  ;;  %v2694_v24 = vmul.f32 %v2686_v46, %v2682_v30 }
 0x3e7   : > { %v4005_v41 = vpop.f32.mrb[3].mxu1  ;;  %v2726_v34 = vmul.f32 %v3252_v47, %v2686_v46  ;;  %v2727_v1 = vmul.f32 %v3253_v51, %v2686_v46  ;;  %v2728_v2 = vmul.f32 %v3254_v29, %v2686_v46  ;;  %v2729_v3 = vmul.f32 %v3255_v54, %v2686_v46 }
 0x3e8   : > { %v2730_v4 = vmul.f32 %v3256_v53, %v2686_v46  ;;  %v2731_v8 = vmul.f32 %v3257_v38, %v2686_v46  ;;  %v2732_v9 = vmul.f32 %v3258_v61, %v2686_v46  ;;  %v2733_v10 = vmul.f32 %v3259_v62, %v2686_v46 }
 0x3e9   : > { %v5235_v11 = vmul.f32 %v3262_v20, %v2686_v46  ;;  %v2770_v15 = vmul.f32 %v3263_v58, %v2686_v46  ;;  %v2771_v49 = vmul.f32 %v3264_v16, %v2686_v46  ;;  %v2772_v55 = vmul.f32 %v3265_v50, %v2686_v46 }
 0x3ea   : > { %v2773_v25 = vmul.f32 %v3266_v60, %v2686_v46  ;;  %v2774_v33 = vmul.f32 %v3267_v37, %v2686_v46  ;;  %v2775_v22 = vmul.f32 %v3268_v0, %v2686_v46  ;;  %v2776_v23 = vmul.f32 %v3269_v5, %v2686_v46 }
 0x3eb   : > { %v5243_v27 = vmul.f32 %v3272_v6, %v2686_v46  ;;  %v5245_v43 = vmul.f32 %v3273_v7, %v2686_v46  ;;  %v5247_v36 = vmul.f32 %v3274_v12, %v2686_v46  ;;  %v5249_v28 = vmul.f32 %v3275_v13, %v2686_v46 }
 0x3ec   : > { %v5253_v35 = vrot.slane %v2668_v18, %v2685_v42  ;;  %v5255_v39 = vmul.f32 %v3276_v14, %v2686_v46  ;;  %v5257_v40 = vmul.f32 %v3277_v52, %v2686_v46  ;;  %v5259_v56 = vmul.f32 %v3278_v59, %v2686_v46 }
 0x3ed   : > { %v5261_v44 = vmul.f32 %v3279_v21, %v2686_v46 }
 0x3ee   : > { %v2699_v30 = vadd.f32 %v5253_v35, %v2687_v57  ;;  %v2700_v48 = vadd.f32 %v5253_v35, %v2688_v19  ;;  %v2701_v47 = vadd.f32 %v5253_v35, %v2689_v26  ;;  %v2702_v51 = vadd.f32 %v5253_v35, %v2690_v45 }
 0x3ef   : > { %v2703_v32 = vadd.f32 %v5253_v35, %v2691_v31  ;;  %v2704_v42 = vadd.f32 %v5253_v35, %v2692_v63  ;;  %v2705_v29 = vadd.f32 %v5253_v35, %v2693_v17  ;;  %v2706_v54 = vadd.f32 %v5253_v35, %v2694_v24 }
 0x3f0   : > { %v2707_v53 = vmax.f32 %v2699_v30, 0.0  ;;  %v2708_v38 = vmax.f32 %v2700_v48, 0.0  ;;  %v2709_v46 = vmax.f32 %v2701_v47, 0.0  ;;  %v2710_v61 = vmax.f32 %v2702_v51, 0.0 }
 0x3f1   : > { %v2711_v62 = vmax.f32 %v2703_v32, 0.0  ;;  %v2712_v57 = vmax.f32 %v2704_v42, 0.0  ;;  %v2713_v20 = vmax.f32 %v2705_v29, 0.0  ;;  %v2714_v18 = vmax.f32 %v2706_v54, 0.0 }
 0x3f2   : > { %v2734_v19 = vadd.f32 %v2726_v34, %v5253_v35  ;;  %v2735_v26 = vadd.f32 %v2727_v1, %v5253_v35  ;;  %v2736_v45 = vadd.f32 %v2728_v2, %v5253_v35  ;;  %v2737_v31 = vadd.f32 %v2729_v3, %v5253_v35 }
 0x3f3   : > { %v2738_v58 = vadd.f32 %v2730_v4, %v5253_v35  ;;  %v2739_v16 = vadd.f32 %v2731_v8, %v5253_v35  ;;  %v2740_v50 = vadd.f32 %v2732_v9, %v5253_v35  ;;  %v2741_v41 = vadd.f32 %v2733_v10, %v5253_v35 }
 0x3f4   : > { %v2742_v63 = vmax.f32 %v2734_v19, 0.0  ;;  %v2743_v17 = vmax.f32 %v2735_v26, 0.0  ;;  %v2744_v24 = vmax.f32 %v2736_v45, 0.0  ;;  %v2745_v60 = vmax.f32 %v2737_v31, 0.0 }
 0x3f5   : > { %v2746_v37 = vmax.f32 %v2738_v58, 0.0  ;;  %v2747_v34 = vmax.f32 %v2739_v16, 0.0  ;;  %v2748_v0 = vmax.f32 %v2740_v50, 0.0  ;;  %v2749_v1 = vmax.f32 %v2741_v41, 0.0 }
 0x3f6   : > { %v2750_v5 = vmax.f32 %v2707_v53, %v2742_v63  ;;  %v2751_v2 = vmax.f32 %v2708_v38, %v2743_v17  ;;  %v2752_v6 = vmax.f32 %v2709_v46, %v2744_v24  ;;  %v2753_v3 = vmax.f32 %v2710_v61, %v2745_v60 }
 0x3f7   : > { %v2754_v7 = vmax.f32 %v2711_v62, %v2746_v37  ;;  %v2755_v4 = vmax.f32 %v2712_v57, %v2747_v34  ;;  %v2756_v12 = vmax.f32 %v2713_v20, %v2748_v0  ;;  %v2757_v8 = vmax.f32 %v2714_v18, %v2749_v1 }
 0x3f8   : > { %v2777_v9 = vadd.f32 %v5235_v11, %v5253_v35  ;;  %v2778_v10 = vadd.f32 %v2770_v15, %v5253_v35  ;;  %v2779_v13 = vadd.f32 %v2771_v49, %v5253_v35  ;;  %v2780_v14 = vadd.f32 %v2772_v55, %v5253_v35 }
 0x3f9   : > { %v2781_v52 = vadd.f32 %v2773_v25, %v5253_v35  ;;  %v2782_v59 = vadd.f32 %v2774_v33, %v5253_v35  ;;  %v2783_v21 = vadd.f32 %v2775_v22, %v5253_v35  ;;  %v2784_v30 = vadd.f32 %v2776_v23, %v5253_v35 }
 0x3fa   : > { %v2785_v48 = vmax.f32 %v2777_v9, 0.0  ;;  %v2786_v47 = vmax.f32 %v2778_v10, 0.0  ;;  %v2787_v51 = vmax.f32 %v2779_v13, 0.0  ;;  %v2788_v32 = vmax.f32 %v2780_v14, 0.0 }
 0x3fb   : > { %v2789_v42 = vmax.f32 %v2781_v52, 0.0  ;;  %v2790_v11 = vmax.f32 %v2782_v59, 0.0  ;;  %v2791_v29 = vmax.f32 %v2783_v21, 0.0  ;;  %v2792_v15 = vmax.f32 %v2784_v30, 0.0 }
 0x3fc   : > { %v2793_v54 = vmax.f32 %v2750_v5, %v2785_v48  ;;  %v2794_v49 = vmax.f32 %v2751_v2, %v2786_v47  ;;  %v2795_v53 = vmax.f32 %v2752_v6, %v2787_v51  ;;  %v2796_v55 = vmax.f32 %v2753_v3, %v2788_v32 }
 0x3fd   : > { %v2797_v38 = vmax.f32 %v2754_v7, %v2789_v42  ;;  %v2798_v25 = vmax.f32 %v2755_v4, %v2790_v11  ;;  %v2799_v46 = vmax.f32 %v2756_v12, %v2791_v29  ;;  %v2800_v33 = vmax.f32 %v2757_v8, %v2792_v15 }
 0x3fe   : > { %v2820_v22 = vadd.f32 %v5243_v27, %v5253_v35  ;;  %v2821_v23 = vadd.f32 %v5245_v43, %v5253_v35  ;;  %v2822_v61 = vadd.f32 %v5247_v36, %v5253_v35  ;;  %v2823_v62 = vadd.f32 %v5249_v28, %v5253_v35 }
 0x3ff   : > { %v2824_v57 = vadd.f32 %v5255_v39, %v5253_v35  ;;  %v2825_v20 = vadd.f32 %v5257_v40, %v5253_v35  ;;  %v2826_v18 = vadd.f32 %v5259_v56, %v5253_v35  ;;  %v2827_v27 = vadd.f32 %v5261_v44, %v5253_v35 }
 0x400   : > { %v2828_v19 = vmax.f32 %v2820_v22, 0.0  ;;  %v2829_v43 = vmax.f32 %v2821_v23, 0.0  ;;  %v2830_v26 = vmax.f32 %v2822_v61, 0.0  ;;  %v2831_v45 = vmax.f32 %v2823_v62, 0.0 }
 0x401   : > { %v2832_v36 = vmax.f32 %v2824_v57, 0.0  ;;  %v2833_v31 = vmax.f32 %v2825_v20, 0.0  ;;  %v2834_v28 = vmax.f32 %v2826_v18, 0.0  ;;  %v2835_v39 = vmax.f32 %v2827_v27, 0.0 }
 0x402   : > { %v2836_v58 = vmax.f32 %v2793_v54, %v2828_v19  ;;  %v2837_v40 = vmax.f32 %v2794_v49, %v2829_v43  ;;  %v2838_v16 = vmax.f32 %v2795_v53, %v2830_v26  ;;  %v2839_v50 = vmax.f32 %v2796_v55, %v2831_v45 }
 0x403   : > { %v2840_v56 = vmax.f32 %v2797_v38, %v2832_v36  ;;  %v2841_v41 = vmax.f32 %v2798_v25, %v2833_v31  ;;  %v2842_v63 = vmax.f32 %v2799_v46, %v2834_v28  ;;  %v2843_v35 = vmax.f32 %v2800_v33, %v2835_v39 }
 0x404   : > { %v3310_v44 = vpack.c.bf16 %v2837_v40, %v2836_v58  ;;  %v3315_v17 = vpack.c.bf16 %v2839_v50, %v2838_v16 }
 0x405   : > { %v3320_v24 = vpack.c.bf16 %v2841_v41, %v2840_v56  ;;  %v3325_v60 = vpack.c.bf16 %v2843_v35, %v2842_v63 }
 0x406   : > { %3311 = vst [vmem:[%s4583_s17] sm:$0xff] %v3310_v44   ;;  %3327 = vst [vmem:[%s4583_s17 + $0x8] sm:$0xff] %v3315_v17  }
 0x407   : > { %3328 = vst [vmem:[%s4583_s17 + $0x10] sm:$0xff] %v3320_v24   ;;  %3329 = vst [vmem:[%s4583_s17 + $0x18] sm:$0xff] %v3325_v60  }
 0x408 PF: > { %s16_s25 = sadd.s32 1, %s4387_s25   ;;  %s5338_s7 = sld [smem:[#allocation5_spill]] }
 0x409   : > { %p13_p11 = scmp.ge.s32.totalorder %s16_s25, 10   ;;  %s5339_s29 = sld [smem:[#allocation6_spill]] }
 0x40a   : > { %s5340_s21 = smov %s4379_s23  ;;  %s5341_s22 = smov %s4383_s24 }
 0x40b   :  { %15 = sbr.rel (!%p13_p11) target bundleno = 3 (0x3), region = 106 }
 0x40e   : > { %s5342_s23 = smov %s5338_s7 }
 0x40f   : > { %s5343_s24 = smov %s5339_s29 }

// kernel: forward.5
= control target key start
LH: loop header
LB: loop body
LE: loop exit
PB: predicated region body
PF: predicated region fallthrough
CT: control target
= control target key end

     0   :  { %v1058_v28 = vlaneseq  ;;  %v16791_v36 = vmov 1966171168   ;;  %s20198_s0 = inlined_call_operand.vmem [shape: bf16[4,2,4096], index: 0, kind: input, shape index: {}]   ;;  %s20199_s1 = inlined_call_operand.vmem [shape: bf16[4,4096,10], index: 1, kind: input, shape index: {}]   ;;  %s20200_s2 = inlined_call_operand.vmem [shape: f32[1,10], index: 2, kind: input, shape index: {}]   ;;  %s20201_s3 = inlined_call_operand.hbm [shape: f32[2,10], index: 3, kind: output, shape index: {}]  }
   0x1   :  { %v15727_v0 = vld [vmem:[%s20199_s1 + $0x840] sm:$0xff]   ;;  %v15731_v4 = vld [vmem:[%s20199_s1 + $0x848] sm:$0xff]   ;;  %v15735_v8 = vld [vmem:[%s20199_s1 + $0x850] sm:$0xff]   ;;  %v1056_v37 = vunpack.c.l.s4 %v16791_v36 }
   0x2   :  { %v15728_v1 = vld [vmem:[%s20199_s1 + $0x8c0] sm:$0xff]   ;;  %14317 = vmatprep.subr.bf16.mxu0 %v15727_v0  ;;  %v15732_v5 = vld [vmem:[%s20199_s1 + $0x8c8] sm:$0xff]   ;;  %v15736_v9 = vld [vmem:[%s20199_s1 + $0x8d0] sm:$0xff]   ;;  %v1059_v33 = vshrl.u32 %v1058_v28, 7 }
   0x3   :  { %v15729_v2 = vld [vmem:[%s20199_s1 + $0x800] sm:$0xff]   ;;  %14339 = vmatprep.subr.bf16.mxu1 %v15728_v1  ;;  %v15733_v6 = vld [vmem:[%s20199_s1 + $0x808] sm:$0xff]   ;;  %v15737_v10 = vld [vmem:[%s20199_s1 + $0x810] sm:$0xff]   ;;  %v1057_v40 = vunpack.c.0.s8 %v1056_v37 }
   0x4   :  { %v15730_v3 = vld [vmem:[%s20199_s1 + $0x880] sm:$0xff]   ;;  %14318 = vmatpush3.bf16.msra.mxu0 %v15729_v2  ;;  %v15734_v7 = vld [vmem:[%s20199_s1 + $0x888] sm:$0xff]   ;;  %v15738_v11 = vld [vmem:[%s20199_s1 + $0x890] sm:$0xff]  }
   0x5   :  { %14340 = vmatpush3.bf16.msra.mxu1 %v15730_v3  ;;  %14319 = vmatprep.subr.bf16.mxu0 %v15731_v4  ;;  %v15739_v12 = vld [vmem:[%s20199_s1 + $0x858] sm:$0xff]   ;;  %v15743_v16 = vld [vmem:[%s20199_s1 + $0x860] sm:$0xff]   ;;  %v15747_v20 = vld [vmem:[%s20199_s1 + $0x868] sm:$0xff]   ;;  %v16918_v41 = vsub.s32 %v1057_v40, %v1059_v33 }
   0x6   :  { %14341 = vmatprep.subr.bf16.mxu1 %v15732_v5  ;;  %v15740_v13 = vld [vmem:[%s20199_s1 + $0x8d8] sm:$0xff]   ;;  %v15744_v17 = vld [vmem:[%s20199_s1 + $0x8e0] sm:$0xff]   ;;  %v15748_v21 = vld [vmem:[%s20199_s1 + $0x8e8] sm:$0xff]  }
   0x7   :  { %v15741_v14 = vld [vmem:[%s20199_s1 + $0x818] sm:$0xff]   ;;  %v15745_v18 = vld [vmem:[%s20199_s1 + $0x820] sm:$0xff]   ;;  %v15749_v22 = vld [vmem:[%s20199_s1 + $0x828] sm:$0xff]  }
   0x8   :  { %14320 = vmatpush3.bf16.msra.mxu0 %v15733_v6  ;;  %v15742_v15 = vld [vmem:[%s20199_s1 + $0x898] sm:$0xff]   ;;  %v15746_v19 = vld [vmem:[%s20199_s1 + $0x8a0] sm:$0xff]   ;;  %v15750_v23 = vld [vmem:[%s20199_s1 + $0x8a8] sm:$0xff]  }
   0x9   :  { %14342 = vmatpush3.bf16.msra.mxu1 %v15734_v7  ;;  %14321 = vmatprep.subr.bf16.mxu0 %v15735_v8  ;;  %v15751_v24 = vld [vmem:[%s20199_s1 + $0x870] sm:$0xff]   ;;  %v15755_v29 = vld [vmem:[%s20199_s1 + $0x878] sm:$0xff]   ;;  %v11744_v34 = vld [vmem:[%s20198_s0 + $0x20] sm:$0xff] }
   0xa   :  { %14343 = vmatprep.subr.bf16.mxu1 %v15736_v9  ;;  %v15752_v25 = vld [vmem:[%s20199_s1 + $0x8f0] sm:$0xff]   ;;  %v15756_v30 = vld [vmem:[%s20199_s1 + $0x8f8] sm:$0xff]   ;;  %v15760_v35 = vld [vmem:[%s20199_s1 + $0x940] sm:$0xff]   ;;  %v1054_v39 = vcombine.high %v11744_v34, %v11744_v34  ;;  %v1061_v42 = vrot.slane %v11744_v34, %v16918_v41 }
   0xb   :  { %v15753_v26 = vld [vmem:[%s20199_s1 + $0x830] sm:$0xff]   ;;  %v15757_v31 = vld [vmem:[%s20199_s1 + $0x838] sm:$0xff]   ;;  %v15761_v38 = vld [vmem:[%s20199_s1 + $0x9c0] sm:$0xff]  }
   0xc   :  { %14322 = vmatpush3.bf16.msra.mxu0 %v15737_v10  ;;  %v15754_v27 = vld [vmem:[%s20199_s1 + $0x8b0] sm:$0xff]   ;;  %v15758_v32 = vld [vmem:[%s20199_s1 + $0x8b8] sm:$0xff]   ;;  %v16922_v43 = vrot.slane %v1054_v39, %v16918_v41  ;;  %v1069_v44 = vcombine.high %v1061_v42, %v1061_v42  ;;  %v1077_v45 = vrot.slane %v1061_v42, %v16918_v41  ;;  %v15762_v47 = vld [vmem:[%s20199_s1 + $0x900] sm:$0xff]  }
   0xd   :  { %14344 = vmatpush3.bf16.msra.mxu1 %v15738_v11  ;;  %14323 = vmatprep.subr.bf16.mxu0 %v15739_v12  ;;  %v15763_v49 = vld [vmem:[%s20199_s1 + $0x980] sm:$0xff]   ;;  %v15764_v52 = vld [vmem:[%s20199_s1 + $0x948] sm:$0xff]   ;;  %v15768_v58 = vld [vmem:[%s20199_s1 + $0x950] sm:$0xff]  }
   0xe   :  { %14345 = vmatprep.subr.bf16.mxu1 %v15740_v13  ;;  %v1070_v46 = vcombine.high %v16922_v43, %v16922_v43  ;;  %v1091_v48 = vrot.slane %v1069_v44, %v16918_v41  ;;  %v1099_v51 = vcombine.high %v1077_v45, %v1077_v45  ;;  %v15765_v54 = vld [vmem:[%s20199_s1 + $0x9c8] sm:$0xff]   ;;  %v15769_v59 = vld [vmem:[%s20199_s1 + $0x9d0] sm:$0xff]   ;;  %v15772_v62 = vld [vmem:[%s20199_s1 + $0x958] sm:$0xff]  }
   0xf   :  { %v15766_v55 = vld [vmem:[%s20199_s1 + $0x908] sm:$0xff]   ;;  %v15770_v60 = vld [vmem:[%s20199_s1 + $0x910] sm:$0xff]   ;;  %v15773_v63 = vld [vmem:[%s20199_s1 + $0x9d8] sm:$0xff]  }
  0x10   :  { %14324 = vmatpush3.bf16.msra.mxu0 %v15741_v14  ;;  %v1098_v50 = vrot.slane %v1070_v46, %v16918_v41  ;;  %2850 = vmatprep.mubr.bf16.mxu0 %v1091_v48  ;;  %v1101_v53 = vcombine.high %v1091_v48, %v1091_v48  ;;  %v15767_v57 = vld [vmem:[%s20199_s1 + $0x988] sm:$0xff]   ;;  %v15771_v61 = vld [vmem:[%s20199_s1 + $0x990] sm:$0xff]   ;;  %v15774_v0 = vld [vmem:[%s20199_s1 + $0x918] sm:$0xff]  }
  0x11   :  { %14346 = vmatpush3.bf16.msra.mxu1 %v15742_v15  ;;  %14325 = vmatprep.subr.bf16.mxu0 %v15743_v16  ;;  %v15775_v1 = vld [vmem:[%s20199_s1 + $0x998] sm:$0xff]   ;;  %v15776_v2 = vld [vmem:[%s20199_s1 + $0x960] sm:$0xff]   ;;  %v15780_v6 = vld [vmem:[%s20199_s1 + $0x968] sm:$0xff]  }
  0x12   :  { %14347 = vmatprep.subr.bf16.mxu1 %v15744_v17  ;;  %v1102_v56 = vcombine.high %v1098_v50, %v1098_v50  ;;  %2890 = vmatprep.mubr.bf16.mxu1 %v1101_v53  ;;  %v15777_v3 = vld [vmem:[%s20199_s1 + $0x9e0] sm:$0xff]   ;;  %v15781_v7 = vld [vmem:[%s20199_s1 + $0x9e8] sm:$0xff]   ;;  %v15784_v10 = vld [vmem:[%s20199_s1 + $0x970] sm:$0xff]  }
  0x13   :  { %v15778_v4 = vld [vmem:[%s20199_s1 + $0x920] sm:$0xff]   ;;  %v15782_v8 = vld [vmem:[%s20199_s1 + $0x928] sm:$0xff]   ;;  %v15785_v11 = vld [vmem:[%s20199_s1 + $0x9f0] sm:$0xff]  }
  0x14   :  { %14326 = vmatpush3.bf16.msra.mxu0 %v15745_v18  ;;  %v15779_v5 = vld [vmem:[%s20199_s1 + $0x9a0] sm:$0xff]   ;;  %v15783_v9 = vld [vmem:[%s20199_s1 + $0x9a8] sm:$0xff]   ;;  %v15786_v12 = vld [vmem:[%s20199_s1 + $0x930] sm:$0xff]   ;;  %v1084_v18 = vrot.slane %v16922_v43, %v16918_v41 }
  0x15   :  { %14348 = vmatpush3.bf16.msra.mxu1 %v15746_v19  ;;  %14327 = vmatprep.subr.bf16.mxu0 %v15747_v20  ;;  %v15787_v13 = vld [vmem:[%s20199_s1 + $0x9b0] sm:$0xff]   ;;  %v15788_v14 = vld [vmem:[%s20199_s1 + $0x978] sm:$0xff]   ;;  %v15792_v19 = vld [vmem:[%s20199_s1 + $0xa40] sm:$0xff]  }
  0x16   :  { %14349 = vmatprep.subr.bf16.mxu1 %v15748_v21  ;;  %v15789_v15 = vld [vmem:[%s20199_s1 + $0x9f8] sm:$0xff]   ;;  %v15793_v20 = vld [vmem:[%s20199_s1 + $0xac0] sm:$0xff]   ;;  %v15800_v28 = vld [vmem:[%s20199_s1 + $0xa50] sm:$0xff]  }
  0x17   :  { %v15790_v16 = vld [vmem:[%s20199_s1 + $0x938] sm:$0xff]   ;;  %v15794_v21 = vld [vmem:[%s20199_s1 + $0xa00] sm:$0xff]   ;;  %v15812_v40 = vld [vmem:[%s20199_s1 + $0xa68] sm:$0xff]  }
  0x18   :  { %14328 = vmatpush3.bf16.msra.mxu0 %v15749_v22  ;;  %v15791_v17 = vld [vmem:[%s20199_s1 + $0x9b8] sm:$0xff]   ;;  %v15795_v22 = vld [vmem:[%s20199_s1 + $0xa80] sm:$0xff]   ;;  %v15813_v42 = vld [vmem:[%s20199_s1 + $0xae8] sm:$0xff]  }
  0x19   :  { %14350 = vmatpush3.bf16.msra.mxu1 %v15750_v23  ;;  %14329 = vmatprep.subr.bf16.mxu0 %v15751_v24  ;;  %v1100_v23 = vcombine.high %v1084_v18, %v1084_v18  ;;  %v15796_v24 = vld [vmem:[%s20199_s1 + $0xa48] sm:$0xff]   ;;  %v15805_v33 = vld [vmem:[%s20199_s1 + $0xad8] sm:$0xff]   ;;  %v15808_v36 = vld [vmem:[%s20199_s1 + $0xa60] sm:$0xff]  }
  0x1a   :  { %14351 = vmatprep.subr.bf16.mxu1 %v15752_v25  ;;  %v15797_v25 = vld [vmem:[%s20199_s1 + $0xac8] sm:$0xff]   ;;  %v15806_v34 = vld [vmem:[%s20199_s1 + $0xa18] sm:$0xff]   ;;  %v15809_v37 = vld [vmem:[%s20199_s1 + $0xae0] sm:$0xff]  }
  0x1b   :  { %v15811_v39 = vld [vmem:[%s20199_s1 + $0xaa0] sm:$0xff]   ;;  %v15814_v43 = vld [vmem:[%s20199_s1 + $0xa28] sm:$0xff]  }
  0x1c   :  { %14330 = vmatpush3.bf16.msra.mxu0 %v15753_v26  ;;  %v15798_v26 = vld [vmem:[%s20199_s1 + $0xa08] sm:$0xff]  }
  0x1d   :  { %14352 = vmatpush3.bf16.msra.mxu1 %v15754_v27  ;;  %14331 = vmatprep.subr.bf16.mxu0 %v15755_v29  ;;  %v15799_v27 = vld [vmem:[%s20199_s1 + $0xa88] sm:$0xff]   ;;  %v15801_v29 = vld [vmem:[%s20199_s1 + $0xad0] sm:$0xff]  }
  0x1e   :  { %14353 = vmatprep.subr.bf16.mxu1 %v15756_v30  ;;  %v15802_v30 = vld [vmem:[%s20199_s1 + $0xa10] sm:$0xff]   ;;  %v15815_v44 = vld [vmem:[%s20199_s1 + $0xaa8] sm:$0xff]  }
  0x1f   :  { %v11745_v46 = vld [vmem:[%s20198_s0 + $0x28] sm:$0xff] }
  0x20   :  { %14332 = vmatpush3.bf16.msra.mxu0 %v15757_v31  ;;  %v15803_v31 = vld [vmem:[%s20199_s1 + $0xa90] sm:$0xff]   ;;  %v1110_v48 = vrot.slane %v11745_v46, %v16918_v41 }
  0x21   :  { %14354 = vmatpush3.bf16.msra.mxu1 %v15758_v32  ;;  %14361 = vmatprep.subr.bf16.mxu0 %v15760_v35  ;;  %v15804_v32 = vld [vmem:[%s20199_s1 + $0xa58] sm:$0xff]  }
  0x22   :  { %14383 = vmatprep.subr.bf16.mxu1 %v15761_v38  ;;  %v15807_v35 = vld [vmem:[%s20199_s1 + $0xa98] sm:$0xff]   ;;  %v15810_v38 = vld [vmem:[%s20199_s1 + $0xa20] sm:$0xff]  }
  0x23   :  { %2851 = vmatmul.mubr.bf16.vlgmr.msra.gmra.mrb[0].mxu0 %v1077_v45  ;;  %v15816_v45 = vld [vmem:[%s20199_s1 + $0xa70] sm:$0xff]  }
  0x24   :  { %14362 = vmatpush3.bf16.msra.mxu0 %v15762_v47  ;;  %2891 = vmatmul.mubr.bf16.vlgmr.msra.gmra.mrb[0].mxu1 %v1099_v51  ;;  %v15817_v47 = vld [vmem:[%s20199_s1 + $0xaf0] sm:$0xff]  }
  0x25   :  { %14363 = vmatprep.subr.bf16.mxu0 %v15764_v52  ;;  %14384 = vmatpush3.bf16.msra.mxu1 %v15763_v49  ;;  %v1103_v49 = vcombine.high %v11745_v46, %v11745_v46  ;;  %v15819_v51 = vld [vmem:[%s20199_s1 + $0xab0] sm:$0xff]   ;;  %v1118_v52 = vcombine.high %v1110_v48, %v1110_v48 }
  0x26   :  { %2930 = vmatprep.mubr.bf16.mxu0 %v1098_v50  ;;  %14385 = vmatprep.subr.bf16.mxu1 %v15765_v54  ;;  %v15818_v50 = vld [vmem:[%s20199_s1 + $0xa30] sm:$0xff]   ;;  %v15820_v54 = vld [vmem:[%s20199_s1 + $0xa78] sm:$0xff]  }
  0x27   :  { %2970 = vmatprep.mubr.bf16.mxu1 %v1102_v56  ;;  %v17110_v53 = vrot.slane %v1103_v49, %v16918_v41  ;;  %v1140_v56 = vrot.slane %v1118_v52, %v16918_v41  ;;  %v15867_v46 = vld [vmem:[%s20199_s1 + $0xc10] sm:$0xff]   ;;  %v15870_v49 = vld [vmem:[%s20199_s1 + $0xcd8] sm:$0xff]   ;;  %v15873_v52 = vld [vmem:[%s20199_s1 + $0xc60] sm:$0xff]  }
  0x28   :  { %14364 = vmatpush3.bf16.msra.mxu0 %v15766_v55  ;;  %v15821_v55 = vld [vmem:[%s20199_s1 + $0xaf8] sm:$0xff]  }
  0x29   :  { %14365 = vmatprep.subr.bf16.mxu0 %v15768_v58  ;;  %14386 = vmatpush3.bf16.msra.mxu1 %v15767_v57  ;;  %v1119_v57 = vcombine.high %v17110_v53, %v17110_v53  ;;  %v15822_v58 = vld [vmem:[%s20199_s1 + $0xa38] sm:$0xff]  }
  0x2a   :  { %14387 = vmatprep.subr.bf16.mxu1 %v15769_v59  ;;  %v15823_v59 = vld [vmem:[%s20199_s1 + $0xab8] sm:$0xff]  }
  0x2c   :  { %14366 = vmatpush3.bf16.msra.mxu0 %v15770_v60  ;;  %v1150_v60 = vcombine.high %v1140_v56, %v1140_v56 }
  0x2d   :  { %14367 = vmatprep.subr.bf16.mxu0 %v15772_v62  ;;  %14388 = vmatpush3.bf16.msra.mxu1 %v15771_v61  ;;  %v1126_v61 = vrot.slane %v1110_v48, %v16918_v41  ;;  %v15824_v62 = vld [vmem:[%s20199_s1 + $0xb40] sm:$0xff]   ;;  %v15869_v48 = vld [vmem:[%s20199_s1 + $0xc58] sm:$0xff]  }
  0x2e   :  { %14389 = vmatprep.subr.bf16.mxu1 %v15773_v63  ;;  %v15825_v63 = vld [vmem:[%s20199_s1 + $0xbc0] sm:$0xff]  }
  0x30   :  { %14368 = vmatpush3.bf16.msra.mxu0 %v15774_v0  ;;  %v1147_v0 = vrot.slane %v1119_v57, %v16918_v41  ;;  %v15878_v57 = vld [vmem:[%s20199_s1 + $0xce8] sm:$0xff]  }
  0x31   :  { %14369 = vmatprep.subr.bf16.mxu0 %v15776_v2  ;;  %14390 = vmatpush3.bf16.msra.mxu1 %v15775_v1  ;;  %v15826_v1 = vld [vmem:[%s20199_s1 + $0xb00] sm:$0xff]  }
  0x32   :  { %14391 = vmatprep.subr.bf16.mxu1 %v15777_v3  ;;  %v15827_v2 = vld [vmem:[%s20199_s1 + $0xb80] sm:$0xff]   ;;  %v1148_v3 = vcombine.high %v1126_v61, %v1126_v61 }
  0x34   :  { %14370 = vmatpush3.bf16.msra.mxu0 %v15778_v4  ;;  %v15828_v4 = vld [vmem:[%s20199_s1 + $0xb48] sm:$0xff]  }
  0x35   :  { %14371 = vmatprep.subr.bf16.mxu0 %v15780_v6  ;;  %14392 = vmatpush3.bf16.msra.mxu1 %v15779_v5  ;;  %v15829_v5 = vld [vmem:[%s20199_s1 + $0xbc8] sm:$0xff]   ;;  %v1151_v6 = vcombine.high %v1147_v0, %v1147_v0 }
  0x36   :  { %14393 = vmatprep.subr.bf16.mxu1 %v15781_v7  ;;  %v15830_v7 = vld [vmem:[%s20199_s1 + $0xb08] sm:$0xff]  }
  0x38   :  { %14372 = vmatpush3.bf16.msra.mxu0 %v15782_v8  ;;  %v15831_v8 = vld [vmem:[%s20199_s1 + $0xb88] sm:$0xff]  }
  0x39   :  { %14373 = vmatprep.subr.bf16.mxu0 %v15784_v10  ;;  %14394 = vmatpush3.bf16.msra.mxu1 %v15783_v9  ;;  %v15832_v9 = vld [vmem:[%s20199_s1 + $0xb50] sm:$0xff]  }
  0x3a   :  { %14395 = vmatprep.subr.bf16.mxu1 %v15785_v11  ;;  %v15833_v10 = vld [vmem:[%s20199_s1 + $0xbd0] sm:$0xff]  }
  0x3b   :  { %v15834_v11 = vld [vmem:[%s20199_s1 + $0xb10] sm:$0xff]  }
  0x3c   :  { %14374 = vmatpush3.bf16.msra.mxu0 %v15786_v12  ;;  %v15835_v12 = vld [vmem:[%s20199_s1 + $0xb90] sm:$0xff]  }
  0x3d   :  { %14375 = vmatprep.subr.bf16.mxu0 %v15788_v14  ;;  %14396 = vmatpush3.bf16.msra.mxu1 %v15787_v13  ;;  %v15836_v13 = vld [vmem:[%s20199_s1 + $0xb58] sm:$0xff]  }
  0x3e   :  { %14397 = vmatprep.subr.bf16.mxu1 %v15789_v15  ;;  %v15837_v14 = vld [vmem:[%s20199_s1 + $0xbd8] sm:$0xff]  }
  0x3f   :  { %v15838_v15 = vld [vmem:[%s20199_s1 + $0xb18] sm:$0xff]  }
  0x40   :  { %14376 = vmatpush3.bf16.msra.mxu0 %v15790_v16  ;;  %v15839_v16 = vld [vmem:[%s20199_s1 + $0xb98] sm:$0xff]  }
  0x41   :  { %14405 = vmatprep.subr.bf16.mxu0 %v15792_v19  ;;  %14398 = vmatpush3.bf16.msra.mxu1 %v15791_v17  ;;  %v15840_v17 = vld [vmem:[%s20199_s1 + $0xb60] sm:$0xff]  }
  0x42   :  { %14427 = vmatprep.subr.bf16.mxu1 %v15793_v20  ;;  %v15842_v19 = vld [vmem:[%s20199_s1 + $0xb20] sm:$0xff]  }
  0x43   :  { %2931 = vmatmul.mubr.bf16.vlgmr.msra.gmra.mrb[4].mxu0 %v1084_v18  ;;  %v15841_v18 = vld [vmem:[%s20199_s1 + $0xbe0] sm:$0xff]  }
  0x44   :  { %14406 = vmatpush3.bf16.msra.mxu0 %v15794_v21  ;;  %2971 = vmatmul.mubr.bf16.vlgmr.msra.gmra.mrb[4].mxu1 %v1100_v23  ;;  %v15843_v20 = vld [vmem:[%s20199_s1 + $0xba0] sm:$0xff]   ;;  %v15844_v21 = vld [vmem:[%s20199_s1 + $0xb68] sm:$0xff]  }
  0x45   :  { %14407 = vmatprep.subr.bf16.mxu0 %v15796_v24  ;;  %14428 = vmatpush3.bf16.msra.mxu1 %v15795_v22  ;;  %v15845_v22 = vld [vmem:[%s20199_s1 + $0xbe8] sm:$0xff]  }
  0x46   :  { %14429 = vmatprep.subr.bf16.mxu1 %v15797_v25  ;;  %3010 = vmatprep.mubr.bf16.mxu0 %v1140_v56  ;;  %v15846_v23 = vld [vmem:[%s20199_s1 + $0xb28] sm:$0xff]   ;;  %v15848_v25 = vld [vmem:[%s20199_s1 + $0xb70] sm:$0xff]  }
  0x47   :  { %3050 = vmatprep.mubr.bf16.mxu1 %v1150_v60  ;;  %v15847_v24 = vld [vmem:[%s20199_s1 + $0xba8] sm:$0xff]   ;;  %v15881_v60 = vld [vmem:[%s20199_s1 + $0xc70] sm:$0xff]  }
  0x48   :  { %14408 = vmatpush3.bf16.msra.mxu0 %v15798_v26  ;;  %v15849_v26 = vld [vmem:[%s20199_s1 + $0xbf0] sm:$0xff]   ;;  %v15877_v56 = vld [vmem:[%s20199_s1 + $0xc68] sm:$0xff]  }
  0x49   :  { %14409 = vmatprep.subr.bf16.mxu0 %v15800_v28  ;;  %14430 = vmatpush3.bf16.msra.mxu1 %v15799_v27  ;;  %v15850_v27 = vld [vmem:[%s20199_s1 + $0xb30] sm:$0xff]  }
  0x4a   :  { %14431 = vmatprep.subr.bf16.mxu1 %v15801_v29  ;;  %v15851_v28 = vld [vmem:[%s20199_s1 + $0xbb0] sm:$0xff]   ;;  %v15852_v29 = vld [vmem:[%s20199_s1 + $0xb78] sm:$0xff]  }
  0x4c   :  { %14410 = vmatpush3.bf16.msra.mxu0 %v15802_v30  ;;  %v15853_v30 = vld [vmem:[%s20199_s1 + $0xbf8] sm:$0xff]  }
  0x4d   :  { %14411 = vmatprep.subr.bf16.mxu0 %v15804_v32  ;;  %14432 = vmatpush3.bf16.msra.mxu1 %v15803_v31  ;;  %v15854_v31 = vld [vmem:[%s20199_s1 + $0xb38] sm:$0xff]  }
  0x4e   :  { %14433 = vmatprep.subr.bf16.mxu1 %v15805_v33  ;;  %v15855_v32 = vld [vmem:[%s20199_s1 + $0xbb8] sm:$0xff]   ;;  %v1133_v33 = vrot.slane %v17110_v53, %v16918_v41  ;;  %v15874_v53 = vld [vmem:[%s20199_s1 + $0xce0] sm:$0xff]  }
  0x50   :  { %14412 = vmatpush3.bf16.msra.mxu0 %v15806_v34  ;;  %v15857_v34 = vld [vmem:[%s20199_s1 + $0xc40] sm:$0xff]  }
  0x51   :  { %14413 = vmatprep.subr.bf16.mxu0 %v15808_v36  ;;  %14434 = vmatpush3.bf16.msra.mxu1 %v15807_v35  ;;  %v15858_v35 = vld [vmem:[%s20199_s1 + $0xcc0] sm:$0xff]  }
  0x52   :  { %14435 = vmatprep.subr.bf16.mxu1 %v15809_v37  ;;  %v15859_v36 = vld [vmem:[%s20199_s1 + $0xc00] sm:$0xff]  }
  0x53   :  { %v15860_v37 = vld [vmem:[%s20199_s1 + $0xc80] sm:$0xff]  }
  0x54   :  { %14414 = vmatpush3.bf16.msra.mxu0 %v15810_v38  ;;  %v1149_v38 = vcombine.high %v1133_v33, %v1133_v33 }
  0x55   :  { %14415 = vmatprep.subr.bf16.mxu0 %v15812_v40  ;;  %14436 = vmatpush3.bf16.msra.mxu1 %v15811_v39  ;;  %v15861_v39 = vld [vmem:[%s20199_s1 + $0xc48] sm:$0xff]  }
  0x56   :  { %14437 = vmatprep.subr.bf16.mxu1 %v15813_v42  ;;  %v15862_v40 = vld [vmem:[%s20199_s1 + $0xcc8] sm:$0xff]  }
  0x57   :  { %v15863_v42 = vld [vmem:[%s20199_s1 + $0xc08] sm:$0xff]  }
  0x58   :  { %14416 = vmatpush3.bf16.msra.mxu0 %v15814_v43  ;;  %v15864_v43 = vld [vmem:[%s20199_s1 + $0xc88] sm:$0xff]  }
  0x59   :  { %14417 = vmatprep.subr.bf16.mxu0 %v15816_v45  ;;  %14438 = vmatpush3.bf16.msra.mxu1 %v15815_v44  ;;  %v15865_v44 = vld [vmem:[%s20199_s1 + $0xc50] sm:$0xff]  }
  0x5a   :  { %14439 = vmatprep.subr.bf16.mxu1 %v15817_v47  ;;  %v15866_v45 = vld [vmem:[%s20199_s1 + $0xcd0] sm:$0xff]  }
  0x5b   :  { %v15868_v47 = vld [vmem:[%s20199_s1 + $0xc90] sm:$0xff]  }
  0x5c   :  { %14418 = vmatpush3.bf16.msra.mxu0 %v15818_v50  ;;  %v15871_v50 = vld [vmem:[%s20199_s1 + $0xc18] sm:$0xff]  }
  0x5d   :  { %14419 = vmatprep.subr.bf16.mxu0 %v15820_v54  ;;  %14440 = vmatpush3.bf16.msra.mxu1 %v15819_v51  ;;  %v15872_v51 = vld [vmem:[%s20199_s1 + $0xc98] sm:$0xff]   ;;  %v15875_v54 = vld [vmem:[%s20199_s1 + $0xc20] sm:$0xff]  }
  0x5e   :  { %14441 = vmatprep.subr.bf16.mxu1 %v15821_v55  ;;  %v15876_v55 = vld [vmem:[%s20199_s1 + $0xca0] sm:$0xff]  }
  0x60   :  { %14420 = vmatpush3.bf16.msra.mxu0 %v15822_v58  ;;  %v15879_v58 = vld [vmem:[%s20199_s1 + $0xc28] sm:$0xff]  }
  0x61   :  { %14449 = vmatprep.subr.bf16.mxu0 %v15824_v62  ;;  %14442 = vmatpush3.bf16.msra.mxu1 %v15823_v59  ;;  %v15880_v59 = vld [vmem:[%s20199_s1 + $0xca8] sm:$0xff]   ;;  %v15882_v62 = vld [vmem:[%s20199_s1 + $0xcf0] sm:$0xff]  }
  0x62   :  { %14471 = vmatprep.subr.bf16.mxu1 %v15825_v63 }
  0x63   :  { %3011 = vmatmul.mubr.bf16.vlgmr.msra.gmra.mrb[8].mxu0 %v1126_v61  ;;  %v11746_v61 = vld [vmem:[%s20198_s0 + $0x30] sm:$0xff] }
  0x64   :  { %14450 = vmatpush3.bf16.msra.mxu0 %v15826_v1  ;;  %3090 = vmatprep.mubr.bf16.mxu0 %v1147_v0  ;;  %v1159_v63 = vrot.slane %v11746_v61, %v16918_v41  ;;  %v1152_v0 = vcombine.high %v11746_v61, %v11746_v61  ;;  %v15883_v1 = vld [vmem:[%s20199_s1 + $0xc30] sm:$0xff]  }
  0x65   :  { %3051 = vmatmul.mubr.bf16.vlgmr.msra.gmra.mrb[8].mxu1 %v1148_v3  ;;  %14451 = vmatprep.subr.bf16.mxu0 %v15828_v4  ;;  %v15932_v61 = vld [vmem:[%s20199_s1 + $0xe10] sm:$0xff]  }
  0x66   :  { %14472 = vmatpush3.bf16.msra.mxu1 %v15827_v2  ;;  %3130 = vmatprep.mubr.bf16.mxu1 %v1151_v6  ;;  %v15884_v2 = vld [vmem:[%s20199_s1 + $0xcb0] sm:$0xff]   ;;  %v1167_v3 = vcombine.high %v1159_v63, %v1159_v63  ;;  %v17316_v4 = vrot.slane %v1152_v0, %v16918_v41  ;;  %v15886_v6 = vld [vmem:[%s20199_s1 + $0xcf8] sm:$0xff]  }
  0x67   :  { %14473 = vmatprep.subr.bf16.mxu1 %v15829_v5  ;;  %v15885_v5 = vld [vmem:[%s20199_s1 + $0xc78] sm:$0xff]  }
  0x68   :  { %14452 = vmatpush3.bf16.msra.mxu0 %v15830_v7  ;;  %v1189_v7 = vrot.slane %v1167_v3, %v16918_v41  ;;  %v15935_v0 = vld [vmem:[%s20199_s1 + $0xed8] sm:$0xff]   ;;  %v15938_v3 = vld [vmem:[%s20199_s1 + $0xe60] sm:$0xff]  }
  0x69   :  { %14453 = vmatprep.subr.bf16.mxu0 %v15832_v9  ;;  %v15887_v9 = vld [vmem:[%s20199_s1 + $0xc38] sm:$0xff]  }
  0x6a   :  { %14474 = vmatpush3.bf16.msra.mxu1 %v15831_v8  ;;  %v1168_v8 = vcombine.high %v17316_v4, %v17316_v4 }
  0x6b   :  { %14475 = vmatprep.subr.bf16.mxu1 %v15833_v10  ;;  %v15888_v10 = vld [vmem:[%s20199_s1 + $0xcb8] sm:$0xff]  }
  0x6c   :  { %14454 = vmatpush3.bf16.msra.mxu0 %v15834_v11  ;;  %v1199_v11 = vcombine.high %v1189_v7, %v1189_v7 }
  0x6d   :  { %14455 = vmatprep.subr.bf16.mxu0 %v15836_v13  ;;  %v15889_v13 = vld [vmem:[%s20199_s1 + $0xd40] sm:$0xff]  }
  0x6e   :  { %14476 = vmatpush3.bf16.msra.mxu1 %v15835_v12  ;;  %v1175_v12 = vrot.slane %v1159_v63, %v16918_v41  ;;  %v15934_v63 = vld [vmem:[%s20199_s1 + $0xe58] sm:$0xff]  }
  0x6f   :  { %14477 = vmatprep.subr.bf16.mxu1 %v15837_v14  ;;  %v15890_v14 = vld [vmem:[%s20199_s1 + $0xdc0] sm:$0xff]  }
  0x70   :  { %14456 = vmatpush3.bf16.msra.mxu0 %v15838_v15  ;;  %v1196_v15 = vrot.slane %v1168_v8, %v16918_v41  ;;  %v15943_v8 = vld [vmem:[%s20199_s1 + $0xee8] sm:$0xff]  }
  0x71   :  { %14457 = vmatprep.subr.bf16.mxu0 %v15840_v17  ;;  %v15892_v17 = vld [vmem:[%s20199_s1 + $0xd80] sm:$0xff]  }
  0x72   :  { %14478 = vmatpush3.bf16.msra.mxu1 %v15839_v16  ;;  %v15891_v16 = vld [vmem:[%s20199_s1 + $0xd00] sm:$0xff]  }
  0x73   :  { %14479 = vmatprep.subr.bf16.mxu1 %v15841_v18  ;;  %v1197_v18 = vcombine.high %v1175_v12, %v1175_v12 }
  0x74   :  { %14458 = vmatpush3.bf16.msra.mxu0 %v15842_v19  ;;  %v15893_v19 = vld [vmem:[%s20199_s1 + $0xd48] sm:$0xff]  }
  0x75   :  { %14459 = vmatprep.subr.bf16.mxu0 %v15844_v21  ;;  %v1200_v21 = vcombine.high %v1196_v15, %v1196_v15 }
  0x76   :  { %14480 = vmatpush3.bf16.msra.mxu1 %v15843_v20  ;;  %v15894_v20 = vld [vmem:[%s20199_s1 + $0xdc8] sm:$0xff]  }
  0x77   :  { %14481 = vmatprep.subr.bf16.mxu1 %v15845_v22  ;;  %v15895_v22 = vld [vmem:[%s20199_s1 + $0xd08] sm:$0xff]  }
  0x78   :  { %14460 = vmatpush3.bf16.msra.mxu0 %v15846_v23  ;;  %v15896_v23 = vld [vmem:[%s20199_s1 + $0xd88] sm:$0xff]  }
  0x79   :  { %14461 = vmatprep.subr.bf16.mxu0 %v15848_v25  ;;  %v15898_v25 = vld [vmem:[%s20199_s1 + $0xdd0] sm:$0xff]  }
  0x7a   :  { %14482 = vmatpush3.bf16.msra.mxu1 %v15847_v24  ;;  %v15897_v24 = vld [vmem:[%s20199_s1 + $0xd50] sm:$0xff]  }
  0x7b   :  { %14483 = vmatprep.subr.bf16.mxu1 %v15849_v26  ;;  %v15899_v26 = vld [vmem:[%s20199_s1 + $0xd10] sm:$0xff]  }
  0x7c   :  { %14462 = vmatpush3.bf16.msra.mxu0 %v15850_v27  ;;  %v15900_v27 = vld [vmem:[%s20199_s1 + $0xd90] sm:$0xff]  }
  0x7d   :  { %14463 = vmatprep.subr.bf16.mxu0 %v15852_v29  ;;  %v15902_v29 = vld [vmem:[%s20199_s1 + $0xdd8] sm:$0xff]  }
  0x7e   :  { %14484 = vmatpush3.bf16.msra.mxu1 %v15851_v28  ;;  %v15901_v28 = vld [vmem:[%s20199_s1 + $0xd58] sm:$0xff]  }
  0x7f   :  { %14485 = vmatprep.subr.bf16.mxu1 %v15853_v30  ;;  %v15903_v30 = vld [vmem:[%s20199_s1 + $0xd18] sm:$0xff]  }
  0x80   :  { %14464 = vmatpush3.bf16.msra.mxu0 %v15854_v31  ;;  %v15904_v31 = vld [vmem:[%s20199_s1 + $0xd98] sm:$0xff]  }
  0x81   :  { %14493 = vmatprep.subr.bf16.mxu0 %v15857_v34  ;;  %v15907_v34 = vld [vmem:[%s20199_s1 + $0xd20] sm:$0xff]  }
  0x82   :  { %14486 = vmatpush3.bf16.msra.mxu1 %v15855_v32  ;;  %v15905_v32 = vld [vmem:[%s20199_s1 + $0xd60] sm:$0xff]  }
  0x83   :  { %3091 = vmatmul.mubr.bf16.vlgmr.msra.gmra.mrb[12].mxu0 %v1133_v33  ;;  %14515 = vmatprep.subr.bf16.mxu1 %v15858_v35  ;;  %v15906_v33 = vld [vmem:[%s20199_s1 + $0xde0] sm:$0xff]  }
  0x84   :  { %14494 = vmatpush3.bf16.msra.mxu0 %v15859_v36  ;;  %3170 = vmatprep.mubr.bf16.mxu0 %v1189_v7  ;;  %v15908_v35 = vld [vmem:[%s20199_s1 + $0xda0] sm:$0xff]   ;;  %v15909_v36 = vld [vmem:[%s20199_s1 + $0xd68] sm:$0xff]  }
  0x85   :  { %3131 = vmatmul.mubr.bf16.vlgmr.msra.gmra.mrb[12].mxu1 %v1149_v38  ;;  %14495 = vmatprep.subr.bf16.mxu0 %v15861_v39  ;;  %v15911_v38 = vld [vmem:[%s20199_s1 + $0xd28] sm:$0xff]  }
  0x86   :  { %14516 = vmatpush3.bf16.msra.mxu1 %v15860_v37  ;;  %3210 = vmatprep.mubr.bf16.mxu1 %v1199_v11  ;;  %v15910_v37 = vld [vmem:[%s20199_s1 + $0xde8] sm:$0xff]   ;;  %v15946_v11 = vld [vmem:[%s20199_s1 + $0xe70] sm:$0xff]  }
  0x87   :  { %14517 = vmatprep.subr.bf16.mxu1 %v15862_v40  ;;  %v15912_v39 = vld [vmem:[%s20199_s1 + $0xda8] sm:$0xff]   ;;  %v15913_v40 = vld [vmem:[%s20199_s1 + $0xd70] sm:$0xff]  }
  0x88   :  { %14496 = vmatpush3.bf16.msra.mxu0 %v15863_v42  ;;  %v15914_v42 = vld [vmem:[%s20199_s1 + $0xdf0] sm:$0xff]   ;;  %v15942_v7 = vld [vmem:[%s20199_s1 + $0xe68] sm:$0xff]  }
  0x89   :  { %14497 = vmatprep.subr.bf16.mxu0 %v15865_v44  ;;  %v15916_v44 = vld [vmem:[%s20199_s1 + $0xdb0] sm:$0xff]  }
  0x8a   :  { %14518 = vmatpush3.bf16.msra.mxu1 %v15864_v43  ;;  %v15915_v43 = vld [vmem:[%s20199_s1 + $0xd30] sm:$0xff]  }
  0x8b   :  { %14519 = vmatprep.subr.bf16.mxu1 %v15866_v45  ;;  %v15917_v45 = vld [vmem:[%s20199_s1 + $0xd78] sm:$0xff]  }
  0x8c   :  { %14498 = vmatpush3.bf16.msra.mxu0 %v15867_v46  ;;  %v15918_v46 = vld [vmem:[%s20199_s1 + $0xdf8] sm:$0xff]  }
  0x8d   :  { %14499 = vmatprep.subr.bf16.mxu0 %v15869_v48  ;;  %v15920_v48 = vld [vmem:[%s20199_s1 + $0xdb8] sm:$0xff]  }
  0x8e   :  { %14520 = vmatpush3.bf16.msra.mxu1 %v15868_v47  ;;  %v15919_v47 = vld [vmem:[%s20199_s1 + $0xd38] sm:$0xff]  }
  0x8f   :  { %14521 = vmatprep.subr.bf16.mxu1 %v15870_v49  ;;  %v1182_v49 = vrot.slane %v17316_v4, %v16918_v41  ;;  %v15939_v4 = vld [vmem:[%s20199_s1 + $0xee0] sm:$0xff]  }
  0x90   :  { %14500 = vmatpush3.bf16.msra.mxu0 %v15871_v50  ;;  %v15922_v50 = vld [vmem:[%s20199_s1 + $0xe40] sm:$0xff]  }
  0x91   :  { %14501 = vmatprep.subr.bf16.mxu0 %v15873_v52  ;;  %v15924_v52 = vld [vmem:[%s20199_s1 + $0xe00] sm:$0xff]  }
  0x92   :  { %14522 = vmatpush3.bf16.msra.mxu1 %v15872_v51  ;;  %v15923_v51 = vld [vmem:[%s20199_s1 + $0xec0] sm:$0xff]  }
  0x93   :  { %14523 = vmatprep.subr.bf16.mxu1 %v15874_v53  ;;  %v15925_v53 = vld [vmem:[%s20199_s1 + $0xe80] sm:$0xff]  }
  0x94   :  { %14502 = vmatpush3.bf16.msra.mxu0 %v15875_v54  ;;  %v1198_v54 = vcombine.high %v1182_v49, %v1182_v49 }
  0x95   :  { %14503 = vmatprep.subr.bf16.mxu0 %v15877_v56  ;;  %v15927_v56 = vld [vmem:[%s20199_s1 + $0xec8] sm:$0xff]  }
  0x96   :  { %14524 = vmatpush3.bf16.msra.mxu1 %v15876_v55  ;;  %v15926_v55 = vld [vmem:[%s20199_s1 + $0xe48] sm:$0xff]  }
  0x97   :  { %14525 = vmatprep.subr.bf16.mxu1 %v15878_v57  ;;  %v15928_v57 = vld [vmem:[%s20199_s1 + $0xe08] sm:$0xff]  }
  0x98   :  { %14504 = vmatpush3.bf16.msra.mxu0 %v15879_v58  ;;  %v15929_v58 = vld [vmem:[%s20199_s1 + $0xe88] sm:$0xff]  }
  0x99   :  { %14505 = vmatprep.subr.bf16.mxu0 %v15881_v60  ;;  %v15931_v60 = vld [vmem:[%s20199_s1 + $0xed0] sm:$0xff]  }
  0x9a   :  { %14526 = vmatpush3.bf16.msra.mxu1 %v15880_v59  ;;  %v15930_v59 = vld [vmem:[%s20199_s1 + $0xe50] sm:$0xff]  }
  0x9b   :  { %14527 = vmatprep.subr.bf16.mxu1 %v15882_v62  ;;  %v15933_v62 = vld [vmem:[%s20199_s1 + $0xe90] sm:$0xff]  }
  0x9c   :  { %14506 = vmatpush3.bf16.msra.mxu0 %v15883_v1  ;;  %v15936_v1 = vld [vmem:[%s20199_s1 + $0xe18] sm:$0xff]  }
  0x9d   :  { %14507 = vmatprep.subr.bf16.mxu0 %v15885_v5  ;;  %v15940_v5 = vld [vmem:[%s20199_s1 + $0xe20] sm:$0xff]  }
  0x9e   :  { %14528 = vmatpush3.bf16.msra.mxu1 %v15884_v2  ;;  %v15937_v2 = vld [vmem:[%s20199_s1 + $0xe98] sm:$0xff]  }
  0x9f   :  { %14529 = vmatprep.subr.bf16.mxu1 %v15886_v6  ;;  %v15941_v6 = vld [vmem:[%s20199_s1 + $0xea0] sm:$0xff]  }
  0xa0   :  { %14508 = vmatpush3.bf16.msra.mxu0 %v15887_v9  ;;  %v15944_v9 = vld [vmem:[%s20199_s1 + $0xe28] sm:$0xff]  }
  0xa1   :  { %14537 = vmatprep.subr.bf16.mxu0 %v15889_v13  ;;  %v11747_v13 = vld [vmem:[%s20198_s0 + $0x38] sm:$0xff] }
  0xa2   :  { %14530 = vmatpush3.bf16.msra.mxu1 %v15888_v10  ;;  %v15945_v10 = vld [vmem:[%s20199_s1 + $0xea8] sm:$0xff]  }
  0xa3   :  { %3171 = vmatmul.mubr.bf16.vlgmr.msra.gmra.mrb[16].mxu0 %v1175_v12  ;;  %14559 = vmatprep.subr.bf16.mxu1 %v15890_v14  ;;  %v15947_v12 = vld [vmem:[%s20199_s1 + $0xef0] sm:$0xff]  }
  0xa4   :  { %14538 = vmatpush3.bf16.msra.mxu0 %v15891_v16  ;;  %3250 = vmatprep.mubr.bf16.mxu0 %v1196_v15  ;;  %v15948_v14 = vld [vmem:[%s20199_s1 + $0xe30] sm:$0xff]   ;;  %v1208_v15 = vrot.slane %v11747_v13, %v16918_v41  ;;  %v1201_v16 = vcombine.high %v11747_v13, %v11747_v13  ;;  %v15988_v13 = vld [vmem:[%s20199_s1 + $0xc0] sm:$0xff]  }
  0xa5   :  { %3211 = vmatmul.mubr.bf16.vlgmr.msra.gmra.mrb[16].mxu1 %v1197_v18  ;;  %14539 = vmatprep.subr.bf16.mxu0 %v15893_v19  ;;  %v15950_v18 = vld [vmem:[%s20199_s1 + $0xe78] sm:$0xff]  }
  0xa6   :  { %14560 = vmatpush3.bf16.msra.mxu1 %v15892_v17  ;;  %3290 = vmatprep.mubr.bf16.mxu1 %v1200_v21  ;;  %v15949_v17 = vld [vmem:[%s20199_s1 + $0xeb0] sm:$0xff]   ;;  %v1216_v19 = vcombine.high %v1208_v15, %v1208_v15  ;;  %v15951_v21 = vld [vmem:[%s20199_s1 + $0xef8] sm:$0xff]  }
  0xa7   :  { %14561 = vmatprep.subr.bf16.mxu1 %v15894_v20  ;;  %v17525_v20 = vrot.slane %v1201_v16, %v16918_v41 }
  0xa8   :  { %14540 = vmatpush3.bf16.msra.mxu0 %v15895_v22  ;;  %v15952_v22 = vld [vmem:[%s20199_s1 + $0xe38] sm:$0xff]  }
  0xa9   :  { %14541 = vmatprep.subr.bf16.mxu0 %v15897_v24  ;;  %v1217_v24 = vcombine.high %v17525_v20, %v17525_v20 }
  0xaa   :  { %14562 = vmatpush3.bf16.msra.mxu1 %v15896_v23  ;;  %v1238_v23 = vrot.slane %v1216_v19, %v16918_v41  ;;  %v15993_v19 = vld [vmem:[%s20199_s1 + $0x8] sm:$0xff]  }
  0xab   :  { %14563 = vmatprep.subr.bf16.mxu1 %v15898_v25  ;;  %v15953_v25 = vld [vmem:[%s20199_s1 + $0xeb8] sm:$0xff]  }
  0xac   :  { %14542 = vmatpush3.bf16.msra.mxu0 %v15899_v26  ;;  %v1248_v26 = vcombine.high %v1238_v23, %v1238_v23 }
  0xad   :  { %14543 = vmatprep.subr.bf16.mxu0 %v15901_v28  ;;  %v15954_v28 = vld [vmem:[%s20199_s1 + $0xf40] sm:$0xff]  }
  0xae   :  { %14564 = vmatpush3.bf16.msra.mxu1 %v15900_v27  ;;  %v1224_v27 = vrot.slane %v1208_v15, %v16918_v41  ;;  %v15990_v15 = vld [vmem:[%s20199_s1 + $0x80] sm:$0xff]  }
  0xaf   :  { %14565 = vmatprep.subr.bf16.mxu1 %v15902_v29  ;;  %v15955_v29 = vld [vmem:[%s20199_s1 + $0xfc0] sm:$0xff]  }
  0xb0   :  { %14544 = vmatpush3.bf16.msra.mxu0 %v15903_v30  ;;  %v1245_v30 = vrot.slane %v1217_v24, %v16918_v41  ;;  %v15998_v24 = vld [vmem:[%s20199_s1 + $0x90] sm:$0xff]  }
  0xb1   :  { %14545 = vmatprep.subr.bf16.mxu0 %v15905_v32  ;;  %v15957_v32 = vld [vmem:[%s20199_s1 + $0xf80] sm:$0xff]  }
  0xb2   :  { %14566 = vmatpush3.bf16.msra.mxu1 %v15904_v31  ;;  %v15956_v31 = vld [vmem:[%s20199_s1 + $0xf00] sm:$0xff]  }
  0xb3   :  { %14567 = vmatprep.subr.bf16.mxu1 %v15906_v33  ;;  %v1246_v33 = vcombine.high %v1224_v27, %v1224_v27 }
  0xb4   :  { %14546 = vmatpush3.bf16.msra.mxu0 %v15907_v34  ;;  %v15958_v34 = vld [vmem:[%s20199_s1 + $0xf48] sm:$0xff]  }
  0xb5   :  { %14547 = vmatprep.subr.bf16.mxu0 %v15909_v36  ;;  %v1249_v36 = vcombine.high %v1245_v30, %v1245_v30 }
  0xb6   :  { %14568 = vmatpush3.bf16.msra.mxu1 %v15908_v35  ;;  %v15959_v35 = vld [vmem:[%s20199_s1 + $0xfc8] sm:$0xff]  }
  0xb7   :  { %14569 = vmatprep.subr.bf16.mxu1 %v15910_v37  ;;  %v15960_v37 = vld [vmem:[%s20199_s1 + $0xf08] sm:$0xff]  }
  0xb8   :  { %14548 = vmatpush3.bf16.msra.mxu0 %v15911_v38  ;;  %v15961_v38 = vld [vmem:[%s20199_s1 + $0xf88] sm:$0xff]  }
  0xb9   :  { %14549 = vmatprep.subr.bf16.mxu0 %v15913_v40  ;;  %v15963_v40 = vld [vmem:[%s20199_s1 + $0xfd0] sm:$0xff]  }
  0xba   :  { %14570 = vmatpush3.bf16.msra.mxu1 %v15912_v39  ;;  %v15962_v39 = vld [vmem:[%s20199_s1 + $0xf50] sm:$0xff]  }
  0xbb   :  { %14571 = vmatprep.subr.bf16.mxu1 %v15914_v42  ;;  %v15964_v42 = vld [vmem:[%s20199_s1 + $0xf10] sm:$0xff]  }
  0xbc   :  { %14550 = vmatpush3.bf16.msra.mxu0 %v15915_v43  ;;  %v15965_v43 = vld [vmem:[%s20199_s1 + $0xf90] sm:$0xff]  }
  0xbd   :  { %14551 = vmatprep.subr.bf16.mxu0 %v15917_v45  ;;  %v15967_v45 = vld [vmem:[%s20199_s1 + $0xfd8] sm:$0xff]  }
  0xbe   :  { %14572 = vmatpush3.bf16.msra.mxu1 %v15916_v44  ;;  %v15966_v44 = vld [vmem:[%s20199_s1 + $0xf58] sm:$0xff]  }
  0xbf   :  { %14573 = vmatprep.subr.bf16.mxu1 %v15918_v46  ;;  %v15968_v46 = vld [vmem:[%s20199_s1 + $0xf18] sm:$0xff]  }
  0xc0   :  { %14552 = vmatpush3.bf16.msra.mxu0 %v15919_v47  ;;  %v15969_v47 = vld [vmem:[%s20199_s1 + $0xf98] sm:$0xff]  }
  0xc1   :  { %14581 = vmatprep.subr.bf16.mxu0 %v15922_v50  ;;  %v15972_v50 = vld [vmem:[%s20199_s1 + $0xf20] sm:$0xff]  }
  0xc2   :  { %14574 = vmatpush3.bf16.msra.mxu1 %v15920_v48  ;;  %v15970_v48 = vld [vmem:[%s20199_s1 + $0xf60] sm:$0xff]  }
  0xc3   :  { %3251 = vmatmul.mubr.bf16.vlgmr.msra.gmra.mrb[20].mxu0 %v1182_v49  ;;  %14603 = vmatprep.subr.bf16.mxu1 %v15923_v51  ;;  %v15971_v49 = vld [vmem:[%s20199_s1 + $0xfe0] sm:$0xff]  }
  0xc4   :  { %14582 = vmatpush3.bf16.msra.mxu0 %v15924_v52  ;;  %3330 = vmatprep.mubr.bf16.mxu0 %v1238_v23  ;;  %v15973_v51 = vld [vmem:[%s20199_s1 + $0xfa0] sm:$0xff]   ;;  %v15974_v52 = vld [vmem:[%s20199_s1 + $0xf68] sm:$0xff]   ;;  %v15997_v23 = vld [vmem:[%s20199_s1 + $0x10] sm:$0xff]  }
  0xc5   :  { %3291 = vmatmul.mubr.bf16.vlgmr.msra.gmra.mrb[20].mxu1 %v1198_v54  ;;  %14583 = vmatprep.subr.bf16.mxu0 %v15926_v55  ;;  %v15976_v54 = vld [vmem:[%s20199_s1 + $0xf28] sm:$0xff]  }
  0xc6   :  { %14604 = vmatpush3.bf16.msra.mxu1 %v15925_v53  ;;  %3370 = vmatprep.mubr.bf16.mxu1 %v1248_v26  ;;  %v15975_v53 = vld [vmem:[%s20199_s1 + $0xfe8] sm:$0xff]   ;;  %v16000_v26 = vld [vmem:[%s20199_s1 + $0xd8] sm:$0xff]  }
  0xc7   :  { %14605 = vmatprep.subr.bf16.mxu1 %v15927_v56  ;;  %v15977_v55 = vld [vmem:[%s20199_s1 + $0xfa8] sm:$0xff]   ;;  %v15978_v56 = vld [vmem:[%s20199_s1 + $0xf70] sm:$0xff]  }
  0xc8   :  { %14584 = vmatpush3.bf16.msra.mxu0 %v15928_v57 }
  0xc9   :  { %14585 = vmatprep.subr.bf16.mxu0 %v15930_v59 }
  0xca   :  { %14606 = vmatpush3.bf16.msra.mxu1 %v15929_v58  ;;  %v15979_v58 = vld [vmem:[%s20199_s1 + $0xff0] sm:$0xff]  }
  0xcb   :  { %14607 = vmatprep.subr.bf16.mxu1 %v15931_v60  ;;  %v15980_v60 = vld [vmem:[%s20199_s1 + $0xf30] sm:$0xff]  }
  0xcc   :  { %14586 = vmatpush3.bf16.msra.mxu0 %v15932_v61 }
  0xcd   :  { %14587 = vmatprep.subr.bf16.mxu0 %v15934_v63 }
  0xce   :  { %14608 = vmatpush3.bf16.msra.mxu1 %v15933_v62 }
  0xcf   :  { %14609 = vmatprep.subr.bf16.mxu1 %v15935_v0  ;;  %v15981_v0 = vld [vmem:[%s20199_s1 + $0xfb0] sm:$0xff]  }
  0xd0   :  { %14588 = vmatpush3.bf16.msra.mxu0 %v15936_v1  ;;  %v15982_v1 = vld [vmem:[%s20199_s1 + $0xf78] sm:$0xff]  }
  0xd1   :  { %14589 = vmatprep.subr.bf16.mxu0 %v15938_v3 }
  0xd2   :  { %14610 = vmatpush3.bf16.msra.mxu1 %v15937_v2 }
  0xd3   :  { %14611 = vmatprep.subr.bf16.mxu1 %v15939_v4 }
  0xd4   :  { %14590 = vmatpush3.bf16.msra.mxu0 %v15940_v5 }
  0xd5   :  { %14591 = vmatprep.subr.bf16.mxu0 %v15942_v7 }
  0xd6   :  { %14612 = vmatpush3.bf16.msra.mxu1 %v15941_v6  ;;  %v15983_v6 = vld [vmem:[%s20199_s1 + $0xff8] sm:$0xff]  }
  0xd7   :  { %14613 = vmatprep.subr.bf16.mxu1 %v15943_v8  ;;  %v15984_v8 = vld [vmem:[%s20199_s1 + $0xf38] sm:$0xff]  }
  0xd8   :  { %14592 = vmatpush3.bf16.msra.mxu0 %v15944_v9 }
  0xd9   :  { %14593 = vmatprep.subr.bf16.mxu0 %v15946_v11  ;;  %v1231_v11 = vrot.slane %v17525_v20, %v16918_v41  ;;  %v15994_v20 = vld [vmem:[%s20199_s1 + $0x88] sm:$0xff]  }
  0xda   :  { %14614 = vmatpush3.bf16.msra.mxu1 %v15945_v10  ;;  %v15985_v10 = vld [vmem:[%s20199_s1 + $0xfb8] sm:$0xff]  }
  0xdb   :  { %14615 = vmatprep.subr.bf16.mxu1 %v15947_v12  ;;  %v15987_v12 = vld [vmem:[%s20199_s1 + $0x40] sm:$0xff]   ;;  %v1247_v16 = vcombine.high %v1231_v11, %v1231_v11 }
  0xdc   :  { %14594 = vmatpush3.bf16.msra.mxu0 %v15948_v14  ;;  %v15989_v14 = vld [vmem:[%s20199_s1] sm:$0xff]  }
  0xdd   :  { %14595 = vmatprep.subr.bf16.mxu0 %v15950_v18  ;;  %v15992_v18 = vld [vmem:[%s20199_s1 + $0xc8] sm:$0xff]  }
  0xde   :  { %14616 = vmatpush3.bf16.msra.mxu1 %v15949_v17  ;;  %v15991_v17 = vld [vmem:[%s20199_s1 + $0x48] sm:$0xff]  }
  0xdf   :  { %14617 = vmatprep.subr.bf16.mxu1 %v15951_v21  ;;  %v15995_v21 = vld [vmem:[%s20199_s1 + $0x50] sm:$0xff]  }
  0xe0   :  { %14596 = vmatpush3.bf16.msra.mxu0 %v15952_v22  ;;  %v15996_v22 = vld [vmem:[%s20199_s1 + $0xd0] sm:$0xff]  }
  0xe1   :  { %14625 = vmatprep.subr.bf16.mxu0 %v15954_v28  ;;  %v16002_v28 = vld [vmem:[%s20199_s1 + $0x98] sm:$0xff]  }
  0xe2   :  { %14618 = vmatpush3.bf16.msra.mxu1 %v15953_v25  ;;  %v15999_v25 = vld [vmem:[%s20199_s1 + $0x58] sm:$0xff]  }
  0xe3   :  { %3331 = vmatmul.mubr.bf16.vlgmr.msra.gmra.mrb[24].mxu0 %v1224_v27  ;;  %14647 = vmatprep.subr.bf16.mxu1 %v15955_v29  ;;  %v16001_v27 = vld [vmem:[%s20199_s1 + $0x18] sm:$0xff]   ;;  %v16003_v29 = vld [vmem:[%s20199_s1 + $0x60] sm:$0xff]  }
  0xe4   :  { %14626 = vmatpush3.bf16.msra.mxu0 %v15956_v31  ;;  %3410 = vmatprep.mubr.bf16.mxu0 %v1245_v30  ;;  %v16004_v30 = vld [vmem:[%s20199_s1 + $0xe0] sm:$0xff]  }
  0xe5   :  { %3371 = vmatmul.mubr.bf16.vlgmr.msra.gmra.mrb[24].mxu1 %v1246_v33  ;;  %14627 = vmatprep.subr.bf16.mxu0 %v15958_v34  ;;  %v16005_v31 = vld [vmem:[%s20199_s1 + $0x20] sm:$0xff]   ;;  %v16007_v33 = vld [vmem:[%s20199_s1 + $0x68] sm:$0xff]  }
  0xe6   :  { %14648 = vmatpush3.bf16.msra.mxu1 %v15957_v32  ;;  %3450 = vmatprep.mubr.bf16.mxu1 %v1249_v36  ;;  %v16006_v32 = vld [vmem:[%s20199_s1 + $0xa0] sm:$0xff]   ;;  %v16008_v34 = vld [vmem:[%s20199_s1 + $0xe8] sm:$0xff]  }
  0xe7   :  { %14649 = vmatprep.subr.bf16.mxu1 %v15959_v35  ;;  %v16009_v35 = vld [vmem:[%s20199_s1 + $0x28] sm:$0xff]  }
  0xe8   :  { %14628 = vmatpush3.bf16.msra.mxu0 %v15960_v37  ;;  %v16010_v36 = vld [vmem:[%s20199_s1 + $0xa8] sm:$0xff]   ;;  %v16011_v37 = vld [vmem:[%s20199_s1 + $0x70] sm:$0xff]  }
  0xe9   :  { %14629 = vmatprep.subr.bf16.mxu0 %v15962_v39  ;;  %v16012_v39 = vld [vmem:[%s20199_s1 + $0xf0] sm:$0xff]  }
  0xea   :  { %14650 = vmatpush3.bf16.msra.mxu1 %v15961_v38 }
  0xeb   :  { %14651 = vmatprep.subr.bf16.mxu1 %v15963_v40  ;;  %v16_v40 = vld [vmem:[%s20198_s0] sm:$0xff] }
  0xec   :  { %14630 = vmatpush3.bf16.msra.mxu0 %v15964_v42 }
  0xed   :  { %14631 = vmatprep.subr.bf16.mxu0 %v15966_v44  ;;  %v3469_v44 = vrot.slane %v16_v40, %v16918_v41 }
  0xee   :  { %14652 = vmatpush3.bf16.msra.mxu1 %v15965_v43  ;;  %v16013_v43 = vld [vmem:[%s20199_s1 + $0x30] sm:$0xff]  }
  0xef   :  { %14653 = vmatprep.subr.bf16.mxu1 %v15967_v45  ;;  %v3462_v45 = vcombine.high %v16_v40, %v16_v40 }
  0xf0   :  { %14632 = vmatpush3.bf16.msra.mxu0 %v15968_v46 }
  0xf1   :  { %14633 = vmatprep.subr.bf16.mxu0 %v15970_v48 }
  0xf2   :  { %14654 = vmatpush3.bf16.msra.mxu1 %v15969_v47 }
  0xf3   :  { %14655 = vmatprep.subr.bf16.mxu1 %v15971_v49 }
  0xf4   :  { %14634 = vmatpush3.bf16.msra.mxu0 %v15972_v50 }
  0xf5   :  { %14635 = vmatprep.subr.bf16.mxu0 %v15974_v52  ;;  %v16015_v52 = vld [vmem:[%s20199_s1 + $0x78] sm:$0xff]  }
  0xf6   :  { %14656 = vmatpush3.bf16.msra.mxu1 %v15973_v51  ;;  %v14333_v57 = vpop.f32.mrb[0].mxu0  ;;  %v16014_v51 = vld [vmem:[%s20199_s1 + $0xb0] sm:$0xff]  }
  0xf7   :  { %v14334_v59 = vpop.f32.mrb[1].mxu0  ;;  %14657 = vmatprep.subr.bf16.mxu1 %v15975_v53  ;;  %v14355_v61 = vpop.f32.mrb[0].mxu1  ;;  %v3477_v53 = vcombine.high %v3469_v44, %v3469_v44 }
  0xf8   :  { %v14335_v62 = vadd.f32 %v14334_v59, %v14333_v57  ;;  %v14336_v63 = vpop.f32.mrb[2].mxu0  ;;  %14636 = vmatpush3.bf16.msra.mxu0 %v15976_v54  ;;  %v14356_v2 = vpop.f32.mrb[1].mxu1  ;;  %v17733_v54 = vrot.slane %v3462_v45, %v16918_v41 }
  0xf9   :  { %v14337_v3 = vpop.f32.mrb[3].mxu0  ;;  %14637 = vmatprep.subr.bf16.mxu0 %v15978_v56  ;;  %v14357_v4 = vadd.f32 %v14356_v2, %v14355_v61  ;;  %v14358_v5 = vpop.f32.mrb[2].mxu1  ;;  %v3499_v61 = vrot.slane %v3477_v53, %v16918_v41  ;;  %v3485_v2 = vrot.slane %v3469_v44, %v16918_v41  ;;  %v16053_v53 = vld [vmem:[%s20199_s1 + $0x2c0] sm:$0xff]  }
  0xfa   :  { %14658 = vmatpush3.bf16.msra.mxu1 %v15977_v55  ;;  %v14359_v7 = vpop.f32.mrb[3].mxu1  ;;  %v16019_v3 = vld [vmem:[%s20199_s1 + $0x140] sm:$0xff]  }
  0xfb   :  { %14659 = vmatprep.subr.bf16.mxu1 %v15979_v58  ;;  %v17634_v9 = vadd.f32 %v14357_v4, %v14335_v62  ;;  %v16016_v58 = vld [vmem:[%s20199_s1 + $0xf8] sm:$0xff]   ;;  %v3478_v62 = vcombine.high %v17733_v54, %v17733_v54  ;;  %v16020_v4 = vld [vmem:[%s20199_s1 + $0x1c0] sm:$0xff]  }
  0xfc   :  { %14638 = vmatpush3.bf16.msra.mxu0 %v15980_v60  ;;  %v16017_v60 = vld [vmem:[%s20199_s1 + $0x38] sm:$0xff]   ;;  %v16022_v7 = vld [vmem:[%s20199_s1 + $0x180] sm:$0xff]  }
  0xfd   :  { %14639 = vmatprep.subr.bf16.mxu0 %v15982_v1  ;;  %v3509_v1 = vcombine.high %v3499_v61, %v3499_v61  ;;  %v3506_v5 = vrot.slane %v3478_v62, %v16918_v41  ;;  %v16061_v62 = vld [vmem:[%s20199_s1 + $0x2d0] sm:$0xff]  }
  0xfe   :  { %14660 = vmatpush3.bf16.msra.mxu1 %v15981_v0  ;;  %v16018_v0 = vld [vmem:[%s20199_s1 + $0xb8] sm:$0xff]  }
  0xff   :  { %14661 = vmatprep.subr.bf16.mxu1 %v15983_v6  ;;  %v16021_v6 = vld [vmem:[%s20199_s1 + $0x100] sm:$0xff]  }
 0x100   :  { %14640 = vmatpush3.bf16.msra.mxu0 %v15984_v8  ;;  %v3507_v8 = vcombine.high %v3485_v2, %v3485_v2 }
 0x101   :  { %14669 = vmatprep.subr.bf16.mxu0 %v15987_v12  ;;  %v16025_v12 = vld [vmem:[%s20199_s1 + $0x108] sm:$0xff]  }
 0x102   :  { %14662 = vmatpush3.bf16.msra.mxu1 %v15985_v10  ;;  %v16024_v10 = vld [vmem:[%s20199_s1 + $0x1c8] sm:$0xff]  }
 0x103   :  { %3411 = vmatmul.mubr.bf16.vlgmr.msra.gmra.mrb[28].mxu0 %v1231_v11  ;;  %14691 = vmatprep.subr.bf16.mxu1 %v15988_v13  ;;  %v3510_v11 = vcombine.high %v3506_v5, %v3506_v5  ;;  %v16026_v13 = vld [vmem:[%s20199_s1 + $0x188] sm:$0xff]  }
 0x104   :  { %14670 = vmatpush3.bf16.msra.mxu0 %v15989_v14  ;;  %5258 = vmatprep.mubr.bf16.mxu0 %v3499_v61  ;;  %v16027_v14 = vld [vmem:[%s20199_s1 + $0x150] sm:$0xff]  }
 0x105   :  { %3451 = vmatmul.mubr.bf16.vlgmr.msra.gmra.mrb[28].mxu1 %v1247_v16  ;;  %14671 = vmatprep.subr.bf16.mxu0 %v15991_v17  ;;  %v16029_v16 = vld [vmem:[%s20199_s1 + $0x110] sm:$0xff]  }
 0x106   :  { %14692 = vmatpush3.bf16.msra.mxu1 %v15990_v15  ;;  %5298 = vmatprep.mubr.bf16.mxu1 %v3509_v1  ;;  %v16028_v15 = vld [vmem:[%s20199_s1 + $0x1d0] sm:$0xff]   ;;  %v16064_v1 = vld [vmem:[%s20199_s1 + $0x258] sm:$0xff]  }
 0x107   :  { %14693 = vmatprep.subr.bf16.mxu1 %v15992_v18  ;;  %v16030_v17 = vld [vmem:[%s20199_s1 + $0x190] sm:$0xff]   ;;  %v16031_v18 = vld [vmem:[%s20199_s1 + $0x158] sm:$0xff]  }
 0x108   :  { %14672 = vmatpush3.bf16.msra.mxu0 %v15993_v19  ;;  %v16032_v19 = vld [vmem:[%s20199_s1 + $0x1d8] sm:$0xff]   ;;  %v16060_v61 = vld [vmem:[%s20199_s1 + $0x250] sm:$0xff]  }
 0x109   :  { %14673 = vmatprep.subr.bf16.mxu0 %v15995_v21  ;;  %v16034_v21 = vld [vmem:[%s20199_s1 + $0x198] sm:$0xff]  }
 0x10a   :  { %14694 = vmatpush3.bf16.msra.mxu1 %v15994_v20  ;;  %v16033_v20 = vld [vmem:[%s20199_s1 + $0x118] sm:$0xff]  }
 0x10b   :  { %14695 = vmatprep.subr.bf16.mxu1 %v15996_v22  ;;  %v16035_v22 = vld [vmem:[%s20199_s1 + $0x160] sm:$0xff]  }
 0x10c   :  { %14674 = vmatpush3.bf16.msra.mxu0 %v15997_v23  ;;  %v16036_v23 = vld [vmem:[%s20199_s1 + $0x1e0] sm:$0xff]  }
 0x10d   :  { %14675 = vmatprep.subr.bf16.mxu0 %v15999_v25  ;;  %v16038_v25 = vld [vmem:[%s20199_s1 + $0x1a0] sm:$0xff]  }
 0x10e   :  { %14696 = vmatpush3.bf16.msra.mxu1 %v15998_v24  ;;  %v16037_v24 = vld [vmem:[%s20199_s1 + $0x120] sm:$0xff]  }
 0x10f   :  { %14697 = vmatprep.subr.bf16.mxu1 %v16000_v26  ;;  %v16039_v26 = vld [vmem:[%s20199_s1 + $0x168] sm:$0xff]  }
 0x110   :  { %14676 = vmatpush3.bf16.msra.mxu0 %v16001_v27  ;;  %v16040_v27 = vld [vmem:[%s20199_s1 + $0x1e8] sm:$0xff]  }
 0x111   :  { %14677 = vmatprep.subr.bf16.mxu0 %v16003_v29  ;;  %v16042_v29 = vld [vmem:[%s20199_s1 + $0x1a8] sm:$0xff]  }
 0x112   :  { %14698 = vmatpush3.bf16.msra.mxu1 %v16002_v28  ;;  %v16041_v28 = vld [vmem:[%s20199_s1 + $0x128] sm:$0xff]  }
 0x113   :  { %14699 = vmatprep.subr.bf16.mxu1 %v16004_v30  ;;  %v16043_v30 = vld [vmem:[%s20199_s1 + $0x170] sm:$0xff]  }
 0x114   :  { %14678 = vmatpush3.bf16.msra.mxu0 %v16005_v31 }
 0x115   :  { %14679 = vmatprep.subr.bf16.mxu0 %v16007_v33 }
 0x116   :  { %14700 = vmatpush3.bf16.msra.mxu1 %v16006_v32  ;;  %v14377_v38 = vpop.f32.mrb[4].mxu0  ;;  %v16044_v32 = vld [vmem:[%s20199_s1 + $0x1f0] sm:$0xff]  }
 0x117   :  { %v14378_v42 = vpop.f32.mrb[5].mxu0  ;;  %14701 = vmatprep.subr.bf16.mxu1 %v16008_v34  ;;  %v14399_v46 = vpop.f32.mrb[4].mxu1  ;;  %v16045_v34 = vld [vmem:[%s20199_s1 + $0x130] sm:$0xff]  }
 0x118   :  { %v14379_v47 = vadd.f32 %v14378_v42, %v14377_v38  ;;  %v14380_v48 = vpop.f32.mrb[6].mxu0  ;;  %14680 = vmatpush3.bf16.msra.mxu0 %v16009_v35  ;;  %v14400_v49 = vpop.f32.mrb[5].mxu1  ;;  %v16046_v38 = vld [vmem:[%s20199_s1 + $0x1b0] sm:$0xff]  }
 0x119   :  { %v14381_v50 = vpop.f32.mrb[7].mxu0  ;;  %14681 = vmatprep.subr.bf16.mxu0 %v16011_v37  ;;  %v14401_v56 = vadd.f32 %v14400_v49, %v14399_v46  ;;  %v14402_v57 = vpop.f32.mrb[6].mxu1  ;;  %v16048_v46 = vld [vmem:[%s20199_s1 + $0x1f8] sm:$0xff]  }
 0x11a   :  { %v2933_v55 = vadd.f32 %v14379_v47, %v17634_v9  ;;  %14702 = vmatpush3.bf16.msra.mxu1 %v16010_v36  ;;  %v14403_v59 = vpop.f32.mrb[7].mxu1  ;;  %v16023_v9 = vld [vmem:[%s20199_s1 + $0x148] sm:$0xff]   ;;  %v16049_v48 = vld [vmem:[%s20199_s1 + $0x138] sm:$0xff]  }
 0x11b   :  { %14703 = vmatprep.subr.bf16.mxu1 %v16012_v39  ;;  %v16047_v39 = vld [vmem:[%s20199_s1 + $0x178] sm:$0xff]   ;;  %v16056_v57 = vld [vmem:[%s20199_s1 + $0x248] sm:$0xff]  }
 0x11c   :  { %v17745_v63 = vadd.f32 %v14401_v56, %v2933_v55  ;;  %14682 = vmatpush3.bf16.msra.mxu0 %v16013_v43  ;;  %v16050_v50 = vld [vmem:[%s20199_s1 + $0x1b8] sm:$0xff]   ;;  %v16054_v55 = vld [vmem:[%s20199_s1 + $0x200] sm:$0xff]   ;;  %v16058_v59 = vld [vmem:[%s20199_s1 + $0x208] sm:$0xff]  }
 0x11d   :  { %14683 = vmatprep.subr.bf16.mxu0 %v16015_v52  ;;  %v16052_v52 = vld [vmem:[%s20199_s1 + $0x240] sm:$0xff]  }
 0x11e   :  { %14704 = vmatpush3.bf16.msra.mxu1 %v16014_v51  ;;  %v3492_v51 = vrot.slane %v17733_v54, %v16918_v41  ;;  %v16055_v56 = vld [vmem:[%s20199_s1 + $0x280] sm:$0xff]  }
 0x11f   :  { %14705 = vmatprep.subr.bf16.mxu1 %v16016_v58  ;;  %v16057_v58 = vld [vmem:[%s20199_s1 + $0x2c8] sm:$0xff]  }
 0x120   :  { %14684 = vmatpush3.bf16.msra.mxu0 %v16017_v60  ;;  %v3508_v54 = vcombine.high %v3492_v51, %v3492_v51  ;;  %v16059_v60 = vld [vmem:[%s20199_s1 + $0x288] sm:$0xff]  }
 0x121   :  { %14713 = vmatprep.subr.bf16.mxu0 %v16019_v3  ;;  %v16066_v3 = vld [vmem:[%s20199_s1 + $0x218] sm:$0xff]  }
 0x122   :  { %14706 = vmatpush3.bf16.msra.mxu1 %v16018_v0  ;;  %v16063_v0 = vld [vmem:[%s20199_s1 + $0x290] sm:$0xff]  }
 0x123   :  { %5259 = vmatmul.mubr.bf16.vlgmr.msra.gmra.mrb[32].mxu0 %v3485_v2  ;;  %14735 = vmatprep.subr.bf16.mxu1 %v16020_v4  ;;  %v16065_v2 = vld [vmem:[%s20199_s1 + $0x2d8] sm:$0xff]  }
 0x124   :  { %14714 = vmatpush3.bf16.msra.mxu0 %v16021_v6  ;;  %5338 = vmatprep.mubr.bf16.mxu0 %v3506_v5  ;;  %v16067_v4 = vld [vmem:[%s20199_s1 + $0x298] sm:$0xff]   ;;  %v16068_v5 = vld [vmem:[%s20199_s1 + $0x260] sm:$0xff]  }
 0x125   :  { %5299 = vmatmul.mubr.bf16.vlgmr.msra.gmra.mrb[32].mxu1 %v3507_v8  ;;  %14715 = vmatprep.subr.bf16.mxu0 %v16023_v9  ;;  %v16069_v6 = vld [vmem:[%s20199_s1 + $0x2e0] sm:$0xff]   ;;  %v16072_v9 = vld [vmem:[%s20199_s1 + $0x268] sm:$0xff]  }
 0x126   :  { %14736 = vmatpush3.bf16.msra.mxu1 %v16022_v7  ;;  %5378 = vmatprep.mubr.bf16.mxu1 %v3510_v11  ;;  %v16070_v7 = vld [vmem:[%s20199_s1 + $0x220] sm:$0xff]   ;;  %v16074_v11 = vld [vmem:[%s20199_s1 + $0x228] sm:$0xff]  }
 0x127   :  { %14737 = vmatprep.subr.bf16.mxu1 %v16024_v10  ;;  %v16071_v8 = vld [vmem:[%s20199_s1 + $0x2a0] sm:$0xff]   ;;  %v16073_v10 = vld [vmem:[%s20199_s1 + $0x2e8] sm:$0xff]  }
 0x128   :  { %14716 = vmatpush3.bf16.msra.mxu0 %v16025_v12  ;;  %v16075_v12 = vld [vmem:[%s20199_s1 + $0x2a8] sm:$0xff]  }
 0x129   :  { %14717 = vmatprep.subr.bf16.mxu0 %v16027_v14 }
 0x12a   :  { %14738 = vmatpush3.bf16.msra.mxu1 %v16026_v13  ;;  %v16076_v13 = vld [vmem:[%s20199_s1 + $0x270] sm:$0xff]  }
 0x12b   :  { %14739 = vmatprep.subr.bf16.mxu1 %v16028_v15  ;;  %v16077_v15 = vld [vmem:[%s20199_s1 + $0x2f0] sm:$0xff]  }
 0x12c   :  { %14718 = vmatpush3.bf16.msra.mxu0 %v16029_v16 }
 0x12d   :  { %14719 = vmatprep.subr.bf16.mxu0 %v16031_v18  ;;  %v17_v18 = vld [vmem:[%s20198_s0 + $0x8] sm:$0xff] }
 0x12e   :  { %14740 = vmatpush3.bf16.msra.mxu1 %v16030_v17  ;;  %v16078_v17 = vld [vmem:[%s20199_s1 + $0x230] sm:$0xff]  }
 0x12f   :  { %14741 = vmatprep.subr.bf16.mxu1 %v16032_v19 }
 0x130   :  { %14720 = vmatpush3.bf16.msra.mxu0 %v16033_v20 }
 0x131   :  { %14721 = vmatprep.subr.bf16.mxu0 %v16035_v22  ;;  %v3518_v22 = vrot.slane %v17_v18, %v16918_v41 }
 0x132   :  { %14742 = vmatpush3.bf16.msra.mxu1 %v16034_v21 }
 0x133   :  { %14743 = vmatprep.subr.bf16.mxu1 %v16036_v23  ;;  %v3511_v23 = vcombine.high %v17_v18, %v17_v18 }
 0x134   :  { %14722 = vmatpush3.bf16.msra.mxu0 %v16037_v24 }
 0x135   :  { %14723 = vmatprep.subr.bf16.mxu0 %v16039_v26  ;;  %v16079_v26 = vld [vmem:[%s20199_s1 + $0x2b0] sm:$0xff]  }
 0x136   :  { %14744 = vmatpush3.bf16.msra.mxu1 %v16038_v25  ;;  %v14421_v31 = vpop.f32.mrb[8].mxu0 }
 0x137   :  { %v14422_v33 = vpop.f32.mrb[9].mxu0  ;;  %14745 = vmatprep.subr.bf16.mxu1 %v16040_v27  ;;  %v16080_v27 = vld [vmem:[%s20199_s1 + $0x278] sm:$0xff]  }
 0x138   :  { %v14443_v35 = vpop.f32.mrb[8].mxu1  ;;  %v14423_v36 = vadd.f32 %v14422_v33, %v14421_v31  ;;  %v14424_v37 = vpop.f32.mrb[10].mxu0  ;;  %14724 = vmatpush3.bf16.msra.mxu0 %v16041_v28  ;;  %v16081_v31 = vld [vmem:[%s20199_s1 + $0x2f8] sm:$0xff]  }
 0x139   :  { %v14444_v40 = vpop.f32.mrb[9].mxu1  ;;  %v14425_v42 = vpop.f32.mrb[11].mxu0  ;;  %14725 = vmatprep.subr.bf16.mxu0 %v16043_v30  ;;  %v16083_v37 = vld [vmem:[%s20199_s1 + $0x2b8] sm:$0xff]  }
 0x13a   :  { %v3013_v43 = vadd.f32 %v14423_v36, %v17745_v63  ;;  %v14445_v44 = vadd.f32 %v14444_v40, %v14443_v35  ;;  %v14446_v45 = vpop.f32.mrb[10].mxu1  ;;  %14746 = vmatpush3.bf16.msra.mxu1 %v16042_v29  ;;  %v16062_v63 = vld [vmem:[%s20199_s1 + $0x210] sm:$0xff]   ;;  %v17952_v35 = vrot.slane %v3511_v23, %v16918_v41  ;;  %v16084_v40 = vld [vmem:[%s20199_s1 + $0x340] sm:$0xff]   ;;  %v16114_v23 = vld [vmem:[%s20199_s1 + $0x338] sm:$0xff]  }
 0x13b   :  { %v14447_v47 = vpop.f32.mrb[11].mxu1  ;;  %14747 = vmatprep.subr.bf16.mxu1 %v16044_v32  ;;  %v3526_v32 = vcombine.high %v3518_v22, %v3518_v22  ;;  %v16086_v45 = vld [vmem:[%s20199_s1 + $0x300] sm:$0xff]  }
 0x13c   :  { %v17846_v49 = vadd.f32 %v14445_v44, %v3013_v43  ;;  %14726 = vmatpush3.bf16.msra.mxu0 %v16045_v34  ;;  %v16082_v34 = vld [vmem:[%s20199_s1 + $0x238] sm:$0xff]   ;;  %v3527_v42 = vcombine.high %v17952_v35, %v17952_v35  ;;  %v16085_v44 = vld [vmem:[%s20199_s1 + $0x3c0] sm:$0xff]  }
 0x13d   :  { %14727 = vmatprep.subr.bf16.mxu0 %v16047_v39  ;;  %v3534_v39 = vrot.slane %v3518_v22, %v16918_v41  ;;  %v16087_v47 = vld [vmem:[%s20199_s1 + $0x380] sm:$0xff]  }
 0x13e   :  { %14748 = vmatpush3.bf16.msra.mxu1 %v16046_v38  ;;  %v3548_v38 = vrot.slane %v3526_v32, %v16918_v41  ;;  %v16121_v32 = vld [vmem:[%s20199_s1 + $0x448] sm:$0xff]  }
 0x13f   :  { %14749 = vmatprep.subr.bf16.mxu1 %v16048_v46  ;;  %v3555_v46 = vrot.slane %v3527_v42, %v16918_v41  ;;  %v16130_v42 = vld [vmem:[%s20199_s1 + $0x4d8] sm:$0xff]  }
 0x140   :  { %14728 = vmatpush3.bf16.msra.mxu0 %v16049_v48  ;;  %v3558_v43 = vcombine.high %v3548_v38, %v3548_v38  ;;  %v3556_v48 = vcombine.high %v3534_v39, %v3534_v39 }
 0x141   :  { %14757 = vmatprep.subr.bf16.mxu0 %v16052_v52  ;;  %v16090_v52 = vld [vmem:[%s20199_s1 + $0x308] sm:$0xff]  }
 0x142   :  { %14750 = vmatpush3.bf16.msra.mxu1 %v16050_v50  ;;  %v16089_v50 = vld [vmem:[%s20199_s1 + $0x3c8] sm:$0xff]  }
 0x143   :  { %5339 = vmatmul.mubr.bf16.vlgmr.msra.gmra.mrb[36].mxu0 %v3492_v51  ;;  %14779 = vmatprep.subr.bf16.mxu1 %v16053_v53  ;;  %v3559_v51 = vcombine.high %v3555_v46, %v3555_v46  ;;  %v16091_v53 = vld [vmem:[%s20199_s1 + $0x388] sm:$0xff]  }
 0x144   :  { %14758 = vmatpush3.bf16.msra.mxu0 %v16054_v55  ;;  %5418 = vmatprep.mubr.bf16.mxu0 %v3548_v38  ;;  %v16092_v55 = vld [vmem:[%s20199_s1 + $0x350] sm:$0xff]  }
 0x145   :  { %5379 = vmatmul.mubr.bf16.vlgmr.msra.gmra.mrb[36].mxu1 %v3508_v54  ;;  %14759 = vmatprep.subr.bf16.mxu0 %v16056_v57  ;;  %v16094_v54 = vld [vmem:[%s20199_s1 + $0x310] sm:$0xff]  }
 0x146   :  { %14780 = vmatpush3.bf16.msra.mxu1 %v16055_v56  ;;  %5458 = vmatprep.mubr.bf16.mxu1 %v3558_v43  ;;  %v16093_v56 = vld [vmem:[%s20199_s1 + $0x3d0] sm:$0xff]   ;;  %v16131_v43 = vld [vmem:[%s20199_s1 + $0x418] sm:$0xff]  }
 0x147   :  { %14781 = vmatprep.subr.bf16.mxu1 %v16057_v58  ;;  %v16095_v57 = vld [vmem:[%s20199_s1 + $0x390] sm:$0xff]   ;;  %v16096_v58 = vld [vmem:[%s20199_s1 + $0x358] sm:$0xff]  }
 0x148   :  { %14760 = vmatpush3.bf16.msra.mxu0 %v16058_v59  ;;  %v16097_v59 = vld [vmem:[%s20199_s1 + $0x3d8] sm:$0xff]   ;;  %v16127_v38 = vld [vmem:[%s20199_s1 + $0x410] sm:$0xff]  }
 0x149   :  { %14761 = vmatprep.subr.bf16.mxu0 %v16060_v61  ;;  %v16099_v61 = vld [vmem:[%s20199_s1 + $0x398] sm:$0xff]  }
 0x14a   :  { %14782 = vmatpush3.bf16.msra.mxu1 %v16059_v60  ;;  %v16098_v60 = vld [vmem:[%s20199_s1 + $0x318] sm:$0xff]  }
 0x14b   :  { %14783 = vmatprep.subr.bf16.mxu1 %v16061_v62  ;;  %v16100_v62 = vld [vmem:[%s20199_s1 + $0x360] sm:$0xff]  }
 0x14c   :  { %14762 = vmatpush3.bf16.msra.mxu0 %v16062_v63  ;;  %v16101_v63 = vld [vmem:[%s20199_s1 + $0x3e0] sm:$0xff]  }
 0x14d   :  { %14763 = vmatprep.subr.bf16.mxu0 %v16064_v1  ;;  %v16103_v1 = vld [vmem:[%s20199_s1 + $0x3a0] sm:$0xff]  }
 0x14e   :  { %14784 = vmatpush3.bf16.msra.mxu1 %v16063_v0  ;;  %v16102_v0 = vld [vmem:[%s20199_s1 + $0x320] sm:$0xff]  }
 0x14f   :  { %14785 = vmatprep.subr.bf16.mxu1 %v16065_v2  ;;  %v16104_v2 = vld [vmem:[%s20199_s1 + $0x368] sm:$0xff]  }
 0x150   :  { %14764 = vmatpush3.bf16.msra.mxu0 %v16066_v3  ;;  %v16105_v3 = vld [vmem:[%s20199_s1 + $0x3e8] sm:$0xff]  }
 0x151   :  { %14765 = vmatprep.subr.bf16.mxu0 %v16068_v5  ;;  %v16107_v5 = vld [vmem:[%s20199_s1 + $0x3a8] sm:$0xff]  }
 0x152   :  { %14786 = vmatpush3.bf16.msra.mxu1 %v16067_v4  ;;  %v16106_v4 = vld [vmem:[%s20199_s1 + $0x328] sm:$0xff]  }
 0x153   :  { %14787 = vmatprep.subr.bf16.mxu1 %v16069_v6  ;;  %v16108_v6 = vld [vmem:[%s20199_s1 + $0x370] sm:$0xff]  }
 0x154   :  { %14766 = vmatpush3.bf16.msra.mxu0 %v16070_v7 }
 0x155   :  { %14767 = vmatprep.subr.bf16.mxu0 %v16072_v9 }
 0x156   :  { %14788 = vmatpush3.bf16.msra.mxu1 %v16071_v8  ;;  %v14465_v14 = vpop.f32.mrb[12].mxu0  ;;  %v16109_v8 = vld [vmem:[%s20199_s1 + $0x3f0] sm:$0xff]  }
 0x157   :  { %v14466_v16 = vpop.f32.mrb[13].mxu0  ;;  %14789 = vmatprep.subr.bf16.mxu1 %v16073_v10  ;;  %v16110_v10 = vld [vmem:[%s20199_s1 + $0x330] sm:$0xff]  }
 0x158   :  { %v14487_v19 = vpop.f32.mrb[12].mxu1  ;;  %v14467_v20 = vadd.f32 %v14466_v16, %v14465_v14  ;;  %v14468_v21 = vpop.f32.mrb[14].mxu0  ;;  %14768 = vmatpush3.bf16.msra.mxu0 %v16074_v11  ;;  %v16111_v14 = vld [vmem:[%s20199_s1 + $0x3b0] sm:$0xff]  }
 0x159   :  { %v14488_v24 = vpop.f32.mrb[13].mxu1  ;;  %v14469_v25 = vpop.f32.mrb[15].mxu0  ;;  %14769 = vmatprep.subr.bf16.mxu0 %v16076_v13  ;;  %v16113_v21 = vld [vmem:[%s20199_s1 + $0x3f8] sm:$0xff]  }
 0x15a   :  { %v3093_v28 = vadd.f32 %v14467_v20, %v17846_v49  ;;  %v14489_v29 = vadd.f32 %v14488_v24, %v14487_v19  ;;  %v14490_v30 = vpop.f32.mrb[14].mxu1  ;;  %14790 = vmatpush3.bf16.msra.mxu1 %v16075_v12  ;;  %v16088_v49 = vld [vmem:[%s20199_s1 + $0x348] sm:$0xff]   ;;  %v16115_v25 = vld [vmem:[%s20199_s1 + $0x3b8] sm:$0xff]  }
 0x15b   :  { %v14491_v33 = vpop.f32.mrb[15].mxu1  ;;  %14791 = vmatprep.subr.bf16.mxu1 %v16077_v15  ;;  %v16112_v15 = vld [vmem:[%s20199_s1 + $0x378] sm:$0xff]   ;;  %v16120_v30 = vld [vmem:[%s20199_s1 + $0x480] sm:$0xff]  }
 0x15c   :  { %v17954_v36 = vadd.f32 %v14489_v29, %v3093_v28  ;;  %14770 = vmatpush3.bf16.msra.mxu0 %v16078_v17  ;;  %v16118_v28 = vld [vmem:[%s20199_s1 + $0x4c0] sm:$0xff]   ;;  %v16122_v33 = vld [vmem:[%s20199_s1 + $0x4c8] sm:$0xff]  }
 0x15d   :  { %14771 = vmatprep.subr.bf16.mxu0 %v16080_v27  ;;  %v16117_v27 = vld [vmem:[%s20199_s1 + $0x440] sm:$0xff]  }
 0x15e   :  { %14792 = vmatpush3.bf16.msra.mxu1 %v16079_v26  ;;  %v3541_v26 = vrot.slane %v17952_v35, %v16918_v41  ;;  %v16119_v29 = vld [vmem:[%s20199_s1 + $0x400] sm:$0xff]   ;;  %v16124_v35 = vld [vmem:[%s20199_s1 + $0x488] sm:$0xff]  }
 0x15f   :  { %14793 = vmatprep.subr.bf16.mxu1 %v16081_v31 }
 0x160   :  { %14772 = vmatpush3.bf16.msra.mxu0 %v16082_v34  ;;  %v3557_v31 = vcombine.high %v3541_v26, %v3541_v26  ;;  %v16123_v34 = vld [vmem:[%s20199_s1 + $0x408] sm:$0xff]  }
 0x161   :  { %14801 = vmatprep.subr.bf16.mxu0 %v16084_v40  ;;  %v16129_v40 = vld [vmem:[%s20199_s1 + $0x458] sm:$0xff]  }
 0x162   :  { %14794 = vmatpush3.bf16.msra.mxu1 %v16083_v37  ;;  %v16126_v37 = vld [vmem:[%s20199_s1 + $0x4d0] sm:$0xff]  }
 0x163   :  { %5419 = vmatmul.mubr.bf16.vlgmr.msra.gmra.mrb[40].mxu0 %v3534_v39  ;;  %14823 = vmatprep.subr.bf16.mxu1 %v16085_v44  ;;  %v16128_v39 = vld [vmem:[%s20199_s1 + $0x490] sm:$0xff]   ;;  %v16132_v44 = vld [vmem:[%s20199_s1 + $0x498] sm:$0xff]  }
 0x164   :  { %14802 = vmatpush3.bf16.msra.mxu0 %v16086_v45  ;;  %5498 = vmatprep.mubr.bf16.mxu0 %v3555_v46  ;;  %v16133_v45 = vld [vmem:[%s20199_s1 + $0x460] sm:$0xff]  }
 0x165   :  { %5459 = vmatmul.mubr.bf16.vlgmr.msra.gmra.mrb[40].mxu1 %v3556_v48  ;;  %14803 = vmatprep.subr.bf16.mxu0 %v16088_v49  ;;  %v16134_v46 = vld [vmem:[%s20199_s1 + $0x4e0] sm:$0xff]   ;;  %v16137_v49 = vld [vmem:[%s20199_s1 + $0x468] sm:$0xff]  }
 0x166   :  { %14824 = vmatpush3.bf16.msra.mxu1 %v16087_v47  ;;  %5538 = vmatprep.mubr.bf16.mxu1 %v3559_v51  ;;  %v16135_v47 = vld [vmem:[%s20199_s1 + $0x420] sm:$0xff]   ;;  %v16139_v51 = vld [vmem:[%s20199_s1 + $0x428] sm:$0xff]  }
 0x167   :  { %14825 = vmatprep.subr.bf16.mxu1 %v16089_v50  ;;  %v16136_v48 = vld [vmem:[%s20199_s1 + $0x4a0] sm:$0xff]   ;;  %v16138_v50 = vld [vmem:[%s20199_s1 + $0x4e8] sm:$0xff]  }
 0x168   :  { %14804 = vmatpush3.bf16.msra.mxu0 %v16090_v52  ;;  %v16140_v52 = vld [vmem:[%s20199_s1 + $0x4a8] sm:$0xff]  }
 0x169   :  { %14805 = vmatprep.subr.bf16.mxu0 %v16092_v55 }
 0x16a   :  { %14826 = vmatpush3.bf16.msra.mxu1 %v16091_v53  ;;  %v16141_v53 = vld [vmem:[%s20199_s1 + $0x470] sm:$0xff]  }
 0x16b   :  { %14827 = vmatprep.subr.bf16.mxu1 %v16093_v56  ;;  %v16142_v56 = vld [vmem:[%s20199_s1 + $0x4f0] sm:$0xff]  }
 0x16c   :  { %14806 = vmatpush3.bf16.msra.mxu0 %v16094_v54 }
 0x16d   :  { %14807 = vmatprep.subr.bf16.mxu0 %v16096_v58 }
 0x16e   :  { %14828 = vmatpush3.bf16.msra.mxu1 %v16095_v57  ;;  %v16143_v57 = vld [vmem:[%s20199_s1 + $0x430] sm:$0xff]  }
 0x16f   :  { %14829 = vmatprep.subr.bf16.mxu1 %v16097_v59 }
 0x170   :  { %14808 = vmatpush3.bf16.msra.mxu0 %v16098_v60 }
 0x171   :  { %14809 = vmatprep.subr.bf16.mxu0 %v16100_v62  ;;  %v16145_v62 = vld [vmem:[%s20199_s1 + $0x478] sm:$0xff]  }
 0x172   :  { %14830 = vmatpush3.bf16.msra.mxu1 %v16099_v61  ;;  %v16144_v61 = vld [vmem:[%s20199_s1 + $0x4b0] sm:$0xff]  }
 0x173   :  { %14831 = vmatprep.subr.bf16.mxu1 %v16101_v63  ;;  %v18_v63 = vld [vmem:[%s20198_s0 + $0x10] sm:$0xff] }
 0x174   :  { %14810 = vmatpush3.bf16.msra.mxu0 %v16102_v0 }
 0x175   :  { %14811 = vmatprep.subr.bf16.mxu0 %v16104_v2  ;;  %v3567_v2 = vrot.slane %v18_v63, %v16918_v41 }
 0x176   :  { %14832 = vmatpush3.bf16.msra.mxu1 %v16103_v1  ;;  %v14509_v7 = vpop.f32.mrb[16].mxu0 }
 0x177   :  { %v14510_v9 = vpop.f32.mrb[17].mxu0  ;;  %14833 = vmatprep.subr.bf16.mxu1 %v16105_v3  ;;  %v3560_v3 = vcombine.high %v18_v63, %v18_v63  ;;  %v16179_v63 = vld [vmem:[%s20199_s1 + $0x538] sm:$0xff]  }
 0x178   :  { %v14531_v11 = vpop.f32.mrb[16].mxu1  ;;  %v14511_v12 = vadd.f32 %v14510_v9, %v14509_v7  ;;  %v14512_v13 = vpop.f32.mrb[18].mxu0  ;;  %14812 = vmatpush3.bf16.msra.mxu0 %v16106_v4  ;;  %v16146_v7 = vld [vmem:[%s20199_s1 + $0x4f8] sm:$0xff]  }
 0x179   :  { %v14532_v16 = vpop.f32.mrb[17].mxu1  ;;  %v14513_v17 = vpop.f32.mrb[19].mxu0  ;;  %14813 = vmatprep.subr.bf16.mxu0 %v16108_v6  ;;  %v16147_v9 = vld [vmem:[%s20199_s1 + $0x438] sm:$0xff]  }
 0x17a   :  { %v3173_v18 = vadd.f32 %v14511_v12, %v17954_v36  ;;  %v14533_v19 = vadd.f32 %v14532_v16, %v14531_v11  ;;  %v14534_v20 = vpop.f32.mrb[18].mxu1  ;;  %14834 = vmatpush3.bf16.msra.mxu1 %v16107_v5  ;;  %v16125_v36 = vld [vmem:[%s20199_s1 + $0x450] sm:$0xff]   ;;  %v18164_v11 = vrot.slane %v3560_v3, %v16918_v41  ;;  %v16148_v13 = vld [vmem:[%s20199_s1 + $0x4b8] sm:$0xff]   ;;  %v16149_v16 = vld [vmem:[%s20199_s1 + $0x540] sm:$0xff]  }
 0x17b   :  { %v14535_v22 = vpop.f32.mrb[19].mxu1  ;;  %14835 = vmatprep.subr.bf16.mxu1 %v16109_v8  ;;  %v16151_v20 = vld [vmem:[%s20199_s1 + $0x500] sm:$0xff]  }
 0x17c   :  { %v18058_v24 = vadd.f32 %v14533_v19, %v3173_v18  ;;  %14814 = vmatpush3.bf16.msra.mxu0 %v16110_v10  ;;  %v3575_v10 = vcombine.high %v3567_v2, %v3567_v2  ;;  %v3576_v17 = vcombine.high %v18164_v11, %v18164_v11  ;;  %v16150_v18 = vld [vmem:[%s20199_s1 + $0x5c0] sm:$0xff]  }
 0x17d   :  { %14815 = vmatprep.subr.bf16.mxu0 %v16112_v15  ;;  %v3583_v15 = vrot.slane %v3567_v2, %v16918_v41  ;;  %v16152_v22 = vld [vmem:[%s20199_s1 + $0x580] sm:$0xff]   ;;  %v3590_v2 = vrot.slane %v18164_v11, %v16918_v41  ;;  %v16189_v11 = vld [vmem:[%s20199_s1 + $0x688] sm:$0xff]  }
 0x17e   :  { %14836 = vmatpush3.bf16.msra.mxu1 %v16111_v14  ;;  %v3597_v14 = vrot.slane %v3575_v10, %v16918_v41  ;;  %v16182_v3 = vld [vmem:[%s20199_s1 + $0x640] sm:$0xff]   ;;  %v16188_v10 = vld [vmem:[%s20199_s1 + $0x608] sm:$0xff]  }
 0x17f   :  { %14837 = vmatprep.subr.bf16.mxu1 %v16113_v21  ;;  %v3604_v21 = vrot.slane %v3576_v17, %v16918_v41  ;;  %v16195_v17 = vld [vmem:[%s20199_s1 + $0x6d8] sm:$0xff]  }
 0x180   :  { %14816 = vmatpush3.bf16.msra.mxu0 %v16114_v23  ;;  %v3607_v19 = vcombine.high %v3597_v14, %v3597_v14  ;;  %v3605_v23 = vcombine.high %v3583_v15, %v3583_v15 }
 0x181   :  { %14845 = vmatprep.subr.bf16.mxu0 %v16117_v27  ;;  %v16155_v27 = vld [vmem:[%s20199_s1 + $0x508] sm:$0xff]  }
 0x182   :  { %14838 = vmatpush3.bf16.msra.mxu1 %v16115_v25  ;;  %v16154_v25 = vld [vmem:[%s20199_s1 + $0x5c8] sm:$0xff]  }
 0x183   :  { %5499 = vmatmul.mubr.bf16.vlgmr.msra.gmra.mrb[44].mxu0 %v3541_v26  ;;  %14867 = vmatprep.subr.bf16.mxu1 %v16118_v28  ;;  %v3608_v26 = vcombine.high %v3604_v21, %v3604_v21  ;;  %v16156_v28 = vld [vmem:[%s20199_s1 + $0x588] sm:$0xff]  }
 0x184   :  { %14846 = vmatpush3.bf16.msra.mxu0 %v16119_v29  ;;  %5578 = vmatprep.mubr.bf16.mxu0 %v3597_v14  ;;  %v16157_v29 = vld [vmem:[%s20199_s1 + $0x550] sm:$0xff]  }
 0x185   :  { %5539 = vmatmul.mubr.bf16.vlgmr.msra.gmra.mrb[44].mxu1 %v3557_v31  ;;  %14847 = vmatprep.subr.bf16.mxu0 %v16121_v32  ;;  %v16159_v31 = vld [vmem:[%s20199_s1 + $0x510] sm:$0xff]  }
 0x186   :  { %14868 = vmatpush3.bf16.msra.mxu1 %v16120_v30  ;;  %5618 = vmatprep.mubr.bf16.mxu1 %v3607_v19  ;;  %v16158_v30 = vld [vmem:[%s20199_s1 + $0x5d0] sm:$0xff]   ;;  %v16197_v19 = vld [vmem:[%s20199_s1 + $0x698] sm:$0xff]  }
 0x187   :  { %14869 = vmatprep.subr.bf16.mxu1 %v16122_v33  ;;  %v16160_v32 = vld [vmem:[%s20199_s1 + $0x590] sm:$0xff]   ;;  %v16161_v33 = vld [vmem:[%s20199_s1 + $0x558] sm:$0xff]  }
 0x188   :  { %14848 = vmatpush3.bf16.msra.mxu0 %v16123_v34  ;;  %v16162_v34 = vld [vmem:[%s20199_s1 + $0x5d8] sm:$0xff]   ;;  %v16192_v14 = vld [vmem:[%s20199_s1 + $0x610] sm:$0xff]  }
 0x189   :  { %14849 = vmatprep.subr.bf16.mxu0 %v16125_v36  ;;  %v16164_v36 = vld [vmem:[%s20199_s1 + $0x598] sm:$0xff]  }
 0x18a   :  { %14870 = vmatpush3.bf16.msra.mxu1 %v16124_v35  ;;  %v16163_v35 = vld [vmem:[%s20199_s1 + $0x518] sm:$0xff]  }
 0x18b   :  { %14871 = vmatprep.subr.bf16.mxu1 %v16126_v37  ;;  %v16165_v37 = vld [vmem:[%s20199_s1 + $0x560] sm:$0xff]  }
 0x18c   :  { %14850 = vmatpush3.bf16.msra.mxu0 %v16127_v38  ;;  %v16166_v38 = vld [vmem:[%s20199_s1 + $0x5e0] sm:$0xff]  }
 0x18d   :  { %14851 = vmatprep.subr.bf16.mxu0 %v16129_v40  ;;  %v16168_v40 = vld [vmem:[%s20199_s1 + $0x5a0] sm:$0xff]  }
 0x18e   :  { %14872 = vmatpush3.bf16.msra.mxu1 %v16128_v39  ;;  %v16167_v39 = vld [vmem:[%s20199_s1 + $0x520] sm:$0xff]  }
 0x18f   :  { %14873 = vmatprep.subr.bf16.mxu1 %v16130_v42  ;;  %v16169_v42 = vld [vmem:[%s20199_s1 + $0x568] sm:$0xff]  }
 0x190   :  { %14852 = vmatpush3.bf16.msra.mxu0 %v16131_v43  ;;  %v16170_v43 = vld [vmem:[%s20199_s1 + $0x5e8] sm:$0xff]  }
 0x191   :  { %14853 = vmatprep.subr.bf16.mxu0 %v16133_v45  ;;  %v16172_v45 = vld [vmem:[%s20199_s1 + $0x5a8] sm:$0xff]  }
 0x192   :  { %14874 = vmatpush3.bf16.msra.mxu1 %v16132_v44  ;;  %v16171_v44 = vld [vmem:[%s20199_s1 + $0x528] sm:$0xff]  }
 0x193   :  { %14875 = vmatprep.subr.bf16.mxu1 %v16134_v46  ;;  %v16173_v46 = vld [vmem:[%s20199_s1 + $0x570] sm:$0xff]  }
 0x194   :  { %14854 = vmatpush3.bf16.msra.mxu0 %v16135_v47 }
 0x195   :  { %14855 = vmatprep.subr.bf16.mxu0 %v16137_v49 }
 0x196   :  { %14876 = vmatpush3.bf16.msra.mxu1 %v16136_v48  ;;  %v14553_v55 = vpop.f32.mrb[20].mxu0  ;;  %v16174_v48 = vld [vmem:[%s20199_s1 + $0x5f0] sm:$0xff]  }
 0x197   :  { %v14554_v54 = vpop.f32.mrb[21].mxu0  ;;  %14877 = vmatprep.subr.bf16.mxu1 %v16138_v50  ;;  %v16175_v50 = vld [vmem:[%s20199_s1 + $0x530] sm:$0xff]  }
 0x198   :  { %v14575_v58 = vpop.f32.mrb[20].mxu1  ;;  %v14555_v59 = vadd.f32 %v14554_v54, %v14553_v55  ;;  %v14556_v60 = vpop.f32.mrb[22].mxu0  ;;  %14856 = vmatpush3.bf16.msra.mxu0 %v16139_v51  ;;  %v16176_v55 = vld [vmem:[%s20199_s1 + $0x5b0] sm:$0xff]  }
 0x199   :  { %v14576_v0 = vpop.f32.mrb[21].mxu1  ;;  %v14557_v1 = vpop.f32.mrb[23].mxu0  ;;  %14857 = vmatprep.subr.bf16.mxu0 %v16141_v53 }
 0x19a   :  { %v3253_v4 = vadd.f32 %v14555_v59, %v18058_v24  ;;  %v14577_v5 = vadd.f32 %v14576_v0, %v14575_v58  ;;  %v14578_v6 = vpop.f32.mrb[22].mxu1  ;;  %14878 = vmatpush3.bf16.msra.mxu1 %v16140_v52  ;;  %v16153_v24 = vld [vmem:[%s20199_s1 + $0x548] sm:$0xff]   ;;  %v16180_v1 = vld [vmem:[%s20199_s1 + $0x5b8] sm:$0xff]  }
 0x19b   :  { %v14579_v8 = vpop.f32.mrb[23].mxu1  ;;  %14879 = vmatprep.subr.bf16.mxu1 %v16142_v56  ;;  %v16177_v56 = vld [vmem:[%s20199_s1 + $0x578] sm:$0xff]   ;;  %v16185_v6 = vld [vmem:[%s20199_s1 + $0x680] sm:$0xff]  }
 0x19c   :  { %v18166_v12 = vadd.f32 %v14577_v5, %v3253_v4  ;;  %14858 = vmatpush3.bf16.msra.mxu0 %v16143_v57  ;;  %v16183_v4 = vld [vmem:[%s20199_s1 + $0x6c0] sm:$0xff]   ;;  %v16186_v8 = vld [vmem:[%s20199_s1 + $0x648] sm:$0xff]  }
 0x19d   :  { %14859 = vmatprep.subr.bf16.mxu0 %v16145_v62  ;;  %v16184_v5 = vld [vmem:[%s20199_s1 + $0x600] sm:$0xff]  }
 0x19e   :  { %14880 = vmatpush3.bf16.msra.mxu1 %v16144_v61  ;;  %v16178_v61 = vld [vmem:[%s20199_s1 + $0x5f8] sm:$0xff]  }
 0x19f   :  { %14881 = vmatprep.subr.bf16.mxu1 %v16146_v7  ;;  %v3606_v7 = vcombine.high %v3590_v2, %v3590_v2 }
 0x1a0   :  { %14860 = vmatpush3.bf16.msra.mxu0 %v16147_v9  ;;  %v16187_v9 = vld [vmem:[%s20199_s1 + $0x6c8] sm:$0xff]  }
 0x1a1   :  { %14889 = vmatprep.subr.bf16.mxu0 %v16149_v16  ;;  %v16194_v16 = vld [vmem:[%s20199_s1 + $0x658] sm:$0xff]  }
 0x1a2   :  { %14882 = vmatpush3.bf16.msra.mxu1 %v16148_v13  ;;  %v16191_v13 = vld [vmem:[%s20199_s1 + $0x6d0] sm:$0xff]  }
 0x1a3   :  { %5579 = vmatmul.mubr.bf16.vlgmr.msra.gmra.mrb[48].mxu0 %v3583_v15  ;;  %14911 = vmatprep.subr.bf16.mxu1 %v16150_v18  ;;  %v16193_v15 = vld [vmem:[%s20199_s1 + $0x690] sm:$0xff]   ;;  %v16196_v18 = vld [vmem:[%s20199_s1 + $0x618] sm:$0xff]  }
 0x1a4   :  { %14890 = vmatpush3.bf16.msra.mxu0 %v16151_v20  ;;  %5658 = vmatprep.mubr.bf16.mxu0 %v3604_v21  ;;  %v16198_v20 = vld [vmem:[%s20199_s1 + $0x660] sm:$0xff]  }
 0x1a5   :  { %5619 = vmatmul.mubr.bf16.vlgmr.msra.gmra.mrb[48].mxu1 %v3605_v23  ;;  %14891 = vmatprep.subr.bf16.mxu0 %v16153_v24  ;;  %v16199_v21 = vld [vmem:[%s20199_s1 + $0x6e0] sm:$0xff]   ;;  %v16202_v24 = vld [vmem:[%s20199_s1 + $0x668] sm:$0xff]  }
 0x1a6   :  { %14912 = vmatpush3.bf16.msra.mxu1 %v16152_v22  ;;  %5698 = vmatprep.mubr.bf16.mxu1 %v3608_v26  ;;  %v16200_v22 = vld [vmem:[%s20199_s1 + $0x620] sm:$0xff]   ;;  %v16204_v26 = vld [vmem:[%s20199_s1 + $0x628] sm:$0xff]  }
 0x1a7   :  { %14913 = vmatprep.subr.bf16.mxu1 %v16154_v25  ;;  %v16201_v23 = vld [vmem:[%s20199_s1 + $0x6a0] sm:$0xff]   ;;  %v16203_v25 = vld [vmem:[%s20199_s1 + $0x6e8] sm:$0xff]  }
 0x1a8   :  { %14892 = vmatpush3.bf16.msra.mxu0 %v16155_v27  ;;  %v16205_v27 = vld [vmem:[%s20199_s1 + $0x6a8] sm:$0xff]  }
 0x1a9   :  { %14893 = vmatprep.subr.bf16.mxu0 %v16157_v29 }
 0x1aa   :  { %14914 = vmatpush3.bf16.msra.mxu1 %v16156_v28  ;;  %v16206_v28 = vld [vmem:[%s20199_s1 + $0x670] sm:$0xff]  }
 0x1ab   :  { %14915 = vmatprep.subr.bf16.mxu1 %v16158_v30  ;;  %v16207_v30 = vld [vmem:[%s20199_s1 + $0x6f0] sm:$0xff]  }
 0x1ac   :  { %14894 = vmatpush3.bf16.msra.mxu0 %v16159_v31 }
 0x1ad   :  { %14895 = vmatprep.subr.bf16.mxu0 %v16161_v33 }
 0x1ae   :  { %14916 = vmatpush3.bf16.msra.mxu1 %v16160_v32  ;;  %v16208_v32 = vld [vmem:[%s20199_s1 + $0x630] sm:$0xff]  }
 0x1af   :  { %14917 = vmatprep.subr.bf16.mxu1 %v16162_v34 }
 0x1b0   :  { %14896 = vmatpush3.bf16.msra.mxu0 %v16163_v35 }
 0x1b1   :  { %14897 = vmatprep.subr.bf16.mxu0 %v16165_v37  ;;  %v16210_v37 = vld [vmem:[%s20199_s1 + $0x678] sm:$0xff]  }
 0x1b2   :  { %14918 = vmatpush3.bf16.msra.mxu1 %v16164_v36  ;;  %v16209_v36 = vld [vmem:[%s20199_s1 + $0x6b0] sm:$0xff]  }
 0x1b3   :  { %14919 = vmatprep.subr.bf16.mxu1 %v16166_v38 }
 0x1b4   :  { %14898 = vmatpush3.bf16.msra.mxu0 %v16167_v39 }
 0x1b5   :  { %14899 = vmatprep.subr.bf16.mxu0 %v16169_v42 }
 0x1b6   :  { %14920 = vmatpush3.bf16.msra.mxu1 %v16168_v40  ;;  %v14597_v47 = vpop.f32.mrb[24].mxu0  ;;  %v16211_v40 = vld [vmem:[%s20199_s1 + $0x6f8] sm:$0xff]  }
 0x1b7   :  { %v14598_v49 = vpop.f32.mrb[25].mxu0  ;;  %14921 = vmatprep.subr.bf16.mxu1 %v16170_v43 }
 0x1b8   :  { %v14619_v51 = vpop.f32.mrb[24].mxu1  ;;  %v14599_v52 = vadd.f32 %v14598_v49, %v14597_v47  ;;  %v14600_v53 = vpop.f32.mrb[26].mxu0  ;;  %14900 = vmatpush3.bf16.msra.mxu0 %v16171_v44  ;;  %v16212_v47 = vld [vmem:[%s20199_s1 + $0x638] sm:$0xff]  }
 0x1b9   :  { %v14620_v54 = vpop.f32.mrb[25].mxu1  ;;  %v14601_v57 = vpop.f32.mrb[27].mxu0  ;;  %14901 = vmatprep.subr.bf16.mxu0 %v16173_v46 }
 0x1ba   :  { %v3333_v58 = vadd.f32 %v14599_v52, %v18166_v12  ;;  %v14621_v59 = vadd.f32 %v14620_v54, %v14619_v51  ;;  %v14622_v60 = vpop.f32.mrb[26].mxu1  ;;  %14922 = vmatpush3.bf16.msra.mxu1 %v16172_v45  ;;  %v16190_v12 = vld [vmem:[%s20199_s1 + $0x650] sm:$0xff]   ;;  %v19_v45 = vld [vmem:[%s20198_s0 + $0x18] sm:$0xff]  ;;  %v16215_v54 = vld [vmem:[%s20199_s1 + $0x7c0] sm:$0xff]  }
 0x1bb   :  { %v14623_v62 = vpop.f32.mrb[27].mxu1  ;;  %14923 = vmatprep.subr.bf16.mxu1 %v16174_v48  ;;  %v3616_v48 = vrot.slane %v19_v45, %v16918_v41  ;;  %v3609_v49 = vcombine.high %v19_v45, %v19_v45  ;;  %v16213_v51 = vld [vmem:[%s20199_s1 + $0x6b8] sm:$0xff]   ;;  %v16217_v60 = vld [vmem:[%s20199_s1 + $0x780] sm:$0xff]  }
 0x1bc   :  { %v18270_v0 = vadd.f32 %v14621_v59, %v3333_v58  ;;  %14902 = vmatpush3.bf16.msra.mxu0 %v16175_v50  ;;  %v16216_v58 = vld [vmem:[%s20199_s1 + $0x700] sm:$0xff]  }
 0x1bd   :  { %14903 = vmatprep.subr.bf16.mxu0 %v16177_v56  ;;  %v3624_v52 = vcombine.high %v3616_v48, %v3616_v48  ;;  %v3632_v53 = vrot.slane %v3616_v48, %v16918_v41  ;;  %v18385_v56 = vrot.slane %v3609_v49, %v16918_v41  ;;  %v16249_v45 = vld [vmem:[%s20199_s1 + $0x1000] sm:$0xff]   ;;  %v16251_v48 = vld [vmem:[%s20199_s1 + $0x1048] sm:$0xff]  }
 0x1be   :  { %14924 = vmatpush3.bf16.msra.mxu1 %v16176_v55  ;;  %v16214_v55 = vld [vmem:[%s20199_s1 + $0x740] sm:$0xff]   ;;  %v16252_v49 = vld [vmem:[%s20199_s1 + $0x10c8] sm:$0xff]  }
 0x1bf   :  { %14925 = vmatprep.subr.bf16.mxu1 %v16178_v61  ;;  %v3646_v57 = vrot.slane %v3624_v52, %v16918_v41  ;;  %v3625_v59 = vcombine.high %v18385_v56, %v18385_v56  ;;  %v3654_v62 = vcombine.high %v3632_v53, %v3632_v53  ;;  %v16255_v52 = vld [vmem:[%s20199_s1 + $0x1050] sm:$0xff]  }
 0x1c0   :  { %14904 = vmatpush3.bf16.msra.mxu0 %v16179_v63  ;;  %v16218_v63 = vld [vmem:[%s20199_s1 + $0x748] sm:$0xff]  }
 0x1c1   :  { %14933 = vmatprep.subr.bf16.mxu0 %v16182_v3  ;;  %v3656_v61 = vcombine.high %v3646_v57, %v3646_v57 }
 0x1c2   :  { %14926 = vmatpush3.bf16.msra.mxu1 %v16180_v1  ;;  %v16219_v1 = vld [vmem:[%s20199_s1 + $0x7c8] sm:$0xff]  }
 0x1c3   :  { %5659 = vmatmul.mubr.bf16.vlgmr.msra.gmra.mrb[52].mxu0 %v3590_v2  ;;  %14955 = vmatprep.subr.bf16.mxu1 %v16183_v4  ;;  %v16220_v2 = vld [vmem:[%s20199_s1 + $0x708] sm:$0xff]  }
 0x1c4   :  { %14934 = vmatpush3.bf16.msra.mxu0 %v16184_v5  ;;  %5738 = vmatprep.mubr.bf16.mxu0 %v3646_v57  ;;  %v16221_v4 = vld [vmem:[%s20199_s1 + $0x788] sm:$0xff]   ;;  %v16222_v5 = vld [vmem:[%s20199_s1 + $0x750] sm:$0xff]   ;;  %v16260_v57 = vld [vmem:[%s20199_s1 + $0x10d8] sm:$0xff]  }
 0x1c5   :  { %5699 = vmatmul.mubr.bf16.vlgmr.msra.gmra.mrb[52].mxu1 %v3606_v7  ;;  %14935 = vmatprep.subr.bf16.mxu0 %v16186_v8  ;;  %v16224_v7 = vld [vmem:[%s20199_s1 + $0x710] sm:$0xff]  }
 0x1c6   :  { %14956 = vmatpush3.bf16.msra.mxu1 %v16185_v6  ;;  %5778 = vmatprep.mubr.bf16.mxu1 %v3656_v61  ;;  %v16223_v6 = vld [vmem:[%s20199_s1 + $0x7d0] sm:$0xff]   ;;  %v16264_v61 = vld [vmem:[%s20199_s1 + $0x10e0] sm:$0xff]  }
 0x1c7   :  { %14957 = vmatprep.subr.bf16.mxu1 %v16187_v9  ;;  %v16225_v8 = vld [vmem:[%s20199_s1 + $0x790] sm:$0xff]   ;;  %v16226_v9 = vld [vmem:[%s20199_s1 + $0x758] sm:$0xff]  }
 0x1c8   :  { %14936 = vmatpush3.bf16.msra.mxu0 %v16188_v10  ;;  %v16227_v10 = vld [vmem:[%s20199_s1 + $0x7d8] sm:$0xff]  }
 0x1c9   :  { %14937 = vmatprep.subr.bf16.mxu0 %v16190_v12  ;;  %v16229_v12 = vld [vmem:[%s20199_s1 + $0x798] sm:$0xff]  }
 0x1ca   :  { %14958 = vmatpush3.bf16.msra.mxu1 %v16189_v11  ;;  %v16228_v11 = vld [vmem:[%s20199_s1 + $0x718] sm:$0xff]  }
 0x1cb   :  { %14959 = vmatprep.subr.bf16.mxu1 %v16191_v13  ;;  %v16230_v13 = vld [vmem:[%s20199_s1 + $0x760] sm:$0xff]  }
 0x1cc   :  { %14938 = vmatpush3.bf16.msra.mxu0 %v16192_v14  ;;  %v16231_v14 = vld [vmem:[%s20199_s1 + $0x7e0] sm:$0xff]  }
 0x1cd   :  { %14939 = vmatprep.subr.bf16.mxu0 %v16194_v16  ;;  %v16233_v16 = vld [vmem:[%s20199_s1 + $0x7a0] sm:$0xff]  }
 0x1ce   :  { %14960 = vmatpush3.bf16.msra.mxu1 %v16193_v15  ;;  %v16232_v15 = vld [vmem:[%s20199_s1 + $0x720] sm:$0xff]  }
 0x1cf   :  { %14961 = vmatprep.subr.bf16.mxu1 %v16195_v17  ;;  %v16234_v17 = vld [vmem:[%s20199_s1 + $0x768] sm:$0xff]  }
 0x1d0   :  { %14940 = vmatpush3.bf16.msra.mxu0 %v16196_v18  ;;  %v16235_v18 = vld [vmem:[%s20199_s1 + $0x7e8] sm:$0xff]  }
 0x1d1   :  { %14941 = vmatprep.subr.bf16.mxu0 %v16198_v20  ;;  %v16237_v20 = vld [vmem:[%s20199_s1 + $0x7a8] sm:$0xff]  }
 0x1d2   :  { %14962 = vmatpush3.bf16.msra.mxu1 %v16197_v19  ;;  %v16236_v19 = vld [vmem:[%s20199_s1 + $0x728] sm:$0xff]  }
 0x1d3   :  { %14963 = vmatprep.subr.bf16.mxu1 %v16199_v21  ;;  %v16238_v21 = vld [vmem:[%s20199_s1 + $0x770] sm:$0xff]  }
 0x1d4   :  { %14942 = vmatpush3.bf16.msra.mxu0 %v16200_v22 }
 0x1d5   :  { %14943 = vmatprep.subr.bf16.mxu0 %v16202_v24 }
 0x1d6   :  { %14964 = vmatpush3.bf16.msra.mxu1 %v16201_v23  ;;  %v14641_v29 = vpop.f32.mrb[28].mxu0  ;;  %v16239_v23 = vld [vmem:[%s20199_s1 + $0x7f0] sm:$0xff]  }
 0x1d7   :  { %v14642_v31 = vpop.f32.mrb[29].mxu0  ;;  %14965 = vmatprep.subr.bf16.mxu1 %v16203_v25  ;;  %v16240_v25 = vld [vmem:[%s20199_s1 + $0x730] sm:$0xff]  }
 0x1d8   :  { %v14663_v33 = vpop.f32.mrb[28].mxu1  ;;  %v14643_v34 = vadd.f32 %v14642_v31, %v14641_v29  ;;  %v14644_v35 = vpop.f32.mrb[30].mxu0  ;;  %14944 = vmatpush3.bf16.msra.mxu0 %v16204_v26  ;;  %v16241_v29 = vld [vmem:[%s20199_s1 + $0x7b0] sm:$0xff]  }
 0x1d9   :  { %v14664_v38 = vpop.f32.mrb[29].mxu1  ;;  %v14645_v39 = vpop.f32.mrb[31].mxu0  ;;  %14945 = vmatprep.subr.bf16.mxu0 %v16206_v28 }
 0x1da   :  { %v3413_v42 = vadd.f32 %v14643_v34, %v18270_v0  ;;  %v14665_v43 = vadd.f32 %v14664_v38, %v14663_v33  ;;  %v14666_v44 = vpop.f32.mrb[30].mxu1  ;;  %14966 = vmatpush3.bf16.msra.mxu1 %v16205_v27  ;;  %v3653_v0 = vrot.slane %v3625_v59, %v16918_v41  ;;  %v16244_v38 = vld [vmem:[%s20199_s1 + $0x738] sm:$0xff]  }
 0x1db   :  { %v14667_v46 = vpop.f32.mrb[31].mxu1  ;;  %14967 = vmatprep.subr.bf16.mxu1 %v16207_v30  ;;  %v16242_v30 = vld [vmem:[%s20199_s1 + $0x778] sm:$0xff]   ;;  %v16248_v44 = vld [vmem:[%s20199_s1 + $0x10c0] sm:$0xff]  }
 0x1dc   :  { %v18375_v50 = vadd.f32 %v14665_v43, %v3413_v42  ;;  %14946 = vmatpush3.bf16.msra.mxu0 %v16208_v32  ;;  %v3657_v3 = vcombine.high %v3653_v0, %v3653_v0  ;;  %v3639_v42 = vrot.slane %v18385_v56, %v16918_v41  ;;  %v16247_v43 = vld [vmem:[%s20199_s1 + $0x1040] sm:$0xff]   ;;  %v16258_v56 = vld [vmem:[%s20199_s1 + $0x1090] sm:$0xff]   ;;  %v16262_v59 = vld [vmem:[%s20199_s1 + $0x1098] sm:$0xff]  }
 0x1dd   :  { %14947 = vmatprep.subr.bf16.mxu0 %v16210_v37  ;;  %v16250_v46 = vld [vmem:[%s20199_s1 + $0x1080] sm:$0xff]  }
 0x1de   :  { %14968 = vmatpush3.bf16.msra.mxu1 %v16209_v36  ;;  %v16243_v36 = vld [vmem:[%s20199_s1 + $0x7f8] sm:$0xff]  }
 0x1df   :  { %14969 = vmatprep.subr.bf16.mxu1 %v16211_v40  ;;  %v16245_v40 = vld [vmem:[%s20199_s1 + $0x7b8] sm:$0xff]  }
 0x1e0   :  { %14948 = vmatpush3.bf16.msra.mxu0 %v16212_v47  ;;  %v3655_v47 = vcombine.high %v3639_v42, %v3639_v42 }
 0x1e1   :  { %14977 = vmatprep.subr.bf16.mxu0 %v16214_v55  ;;  %v16257_v55 = vld [vmem:[%s20199_s1 + $0x1010] sm:$0xff]  }
 0x1e2   :  { %14970 = vmatpush3.bf16.msra.mxu1 %v16213_v51  ;;  %v16254_v51 = vld [vmem:[%s20199_s1 + $0x1088] sm:$0xff]  }
 0x1e3   :  { %5739 = vmatmul.mubr.bf16.vlgmr.msra.gmra.mrb[56].mxu0 %v3632_v53  ;;  %14999 = vmatprep.subr.bf16.mxu1 %v16215_v54  ;;  %v16256_v53 = vld [vmem:[%s20199_s1 + $0x10d0] sm:$0xff]   ;;  %v16259_v54 = vld [vmem:[%s20199_s1 + $0x1058] sm:$0xff]  }
 0x1e4   :  { %14978 = vmatpush3.bf16.msra.mxu0 %v16216_v58  ;;  %5818 = vmatprep.mubr.bf16.mxu0 %v3653_v0  ;;  %v16261_v58 = vld [vmem:[%s20199_s1 + $0x1018] sm:$0xff]   ;;  %v16267_v0 = vld [vmem:[%s20199_s1 + $0x1068] sm:$0xff]  }
 0x1e5   :  { %5779 = vmatmul.mubr.bf16.vlgmr.msra.gmra.mrb[56].mxu1 %v3654_v62  ;;  %14979 = vmatprep.subr.bf16.mxu0 %v16218_v63  ;;  %v16265_v62 = vld [vmem:[%s20199_s1 + $0x1020] sm:$0xff]  }
 0x1e6   :  { %15000 = vmatpush3.bf16.msra.mxu1 %v16217_v60  ;;  %5858 = vmatprep.mubr.bf16.mxu1 %v3657_v3  ;;  %v16263_v60 = vld [vmem:[%s20199_s1 + $0x1060] sm:$0xff]   ;;  %v16270_v3 = vld [vmem:[%s20199_s1 + $0x10a8] sm:$0xff]  }
 0x1e7   :  { %15001 = vmatprep.subr.bf16.mxu1 %v16219_v1  ;;  %v16266_v63 = vld [vmem:[%s20199_s1 + $0x10a0] sm:$0xff]   ;;  %v16268_v1 = vld [vmem:[%s20199_s1 + $0x10e8] sm:$0xff]  }
 0x1e8   :  { %14980 = vmatpush3.bf16.msra.mxu0 %v16220_v2  ;;  %v16269_v2 = vld [vmem:[%s20199_s1 + $0x1028] sm:$0xff]  }
 0x1e9   :  { %14981 = vmatprep.subr.bf16.mxu0 %v16222_v5 }
 0x1ea   :  { %15002 = vmatpush3.bf16.msra.mxu1 %v16221_v4  ;;  %v16271_v4 = vld [vmem:[%s20199_s1 + $0x1070] sm:$0xff]  }
 0x1eb   :  { %15003 = vmatprep.subr.bf16.mxu1 %v16223_v6  ;;  %v16272_v6 = vld [vmem:[%s20199_s1 + $0x10f0] sm:$0xff]  }
 0x1ec   :  { %14982 = vmatpush3.bf16.msra.mxu0 %v16224_v7 }
 0x1ed   :  { %14983 = vmatprep.subr.bf16.mxu0 %v16226_v9 }
 0x1ee   :  { %15004 = vmatpush3.bf16.msra.mxu1 %v16225_v8  ;;  %v16273_v8 = vld [vmem:[%s20199_s1 + $0x1030] sm:$0xff]  }
 0x1ef   :  { %15005 = vmatprep.subr.bf16.mxu1 %v16227_v10 }
 0x1f0   :  { %14984 = vmatpush3.bf16.msra.mxu0 %v16228_v11 }
 0x1f1   :  { %14985 = vmatprep.subr.bf16.mxu0 %v16230_v13  ;;  %v16275_v13 = vld [vmem:[%s20199_s1 + $0x1078] sm:$0xff]  }
 0x1f2   :  { %15006 = vmatpush3.bf16.msra.mxu1 %v16229_v12  ;;  %v16274_v12 = vld [vmem:[%s20199_s1 + $0x10b0] sm:$0xff]  }
 0x1f3   :  { %15007 = vmatprep.subr.bf16.mxu1 %v16231_v14 }
 0x1f4   :  { %14986 = vmatpush3.bf16.msra.mxu0 %v16232_v15 }
 0x1f5   :  { %14987 = vmatprep.subr.bf16.mxu0 %v16234_v17 }
 0x1f6   :  { %15008 = vmatpush3.bf16.msra.mxu1 %v16233_v16  ;;  %v14685_v22 = vpop.f32.mrb[32].mxu0  ;;  %v16276_v16 = vld [vmem:[%s20199_s1 + $0x10f8] sm:$0xff]  }
 0x1f7   :  { %v14686_v24 = vpop.f32.mrb[33].mxu0  ;;  %15009 = vmatprep.subr.bf16.mxu1 %v16235_v18 }
 0x1f8   :  { %v14707_v26 = vpop.f32.mrb[32].mxu1  ;;  %v14687_v27 = vadd.f32 %v14686_v24, %v14685_v22  ;;  %v14688_v28 = vpop.f32.mrb[34].mxu0  ;;  %14988 = vmatpush3.bf16.msra.mxu0 %v16236_v19  ;;  %v12772_v22 = vld [vmem:[%s20198_s0 + $0x40] sm:$0xff]  ;;  %v16278_v24 = vld [vmem:[%s20199_s1 + $0x10b8] sm:$0xff]  }
 0x1f9   :  { %v14708_v31 = vpop.f32.mrb[33].mxu1  ;;  %v14689_v32 = vpop.f32.mrb[35].mxu0  ;;  %14989 = vmatprep.subr.bf16.mxu0 %v16238_v21 }
 0x1fa   :  { %v5261_v33 = vadd.f32 %v14687_v27, %v18375_v50  ;;  %v14709_v34 = vadd.f32 %v14708_v31, %v14707_v26  ;;  %v14710_v35 = vpop.f32.mrb[34].mxu1  ;;  %15010 = vmatpush3.bf16.msra.mxu1 %v16237_v20  ;;  %v16253_v50 = vld [vmem:[%s20199_s1 + $0x1008] sm:$0xff]   ;;  %v16277_v20 = vld [vmem:[%s20199_s1 + $0x1038] sm:$0xff]   ;;  %v6388_v26 = vcombine.high %v12772_v22, %v12772_v22  ;;  %v16279_v27 = vld [vmem:[%s20199_s1 + $0x1140] sm:$0xff]  }
 0x1fb   :  { %v14711_v37 = vpop.f32.mrb[35].mxu1  ;;  %15011 = vmatprep.subr.bf16.mxu1 %v16239_v23  ;;  %v16281_v32 = vld [vmem:[%s20199_s1 + $0x1100] sm:$0xff]  }
 0x1fc   :  { %v18482_v39 = vadd.f32 %v14709_v34, %v5261_v33  ;;  %14990 = vmatpush3.bf16.msra.mxu0 %v16240_v25  ;;  %v6395_v25 = vrot.slane %v12772_v22, %v16918_v41  ;;  %v18600_v31 = vrot.slane %v6388_v26, %v16918_v41  ;;  %v16282_v34 = vld [vmem:[%s20199_s1 + $0x1180] sm:$0xff]   ;;  %v16283_v37 = vld [vmem:[%s20199_s1 + $0x1148] sm:$0xff]  }
 0x1fd   :  { %14991 = vmatprep.subr.bf16.mxu0 %v16242_v30  ;;  %v16280_v30 = vld [vmem:[%s20199_s1 + $0x11c0] sm:$0xff]   ;;  %v16319_v26 = vld [vmem:[%s20199_s1 + $0x1288] sm:$0xff]  }
 0x1fe   :  { %15012 = vmatpush3.bf16.msra.mxu1 %v16241_v29  ;;  %v6403_v28 = vcombine.high %v6395_v25, %v6395_v25  ;;  %v6411_v29 = vrot.slane %v6395_v25, %v16918_v41  ;;  %v6404_v35 = vcombine.high %v18600_v31, %v18600_v31  ;;  %v16318_v25 = vld [vmem:[%s20199_s1 + $0x1208] sm:$0xff]  }
 0x1ff   :  { %15013 = vmatprep.subr.bf16.mxu1 %v16243_v36 }
 0x200   :  { %14992 = vmatpush3.bf16.msra.mxu0 %v16244_v38  ;;  %v6425_v33 = vrot.slane %v6403_v28, %v16918_v41  ;;  %v6433_v36 = vcombine.high %v6411_v29, %v6411_v29  ;;  %v16321_v28 = vld [vmem:[%s20199_s1 + $0x12d0] sm:$0xff]  }
 0x201   :  { %15021 = vmatprep.subr.bf16.mxu0 %v16247_v43  ;;  %v16286_v43 = vld [vmem:[%s20199_s1 + $0x1188] sm:$0xff]  }
 0x202   :  { %15014 = vmatpush3.bf16.msra.mxu1 %v16245_v40  ;;  %v6435_v38 = vcombine.high %v6425_v33, %v6425_v33  ;;  %v6432_v40 = vrot.slane %v6404_v35, %v16918_v41  ;;  %v16328_v35 = vld [vmem:[%s20199_s1 + $0x1260] sm:$0xff]  }
 0x203   :  { %5819 = vmatmul.mubr.bf16.vlgmr.msra.gmra.mrb[60].mxu0 %v3639_v42  ;;  %15043 = vmatprep.subr.bf16.mxu1 %v16248_v44  ;;  %v16285_v42 = vld [vmem:[%s20199_s1 + $0x1108] sm:$0xff]  }
 0x204   :  { %15022 = vmatpush3.bf16.msra.mxu0 %v16249_v45  ;;  %8184 = vmatprep.mubr.bf16.mxu0 %v6425_v33  ;;  %v6436_v44 = vcombine.high %v6432_v40, %v6432_v40  ;;  %v16287_v45 = vld [vmem:[%s20199_s1 + $0x1150] sm:$0xff]   ;;  %v16326_v33 = vld [vmem:[%s20199_s1 + $0x1218] sm:$0xff]  }
 0x205   :  { %5859 = vmatmul.mubr.bf16.vlgmr.msra.gmra.mrb[60].mxu1 %v3655_v47  ;;  %15023 = vmatprep.subr.bf16.mxu0 %v16251_v48  ;;  %v16289_v47 = vld [vmem:[%s20199_s1 + $0x1110] sm:$0xff]  }
 0x206   :  { %15044 = vmatpush3.bf16.msra.mxu1 %v16250_v46  ;;  %8224 = vmatprep.mubr.bf16.mxu1 %v6435_v38  ;;  %v16288_v46 = vld [vmem:[%s20199_s1 + $0x11d0] sm:$0xff]   ;;  %v16331_v38 = vld [vmem:[%s20199_s1 + $0x12a0] sm:$0xff]  }
 0x207   :  { %15045 = vmatprep.subr.bf16.mxu1 %v16252_v49  ;;  %v16290_v48 = vld [vmem:[%s20199_s1 + $0x1190] sm:$0xff]   ;;  %v16291_v49 = vld [vmem:[%s20199_s1 + $0x1158] sm:$0xff]  }
 0x208   :  { %15024 = vmatpush3.bf16.msra.mxu0 %v16253_v50  ;;  %v16292_v50 = vld [vmem:[%s20199_s1 + $0x11d8] sm:$0xff]  }
 0x209   :  { %15025 = vmatprep.subr.bf16.mxu0 %v16255_v52  ;;  %v16294_v52 = vld [vmem:[%s20199_s1 + $0x1198] sm:$0xff]  }
 0x20a   :  { %15046 = vmatpush3.bf16.msra.mxu1 %v16254_v51  ;;  %v16293_v51 = vld [vmem:[%s20199_s1 + $0x1118] sm:$0xff]  }
 0x20b   :  { %15047 = vmatprep.subr.bf16.mxu1 %v16256_v53  ;;  %v16295_v53 = vld [vmem:[%s20199_s1 + $0x1160] sm:$0xff]  }
 0x20c   :  { %15026 = vmatpush3.bf16.msra.mxu0 %v16257_v55  ;;  %v16296_v55 = vld [vmem:[%s20199_s1 + $0x11e0] sm:$0xff]  }
 0x20d   :  { %15027 = vmatprep.subr.bf16.mxu0 %v16259_v54  ;;  %v16298_v54 = vld [vmem:[%s20199_s1 + $0x11a0] sm:$0xff]  }
 0x20e   :  { %15048 = vmatpush3.bf16.msra.mxu1 %v16258_v56  ;;  %v16297_v56 = vld [vmem:[%s20199_s1 + $0x1120] sm:$0xff]  }
 0x20f   :  { %15049 = vmatprep.subr.bf16.mxu1 %v16260_v57  ;;  %v16299_v57 = vld [vmem:[%s20199_s1 + $0x1168] sm:$0xff]  }
 0x210   :  { %15028 = vmatpush3.bf16.msra.mxu0 %v16261_v58  ;;  %v16300_v58 = vld [vmem:[%s20199_s1 + $0x11e8] sm:$0xff]  }
 0x211   :  { %15029 = vmatprep.subr.bf16.mxu0 %v16263_v60  ;;  %v16302_v60 = vld [vmem:[%s20199_s1 + $0x11a8] sm:$0xff]  }
 0x212   :  { %15050 = vmatpush3.bf16.msra.mxu1 %v16262_v59  ;;  %v16301_v59 = vld [vmem:[%s20199_s1 + $0x1128] sm:$0xff]  }
 0x213   :  { %15051 = vmatprep.subr.bf16.mxu1 %v16264_v61  ;;  %v16303_v61 = vld [vmem:[%s20199_s1 + $0x1170] sm:$0xff]  }
 0x214   :  { %15030 = vmatpush3.bf16.msra.mxu0 %v16265_v62 }
 0x215   :  { %15031 = vmatprep.subr.bf16.mxu0 %v16267_v0 }
 0x216   :  { %15052 = vmatpush3.bf16.msra.mxu1 %v16266_v63  ;;  %v14729_v5 = vpop.f32.mrb[36].mxu0  ;;  %v16304_v63 = vld [vmem:[%s20199_s1 + $0x11f0] sm:$0xff]  }
 0x217   :  { %v14730_v7 = vpop.f32.mrb[37].mxu0  ;;  %15053 = vmatprep.subr.bf16.mxu1 %v16268_v1  ;;  %v16305_v1 = vld [vmem:[%s20199_s1 + $0x1130] sm:$0xff]  }
 0x218   :  { %v14751_v9 = vpop.f32.mrb[36].mxu1  ;;  %v14731_v10 = vadd.f32 %v14730_v7, %v14729_v5  ;;  %v14732_v11 = vpop.f32.mrb[38].mxu0  ;;  %15032 = vmatpush3.bf16.msra.mxu0 %v16269_v2  ;;  %v16306_v5 = vld [vmem:[%s20199_s1 + $0x11b0] sm:$0xff]  }
 0x219   :  { %v14752_v14 = vpop.f32.mrb[37].mxu1  ;;  %v14733_v15 = vpop.f32.mrb[39].mxu0  ;;  %15033 = vmatprep.subr.bf16.mxu0 %v16271_v4 }
 0x21a   :  { %v5341_v17 = vadd.f32 %v14731_v10, %v18482_v39  ;;  %v14753_v18 = vadd.f32 %v14752_v14, %v14751_v9  ;;  %v14754_v19 = vpop.f32.mrb[38].mxu1  ;;  %15054 = vmatpush3.bf16.msra.mxu1 %v16270_v3  ;;  %v16284_v39 = vld [vmem:[%s20199_s1 + $0x11c8] sm:$0xff]   ;;  %v16309_v14 = vld [vmem:[%s20199_s1 + $0x1138] sm:$0xff]  }
 0x21b   :  { %v14755_v21 = vpop.f32.mrb[39].mxu1  ;;  %15055 = vmatprep.subr.bf16.mxu1 %v16272_v6  ;;  %v16307_v6 = vld [vmem:[%s20199_s1 + $0x1178] sm:$0xff]   ;;  %v16313_v19 = vld [vmem:[%s20199_s1 + $0x12c0] sm:$0xff]  }
 0x21c   :  { %v18586_v23 = vadd.f32 %v14753_v18, %v5341_v17  ;;  %15034 = vmatpush3.bf16.msra.mxu0 %v16273_v8  ;;  %v6418_v17 = vrot.slane %v18600_v31, %v16918_v41  ;;  %v16312_v18 = vld [vmem:[%s20199_s1 + $0x1240] sm:$0xff]   ;;  %v16324_v31 = vld [vmem:[%s20199_s1 + $0x1258] sm:$0xff]  }
 0x21d   :  { %15035 = vmatprep.subr.bf16.mxu0 %v16275_v13  ;;  %v16315_v21 = vld [vmem:[%s20199_s1 + $0x1280] sm:$0xff]  }
 0x21e   :  { %15056 = vmatpush3.bf16.msra.mxu1 %v16274_v12  ;;  %v16308_v12 = vld [vmem:[%s20199_s1 + $0x11f8] sm:$0xff]   ;;  %v6434_v22 = vcombine.high %v6418_v17, %v6418_v17 }
 0x21f   :  { %15057 = vmatprep.subr.bf16.mxu1 %v16276_v16  ;;  %v16310_v16 = vld [vmem:[%s20199_s1 + $0x11b8] sm:$0xff]  }
 0x220   :  { %15036 = vmatpush3.bf16.msra.mxu0 %v16277_v20  ;;  %v16314_v20 = vld [vmem:[%s20199_s1 + $0x1200] sm:$0xff]  }
 0x221   :  { %15065 = vmatprep.subr.bf16.mxu0 %v16279_v27  ;;  %v16320_v27 = vld [vmem:[%s20199_s1 + $0x1250] sm:$0xff]  }
 0x222   :  { %15058 = vmatpush3.bf16.msra.mxu1 %v16278_v24  ;;  %v16317_v24 = vld [vmem:[%s20199_s1 + $0x12c8] sm:$0xff]  }
 0x223   :  { %8185 = vmatmul.mubr.bf16.vlgmr.msra.gmra.mrb[64].mxu0 %v6411_v29  ;;  %15087 = vmatprep.subr.bf16.mxu1 %v16280_v30  ;;  %v16322_v29 = vld [vmem:[%s20199_s1 + $0x1210] sm:$0xff]  }
 0x224   :  { %15066 = vmatpush3.bf16.msra.mxu0 %v16281_v32  ;;  %8264 = vmatprep.mubr.bf16.mxu0 %v6432_v40  ;;  %v16323_v30 = vld [vmem:[%s20199_s1 + $0x1290] sm:$0xff]   ;;  %v16325_v32 = vld [vmem:[%s20199_s1 + $0x12d8] sm:$0xff]   ;;  %v16333_v40 = vld [vmem:[%s20199_s1 + $0x12e8] sm:$0xff]  }
 0x225   :  { %8225 = vmatmul.mubr.bf16.vlgmr.msra.gmra.mrb[64].mxu1 %v6433_v36  ;;  %15067 = vmatprep.subr.bf16.mxu0 %v16283_v37  ;;  %v16329_v36 = vld [vmem:[%s20199_s1 + $0x12e0] sm:$0xff]  }
 0x226   :  { %15088 = vmatpush3.bf16.msra.mxu1 %v16282_v34  ;;  %8304 = vmatprep.mubr.bf16.mxu1 %v6436_v44  ;;  %v16327_v34 = vld [vmem:[%s20199_s1 + $0x1298] sm:$0xff]   ;;  %v16330_v37 = vld [vmem:[%s20199_s1 + $0x1220] sm:$0xff]   ;;  %v16336_v44 = vld [vmem:[%s20199_s1 + $0x1270] sm:$0xff]  }
 0x227   :  { %15089 = vmatprep.subr.bf16.mxu1 %v16284_v39  ;;  %v16332_v39 = vld [vmem:[%s20199_s1 + $0x1268] sm:$0xff]  }
 0x228   :  { %15068 = vmatpush3.bf16.msra.mxu0 %v16285_v42  ;;  %v16334_v42 = vld [vmem:[%s20199_s1 + $0x1228] sm:$0xff]  }
 0x229   :  { %15069 = vmatprep.subr.bf16.mxu0 %v16287_v45 }
 0x22a   :  { %15090 = vmatpush3.bf16.msra.mxu1 %v16286_v43  ;;  %v16335_v43 = vld [vmem:[%s20199_s1 + $0x12a8] sm:$0xff]  }
 0x22b   :  { %15091 = vmatprep.subr.bf16.mxu1 %v16288_v46  ;;  %v16337_v46 = vld [vmem:[%s20199_s1 + $0x12f0] sm:$0xff]  }
 0x22c   :  { %15070 = vmatpush3.bf16.msra.mxu0 %v16289_v47 }
 0x22d   :  { %15071 = vmatprep.subr.bf16.mxu0 %v16291_v49 }
 0x22e   :  { %15092 = vmatpush3.bf16.msra.mxu1 %v16290_v48  ;;  %v16338_v48 = vld [vmem:[%s20199_s1 + $0x1230] sm:$0xff]  }
 0x22f   :  { %15093 = vmatprep.subr.bf16.mxu1 %v16292_v50 }
 0x230   :  { %15072 = vmatpush3.bf16.msra.mxu0 %v16293_v51 }
 0x231   :  { %15073 = vmatprep.subr.bf16.mxu0 %v16295_v53  ;;  %v16340_v53 = vld [vmem:[%s20199_s1 + $0x1278] sm:$0xff]  }
 0x232   :  { %15094 = vmatpush3.bf16.msra.mxu1 %v16294_v52  ;;  %v16339_v52 = vld [vmem:[%s20199_s1 + $0x12b0] sm:$0xff]  }
 0x233   :  { %15095 = vmatprep.subr.bf16.mxu1 %v16296_v55 }
 0x234   :  { %15074 = vmatpush3.bf16.msra.mxu0 %v16297_v56 }
 0x235   :  { %15075 = vmatprep.subr.bf16.mxu0 %v16299_v57 }
 0x236   :  { %15096 = vmatpush3.bf16.msra.mxu1 %v16298_v54  ;;  %v14773_v62 = vpop.f32.mrb[40].mxu0 }
 0x237   :  { %v14774_v0 = vpop.f32.mrb[41].mxu0  ;;  %15097 = vmatprep.subr.bf16.mxu1 %v16300_v58 }
 0x238   :  { %v14795_v2 = vpop.f32.mrb[40].mxu1  ;;  %v14775_v3 = vadd.f32 %v14774_v0, %v14773_v62  ;;  %v14776_v4 = vpop.f32.mrb[42].mxu0  ;;  %15076 = vmatpush3.bf16.msra.mxu0 %v16301_v59  ;;  %v16341_v59 = vld [vmem:[%s20199_s1 + $0x12f8] sm:$0xff]  }
 0x239   :  { %v14796_v7 = vpop.f32.mrb[41].mxu1  ;;  %v14777_v8 = vpop.f32.mrb[43].mxu0  ;;  %15077 = vmatprep.subr.bf16.mxu0 %v16303_v61  ;;  %v16342_v61 = vld [vmem:[%s20199_s1 + $0x1238] sm:$0xff]  }
 0x23a   :  { %v5421_v9 = vadd.f32 %v14775_v3, %v18586_v23  ;;  %v14797_v10 = vadd.f32 %v14796_v7, %v14795_v2  ;;  %v14798_v11 = vpop.f32.mrb[42].mxu1  ;;  %15098 = vmatpush3.bf16.msra.mxu1 %v16302_v60  ;;  %v16316_v23 = vld [vmem:[%s20199_s1 + $0x1248] sm:$0xff]   ;;  %v16343_v3 = vld [vmem:[%s20199_s1 + $0x12b8] sm:$0xff]  }
 0x23b   :  { %v14799_v13 = vpop.f32.mrb[43].mxu1  ;;  %15099 = vmatprep.subr.bf16.mxu1 %v16304_v63  ;;  %v12773_v63 = vld [vmem:[%s20198_s0 + $0x48] sm:$0xff] }
 0x23c   :  { %v18694_v15 = vadd.f32 %v14797_v10, %v5421_v9  ;;  %15078 = vmatpush3.bf16.msra.mxu0 %v16305_v1  ;;  %v6444_v0 = vrot.slane %v12773_v63, %v16918_v41  ;;  %v16344_v1 = vld [vmem:[%s20199_s1 + $0x1340] sm:$0xff]   ;;  %v6437_v2 = vcombine.high %v12773_v63, %v12773_v63 }
 0x23d   :  { %15079 = vmatprep.subr.bf16.mxu0 %v16307_v6  ;;  %v16345_v6 = vld [vmem:[%s20199_s1 + $0x13c0] sm:$0xff]  }
 0x23e   :  { %15100 = vmatpush3.bf16.msra.mxu1 %v16306_v5  ;;  %v6452_v4 = vcombine.high %v6444_v0, %v6444_v0  ;;  %v6460_v5 = vrot.slane %v6444_v0, %v16918_v41  ;;  %v18812_v7 = vrot.slane %v6437_v2, %v16918_v41  ;;  %v16346_v9 = vld [vmem:[%s20199_s1 + $0x1300] sm:$0xff]   ;;  %v16382_v0 = vld [vmem:[%s20199_s1 + $0x14c8] sm:$0xff]   ;;  %v16385_v2 = vld [vmem:[%s20199_s1 + $0x1450] sm:$0xff]  }
 0x23f   :  { %15101 = vmatprep.subr.bf16.mxu1 %v16308_v12  ;;  %v16348_v12 = vld [vmem:[%s20199_s1 + $0x1348] sm:$0xff]   ;;  %v16380_v63 = vld [vmem:[%s20199_s1 + $0x1480] sm:$0xff]  }
 0x240   :  { %15080 = vmatpush3.bf16.msra.mxu0 %v16309_v14  ;;  %v6474_v8 = vrot.slane %v6452_v4, %v16918_v41  ;;  %v6453_v10 = vcombine.high %v18812_v7, %v18812_v7  ;;  %v6482_v11 = vcombine.high %v6460_v5, %v6460_v5  ;;  %v16347_v14 = vld [vmem:[%s20199_s1 + $0x1380] sm:$0xff]   ;;  %v16386_v4 = vld [vmem:[%s20199_s1 + $0x14d0] sm:$0xff]  }
 0x241   :  { %15109 = vmatprep.subr.bf16.mxu0 %v16312_v18 }
 0x242   :  { %15102 = vmatpush3.bf16.msra.mxu1 %v16310_v16  ;;  %v6484_v13 = vcombine.high %v6474_v8, %v6474_v8  ;;  %v16349_v16 = vld [vmem:[%s20199_s1 + $0x13c8] sm:$0xff]  }
 0x243   :  { %8265 = vmatmul.mubr.bf16.vlgmr.msra.gmra.mrb[68].mxu0 %v6418_v17  ;;  %15131 = vmatprep.subr.bf16.mxu1 %v16313_v19  ;;  %v16350_v17 = vld [vmem:[%s20199_s1 + $0x1308] sm:$0xff]   ;;  %v16352_v19 = vld [vmem:[%s20199_s1 + $0x1350] sm:$0xff]  }
 0x244   :  { %15110 = vmatpush3.bf16.msra.mxu0 %v16314_v20  ;;  %8344 = vmatprep.mubr.bf16.mxu0 %v6474_v8  ;;  %v16351_v20 = vld [vmem:[%s20199_s1 + $0x1388] sm:$0xff]   ;;  %v16390_v8 = vld [vmem:[%s20199_s1 + $0x14d8] sm:$0xff]  }
 0x245   :  { %8305 = vmatmul.mubr.bf16.vlgmr.msra.gmra.mrb[68].mxu1 %v6434_v22  ;;  %15111 = vmatprep.subr.bf16.mxu0 %v16316_v23  ;;  %v16354_v22 = vld [vmem:[%s20199_s1 + $0x1310] sm:$0xff]   ;;  %v16356_v23 = vld [vmem:[%s20199_s1 + $0x1358] sm:$0xff]  }
 0x246   :  { %15132 = vmatpush3.bf16.msra.mxu1 %v16315_v21  ;;  %8384 = vmatprep.mubr.bf16.mxu1 %v6484_v13  ;;  %v16353_v21 = vld [vmem:[%s20199_s1 + $0x13d0] sm:$0xff]   ;;  %v16395_v13 = vld [vmem:[%s20199_s1 + $0x1420] sm:$0xff]  }
 0x247   :  { %15133 = vmatprep.subr.bf16.mxu1 %v16317_v24  ;;  %v16355_v24 = vld [vmem:[%s20199_s1 + $0x1390] sm:$0xff]  }
 0x248   :  { %15112 = vmatpush3.bf16.msra.mxu0 %v16318_v25  ;;  %v16357_v25 = vld [vmem:[%s20199_s1 + $0x13d8] sm:$0xff]  }
 0x249   :  { %15113 = vmatprep.subr.bf16.mxu0 %v16320_v27  ;;  %v16360_v27 = vld [vmem:[%s20199_s1 + $0x1360] sm:$0xff]  }
 0x24a   :  { %15134 = vmatpush3.bf16.msra.mxu1 %v16319_v26  ;;  %v16358_v26 = vld [vmem:[%s20199_s1 + $0x1318] sm:$0xff]  }
 0x24b   :  { %15135 = vmatprep.subr.bf16.mxu1 %v16321_v28  ;;  %v16359_v28 = vld [vmem:[%s20199_s1 + $0x1398] sm:$0xff]  }
 0x24c   :  { %15114 = vmatpush3.bf16.msra.mxu0 %v16322_v29  ;;  %v16361_v29 = vld [vmem:[%s20199_s1 + $0x13e0] sm:$0xff]  }
 0x24d   :  { %15115 = vmatprep.subr.bf16.mxu0 %v16324_v31  ;;  %v16364_v31 = vld [vmem:[%s20199_s1 + $0x1368] sm:$0xff]  }
 0x24e   :  { %15136 = vmatpush3.bf16.msra.mxu1 %v16323_v30  ;;  %v16362_v30 = vld [vmem:[%s20199_s1 + $0x1320] sm:$0xff]  }
 0x24f   :  { %15137 = vmatprep.subr.bf16.mxu1 %v16325_v32  ;;  %v16363_v32 = vld [vmem:[%s20199_s1 + $0x13a0] sm:$0xff]  }
 0x250   :  { %15116 = vmatpush3.bf16.msra.mxu0 %v16326_v33  ;;  %v16365_v33 = vld [vmem:[%s20199_s1 + $0x13e8] sm:$0xff]  }
 0x251   :  { %15117 = vmatprep.subr.bf16.mxu0 %v16328_v35 }
 0x252   :  { %15138 = vmatpush3.bf16.msra.mxu1 %v16327_v34  ;;  %v16366_v34 = vld [vmem:[%s20199_s1 + $0x1328] sm:$0xff]  }
 0x253   :  { %15139 = vmatprep.subr.bf16.mxu1 %v16329_v36  ;;  %v16368_v36 = vld [vmem:[%s20199_s1 + $0x1370] sm:$0xff]  }
 0x254   :  { %15118 = vmatpush3.bf16.msra.mxu0 %v16330_v37 }
 0x255   :  { %15119 = vmatprep.subr.bf16.mxu0 %v16332_v39 }
 0x256   :  { %15140 = vmatpush3.bf16.msra.mxu1 %v16331_v38  ;;  %v14817_v45 = vpop.f32.mrb[44].mxu0  ;;  %v16367_v38 = vld [vmem:[%s20199_s1 + $0x13a8] sm:$0xff]  }
 0x257   :  { %v14818_v47 = vpop.f32.mrb[45].mxu0  ;;  %15141 = vmatprep.subr.bf16.mxu1 %v16333_v40 }
 0x258   :  { %v14839_v49 = vpop.f32.mrb[44].mxu1  ;;  %v14819_v50 = vadd.f32 %v14818_v47, %v14817_v45  ;;  %v14820_v51 = vpop.f32.mrb[46].mxu0  ;;  %15120 = vmatpush3.bf16.msra.mxu0 %v16334_v42 }
 0x259   :  { %v14840_v55 = vpop.f32.mrb[45].mxu1  ;;  %v14821_v56 = vpop.f32.mrb[47].mxu0  ;;  %15121 = vmatprep.subr.bf16.mxu0 %v16336_v44  ;;  %v16370_v44 = vld [vmem:[%s20199_s1 + $0x1330] sm:$0xff]  }
 0x25a   :  { %v5501_v54 = vadd.f32 %v14819_v50, %v18694_v15  ;;  %v14841_v57 = vadd.f32 %v14840_v55, %v14839_v49  ;;  %v14842_v58 = vpop.f32.mrb[46].mxu1  ;;  %15142 = vmatpush3.bf16.msra.mxu1 %v16335_v43  ;;  %v6481_v15 = vrot.slane %v6453_v10, %v16918_v41  ;;  %v16369_v43 = vld [vmem:[%s20199_s1 + $0x13f0] sm:$0xff]   ;;  %v16372_v50 = vld [vmem:[%s20199_s1 + $0x1378] sm:$0xff]   ;;  %v16393_v10 = vld [vmem:[%s20199_s1 + $0x1460] sm:$0xff]  }
 0x25b   :  { %v14843_v60 = vpop.f32.mrb[47].mxu1  ;;  %15143 = vmatprep.subr.bf16.mxu1 %v16337_v46  ;;  %v16373_v55 = vld [vmem:[%s20199_s1 + $0x13f8] sm:$0xff]  }
 0x25c   :  { %v18795_v62 = vadd.f32 %v14841_v57, %v5501_v54  ;;  %15122 = vmatpush3.bf16.msra.mxu0 %v16338_v48  ;;  %v6485_v18 = vcombine.high %v6481_v15, %v6481_v15  ;;  %v16374_v56 = vld [vmem:[%s20199_s1 + $0x1338] sm:$0xff]   ;;  %v6467_v54 = vrot.slane %v18812_v7, %v16918_v41  ;;  %v16377_v57 = vld [vmem:[%s20199_s1 + $0x1440] sm:$0xff]   ;;  %v16388_v7 = vld [vmem:[%s20199_s1 + $0x1490] sm:$0xff]  }
 0x25d   :  { %15123 = vmatprep.subr.bf16.mxu0 %v16340_v53  ;;  %v16375_v58 = vld [vmem:[%s20199_s1 + $0x13b8] sm:$0xff]   ;;  %v16379_v60 = vld [vmem:[%s20199_s1 + $0x1400] sm:$0xff]  }
 0x25e   :  { %15144 = vmatpush3.bf16.msra.mxu1 %v16339_v52  ;;  %v16371_v52 = vld [vmem:[%s20199_s1 + $0x13b0] sm:$0xff]  }
 0x25f   :  { %15145 = vmatprep.subr.bf16.mxu1 %v16341_v59  ;;  %v16378_v59 = vld [vmem:[%s20199_s1 + $0x14c0] sm:$0xff]  }
 0x260   :  { %15124 = vmatpush3.bf16.msra.mxu0 %v16342_v61  ;;  %v6483_v61 = vcombine.high %v6467_v54, %v6467_v54 }
 0x261   :  { %15153 = vmatprep.subr.bf16.mxu0 %v16344_v1  ;;  %v16383_v1 = vld [vmem:[%s20199_s1 + $0x1408] sm:$0xff]  }
 0x262   :  { %15146 = vmatpush3.bf16.msra.mxu1 %v16343_v3  ;;  %v16384_v3 = vld [vmem:[%s20199_s1 + $0x1488] sm:$0xff]  }
 0x263   :  { %15175 = vmatprep.subr.bf16.mxu1 %v16345_v6  ;;  %8345 = vmatmul.mubr.bf16.vlgmr.msra.gmra.mrb[72].mxu0 %v6460_v5  ;;  %v16387_v5 = vld [vmem:[%s20199_s1 + $0x1410] sm:$0xff]   ;;  %v16389_v6 = vld [vmem:[%s20199_s1 + $0x1458] sm:$0xff]  }
 0x264   :  { %15154 = vmatpush3.bf16.msra.mxu0 %v16346_v9  ;;  %8424 = vmatprep.mubr.bf16.mxu0 %v6481_v15  ;;  %v16391_v9 = vld [vmem:[%s20199_s1 + $0x1418] sm:$0xff]   ;;  %v16396_v15 = vld [vmem:[%s20199_s1 + $0x14a0] sm:$0xff]  }
 0x265   :  { %8385 = vmatmul.mubr.bf16.vlgmr.msra.gmra.mrb[72].mxu1 %v6482_v11  ;;  %15155 = vmatprep.subr.bf16.mxu0 %v16348_v12  ;;  %v16392_v11 = vld [vmem:[%s20199_s1 + $0x1498] sm:$0xff]   ;;  %v16394_v12 = vld [vmem:[%s20199_s1 + $0x14e0] sm:$0xff]  }
 0x266   :  { %15176 = vmatpush3.bf16.msra.mxu1 %v16347_v14  ;;  %8464 = vmatprep.mubr.bf16.mxu1 %v6485_v18  ;;  %v16397_v14 = vld [vmem:[%s20199_s1 + $0x1468] sm:$0xff]  }
 0x267   :  { %15177 = vmatprep.subr.bf16.mxu1 %v16349_v16  ;;  %v16398_v16 = vld [vmem:[%s20199_s1 + $0x14e8] sm:$0xff]  }
 0x268   :  { %15156 = vmatpush3.bf16.msra.mxu0 %v16350_v17  ;;  %v16399_v17 = vld [vmem:[%s20199_s1 + $0x1428] sm:$0xff]  }
 0x269   :  { %15157 = vmatprep.subr.bf16.mxu0 %v16352_v19  ;;  %v16401_v19 = vld [vmem:[%s20199_s1 + $0x1470] sm:$0xff]  }
 0x26a   :  { %15178 = vmatpush3.bf16.msra.mxu1 %v16351_v20 }
 0x26b   :  { %15179 = vmatprep.subr.bf16.mxu1 %v16353_v21  ;;  %v16400_v21 = vld [vmem:[%s20199_s1 + $0x14a8] sm:$0xff]  }
 0x26c   :  { %15158 = vmatpush3.bf16.msra.mxu0 %v16354_v22 }
 0x26d   :  { %15159 = vmatprep.subr.bf16.mxu0 %v16356_v23 }
 0x26e   :  { %15180 = vmatpush3.bf16.msra.mxu1 %v16355_v24 }
 0x26f   :  { %15181 = vmatprep.subr.bf16.mxu1 %v16357_v25  ;;  %v16402_v25 = vld [vmem:[%s20199_s1 + $0x14f0] sm:$0xff]  }
 0x270   :  { %15160 = vmatpush3.bf16.msra.mxu0 %v16358_v26  ;;  %v16403_v26 = vld [vmem:[%s20199_s1 + $0x1430] sm:$0xff]  }
 0x271   :  { %15161 = vmatprep.subr.bf16.mxu0 %v16360_v27 }
 0x272   :  { %15182 = vmatpush3.bf16.msra.mxu1 %v16359_v28 }
 0x273   :  { %15183 = vmatprep.subr.bf16.mxu1 %v16361_v29  ;;  %v16404_v29 = vld [vmem:[%s20199_s1 + $0x14b0] sm:$0xff]  }
 0x274   :  { %15162 = vmatpush3.bf16.msra.mxu0 %v16362_v30 }
 0x275   :  { %15163 = vmatprep.subr.bf16.mxu0 %v16364_v31 }
 0x276   :  { %v14861_v35 = vpop.f32.mrb[48].mxu0  ;;  %15184 = vmatpush3.bf16.msra.mxu1 %v16363_v32 }
 0x277   :  { %v14862_v37 = vpop.f32.mrb[49].mxu0  ;;  %15185 = vmatprep.subr.bf16.mxu1 %v16365_v33  ;;  %v16405_v33 = vld [vmem:[%s20199_s1 + $0x1478] sm:$0xff]  }
 0x278   :  { %v14883_v39 = vpop.f32.mrb[48].mxu1  ;;  %v14863_v40 = vadd.f32 %v14862_v37, %v14861_v35  ;;  %v14864_v42 = vpop.f32.mrb[50].mxu0  ;;  %15164 = vmatpush3.bf16.msra.mxu0 %v16366_v34  ;;  %v16406_v35 = vld [vmem:[%s20199_s1 + $0x14f8] sm:$0xff]  }
 0x279   :  { %v14884_v45 = vpop.f32.mrb[49].mxu1  ;;  %v14865_v46 = vpop.f32.mrb[51].mxu0  ;;  %15165 = vmatprep.subr.bf16.mxu0 %v16368_v36  ;;  %v16407_v37 = vld [vmem:[%s20199_s1 + $0x1438] sm:$0xff]  }
 0x27a   :  { %v5581_v47 = vadd.f32 %v14863_v40, %v18795_v62  ;;  %v14885_v48 = vadd.f32 %v14884_v45, %v14883_v39  ;;  %v14886_v49 = vpop.f32.mrb[50].mxu1  ;;  %15186 = vmatpush3.bf16.msra.mxu1 %v16367_v38  ;;  %v16381_v62 = vld [vmem:[%s20199_s1 + $0x1448] sm:$0xff]   ;;  %v12774_v38 = vld [vmem:[%s20198_s0 + $0x50] sm:$0xff]  ;;  %v16409_v40 = vld [vmem:[%s20199_s1 + $0x1540] sm:$0xff]  }
 0x27b   :  { %v14887_v51 = vpop.f32.mrb[51].mxu1  ;;  %15187 = vmatprep.subr.bf16.mxu1 %v16369_v43  ;;  %v6493_v39 = vrot.slane %v12774_v38, %v16918_v41  ;;  %v6486_v42 = vcombine.high %v12774_v38, %v12774_v38  ;;  %v16408_v43 = vld [vmem:[%s20199_s1 + $0x14b8] sm:$0xff]   ;;  %v16410_v46 = vld [vmem:[%s20199_s1 + $0x15c0] sm:$0xff]   ;;  %v16446_v38 = vld [vmem:[%s20199_s1 + $0x1648] sm:$0xff]  }
 0x27c   :  { %v18900_v53 = vadd.f32 %v14885_v48, %v5581_v47  ;;  %15166 = vmatpush3.bf16.msra.mxu0 %v16370_v44  ;;  %v16411_v48 = vld [vmem:[%s20199_s1 + $0x1500] sm:$0xff]  }
 0x27d   :  { %15167 = vmatprep.subr.bf16.mxu0 %v16372_v50  ;;  %v6501_v44 = vcombine.high %v6493_v39, %v6493_v39  ;;  %v6509_v45 = vrot.slane %v6493_v39, %v16918_v41  ;;  %v19024_v47 = vrot.slane %v6486_v42, %v16918_v41  ;;  %v16412_v50 = vld [vmem:[%s20199_s1 + $0x1580] sm:$0xff]   ;;  %v16447_v39 = vld [vmem:[%s20199_s1 + $0x16c8] sm:$0xff]  }
 0x27e   :  { %15188 = vmatpush3.bf16.msra.mxu1 %v16371_v52  ;;  %v16449_v42 = vld [vmem:[%s20199_s1 + $0x1688] sm:$0xff]  }
 0x27f   :  { %15189 = vmatprep.subr.bf16.mxu1 %v16373_v55  ;;  %v6523_v49 = vrot.slane %v6501_v44, %v16918_v41  ;;  %v6502_v51 = vcombine.high %v19024_v47, %v19024_v47  ;;  %v6531_v52 = vcombine.high %v6509_v45, %v6509_v45  ;;  %v16451_v44 = vld [vmem:[%s20199_s1 + $0x16d0] sm:$0xff]  }
 0x280   :  { %15168 = vmatpush3.bf16.msra.mxu0 %v16374_v56  ;;  %v16414_v56 = vld [vmem:[%s20199_s1 + $0x15c8] sm:$0xff]  }
 0x281   :  { %15197 = vmatprep.subr.bf16.mxu0 %v16377_v57  ;;  %v6533_v55 = vcombine.high %v6523_v49, %v6523_v49  ;;  %v16415_v57 = vld [vmem:[%s20199_s1 + $0x1508] sm:$0xff]  }
 0x282   :  { %15190 = vmatpush3.bf16.msra.mxu1 %v16375_v58  ;;  %v16416_v58 = vld [vmem:[%s20199_s1 + $0x1588] sm:$0xff]  }
 0x283   :  { %8425 = vmatmul.mubr.bf16.vlgmr.msra.gmra.mrb[76].mxu0 %v6467_v54  ;;  %15219 = vmatprep.subr.bf16.mxu1 %v16378_v59  ;;  %v6530_v54 = vrot.slane %v6502_v51, %v16918_v41  ;;  %v16458_v51 = vld [vmem:[%s20199_s1 + $0x1660] sm:$0xff]  }
 0x284   :  { %15198 = vmatpush3.bf16.msra.mxu0 %v16379_v60  ;;  %8504 = vmatprep.mubr.bf16.mxu0 %v6523_v49  ;;  %v16417_v60 = vld [vmem:[%s20199_s1 + $0x1550] sm:$0xff]   ;;  %v16456_v49 = vld [vmem:[%s20199_s1 + $0x1618] sm:$0xff]  }
 0x285   :  { %8465 = vmatmul.mubr.bf16.vlgmr.msra.gmra.mrb[76].mxu1 %v6483_v61  ;;  %15199 = vmatprep.subr.bf16.mxu0 %v16381_v62  ;;  %v6534_v59 = vcombine.high %v6530_v54, %v6530_v54  ;;  %v16418_v61 = vld [vmem:[%s20199_s1 + $0x15d0] sm:$0xff]  }
 0x286   :  { %15220 = vmatpush3.bf16.msra.mxu1 %v16380_v63  ;;  %8544 = vmatprep.mubr.bf16.mxu1 %v6533_v55  ;;  %v16419_v62 = vld [vmem:[%s20199_s1 + $0x1510] sm:$0xff]   ;;  %v16461_v55 = vld [vmem:[%s20199_s1 + $0x16a0] sm:$0xff]  }
 0x287   :  { %15221 = vmatprep.subr.bf16.mxu1 %v16382_v0  ;;  %v16420_v63 = vld [vmem:[%s20199_s1 + $0x1590] sm:$0xff]   ;;  %v16421_v0 = vld [vmem:[%s20199_s1 + $0x1558] sm:$0xff]  }
 0x288   :  { %15200 = vmatpush3.bf16.msra.mxu0 %v16383_v1  ;;  %v16422_v1 = vld [vmem:[%s20199_s1 + $0x15d8] sm:$0xff]  }
 0x289   :  { %15201 = vmatprep.subr.bf16.mxu0 %v16385_v2  ;;  %v16423_v2 = vld [vmem:[%s20199_s1 + $0x1518] sm:$0xff]  }
 0x28a   :  { %15222 = vmatpush3.bf16.msra.mxu1 %v16384_v3  ;;  %v16424_v3 = vld [vmem:[%s20199_s1 + $0x1598] sm:$0xff]  }
 0x28b   :  { %15223 = vmatprep.subr.bf16.mxu1 %v16386_v4  ;;  %v16425_v4 = vld [vmem:[%s20199_s1 + $0x1560] sm:$0xff]  }
 0x28c   :  { %15202 = vmatpush3.bf16.msra.mxu0 %v16387_v5  ;;  %v16426_v5 = vld [vmem:[%s20199_s1 + $0x15e0] sm:$0xff]  }
 0x28d   :  { %15203 = vmatprep.subr.bf16.mxu0 %v16389_v6  ;;  %v16427_v6 = vld [vmem:[%s20199_s1 + $0x1520] sm:$0xff]  }
 0x28e   :  { %15224 = vmatpush3.bf16.msra.mxu1 %v16388_v7  ;;  %v16428_v7 = vld [vmem:[%s20199_s1 + $0x15a0] sm:$0xff]  }
 0x28f   :  { %15225 = vmatprep.subr.bf16.mxu1 %v16390_v8  ;;  %v16429_v8 = vld [vmem:[%s20199_s1 + $0x1568] sm:$0xff]  }
 0x290   :  { %15204 = vmatpush3.bf16.msra.mxu0 %v16391_v9  ;;  %v16430_v9 = vld [vmem:[%s20199_s1 + $0x15e8] sm:$0xff]  }
 0x291   :  { %15205 = vmatprep.subr.bf16.mxu0 %v16393_v10  ;;  %v16431_v10 = vld [vmem:[%s20199_s1 + $0x1528] sm:$0xff]  }
 0x292   :  { %15226 = vmatpush3.bf16.msra.mxu1 %v16392_v11 }
 0x293   :  { %15227 = vmatprep.subr.bf16.mxu1 %v16394_v12  ;;  %v16432_v12 = vld [vmem:[%s20199_s1 + $0x15a8] sm:$0xff]  }
 0x294   :  { %15206 = vmatpush3.bf16.msra.mxu0 %v16395_v13 }
 0x295   :  { %15207 = vmatprep.subr.bf16.mxu0 %v16397_v14  ;;  %v16433_v14 = vld [vmem:[%s20199_s1 + $0x1570] sm:$0xff]  }
 0x296   :  { %v14905_v18 = vpop.f32.mrb[52].mxu0  ;;  %15228 = vmatpush3.bf16.msra.mxu1 %v16396_v15 }
 0x297   :  { %v14906_v20 = vpop.f32.mrb[53].mxu0  ;;  %15229 = vmatprep.subr.bf16.mxu1 %v16398_v16 }
 0x298   :  { %v14927_v22 = vpop.f32.mrb[52].mxu1  ;;  %v14907_v23 = vadd.f32 %v14906_v20, %v14905_v18  ;;  %v14908_v24 = vpop.f32.mrb[54].mxu0  ;;  %15208 = vmatpush3.bf16.msra.mxu0 %v16399_v17  ;;  %v16434_v18 = vld [vmem:[%s20199_s1 + $0x15f0] sm:$0xff]  }
 0x299   :  { %v14928_v27 = vpop.f32.mrb[53].mxu1  ;;  %v14909_v28 = vpop.f32.mrb[55].mxu0  ;;  %15209 = vmatprep.subr.bf16.mxu0 %v16401_v19  ;;  %v16435_v19 = vld [vmem:[%s20199_s1 + $0x1530] sm:$0xff]  }
 0x29a   :  { %v5661_v30 = vadd.f32 %v14907_v23, %v18900_v53  ;;  %v14929_v31 = vadd.f32 %v14928_v27, %v14927_v22  ;;  %v14930_v32 = vpop.f32.mrb[54].mxu1  ;;  %15230 = vmatpush3.bf16.msra.mxu1 %v16400_v21  ;;  %v16413_v53 = vld [vmem:[%s20199_s1 + $0x1548] sm:$0xff]   ;;  %v16437_v27 = vld [vmem:[%s20199_s1 + $0x1578] sm:$0xff]  }
 0x29b   :  { %v14931_v34 = vpop.f32.mrb[55].mxu1  ;;  %15231 = vmatprep.subr.bf16.mxu1 %v16402_v25  ;;  %v16436_v25 = vld [vmem:[%s20199_s1 + $0x15b0] sm:$0xff]   ;;  %v6516_v32 = vrot.slane %v19024_v47, %v16918_v41  ;;  %v16454_v47 = vld [vmem:[%s20199_s1 + $0x1658] sm:$0xff]  }
 0x29c   :  { %v19004_v36 = vadd.f32 %v14929_v31, %v5661_v30  ;;  %15210 = vmatpush3.bf16.msra.mxu0 %v16403_v26  ;;  %v16439_v30 = vld [vmem:[%s20199_s1 + $0x1538] sm:$0xff]   ;;  %v16443_v34 = vld [vmem:[%s20199_s1 + $0x16c0] sm:$0xff]  }
 0x29d   :  { %15211 = vmatprep.subr.bf16.mxu0 %v16405_v33  ;;  %v16440_v31 = vld [vmem:[%s20199_s1 + $0x15b8] sm:$0xff]   ;;  %v16442_v33 = vld [vmem:[%s20199_s1 + $0x1640] sm:$0xff]  }
 0x29e   :  { %15232 = vmatpush3.bf16.msra.mxu1 %v16404_v29  ;;  %v16438_v29 = vld [vmem:[%s20199_s1 + $0x15f8] sm:$0xff]  }
 0x29f   :  { %15233 = vmatprep.subr.bf16.mxu1 %v16406_v35  ;;  %v16444_v35 = vld [vmem:[%s20199_s1 + $0x1600] sm:$0xff]  }
 0x2a0   :  { %15212 = vmatpush3.bf16.msra.mxu0 %v16407_v37  ;;  %v6532_v37 = vcombine.high %v6516_v32, %v6516_v32 }
 0x2a1   :  { %15241 = vmatprep.subr.bf16.mxu0 %v16409_v40  ;;  %v16448_v40 = vld [vmem:[%s20199_s1 + $0x1608] sm:$0xff]  }
 0x2a2   :  { %15234 = vmatpush3.bf16.msra.mxu1 %v16408_v43  ;;  %v16450_v43 = vld [vmem:[%s20199_s1 + $0x1650] sm:$0xff]  }
 0x2a3   :  { %15263 = vmatprep.subr.bf16.mxu1 %v16410_v46  ;;  %8505 = vmatmul.mubr.bf16.vlgmr.msra.gmra.mrb[80].mxu0 %v6509_v45  ;;  %v16452_v45 = vld [vmem:[%s20199_s1 + $0x1610] sm:$0xff]  }
 0x2a4   :  { %15242 = vmatpush3.bf16.msra.mxu0 %v16411_v48  ;;  %8584 = vmatprep.mubr.bf16.mxu0 %v6530_v54  ;;  %v16453_v46 = vld [vmem:[%s20199_s1 + $0x1690] sm:$0xff]   ;;  %v16455_v48 = vld [vmem:[%s20199_s1 + $0x16d8] sm:$0xff]   ;;  %v16463_v54 = vld [vmem:[%s20199_s1 + $0x16e8] sm:$0xff]  }
 0x2a5   :  { %8545 = vmatmul.mubr.bf16.vlgmr.msra.gmra.mrb[80].mxu1 %v6531_v52  ;;  %15243 = vmatprep.subr.bf16.mxu0 %v16413_v53  ;;  %v16459_v52 = vld [vmem:[%s20199_s1 + $0x16e0] sm:$0xff]  }
 0x2a6   :  { %15264 = vmatpush3.bf16.msra.mxu1 %v16412_v50  ;;  %8624 = vmatprep.mubr.bf16.mxu1 %v6534_v59  ;;  %v16457_v50 = vld [vmem:[%s20199_s1 + $0x1698] sm:$0xff]   ;;  %v16460_v53 = vld [vmem:[%s20199_s1 + $0x1620] sm:$0xff]   ;;  %v16465_v59 = vld [vmem:[%s20199_s1 + $0x16a8] sm:$0xff]  }
 0x2a7   :  { %15265 = vmatprep.subr.bf16.mxu1 %v16414_v56  ;;  %v16462_v56 = vld [vmem:[%s20199_s1 + $0x1668] sm:$0xff]  }
 0x2a8   :  { %15244 = vmatpush3.bf16.msra.mxu0 %v16415_v57  ;;  %v16464_v57 = vld [vmem:[%s20199_s1 + $0x1628] sm:$0xff]  }
 0x2a9   :  { %15245 = vmatprep.subr.bf16.mxu0 %v16417_v60 }
 0x2aa   :  { %15266 = vmatpush3.bf16.msra.mxu1 %v16416_v58 }
 0x2ab   :  { %15267 = vmatprep.subr.bf16.mxu1 %v16418_v61  ;;  %v16466_v61 = vld [vmem:[%s20199_s1 + $0x1670] sm:$0xff]  }
 0x2ac   :  { %15246 = vmatpush3.bf16.msra.mxu0 %v16419_v62 }
 0x2ad   :  { %15247 = vmatprep.subr.bf16.mxu0 %v16421_v0 }
 0x2ae   :  { %15268 = vmatpush3.bf16.msra.mxu1 %v16420_v63 }
 0x2af   :  { %15269 = vmatprep.subr.bf16.mxu1 %v16422_v1  ;;  %v16467_v1 = vld [vmem:[%s20199_s1 + $0x16f0] sm:$0xff]  }
 0x2b0   :  { %15248 = vmatpush3.bf16.msra.mxu0 %v16423_v2  ;;  %v16468_v2 = vld [vmem:[%s20199_s1 + $0x1630] sm:$0xff]  }
 0x2b1   :  { %15249 = vmatprep.subr.bf16.mxu0 %v16425_v4 }
 0x2b2   :  { %15270 = vmatpush3.bf16.msra.mxu1 %v16424_v3 }
 0x2b3   :  { %15271 = vmatprep.subr.bf16.mxu1 %v16426_v5 }
 0x2b4   :  { %15250 = vmatpush3.bf16.msra.mxu0 %v16427_v6 }
 0x2b5   :  { %15251 = vmatprep.subr.bf16.mxu0 %v16429_v8  ;;  %v16469_v8 = vld [vmem:[%s20199_s1 + $0x16b0] sm:$0xff]  }
 0x2b6   :  { %v14949_v11 = vpop.f32.mrb[56].mxu0  ;;  %15272 = vmatpush3.bf16.msra.mxu1 %v16428_v7 }
 0x2b7   :  { %v14950_v13 = vpop.f32.mrb[57].mxu0  ;;  %15273 = vmatprep.subr.bf16.mxu1 %v16430_v9 }
 0x2b8   :  { %v14971_v15 = vpop.f32.mrb[56].mxu1  ;;  %v14951_v16 = vadd.f32 %v14950_v13, %v14949_v11  ;;  %v14952_v17 = vpop.f32.mrb[58].mxu0  ;;  %15252 = vmatpush3.bf16.msra.mxu0 %v16431_v10  ;;  %v16470_v10 = vld [vmem:[%s20199_s1 + $0x1678] sm:$0xff]  }
 0x2b9   :  { %v14972_v20 = vpop.f32.mrb[57].mxu1  ;;  %v14953_v21 = vpop.f32.mrb[59].mxu0  ;;  %15253 = vmatprep.subr.bf16.mxu0 %v16433_v14  ;;  %v16472_v13 = vld [vmem:[%s20199_s1 + $0x1638] sm:$0xff]  }
 0x2ba   :  { %v5741_v22 = vadd.f32 %v14951_v16, %v19004_v36  ;;  %v14973_v23 = vadd.f32 %v14972_v20, %v14971_v15  ;;  %v14974_v24 = vpop.f32.mrb[58].mxu1  ;;  %15274 = vmatpush3.bf16.msra.mxu1 %v16432_v12  ;;  %v16445_v36 = vld [vmem:[%s20199_s1 + $0x1680] sm:$0xff]   ;;  %v16471_v12 = vld [vmem:[%s20199_s1 + $0x16f8] sm:$0xff]  }
 0x2bb   :  { %v14975_v26 = vpop.f32.mrb[59].mxu1  ;;  %15275 = vmatprep.subr.bf16.mxu1 %v16434_v18  ;;  %v12775_v14 = vld [vmem:[%s20198_s0 + $0x58] sm:$0xff]  ;;  %v16474_v16 = vld [vmem:[%s20199_s1 + $0x1740] sm:$0xff]  }
 0x2bc   :  { %v19112_v28 = vadd.f32 %v14973_v23, %v5741_v22  ;;  %15254 = vmatpush3.bf16.msra.mxu0 %v16435_v19  ;;  %v6542_v15 = vrot.slane %v12775_v14, %v16918_v41  ;;  %v6535_v17 = vcombine.high %v12775_v14, %v12775_v14  ;;  %v16473_v18 = vld [vmem:[%s20199_s1 + $0x16b8] sm:$0xff]   ;;  %v16475_v21 = vld [vmem:[%s20199_s1 + $0x17c0] sm:$0xff]   ;;  %v16511_v14 = vld [vmem:[%s20199_s1 + $0x1848] sm:$0xff]  }
 0x2bd   :  { %15255 = vmatprep.subr.bf16.mxu0 %v16437_v27  ;;  %v16476_v23 = vld [vmem:[%s20199_s1 + $0x1700] sm:$0xff]  }
 0x2be   :  { %15276 = vmatpush3.bf16.msra.mxu1 %v16436_v25  ;;  %v6550_v19 = vcombine.high %v6542_v15, %v6542_v15  ;;  %v6558_v20 = vrot.slane %v6542_v15, %v16918_v41  ;;  %v19236_v22 = vrot.slane %v6535_v17, %v16918_v41  ;;  %v16477_v25 = vld [vmem:[%s20199_s1 + $0x1780] sm:$0xff]   ;;  %v16512_v15 = vld [vmem:[%s20199_s1 + $0x18c8] sm:$0xff]  }
 0x2bf   :  { %15277 = vmatprep.subr.bf16.mxu1 %v16438_v29  ;;  %v16514_v17 = vld [vmem:[%s20199_s1 + $0x1888] sm:$0xff]  }
 0x2c0   :  { %15256 = vmatpush3.bf16.msra.mxu0 %v16439_v30  ;;  %v6572_v24 = vrot.slane %v6550_v19, %v16918_v41  ;;  %v6551_v26 = vcombine.high %v19236_v22, %v19236_v22  ;;  %v6580_v27 = vcombine.high %v6558_v20, %v6558_v20  ;;  %v16479_v30 = vld [vmem:[%s20199_s1 + $0x17c8] sm:$0xff]   ;;  %v16516_v19 = vld [vmem:[%s20199_s1 + $0x18d0] sm:$0xff]  }
 0x2c1   :  { %15285 = vmatprep.subr.bf16.mxu0 %v16442_v33  ;;  %v16481_v33 = vld [vmem:[%s20199_s1 + $0x1788] sm:$0xff]  }
 0x2c2   :  { %15278 = vmatpush3.bf16.msra.mxu1 %v16440_v31  ;;  %v6582_v29 = vcombine.high %v6572_v24, %v6572_v24  ;;  %v6579_v31 = vrot.slane %v6551_v26, %v16918_v41  ;;  %v16523_v26 = vld [vmem:[%s20199_s1 + $0x1860] sm:$0xff]  }
 0x2c3   :  { %8585 = vmatmul.mubr.bf16.vlgmr.msra.gmra.mrb[84].mxu0 %v6516_v32  ;;  %15307 = vmatprep.subr.bf16.mxu1 %v16443_v34  ;;  %v16480_v32 = vld [vmem:[%s20199_s1 + $0x1708] sm:$0xff]  }
 0x2c4   :  { %15286 = vmatpush3.bf16.msra.mxu0 %v16444_v35  ;;  %8664 = vmatprep.mubr.bf16.mxu0 %v6572_v24  ;;  %v6583_v34 = vcombine.high %v6579_v31, %v6579_v31  ;;  %v16482_v35 = vld [vmem:[%s20199_s1 + $0x1750] sm:$0xff]   ;;  %v16521_v24 = vld [vmem:[%s20199_s1 + $0x1818] sm:$0xff]  }
 0x2c5   :  { %8625 = vmatmul.mubr.bf16.vlgmr.msra.gmra.mrb[84].mxu1 %v6532_v37  ;;  %15287 = vmatprep.subr.bf16.mxu0 %v16446_v38  ;;  %v16484_v37 = vld [vmem:[%s20199_s1 + $0x1710] sm:$0xff]  }
 0x2c6   :  { %15308 = vmatpush3.bf16.msra.mxu1 %v16445_v36  ;;  %8704 = vmatprep.mubr.bf16.mxu1 %v6582_v29  ;;  %v16483_v36 = vld [vmem:[%s20199_s1 + $0x17d0] sm:$0xff]   ;;  %v16526_v29 = vld [vmem:[%s20199_s1 + $0x18a0] sm:$0xff]  }
 0x2c7   :  { %15309 = vmatprep.subr.bf16.mxu1 %v16447_v39  ;;  %v16485_v38 = vld [vmem:[%s20199_s1 + $0x1790] sm:$0xff]   ;;  %v16486_v39 = vld [vmem:[%s20199_s1 + $0x1758] sm:$0xff]  }
 0x2c8   :  { %15288 = vmatpush3.bf16.msra.mxu0 %v16448_v40  ;;  %v16487_v40 = vld [vmem:[%s20199_s1 + $0x17d8] sm:$0xff]  }
 0x2c9   :  { %15289 = vmatprep.subr.bf16.mxu0 %v16450_v43  ;;  %v16489_v43 = vld [vmem:[%s20199_s1 + $0x1798] sm:$0xff]  }
 0x2ca   :  { %15310 = vmatpush3.bf16.msra.mxu1 %v16449_v42  ;;  %v16488_v42 = vld [vmem:[%s20199_s1 + $0x1718] sm:$0xff]  }
 0x2cb   :  { %15311 = vmatprep.subr.bf16.mxu1 %v16451_v44  ;;  %v16490_v44 = vld [vmem:[%s20199_s1 + $0x1760] sm:$0xff]  }
 0x2cc   :  { %15290 = vmatpush3.bf16.msra.mxu0 %v16452_v45  ;;  %v16491_v45 = vld [vmem:[%s20199_s1 + $0x17e0] sm:$0xff]  }
 0x2cd   :  { %15291 = vmatprep.subr.bf16.mxu0 %v16454_v47  ;;  %v16493_v47 = vld [vmem:[%s20199_s1 + $0x17a0] sm:$0xff]  }
 0x2ce   :  { %15312 = vmatpush3.bf16.msra.mxu1 %v16453_v46  ;;  %v16492_v46 = vld [vmem:[%s20199_s1 + $0x1720] sm:$0xff]  }
 0x2cf   :  { %15313 = vmatprep.subr.bf16.mxu1 %v16455_v48  ;;  %v16494_v48 = vld [vmem:[%s20199_s1 + $0x1768] sm:$0xff]  }
 0x2d0   :  { %15292 = vmatpush3.bf16.msra.mxu0 %v16456_v49  ;;  %v16495_v49 = vld [vmem:[%s20199_s1 + $0x17e8] sm:$0xff]  }
 0x2d1   :  { %15293 = vmatprep.subr.bf16.mxu0 %v16458_v51  ;;  %v16496_v51 = vld [vmem:[%s20199_s1 + $0x1728] sm:$0xff]  }
 0x2d2   :  { %15314 = vmatpush3.bf16.msra.mxu1 %v16457_v50 }
 0x2d3   :  { %15315 = vmatprep.subr.bf16.mxu1 %v16459_v52 }
 0x2d4   :  { %15294 = vmatpush3.bf16.msra.mxu0 %v16460_v53  ;;  %v16497_v53 = vld [vmem:[%s20199_s1 + $0x17a8] sm:$0xff]  }
 0x2d5   :  { %15295 = vmatprep.subr.bf16.mxu0 %v16462_v56 }
 0x2d6   :  { %v14993_v58 = vpop.f32.mrb[60].mxu0  ;;  %15316 = vmatpush3.bf16.msra.mxu1 %v16461_v55 }
 0x2d7   :  { %v14994_v60 = vpop.f32.mrb[61].mxu0  ;;  %15317 = vmatprep.subr.bf16.mxu1 %v16463_v54 }
 0x2d8   :  { %v15015_v62 = vpop.f32.mrb[60].mxu1  ;;  %v14995_v63 = vadd.f32 %v14994_v60, %v14993_v58  ;;  %v14996_v0 = vpop.f32.mrb[62].mxu0  ;;  %15296 = vmatpush3.bf16.msra.mxu0 %v16464_v57  ;;  %v16498_v57 = vld [vmem:[%s20199_s1 + $0x1770] sm:$0xff]  }
 0x2d9   :  { %v15016_v3 = vpop.f32.mrb[61].mxu1  ;;  %v14997_v4 = vpop.f32.mrb[63].mxu0  ;;  %15297 = vmatprep.subr.bf16.mxu0 %v16466_v61  ;;  %v16499_v58 = vld [vmem:[%s20199_s1 + $0x17f0] sm:$0xff]  }
 0x2da   :  { %v5821_v5 = vadd.f32 %v14995_v63, %v19112_v28  ;;  %v15017_v6 = vadd.f32 %v15016_v3, %v15015_v62  ;;  %v15018_v7 = vpop.f32.mrb[62].mxu1  ;;  %15318 = vmatpush3.bf16.msra.mxu1 %v16465_v59  ;;  %v16478_v28 = vld [vmem:[%s20199_s1 + $0x1748] sm:$0xff]   ;;  %v16500_v63 = vld [vmem:[%s20199_s1 + $0x1730] sm:$0xff]   ;;  %v16502_v3 = vld [vmem:[%s20199_s1 + $0x1778] sm:$0xff]  }
 0x2db   :  { %v15019_v9 = vpop.f32.mrb[63].mxu1  ;;  %15319 = vmatprep.subr.bf16.mxu1 %v16467_v1  ;;  %v16501_v1 = vld [vmem:[%s20199_s1 + $0x17b0] sm:$0xff]   ;;  %v16503_v4 = vld [vmem:[%s20199_s1 + $0x17f8] sm:$0xff]   ;;  %v6565_v7 = vrot.slane %v19236_v22, %v16918_v41 }
 0x2dc   :  { %v19213_v11 = vadd.f32 %v15017_v6, %v5821_v5  ;;  %15298 = vmatpush3.bf16.msra.mxu0 %v16468_v2  ;;  %v16504_v5 = vld [vmem:[%s20199_s1 + $0x1738] sm:$0xff]   ;;  %v16508_v9 = vld [vmem:[%s20199_s1 + $0x18c0] sm:$0xff]  }
 0x2dd   :  { %15299 = vmatprep.subr.bf16.mxu0 %v16470_v10  ;;  %v16505_v6 = vld [vmem:[%s20199_s1 + $0x17b8] sm:$0xff]   ;;  %v16509_v10 = vld [vmem:[%s20199_s1 + $0x1800] sm:$0xff]  }
 0x2de   :  { %15320 = vmatpush3.bf16.msra.mxu1 %v16469_v8  ;;  %v16507_v8 = vld [vmem:[%s20199_s1 + $0x1840] sm:$0xff]   ;;  %v16519_v22 = vld [vmem:[%s20199_s1 + $0x1858] sm:$0xff]  }
 0x2df   :  { %15321 = vmatprep.subr.bf16.mxu1 %v16471_v12  ;;  %v16510_v12 = vld [vmem:[%s20199_s1 + $0x1880] sm:$0xff]  }
 0x2e0   :  { %15300 = vmatpush3.bf16.msra.mxu0 %v16472_v13  ;;  %v6581_v13 = vcombine.high %v6565_v7, %v6565_v7 }
 0x2e1   :  { %15329 = vmatprep.subr.bf16.mxu0 %v16474_v16  ;;  %v16513_v16 = vld [vmem:[%s20199_s1 + $0x1808] sm:$0xff]  }
 0x2e2   :  { %15322 = vmatpush3.bf16.msra.mxu1 %v16473_v18  ;;  %v16515_v18 = vld [vmem:[%s20199_s1 + $0x1850] sm:$0xff]  }
 0x2e3   :  { %15351 = vmatprep.subr.bf16.mxu1 %v16475_v21  ;;  %8665 = vmatmul.mubr.bf16.vlgmr.msra.gmra.mrb[88].mxu0 %v6558_v20  ;;  %v16517_v20 = vld [vmem:[%s20199_s1 + $0x1810] sm:$0xff]  }
 0x2e4   :  { %15330 = vmatpush3.bf16.msra.mxu0 %v16476_v23  ;;  %8744 = vmatprep.mubr.bf16.mxu0 %v6579_v31  ;;  %v16518_v21 = vld [vmem:[%s20199_s1 + $0x1890] sm:$0xff]   ;;  %v16520_v23 = vld [vmem:[%s20199_s1 + $0x18d8] sm:$0xff]   ;;  %v16528_v31 = vld [vmem:[%s20199_s1 + $0x18e8] sm:$0xff]  }
 0x2e5   :  { %8705 = vmatmul.mubr.bf16.vlgmr.msra.gmra.mrb[88].mxu1 %v6580_v27  ;;  %15331 = vmatprep.subr.bf16.mxu0 %v16478_v28  ;;  %v16524_v27 = vld [vmem:[%s20199_s1 + $0x18e0] sm:$0xff]  }
 0x2e6   :  { %15352 = vmatpush3.bf16.msra.mxu1 %v16477_v25  ;;  %8784 = vmatprep.mubr.bf16.mxu1 %v6583_v34  ;;  %v16522_v25 = vld [vmem:[%s20199_s1 + $0x1898] sm:$0xff]   ;;  %v16525_v28 = vld [vmem:[%s20199_s1 + $0x1820] sm:$0xff]  }
 0x2e7   :  { %15353 = vmatprep.subr.bf16.mxu1 %v16479_v30  ;;  %v16527_v30 = vld [vmem:[%s20199_s1 + $0x1868] sm:$0xff]  }
 0x2e8   :  { %15332 = vmatpush3.bf16.msra.mxu0 %v16480_v32 }
 0x2e9   :  { %15333 = vmatprep.subr.bf16.mxu0 %v16482_v35  ;;  %v16530_v35 = vld [vmem:[%s20199_s1 + $0x18a8] sm:$0xff]  }
 0x2ea   :  { %15354 = vmatpush3.bf16.msra.mxu1 %v16481_v33  ;;  %v16529_v33 = vld [vmem:[%s20199_s1 + $0x1828] sm:$0xff]  }
 0x2eb   :  { %15355 = vmatprep.subr.bf16.mxu1 %v16483_v36 }
 0x2ec   :  { %15334 = vmatpush3.bf16.msra.mxu0 %v16484_v37 }
 0x2ed   :  { %15335 = vmatprep.subr.bf16.mxu0 %v16486_v39  ;;  %v16531_v39 = vld [vmem:[%s20199_s1 + $0x1870] sm:$0xff]  }
 0x2ee   :  { %15356 = vmatpush3.bf16.msra.mxu1 %v16485_v38 }
 0x2ef   :  { %15357 = vmatprep.subr.bf16.mxu1 %v16487_v40  ;;  %v16532_v40 = vld [vmem:[%s20199_s1 + $0x18f0] sm:$0xff]  }
 0x2f0   :  { %15336 = vmatpush3.bf16.msra.mxu0 %v16488_v42 }
 0x2f1   :  { %15337 = vmatprep.subr.bf16.mxu0 %v16490_v44 }
 0x2f2   :  { %15358 = vmatpush3.bf16.msra.mxu1 %v16489_v43 }
 0x2f3   :  { %15359 = vmatprep.subr.bf16.mxu1 %v16491_v45 }
 0x2f4   :  { %15338 = vmatpush3.bf16.msra.mxu0 %v16492_v46 }
 0x2f5   :  { %15339 = vmatprep.subr.bf16.mxu0 %v16494_v48 }
 0x2f6   :  { %v15037_v50 = vpop.f32.mrb[64].mxu0  ;;  %15360 = vmatpush3.bf16.msra.mxu1 %v16493_v47  ;;  %v16533_v47 = vld [vmem:[%s20199_s1 + $0x1830] sm:$0xff]  }
 0x2f7   :  { %v15038_v52 = vpop.f32.mrb[65].mxu0  ;;  %15361 = vmatprep.subr.bf16.mxu1 %v16495_v49  ;;  %v16534_v49 = vld [vmem:[%s20199_s1 + $0x18b0] sm:$0xff]  }
 0x2f8   :  { %v15059_v55 = vpop.f32.mrb[64].mxu1  ;;  %v15039_v56 = vadd.f32 %v15038_v52, %v15037_v50  ;;  %v15040_v54 = vpop.f32.mrb[66].mxu0  ;;  %15340 = vmatpush3.bf16.msra.mxu0 %v16496_v51  ;;  %v16535_v51 = vld [vmem:[%s20199_s1 + $0x1878] sm:$0xff]  }
 0x2f9   :  { %v15060_v59 = vpop.f32.mrb[65].mxu1  ;;  %v15041_v60 = vpop.f32.mrb[67].mxu0  ;;  %15341 = vmatprep.subr.bf16.mxu0 %v16498_v57  ;;  %v16536_v52 = vld [vmem:[%s20199_s1 + $0x18f8] sm:$0xff]   ;;  %v16539_v54 = vld [vmem:[%s20199_s1 + $0x1940] sm:$0xff]  }
 0x2fa   :  { %v15061_v61 = vadd.f32 %v15060_v59, %v15059_v55  ;;  %v15062_v62 = vpop.f32.mrb[66].mxu1  ;;  %15362 = vmatpush3.bf16.msra.mxu1 %v16497_v53  ;;  %v16537_v53 = vld [vmem:[%s20199_s1 + $0x1838] sm:$0xff]   ;;  %v13544_v55 = vld [vmem:[%s20198_s0 + $0x60] sm:$0xff] }
 0x2fb   :  { %v15063_v0 = vpop.f32.mrb[67].mxu1  ;;  %15363 = vmatprep.subr.bf16.mxu1 %v16499_v58  ;;  %v9315_v57 = vcombine.high %v13544_v55, %v13544_v55  ;;  %v16538_v58 = vld [vmem:[%s20199_s1 + $0x18b8] sm:$0xff]  }
 0x2fc   :  { %v19320_v2 = vadd.f32 %v15061_v61, %v15039_v56  ;;  %15342 = vmatpush3.bf16.msra.mxu0 %v16500_v63  ;;  %v9322_v56 = vrot.slane %v13544_v55, %v16918_v41  ;;  %v16540_v61 = vld [vmem:[%s20199_s1 + $0x19c0] sm:$0xff]  }
 0x2fd   :  { %15343 = vmatprep.subr.bf16.mxu0 %v16502_v3  ;;  %v19447_v62 = vrot.slane %v9315_v57, %v16918_v41  ;;  %v16541_v63 = vld [vmem:[%s20199_s1 + $0x1900] sm:$0xff]   ;;  %v16578_v57 = vld [vmem:[%s20199_s1 + $0x1a08] sm:$0xff]  }
 0x2fe   :  { %15364 = vmatpush3.bf16.msra.mxu1 %v16501_v1  ;;  %v9330_v59 = vcombine.high %v9322_v56, %v9322_v56  ;;  %v9338_v60 = vrot.slane %v9322_v56, %v16918_v41  ;;  %v16542_v1 = vld [vmem:[%s20199_s1 + $0x1980] sm:$0xff]   ;;  %v16576_v56 = vld [vmem:[%s20199_s1 + $0x1a48] sm:$0xff]  }
 0x2ff   :  { %15365 = vmatprep.subr.bf16.mxu1 %v16503_v4  ;;  %v16543_v4 = vld [vmem:[%s20199_s1 + $0x1948] sm:$0xff]  }
 0x300   :  { %15344 = vmatpush3.bf16.msra.mxu0 %v16504_v5  ;;  %v9352_v0 = vrot.slane %v9330_v59, %v16918_v41  ;;  %v9360_v3 = vcombine.high %v9338_v60, %v9338_v60  ;;  %v16580_v59 = vld [vmem:[%s20199_s1 + $0x1a50] sm:$0xff]  }
 0x301   :  { %15373 = vmatprep.subr.bf16.mxu0 %v16507_v8  ;;  %v16545_v8 = vld [vmem:[%s20199_s1 + $0x1908] sm:$0xff]  }
 0x302   :  { %15366 = vmatpush3.bf16.msra.mxu1 %v16505_v6  ;;  %v9362_v5 = vcombine.high %v9352_v0, %v9352_v0  ;;  %v16544_v6 = vld [vmem:[%s20199_s1 + $0x19c8] sm:$0xff]  }
 0x303   :  { %8745 = vmatmul.mubr.bf16.vlgmr.msra.gmra.mrb[92].mxu0 %v6565_v7  ;;  %15395 = vmatprep.subr.bf16.mxu1 %v16508_v9  ;;  %v16546_v9 = vld [vmem:[%s20199_s1 + $0x1988] sm:$0xff]  }
 0x304   :  { %15374 = vmatpush3.bf16.msra.mxu0 %v16509_v10  ;;  %11111 = vmatprep.mubr.bf16.mxu0 %v9352_v0  ;;  %v16585_v0 = vld [vmem:[%s20199_s1 + $0x1ad8] sm:$0xff]  }
 0x305   :  { %8785 = vmatmul.mubr.bf16.vlgmr.msra.gmra.mrb[92].mxu1 %v6581_v13  ;;  %15375 = vmatprep.subr.bf16.mxu0 %v16511_v14  ;;  %v16548_v13 = vld [vmem:[%s20199_s1 + $0x19d0] sm:$0xff]  }
 0x306   :  { %15396 = vmatpush3.bf16.msra.mxu1 %v16510_v12  ;;  %11151 = vmatprep.mubr.bf16.mxu1 %v9362_v5  ;;  %v16547_v12 = vld [vmem:[%s20199_s1 + $0x1950] sm:$0xff]   ;;  %v16590_v5 = vld [vmem:[%s20199_s1 + $0x1a20] sm:$0xff]  }
 0x307   :  { %15397 = vmatprep.subr.bf16.mxu1 %v16512_v15  ;;  %v16549_v14 = vld [vmem:[%s20199_s1 + $0x1910] sm:$0xff]  }
 0x308   :  { %15376 = vmatpush3.bf16.msra.mxu0 %v16513_v16  ;;  %v16550_v15 = vld [vmem:[%s20199_s1 + $0x1990] sm:$0xff]   ;;  %v16551_v16 = vld [vmem:[%s20199_s1 + $0x1958] sm:$0xff]  }
 0x309   :  { %15377 = vmatprep.subr.bf16.mxu0 %v16515_v18  ;;  %v16553_v18 = vld [vmem:[%s20199_s1 + $0x1918] sm:$0xff]  }
 0x30a   :  { %15398 = vmatpush3.bf16.msra.mxu1 %v16514_v17  ;;  %v16552_v17 = vld [vmem:[%s20199_s1 + $0x19d8] sm:$0xff]  }
 0x30b   :  { %15399 = vmatprep.subr.bf16.mxu1 %v16516_v19  ;;  %v16554_v19 = vld [vmem:[%s20199_s1 + $0x1998] sm:$0xff]  }
 0x30c   :  { %15378 = vmatpush3.bf16.msra.mxu0 %v16517_v20  ;;  %v16555_v20 = vld [vmem:[%s20199_s1 + $0x1960] sm:$0xff]  }
 0x30d   :  { %15379 = vmatprep.subr.bf16.mxu0 %v16519_v22  ;;  %v16557_v22 = vld [vmem:[%s20199_s1 + $0x1920] sm:$0xff]  }
 0x30e   :  { %15400 = vmatpush3.bf16.msra.mxu1 %v16518_v21  ;;  %v16556_v21 = vld [vmem:[%s20199_s1 + $0x19e0] sm:$0xff]  }
 0x30f   :  { %15401 = vmatprep.subr.bf16.mxu1 %v16520_v23  ;;  %v16558_v23 = vld [vmem:[%s20199_s1 + $0x19a0] sm:$0xff]  }
 0x310   :  { %15380 = vmatpush3.bf16.msra.mxu0 %v16521_v24  ;;  %v16559_v24 = vld [vmem:[%s20199_s1 + $0x1968] sm:$0xff]  }
 0x311   :  { %15381 = vmatprep.subr.bf16.mxu0 %v16523_v26 }
 0x312   :  { %15402 = vmatpush3.bf16.msra.mxu1 %v16522_v25  ;;  %v16560_v25 = vld [vmem:[%s20199_s1 + $0x19e8] sm:$0xff]  }
 0x313   :  { %15403 = vmatprep.subr.bf16.mxu1 %v16524_v27  ;;  %v16561_v27 = vld [vmem:[%s20199_s1 + $0x1928] sm:$0xff]  }
 0x314   :  { %15382 = vmatpush3.bf16.msra.mxu0 %v16525_v28 }
 0x315   :  { %15383 = vmatprep.subr.bf16.mxu0 %v16527_v30 }
 0x316   :  { %v15081_v32 = vpop.f32.mrb[68].mxu0  ;;  %15404 = vmatpush3.bf16.msra.mxu1 %v16526_v29  ;;  %v16562_v29 = vld [vmem:[%s20199_s1 + $0x19a8] sm:$0xff]  }
 0x317   :  { %v15082_v34 = vpop.f32.mrb[69].mxu0  ;;  %15405 = vmatprep.subr.bf16.mxu1 %v16528_v31 }
 0x318   :  { %v15103_v36 = vpop.f32.mrb[68].mxu1  ;;  %v15083_v37 = vadd.f32 %v15082_v34, %v15081_v32  ;;  %v15084_v38 = vpop.f32.mrb[70].mxu0  ;;  %15384 = vmatpush3.bf16.msra.mxu0 %v16529_v33  ;;  %v16563_v33 = vld [vmem:[%s20199_s1 + $0x1970] sm:$0xff]  }
 0x319   :  { %v15104_v42 = vpop.f32.mrb[69].mxu1  ;;  %v15085_v43 = vpop.f32.mrb[71].mxu0  ;;  %15385 = vmatprep.subr.bf16.mxu0 %v16531_v39  ;;  %v16564_v34 = vld [vmem:[%s20199_s1 + $0x19f0] sm:$0xff]  }
 0x31a   :  { %v8267_v44 = vadd.f32 %v15083_v37, %v19320_v2  ;;  %v15105_v45 = vadd.f32 %v15104_v42, %v15103_v36  ;;  %v15106_v46 = vpop.f32.mrb[70].mxu1  ;;  %15406 = vmatpush3.bf16.msra.mxu1 %v16530_v35  ;;  %v9331_v2 = vcombine.high %v19447_v62, %v19447_v62  ;;  %v16566_v43 = vld [vmem:[%s20199_s1 + $0x19b0] sm:$0xff]  }
 0x31b   :  { %v15107_v48 = vpop.f32.mrb[71].mxu1  ;;  %15407 = vmatprep.subr.bf16.mxu1 %v16532_v40  ;;  %v16565_v40 = vld [vmem:[%s20199_s1 + $0x1930] sm:$0xff]   ;;  %v16568_v46 = vld [vmem:[%s20199_s1 + $0x19f8] sm:$0xff]  }
 0x31c   :  { %v19421_v50 = vadd.f32 %v15105_v45, %v8267_v44  ;;  %15386 = vmatpush3.bf16.msra.mxu0 %v16533_v47  ;;  %v9359_v7 = vrot.slane %v9331_v2, %v16918_v41  ;;  %v16567_v45 = vld [vmem:[%s20199_s1 + $0x1978] sm:$0xff]  }
 0x31d   :  { %15387 = vmatprep.subr.bf16.mxu0 %v16535_v51  ;;  %v16569_v47 = vld [vmem:[%s20199_s1 + $0x1938] sm:$0xff]   ;;  %v16573_v51 = vld [vmem:[%s20199_s1 + $0x1ac0] sm:$0xff]  }
 0x31e   :  { %15408 = vmatpush3.bf16.msra.mxu1 %v16534_v49  ;;  %v9363_v10 = vcombine.high %v9359_v7, %v9359_v7  ;;  %v16570_v48 = vld [vmem:[%s20199_s1 + $0x19b8] sm:$0xff]   ;;  %v9345_v49 = vrot.slane %v19447_v62, %v16918_v41  ;;  %v16583_v62 = vld [vmem:[%s20199_s1 + $0x1a90] sm:$0xff]  }
 0x31f   :  { %15409 = vmatprep.subr.bf16.mxu1 %v16536_v52  ;;  %v16574_v52 = vld [vmem:[%s20199_s1 + $0x1a00] sm:$0xff]   ;;  %v16587_v2 = vld [vmem:[%s20199_s1 + $0x1a98] sm:$0xff]  }
 0x320   :  { %15388 = vmatpush3.bf16.msra.mxu0 %v16537_v53  ;;  %v16575_v53 = vld [vmem:[%s20199_s1 + $0x1a80] sm:$0xff]   ;;  %v9361_v55 = vcombine.high %v9345_v49, %v9345_v49 }
 0x321   :  { %15417 = vmatprep.subr.bf16.mxu0 %v16539_v54  ;;  %v16577_v54 = vld [vmem:[%s20199_s1 + $0x1ac8] sm:$0xff]  }
 0x322   :  { %15410 = vmatpush3.bf16.msra.mxu1 %v16538_v58  ;;  %v16579_v58 = vld [vmem:[%s20199_s1 + $0x1a88] sm:$0xff]  }
 0x323   :  { %15439 = vmatprep.subr.bf16.mxu1 %v16540_v61  ;;  %11112 = vmatmul.mubr.bf16.vlgmr.msra.gmra.mrb[96].mxu0 %v9338_v60  ;;  %v16581_v60 = vld [vmem:[%s20199_s1 + $0x1ad0] sm:$0xff]  }
 0x324   :  { %15418 = vmatpush3.bf16.msra.mxu0 %v16541_v63  ;;  %11191 = vmatprep.mubr.bf16.mxu0 %v9359_v7  ;;  %v16582_v61 = vld [vmem:[%s20199_s1 + $0x1a10] sm:$0xff]   ;;  %v16584_v63 = vld [vmem:[%s20199_s1 + $0x1a58] sm:$0xff]   ;;  %v16592_v7 = vld [vmem:[%s20199_s1 + $0x1a68] sm:$0xff]  }
 0x325   :  { %11152 = vmatmul.mubr.bf16.vlgmr.msra.gmra.mrb[96].mxu1 %v9360_v3  ;;  %15419 = vmatprep.subr.bf16.mxu0 %v16543_v4  ;;  %v16588_v3 = vld [vmem:[%s20199_s1 + $0x1a60] sm:$0xff]  }
 0x326   :  { %15440 = vmatpush3.bf16.msra.mxu1 %v16542_v1  ;;  %11231 = vmatprep.mubr.bf16.mxu1 %v9363_v10  ;;  %v16586_v1 = vld [vmem:[%s20199_s1 + $0x1a18] sm:$0xff]   ;;  %v16589_v4 = vld [vmem:[%s20199_s1 + $0x1ae0] sm:$0xff]   ;;  %v16594_v10 = vld [vmem:[%s20199_s1 + $0x1a28] sm:$0xff]  }
 0x327   :  { %15441 = vmatprep.subr.bf16.mxu1 %v16544_v6  ;;  %v16591_v6 = vld [vmem:[%s20199_s1 + $0x1aa0] sm:$0xff]  }
 0x328   :  { %15420 = vmatpush3.bf16.msra.mxu0 %v16545_v8  ;;  %v16593_v8 = vld [vmem:[%s20199_s1 + $0x1ae8] sm:$0xff]  }
 0x329   :  { %15421 = vmatprep.subr.bf16.mxu0 %v16547_v12 }
 0x32a   :  { %15442 = vmatpush3.bf16.msra.mxu1 %v16546_v9 }
 0x32b   :  { %15443 = vmatprep.subr.bf16.mxu1 %v16548_v13  ;;  %v16595_v13 = vld [vmem:[%s20199_s1 + $0x1aa8] sm:$0xff]  }
 0x32c   :  { %15422 = vmatpush3.bf16.msra.mxu0 %v16549_v14 }
 0x32d   :  { %15423 = vmatprep.subr.bf16.mxu0 %v16551_v16 }
 0x32e   :  { %15444 = vmatpush3.bf16.msra.mxu1 %v16550_v15 }
 0x32f   :  { %15445 = vmatprep.subr.bf16.mxu1 %v16552_v17  ;;  %v16596_v17 = vld [vmem:[%s20199_s1 + $0x1a70] sm:$0xff]  }
 0x330   :  { %15424 = vmatpush3.bf16.msra.mxu0 %v16553_v18  ;;  %v16597_v18 = vld [vmem:[%s20199_s1 + $0x1af0] sm:$0xff]  }
 0x331   :  { %15425 = vmatprep.subr.bf16.mxu0 %v16555_v20 }
 0x332   :  { %15446 = vmatpush3.bf16.msra.mxu1 %v16554_v19 }
 0x333   :  { %15447 = vmatprep.subr.bf16.mxu1 %v16556_v21 }
 0x334   :  { %15426 = vmatpush3.bf16.msra.mxu0 %v16557_v22 }
 0x335   :  { %15427 = vmatprep.subr.bf16.mxu0 %v16559_v24  ;;  %v16598_v24 = vld [vmem:[%s20199_s1 + $0x1a30] sm:$0xff]  }
 0x336   :  { %v15125_v26 = vpop.f32.mrb[72].mxu0  ;;  %15448 = vmatpush3.bf16.msra.mxu1 %v16558_v23 }
 0x337   :  { %v15126_v28 = vpop.f32.mrb[73].mxu0  ;;  %15449 = vmatprep.subr.bf16.mxu1 %v16560_v25 }
 0x338   :  { %v15147_v30 = vpop.f32.mrb[72].mxu1  ;;  %v15127_v31 = vadd.f32 %v15126_v28, %v15125_v26  ;;  %v15128_v32 = vpop.f32.mrb[74].mxu0  ;;  %15428 = vmatpush3.bf16.msra.mxu0 %v16561_v27  ;;  %v16599_v26 = vld [vmem:[%s20199_s1 + $0x1ab0] sm:$0xff]   ;;  %v16600_v28 = vld [vmem:[%s20199_s1 + $0x1a78] sm:$0xff]  }
 0x339   :  { %v15148_v35 = vpop.f32.mrb[73].mxu1  ;;  %v15129_v36 = vpop.f32.mrb[75].mxu0  ;;  %15429 = vmatprep.subr.bf16.mxu0 %v16563_v33  ;;  %v16604_v33 = vld [vmem:[%s20199_s1 + $0x1b40] sm:$0xff]  }
 0x33a   :  { %v8347_v37 = vadd.f32 %v15127_v31, %v19421_v50  ;;  %v15149_v38 = vadd.f32 %v15148_v35, %v15147_v30  ;;  %v15150_v39 = vpop.f32.mrb[74].mxu1  ;;  %15450 = vmatpush3.bf16.msra.mxu1 %v16562_v29  ;;  %v16572_v50 = vld [vmem:[%s20199_s1 + $0x1a40] sm:$0xff]   ;;  %v16601_v29 = vld [vmem:[%s20199_s1 + $0x1af8] sm:$0xff]   ;;  %v13545_v31 = vld [vmem:[%s20198_s0 + $0x68] sm:$0xff] }
 0x33b   :  { %v15151_v42 = vpop.f32.mrb[75].mxu1  ;;  %15451 = vmatprep.subr.bf16.mxu1 %v16564_v34  ;;  %v16602_v30 = vld [vmem:[%s20199_s1 + $0x1a38] sm:$0xff]   ;;  %v9371_v32 = vrot.slane %v13545_v31, %v16918_v41  ;;  %v9364_v34 = vcombine.high %v13545_v31, %v13545_v31 }
 0x33c   :  { %v19532_v44 = vadd.f32 %v15149_v38, %v8347_v37  ;;  %15430 = vmatpush3.bf16.msra.mxu0 %v16565_v40  ;;  %v16603_v35 = vld [vmem:[%s20199_s1 + $0x1ab8] sm:$0xff]   ;;  %v16605_v38 = vld [vmem:[%s20199_s1 + $0x1bc0] sm:$0xff]  }
 0x33d   :  { %15431 = vmatprep.subr.bf16.mxu0 %v16567_v45  ;;  %v9379_v36 = vcombine.high %v9371_v32, %v9371_v32  ;;  %v9387_v37 = vrot.slane %v9371_v32, %v16918_v41  ;;  %v19659_v39 = vrot.slane %v9364_v34, %v16918_v41  ;;  %v16606_v40 = vld [vmem:[%s20199_s1 + $0x1b00] sm:$0xff]   ;;  %v16641_v32 = vld [vmem:[%s20199_s1 + $0x1c48] sm:$0xff]  }
 0x33e   :  { %15452 = vmatpush3.bf16.msra.mxu1 %v16566_v43  ;;  %v16607_v43 = vld [vmem:[%s20199_s1 + $0x1b80] sm:$0xff]   ;;  %v16643_v34 = vld [vmem:[%s20199_s1 + $0x1c08] sm:$0xff]  }
 0x33f   :  { %15453 = vmatprep.subr.bf16.mxu1 %v16568_v46  ;;  %v9401_v42 = vrot.slane %v9379_v36, %v16918_v41  ;;  %v9409_v45 = vcombine.high %v9387_v37, %v9387_v37  ;;  %v16608_v46 = vld [vmem:[%s20199_s1 + $0x1b48] sm:$0xff]   ;;  %v16645_v36 = vld [vmem:[%s20199_s1 + $0x1c50] sm:$0xff]  }
 0x340   :  { %15432 = vmatpush3.bf16.msra.mxu0 %v16569_v47 }
 0x341   :  { %15461 = vmatprep.subr.bf16.mxu0 %v16572_v50  ;;  %v9411_v47 = vcombine.high %v9401_v42, %v9401_v42  ;;  %v16610_v50 = vld [vmem:[%s20199_s1 + $0x1b08] sm:$0xff]  }
 0x342   :  { %15454 = vmatpush3.bf16.msra.mxu1 %v16570_v48  ;;  %v16609_v48 = vld [vmem:[%s20199_s1 + $0x1bc8] sm:$0xff]  }
 0x343   :  { %11192 = vmatmul.mubr.bf16.vlgmr.msra.gmra.mrb[100].mxu0 %v9345_v49  ;;  %15483 = vmatprep.subr.bf16.mxu1 %v16573_v51  ;;  %v16611_v51 = vld [vmem:[%s20199_s1 + $0x1b88] sm:$0xff]  }
 0x344   :  { %15462 = vmatpush3.bf16.msra.mxu0 %v16574_v52  ;;  %11271 = vmatprep.mubr.bf16.mxu0 %v9401_v42  ;;  %v16650_v42 = vld [vmem:[%s20199_s1 + $0x1cd8] sm:$0xff]  }
 0x345   :  { %11232 = vmatmul.mubr.bf16.vlgmr.msra.gmra.mrb[100].mxu1 %v9361_v55  ;;  %15463 = vmatprep.subr.bf16.mxu0 %v16576_v56  ;;  %v16613_v55 = vld [vmem:[%s20199_s1 + $0x1bd0] sm:$0xff]  }
 0x346   :  { %15484 = vmatpush3.bf16.msra.mxu1 %v16575_v53  ;;  %11311 = vmatprep.mubr.bf16.mxu1 %v9411_v47  ;;  %v16612_v53 = vld [vmem:[%s20199_s1 + $0x1b50] sm:$0xff]   ;;  %v16655_v47 = vld [vmem:[%s20199_s1 + $0x1c20] sm:$0xff]  }
 0x347   :  { %15485 = vmatprep.subr.bf16.mxu1 %v16577_v54  ;;  %v16614_v56 = vld [vmem:[%s20199_s1 + $0x1b10] sm:$0xff]  }
 0x348   :  { %15464 = vmatpush3.bf16.msra.mxu0 %v16578_v57  ;;  %v16615_v54 = vld [vmem:[%s20199_s1 + $0x1b90] sm:$0xff]   ;;  %v16616_v57 = vld [vmem:[%s20199_s1 + $0x1b58] sm:$0xff]  }
 0x349   :  { %15465 = vmatprep.subr.bf16.mxu0 %v16580_v59  ;;  %v16618_v59 = vld [vmem:[%s20199_s1 + $0x1b18] sm:$0xff]  }
 0x34a   :  { %15486 = vmatpush3.bf16.msra.mxu1 %v16579_v58  ;;  %v16617_v58 = vld [vmem:[%s20199_s1 + $0x1bd8] sm:$0xff]  }
 0x34b   :  { %15487 = vmatprep.subr.bf16.mxu1 %v16581_v60  ;;  %v16619_v60 = vld [vmem:[%s20199_s1 + $0x1b98] sm:$0xff]  }
 0x34c   :  { %15466 = vmatpush3.bf16.msra.mxu0 %v16582_v61  ;;  %v16620_v61 = vld [vmem:[%s20199_s1 + $0x1b60] sm:$0xff]  }
 0x34d   :  { %15467 = vmatprep.subr.bf16.mxu0 %v16584_v63  ;;  %v16622_v63 = vld [vmem:[%s20199_s1 + $0x1b20] sm:$0xff]  }
 0x34e   :  { %15488 = vmatpush3.bf16.msra.mxu1 %v16583_v62  ;;  %v16621_v62 = vld [vmem:[%s20199_s1 + $0x1be0] sm:$0xff]  }
 0x34f   :  { %15489 = vmatprep.subr.bf16.mxu1 %v16585_v0  ;;  %v16623_v0 = vld [vmem:[%s20199_s1 + $0x1ba0] sm:$0xff]  }
 0x350   :  { %15468 = vmatpush3.bf16.msra.mxu0 %v16586_v1  ;;  %v16624_v1 = vld [vmem:[%s20199_s1 + $0x1b68] sm:$0xff]  }
 0x351   :  { %15469 = vmatprep.subr.bf16.mxu0 %v16588_v3 }
 0x352   :  { %15490 = vmatpush3.bf16.msra.mxu1 %v16587_v2  ;;  %v16625_v2 = vld [vmem:[%s20199_s1 + $0x1be8] sm:$0xff]  }
 0x353   :  { %15491 = vmatprep.subr.bf16.mxu1 %v16589_v4  ;;  %v16626_v4 = vld [vmem:[%s20199_s1 + $0x1b28] sm:$0xff]  }
 0x354   :  { %15470 = vmatpush3.bf16.msra.mxu0 %v16590_v5 }
 0x355   :  { %15471 = vmatprep.subr.bf16.mxu0 %v16592_v7 }
 0x356   :  { %v15169_v9 = vpop.f32.mrb[76].mxu0  ;;  %15492 = vmatpush3.bf16.msra.mxu1 %v16591_v6  ;;  %v16627_v6 = vld [vmem:[%s20199_s1 + $0x1ba8] sm:$0xff]  }
 0x357   :  { %v15170_v12 = vpop.f32.mrb[77].mxu0  ;;  %15493 = vmatprep.subr.bf16.mxu1 %v16593_v8 }
 0x358   :  { %v15191_v14 = vpop.f32.mrb[76].mxu1  ;;  %v15171_v15 = vadd.f32 %v15170_v12, %v15169_v9  ;;  %v15172_v16 = vpop.f32.mrb[78].mxu0  ;;  %15472 = vmatpush3.bf16.msra.mxu0 %v16594_v10  ;;  %v16628_v10 = vld [vmem:[%s20199_s1 + $0x1b70] sm:$0xff]  }
 0x359   :  { %v15192_v19 = vpop.f32.mrb[77].mxu1  ;;  %v15173_v20 = vpop.f32.mrb[79].mxu0  ;;  %15473 = vmatprep.subr.bf16.mxu0 %v16596_v17  ;;  %v16629_v12 = vld [vmem:[%s20199_s1 + $0x1bf0] sm:$0xff]  }
 0x35a   :  { %v8427_v21 = vadd.f32 %v15171_v15, %v19532_v44  ;;  %v15193_v22 = vadd.f32 %v15192_v19, %v15191_v14  ;;  %v15194_v23 = vpop.f32.mrb[78].mxu1  ;;  %15494 = vmatpush3.bf16.msra.mxu1 %v16595_v13  ;;  %v9380_v44 = vcombine.high %v19659_v39, %v19659_v39  ;;  %v16631_v20 = vld [vmem:[%s20199_s1 + $0x1bb0] sm:$0xff]  }
 0x35b   :  { %v15195_v25 = vpop.f32.mrb[79].mxu1  ;;  %15495 = vmatprep.subr.bf16.mxu1 %v16597_v18  ;;  %v16630_v18 = vld [vmem:[%s20199_s1 + $0x1b30] sm:$0xff]   ;;  %v16633_v23 = vld [vmem:[%s20199_s1 + $0x1bf8] sm:$0xff]  }
 0x35c   :  { %v19633_v27 = vadd.f32 %v15193_v22, %v8427_v21  ;;  %15474 = vmatpush3.bf16.msra.mxu0 %v16598_v24  ;;  %v9408_v49 = vrot.slane %v9380_v44, %v16918_v41  ;;  %v16632_v22 = vld [vmem:[%s20199_s1 + $0x1b78] sm:$0xff]  }
 0x35d   :  { %15475 = vmatprep.subr.bf16.mxu0 %v16600_v28  ;;  %v16634_v24 = vld [vmem:[%s20199_s1 + $0x1b38] sm:$0xff]   ;;  %v16638_v28 = vld [vmem:[%s20199_s1 + $0x1cc0] sm:$0xff]  }
 0x35e   :  { %15496 = vmatpush3.bf16.msra.mxu1 %v16599_v26  ;;  %v9412_v52 = vcombine.high %v9408_v49, %v9408_v49  ;;  %v16635_v25 = vld [vmem:[%s20199_s1 + $0x1bb8] sm:$0xff]   ;;  %v9394_v26 = vrot.slane %v19659_v39, %v16918_v41  ;;  %v16648_v39 = vld [vmem:[%s20199_s1 + $0x1c90] sm:$0xff]  }
 0x35f   :  { %15497 = vmatprep.subr.bf16.mxu1 %v16601_v29  ;;  %v16639_v29 = vld [vmem:[%s20199_s1 + $0x1c00] sm:$0xff]   ;;  %v16652_v44 = vld [vmem:[%s20199_s1 + $0x1c98] sm:$0xff]  }
 0x360   :  { %15476 = vmatpush3.bf16.msra.mxu0 %v16602_v30  ;;  %v16640_v30 = vld [vmem:[%s20199_s1 + $0x1c80] sm:$0xff]   ;;  %v9410_v31 = vcombine.high %v9394_v26, %v9394_v26 }
 0x361   :  { %15505 = vmatprep.subr.bf16.mxu0 %v16604_v33  ;;  %v16642_v33 = vld [vmem:[%s20199_s1 + $0x1cc8] sm:$0xff]  }
 0x362   :  { %15498 = vmatpush3.bf16.msra.mxu1 %v16603_v35  ;;  %v16644_v35 = vld [vmem:[%s20199_s1 + $0x1c88] sm:$0xff]  }
 0x363   :  { %15527 = vmatprep.subr.bf16.mxu1 %v16605_v38  ;;  %11272 = vmatmul.mubr.bf16.vlgmr.msra.gmra.mrb[104].mxu0 %v9387_v37  ;;  %v16646_v37 = vld [vmem:[%s20199_s1 + $0x1cd0] sm:$0xff]  }
 0x364   :  { %15506 = vmatpush3.bf16.msra.mxu0 %v16606_v40  ;;  %11351 = vmatprep.mubr.bf16.mxu0 %v9408_v49  ;;  %v16647_v38 = vld [vmem:[%s20199_s1 + $0x1c10] sm:$0xff]   ;;  %v16649_v40 = vld [vmem:[%s20199_s1 + $0x1c58] sm:$0xff]   ;;  %v16657_v49 = vld [vmem:[%s20199_s1 + $0x1c68] sm:$0xff]  }
 0x365   :  { %11312 = vmatmul.mubr.bf16.vlgmr.msra.gmra.mrb[104].mxu1 %v9409_v45  ;;  %15507 = vmatprep.subr.bf16.mxu0 %v16608_v46  ;;  %v16653_v45 = vld [vmem:[%s20199_s1 + $0x1c60] sm:$0xff]  }
 0x366   :  { %15528 = vmatpush3.bf16.msra.mxu1 %v16607_v43  ;;  %11391 = vmatprep.mubr.bf16.mxu1 %v9412_v52  ;;  %v16651_v43 = vld [vmem:[%s20199_s1 + $0x1c18] sm:$0xff]   ;;  %v16654_v46 = vld [vmem:[%s20199_s1 + $0x1ce0] sm:$0xff]   ;;  %v16659_v52 = vld [vmem:[%s20199_s1 + $0x1c28] sm:$0xff]  }
 0x367   :  { %15529 = vmatprep.subr.bf16.mxu1 %v16609_v48  ;;  %v16656_v48 = vld [vmem:[%s20199_s1 + $0x1ca0] sm:$0xff]  }
 0x368   :  { %15508 = vmatpush3.bf16.msra.mxu0 %v16610_v50  ;;  %v16658_v50 = vld [vmem:[%s20199_s1 + $0x1ce8] sm:$0xff]  }
 0x369   :  { %15509 = vmatprep.subr.bf16.mxu0 %v16612_v53 }
 0x36a   :  { %15530 = vmatpush3.bf16.msra.mxu1 %v16611_v51 }
 0x36b   :  { %15531 = vmatprep.subr.bf16.mxu1 %v16613_v55  ;;  %v16660_v55 = vld [vmem:[%s20199_s1 + $0x1ca8] sm:$0xff]  }
 0x36c   :  { %15510 = vmatpush3.bf16.msra.mxu0 %v16614_v56 }
 0x36d   :  { %15511 = vmatprep.subr.bf16.mxu0 %v16616_v57 }
 0x36e   :  { %15532 = vmatpush3.bf16.msra.mxu1 %v16615_v54 }
 0x36f   :  { %15533 = vmatprep.subr.bf16.mxu1 %v16617_v58  ;;  %v16661_v58 = vld [vmem:[%s20199_s1 + $0x1c70] sm:$0xff]  }
 0x370   :  { %15512 = vmatpush3.bf16.msra.mxu0 %v16618_v59  ;;  %v16662_v59 = vld [vmem:[%s20199_s1 + $0x1cf0] sm:$0xff]  }
 0x371   :  { %15513 = vmatprep.subr.bf16.mxu0 %v16620_v61 }
 0x372   :  { %15534 = vmatpush3.bf16.msra.mxu1 %v16619_v60 }
 0x373   :  { %15535 = vmatprep.subr.bf16.mxu1 %v16621_v62 }
 0x374   :  { %15514 = vmatpush3.bf16.msra.mxu0 %v16622_v63 }
 0x375   :  { %15515 = vmatprep.subr.bf16.mxu0 %v16624_v1  ;;  %v16663_v1 = vld [vmem:[%s20199_s1 + $0x1c30] sm:$0xff]  }
 0x376   :  { %v15213_v3 = vpop.f32.mrb[80].mxu0  ;;  %15536 = vmatpush3.bf16.msra.mxu1 %v16623_v0 }
 0x377   :  { %v15214_v5 = vpop.f32.mrb[81].mxu0  ;;  %15537 = vmatprep.subr.bf16.mxu1 %v16625_v2 }
 0x378   :  { %v15235_v7 = vpop.f32.mrb[80].mxu1  ;;  %v15215_v8 = vadd.f32 %v15214_v5, %v15213_v3  ;;  %v15216_v9 = vpop.f32.mrb[82].mxu0  ;;  %15516 = vmatpush3.bf16.msra.mxu0 %v16626_v4  ;;  %v16664_v3 = vld [vmem:[%s20199_s1 + $0x1cb0] sm:$0xff]   ;;  %v16665_v5 = vld [vmem:[%s20199_s1 + $0x1c78] sm:$0xff]  }
 0x379   :  { %v15236_v13 = vpop.f32.mrb[81].mxu1  ;;  %v15217_v14 = vpop.f32.mrb[83].mxu0  ;;  %15517 = vmatprep.subr.bf16.mxu0 %v16628_v10  ;;  %v16669_v10 = vld [vmem:[%s20199_s1 + $0x1d40] sm:$0xff]  }
 0x37a   :  { %v8507_v15 = vadd.f32 %v15215_v8, %v19633_v27  ;;  %v15237_v16 = vadd.f32 %v15236_v13, %v15235_v7  ;;  %v15238_v17 = vpop.f32.mrb[82].mxu1  ;;  %15538 = vmatpush3.bf16.msra.mxu1 %v16627_v6  ;;  %v16637_v27 = vld [vmem:[%s20199_s1 + $0x1c40] sm:$0xff]   ;;  %v16666_v6 = vld [vmem:[%s20199_s1 + $0x1cf8] sm:$0xff]   ;;  %v13546_v8 = vld [vmem:[%s20198_s0 + $0x70] sm:$0xff] }
 0x37b   :  { %v15239_v19 = vpop.f32.mrb[83].mxu1  ;;  %15539 = vmatprep.subr.bf16.mxu1 %v16629_v12  ;;  %v16667_v7 = vld [vmem:[%s20199_s1 + $0x1c38] sm:$0xff]   ;;  %v9420_v9 = vrot.slane %v13546_v8, %v16918_v41  ;;  %v9413_v12 = vcombine.high %v13546_v8, %v13546_v8 }
 0x37c   :  { %v19744_v21 = vadd.f32 %v15237_v16, %v8507_v15  ;;  %15518 = vmatpush3.bf16.msra.mxu0 %v16630_v18  ;;  %v16668_v13 = vld [vmem:[%s20199_s1 + $0x1cb8] sm:$0xff]   ;;  %v16670_v16 = vld [vmem:[%s20199_s1 + $0x1dc0] sm:$0xff]  }
 0x37d   :  { %15519 = vmatprep.subr.bf16.mxu0 %v16632_v22  ;;  %v9428_v14 = vcombine.high %v9420_v9, %v9420_v9  ;;  %v9436_v15 = vrot.slane %v9420_v9, %v16918_v41  ;;  %v19871_v17 = vrot.slane %v9413_v12, %v16918_v41  ;;  %v16671_v18 = vld [vmem:[%s20199_s1 + $0x1d00] sm:$0xff]   ;;  %v16706_v9 = vld [vmem:[%s20199_s1 + $0x1e48] sm:$0xff]  }
 0x37e   :  { %15540 = vmatpush3.bf16.msra.mxu1 %v16631_v20  ;;  %v16672_v20 = vld [vmem:[%s20199_s1 + $0x1d80] sm:$0xff]   ;;  %v16708_v12 = vld [vmem:[%s20199_s1 + $0x1e08] sm:$0xff]  }
 0x37f   :  { %15541 = vmatprep.subr.bf16.mxu1 %v16633_v23  ;;  %v9450_v19 = vrot.slane %v9428_v14, %v16918_v41  ;;  %v9458_v22 = vcombine.high %v9436_v15, %v9436_v15  ;;  %v16673_v23 = vld [vmem:[%s20199_s1 + $0x1d48] sm:$0xff]   ;;  %v16710_v14 = vld [vmem:[%s20199_s1 + $0x1e50] sm:$0xff]  }
 0x380   :  { %15520 = vmatpush3.bf16.msra.mxu0 %v16634_v24 }
 0x381   :  { %15549 = vmatprep.subr.bf16.mxu0 %v16637_v27  ;;  %v9460_v24 = vcombine.high %v9450_v19, %v9450_v19  ;;  %v16675_v27 = vld [vmem:[%s20199_s1 + $0x1d08] sm:$0xff]  }
 0x382   :  { %15542 = vmatpush3.bf16.msra.mxu1 %v16635_v25  ;;  %v16674_v25 = vld [vmem:[%s20199_s1 + $0x1dc8] sm:$0xff]  }
 0x383   :  { %11352 = vmatmul.mubr.bf16.vlgmr.msra.gmra.mrb[108].mxu0 %v9394_v26  ;;  %15571 = vmatprep.subr.bf16.mxu1 %v16638_v28  ;;  %v16676_v28 = vld [vmem:[%s20199_s1 + $0x1d88] sm:$0xff]  }
 0x384   :  { %15550 = vmatpush3.bf16.msra.mxu0 %v16639_v29  ;;  %11431 = vmatprep.mubr.bf16.mxu0 %v9450_v19  ;;  %v16715_v19 = vld [vmem:[%s20199_s1 + $0x1ed8] sm:$0xff]  }
 0x385   :  { %11392 = vmatmul.mubr.bf16.vlgmr.msra.gmra.mrb[108].mxu1 %v9410_v31  ;;  %15551 = vmatprep.subr.bf16.mxu0 %v16641_v32  ;;  %v16678_v31 = vld [vmem:[%s20199_s1 + $0x1dd0] sm:$0xff]  }
 0x386   :  { %15572 = vmatpush3.bf16.msra.mxu1 %v16640_v30  ;;  %11471 = vmatprep.mubr.bf16.mxu1 %v9460_v24  ;;  %v16677_v30 = vld [vmem:[%s20199_s1 + $0x1d50] sm:$0xff]   ;;  %v16720_v24 = vld [vmem:[%s20199_s1 + $0x1e20] sm:$0xff]  }
 0x387   :  { %15573 = vmatprep.subr.bf16.mxu1 %v16642_v33  ;;  %v16679_v32 = vld [vmem:[%s20199_s1 + $0x1d10] sm:$0xff]  }
 0x388   :  { %15552 = vmatpush3.bf16.msra.mxu0 %v16643_v34  ;;  %v16680_v33 = vld [vmem:[%s20199_s1 + $0x1d90] sm:$0xff]   ;;  %v16681_v34 = vld [vmem:[%s20199_s1 + $0x1d58] sm:$0xff]  }
 0x389   :  { %15553 = vmatprep.subr.bf16.mxu0 %v16645_v36  ;;  %v16683_v36 = vld [vmem:[%s20199_s1 + $0x1d18] sm:$0xff]  }
 0x38a   :  { %15574 = vmatpush3.bf16.msra.mxu1 %v16644_v35  ;;  %v16682_v35 = vld [vmem:[%s20199_s1 + $0x1dd8] sm:$0xff]  }
 0x38b   :  { %15575 = vmatprep.subr.bf16.mxu1 %v16646_v37  ;;  %v16684_v37 = vld [vmem:[%s20199_s1 + $0x1d98] sm:$0xff]  }
 0x38c   :  { %15554 = vmatpush3.bf16.msra.mxu0 %v16647_v38  ;;  %v16685_v38 = vld [vmem:[%s20199_s1 + $0x1d60] sm:$0xff]  }
 0x38d   :  { %15555 = vmatprep.subr.bf16.mxu0 %v16649_v40  ;;  %v16687_v40 = vld [vmem:[%s20199_s1 + $0x1d20] sm:$0xff]  }
 0x38e   :  { %15576 = vmatpush3.bf16.msra.mxu1 %v16648_v39  ;;  %v16686_v39 = vld [vmem:[%s20199_s1 + $0x1de0] sm:$0xff]  }
 0x38f   :  { %15577 = vmatprep.subr.bf16.mxu1 %v16650_v42  ;;  %v16688_v42 = vld [vmem:[%s20199_s1 + $0x1da0] sm:$0xff]  }
 0x390   :  { %15556 = vmatpush3.bf16.msra.mxu0 %v16651_v43  ;;  %v16689_v43 = vld [vmem:[%s20199_s1 + $0x1d68] sm:$0xff]  }
 0x391   :  { %15557 = vmatprep.subr.bf16.mxu0 %v16653_v45 }
 0x392   :  { %15578 = vmatpush3.bf16.msra.mxu1 %v16652_v44  ;;  %v16690_v44 = vld [vmem:[%s20199_s1 + $0x1de8] sm:$0xff]  }
 0x393   :  { %15579 = vmatprep.subr.bf16.mxu1 %v16654_v46  ;;  %v16691_v46 = vld [vmem:[%s20199_s1 + $0x1d28] sm:$0xff]  }
 0x394   :  { %15558 = vmatpush3.bf16.msra.mxu0 %v16655_v47 }
 0x395   :  { %15559 = vmatprep.subr.bf16.mxu0 %v16657_v49 }
 0x396   :  { %v15257_v51 = vpop.f32.mrb[84].mxu0  ;;  %15580 = vmatpush3.bf16.msra.mxu1 %v16656_v48  ;;  %v16692_v48 = vld [vmem:[%s20199_s1 + $0x1da8] sm:$0xff]  }
 0x397   :  { %v15258_v53 = vpop.f32.mrb[85].mxu0  ;;  %15581 = vmatprep.subr.bf16.mxu1 %v16658_v50 }
 0x398   :  { %v15279_v56 = vpop.f32.mrb[84].mxu1  ;;  %v15259_v54 = vadd.f32 %v15258_v53, %v15257_v51  ;;  %v15260_v57 = vpop.f32.mrb[86].mxu0  ;;  %15560 = vmatpush3.bf16.msra.mxu0 %v16659_v52  ;;  %v16693_v52 = vld [vmem:[%s20199_s1 + $0x1d70] sm:$0xff]  }
 0x399   :  { %v15280_v60 = vpop.f32.mrb[85].mxu1  ;;  %v15261_v61 = vpop.f32.mrb[87].mxu0  ;;  %15561 = vmatprep.subr.bf16.mxu0 %v16661_v58  ;;  %v16694_v53 = vld [vmem:[%s20199_s1 + $0x1df0] sm:$0xff]  }
 0x39a   :  { %v8587_v62 = vadd.f32 %v15259_v54, %v19744_v21  ;;  %v15281_v63 = vadd.f32 %v15280_v60, %v15279_v56  ;;  %v15282_v0 = vpop.f32.mrb[86].mxu1  ;;  %15582 = vmatpush3.bf16.msra.mxu1 %v16660_v55  ;;  %v9429_v21 = vcombine.high %v19871_v17, %v19871_v17  ;;  %v16696_v61 = vld [vmem:[%s20199_s1 + $0x1db0] sm:$0xff]  }
 0x39b   :  { %v15283_v2 = vpop.f32.mrb[87].mxu1  ;;  %15583 = vmatprep.subr.bf16.mxu1 %v16662_v59  ;;  %v16695_v59 = vld [vmem:[%s20199_s1 + $0x1d30] sm:$0xff]   ;;  %v16698_v0 = vld [vmem:[%s20199_s1 + $0x1df8] sm:$0xff]  }
 0x39c   :  { %v19845_v4 = vadd.f32 %v15281_v63, %v8587_v62  ;;  %15562 = vmatpush3.bf16.msra.mxu0 %v16663_v1  ;;  %v9457_v26 = vrot.slane %v9429_v21, %v16918_v41  ;;  %v16697_v63 = vld [vmem:[%s20199_s1 + $0x1d78] sm:$0xff]  }
 0x39d   :  { %15563 = vmatprep.subr.bf16.mxu0 %v16665_v5  ;;  %v16699_v1 = vld [vmem:[%s20199_s1 + $0x1d38] sm:$0xff]   ;;  %v16703_v5 = vld [vmem:[%s20199_s1 + $0x1ec0] sm:$0xff]  }
 0x39e   :  { %15584 = vmatpush3.bf16.msra.mxu1 %v16664_v3  ;;  %v9461_v29 = vcombine.high %v9457_v26, %v9457_v26  ;;  %v16700_v2 = vld [vmem:[%s20199_s1 + $0x1db8] sm:$0xff]   ;;  %v9443_v3 = vrot.slane %v19871_v17, %v16918_v41  ;;  %v16713_v17 = vld [vmem:[%s20199_s1 + $0x1e90] sm:$0xff]  }
 0x39f   :  { %15585 = vmatprep.subr.bf16.mxu1 %v16666_v6  ;;  %v16704_v6 = vld [vmem:[%s20199_s1 + $0x1e00] sm:$0xff]   ;;  %v16717_v21 = vld [vmem:[%s20199_s1 + $0x1e98] sm:$0xff]  }
 0x3a0   :  { %15564 = vmatpush3.bf16.msra.mxu0 %v16667_v7  ;;  %v16705_v7 = vld [vmem:[%s20199_s1 + $0x1e80] sm:$0xff]   ;;  %v9459_v8 = vcombine.high %v9443_v3, %v9443_v3 }
 0x3a1   :  { %15593 = vmatprep.subr.bf16.mxu0 %v16669_v10  ;;  %v16707_v10 = vld [vmem:[%s20199_s1 + $0x1ec8] sm:$0xff]  }
 0x3a2   :  { %15586 = vmatpush3.bf16.msra.mxu1 %v16668_v13  ;;  %v16709_v13 = vld [vmem:[%s20199_s1 + $0x1e88] sm:$0xff]  }
 0x3a3   :  { %15615 = vmatprep.subr.bf16.mxu1 %v16670_v16  ;;  %11432 = vmatmul.mubr.bf16.vlgmr.msra.gmra.mrb[112].mxu0 %v9436_v15  ;;  %v16711_v15 = vld [vmem:[%s20199_s1 + $0x1ed0] sm:$0xff]  }
 0x3a4   :  { %15594 = vmatpush3.bf16.msra.mxu0 %v16671_v18  ;;  %11511 = vmatprep.mubr.bf16.mxu0 %v9457_v26  ;;  %v16712_v16 = vld [vmem:[%s20199_s1 + $0x1e10] sm:$0xff]   ;;  %v16714_v18 = vld [vmem:[%s20199_s1 + $0x1e58] sm:$0xff]   ;;  %v16722_v26 = vld [vmem:[%s20199_s1 + $0x1e68] sm:$0xff]  }
 0x3a5   :  { %11472 = vmatmul.mubr.bf16.vlgmr.msra.gmra.mrb[112].mxu1 %v9458_v22  ;;  %15595 = vmatprep.subr.bf16.mxu0 %v16673_v23  ;;  %v16718_v22 = vld [vmem:[%s20199_s1 + $0x1e60] sm:$0xff]  }
 0x3a6   :  { %15616 = vmatpush3.bf16.msra.mxu1 %v16672_v20  ;;  %11551 = vmatprep.mubr.bf16.mxu1 %v9461_v29  ;;  %v16716_v20 = vld [vmem:[%s20199_s1 + $0x1e18] sm:$0xff]   ;;  %v16719_v23 = vld [vmem:[%s20199_s1 + $0x1ee0] sm:$0xff]   ;;  %v16724_v29 = vld [vmem:[%s20199_s1 + $0x1e28] sm:$0xff]  }
 0x3a7   :  { %15617 = vmatprep.subr.bf16.mxu1 %v16674_v25  ;;  %v16721_v25 = vld [vmem:[%s20199_s1 + $0x1ea0] sm:$0xff]  }
 0x3a8   :  { %15596 = vmatpush3.bf16.msra.mxu0 %v16675_v27  ;;  %v16723_v27 = vld [vmem:[%s20199_s1 + $0x1ee8] sm:$0xff]  }
 0x3a9   :  { %15597 = vmatprep.subr.bf16.mxu0 %v16677_v30 }
 0x3aa   :  { %15618 = vmatpush3.bf16.msra.mxu1 %v16676_v28 }
 0x3ab   :  { %15619 = vmatprep.subr.bf16.mxu1 %v16678_v31  ;;  %v16725_v31 = vld [vmem:[%s20199_s1 + $0x1ea8] sm:$0xff]  }
 0x3ac   :  { %15598 = vmatpush3.bf16.msra.mxu0 %v16679_v32 }
 0x3ad   :  { %15599 = vmatprep.subr.bf16.mxu0 %v16681_v34 }
 0x3ae   :  { %15620 = vmatpush3.bf16.msra.mxu1 %v16680_v33 }
 0x3af   :  { %15621 = vmatprep.subr.bf16.mxu1 %v16682_v35  ;;  %v16726_v35 = vld [vmem:[%s20199_s1 + $0x1e70] sm:$0xff]  }
 0x3b0   :  { %15600 = vmatpush3.bf16.msra.mxu0 %v16683_v36  ;;  %v16727_v36 = vld [vmem:[%s20199_s1 + $0x1ef0] sm:$0xff]  }
 0x3b1   :  { %15601 = vmatprep.subr.bf16.mxu0 %v16685_v38 }
 0x3b2   :  { %15622 = vmatpush3.bf16.msra.mxu1 %v16684_v37 }
 0x3b3   :  { %15623 = vmatprep.subr.bf16.mxu1 %v16686_v39 }
 0x3b4   :  { %15602 = vmatpush3.bf16.msra.mxu0 %v16687_v40 }
 0x3b5   :  { %15603 = vmatprep.subr.bf16.mxu0 %v16689_v43  ;;  %v16728_v43 = vld [vmem:[%s20199_s1 + $0x1e30] sm:$0xff]  }
 0x3b6   :  { %v15301_v45 = vpop.f32.mrb[88].mxu0  ;;  %15624 = vmatpush3.bf16.msra.mxu1 %v16688_v42 }
 0x3b7   :  { %v15302_v47 = vpop.f32.mrb[89].mxu0  ;;  %15625 = vmatprep.subr.bf16.mxu1 %v16690_v44 }
 0x3b8   :  { %v15323_v49 = vpop.f32.mrb[88].mxu1  ;;  %v15303_v50 = vadd.f32 %v15302_v47, %v15301_v45  ;;  %v15304_v51 = vpop.f32.mrb[90].mxu0  ;;  %15604 = vmatpush3.bf16.msra.mxu0 %v16691_v46  ;;  %v16729_v45 = vld [vmem:[%s20199_s1 + $0x1eb0] sm:$0xff]   ;;  %v16730_v47 = vld [vmem:[%s20199_s1 + $0x1e78] sm:$0xff]  }
 0x3b9   :  { %v15324_v55 = vpop.f32.mrb[89].mxu1  ;;  %v15305_v56 = vpop.f32.mrb[91].mxu0  ;;  %15605 = vmatprep.subr.bf16.mxu0 %v16693_v52  ;;  %v13547_v51 = vld [vmem:[%s20198_s0 + $0x78] sm:$0xff] }
 0x3ba   :  { %v8667_v54 = vadd.f32 %v15303_v50, %v19845_v4  ;;  %v15325_v57 = vadd.f32 %v15324_v55, %v15323_v49  ;;  %v15326_v58 = vpop.f32.mrb[90].mxu1  ;;  %15626 = vmatpush3.bf16.msra.mxu1 %v16692_v48  ;;  %v16702_v4 = vld [vmem:[%s20199_s1 + $0x1e40] sm:$0xff]   ;;  %v16731_v48 = vld [vmem:[%s20199_s1 + $0x1ef8] sm:$0xff]   ;;  %v9469_v52 = vrot.slane %v13547_v51, %v16918_v41  ;;  %v9462_v55 = vcombine.high %v13547_v51, %v13547_v51 }
 0x3bb   :  { %v15327_v60 = vpop.f32.mrb[91].mxu1  ;;  %15627 = vmatprep.subr.bf16.mxu1 %v16694_v53  ;;  %v16732_v50 = vld [vmem:[%s20199_s1 + $0x1e38] sm:$0xff]   ;;  %v16734_v53 = vld [vmem:[%s20199_s1 + $0x1f40] sm:$0xff]  }
 0x3bc   :  { %v19956_v62 = vadd.f32 %v15325_v57, %v8667_v54  ;;  %15606 = vmatpush3.bf16.msra.mxu0 %v16695_v59  ;;  %v9477_v56 = vcombine.high %v9469_v52, %v9469_v52  ;;  %v9485_v54 = vrot.slane %v9469_v52, %v16918_v41  ;;  %v16735_v57 = vld [vmem:[%s20199_s1 + $0x1fc0] sm:$0xff]   ;;  %v20084_v58 = vrot.slane %v9462_v55, %v16918_v41 }
 0x3bd   :  { %15607 = vmatprep.subr.bf16.mxu0 %v16697_v63  ;;  %v16736_v60 = vld [vmem:[%s20199_s1 + $0x1f00] sm:$0xff]   ;;  %v16738_v63 = vld [vmem:[%s20199_s1 + $0x1f48] sm:$0xff]  }
 0x3be   :  { %15628 = vmatpush3.bf16.msra.mxu1 %v16696_v61  ;;  %v9499_v59 = vrot.slane %v9477_v56, %v16918_v41  ;;  %v9478_v61 = vcombine.high %v20084_v58, %v20084_v58 }
 0x3bf   :  { %15629 = vmatprep.subr.bf16.mxu1 %v16698_v0 }
 0x3c0   :  { %15608 = vmatpush3.bf16.msra.mxu0 %v16699_v1  ;;  %v9509_v0 = vcombine.high %v9499_v59, %v9499_v59  ;;  %v16737_v1 = vld [vmem:[%s20199_s1 + $0x1f80] sm:$0xff]  }
 0x3c1   :  { %15637 = vmatprep.subr.bf16.mxu0 %v16702_v4  ;;  %v16740_v4 = vld [vmem:[%s20199_s1 + $0x1f08] sm:$0xff]  }
 0x3c2   :  { %15630 = vmatpush3.bf16.msra.mxu1 %v16700_v2  ;;  %v9506_v2 = vrot.slane %v9478_v61, %v16918_v41 }
 0x3c3   :  { %11512 = vmatmul.mubr.bf16.vlgmr.msra.gmra.mrb[116].mxu0 %v9443_v3  ;;  %15659 = vmatprep.subr.bf16.mxu1 %v16703_v5  ;;  %v16739_v3 = vld [vmem:[%s20199_s1 + $0x1fc8] sm:$0xff]  }
 0x3c4   :  { %15638 = vmatpush3.bf16.msra.mxu0 %v16704_v6  ;;  %11591 = vmatprep.mubr.bf16.mxu0 %v9499_v59  ;;  %v9510_v5 = vcombine.high %v9506_v2, %v9506_v2  ;;  %v16742_v6 = vld [vmem:[%s20199_s1 + $0x1f50] sm:$0xff]  }
 0x3c5   :  { %11552 = vmatmul.mubr.bf16.vlgmr.msra.gmra.mrb[116].mxu1 %v9459_v8  ;;  %15639 = vmatprep.subr.bf16.mxu0 %v16706_v9  ;;  %v16743_v8 = vld [vmem:[%s20199_s1 + $0x1fd0] sm:$0xff]  }
 0x3c6   :  { %15660 = vmatpush3.bf16.msra.mxu1 %v16705_v7  ;;  %11631 = vmatprep.mubr.bf16.mxu1 %v9509_v0  ;;  %v16741_v7 = vld [vmem:[%s20199_s1 + $0x1f88] sm:$0xff]   ;;  %v16744_v9 = vld [vmem:[%s20199_s1 + $0x1f10] sm:$0xff]  }
 0x3c7   :  { %15661 = vmatprep.subr.bf16.mxu1 %v16707_v10  ;;  %v16746_v10 = vld [vmem:[%s20199_s1 + $0x1f58] sm:$0xff]  }
 0x3c8   :  { %15640 = vmatpush3.bf16.msra.mxu0 %v16708_v12  ;;  %v16745_v12 = vld [vmem:[%s20199_s1 + $0x1f90] sm:$0xff]  }
 0x3c9   :  { %15641 = vmatprep.subr.bf16.mxu0 %v16710_v14  ;;  %v16748_v14 = vld [vmem:[%s20199_s1 + $0x1f18] sm:$0xff]  }
 0x3ca   :  { %15662 = vmatpush3.bf16.msra.mxu1 %v16709_v13  ;;  %v16747_v13 = vld [vmem:[%s20199_s1 + $0x1fd8] sm:$0xff]  }
 0x3cb   :  { %15663 = vmatprep.subr.bf16.mxu1 %v16711_v15  ;;  %v16750_v15 = vld [vmem:[%s20199_s1 + $0x1f60] sm:$0xff]  }
 0x3cc   :  { %15642 = vmatpush3.bf16.msra.mxu0 %v16712_v16  ;;  %v16749_v16 = vld [vmem:[%s20199_s1 + $0x1f98] sm:$0xff]  }
 0x3cd   :  { %15643 = vmatprep.subr.bf16.mxu0 %v16714_v18  ;;  %v16752_v18 = vld [vmem:[%s20199_s1 + $0x1f20] sm:$0xff]  }
 0x3ce   :  { %15664 = vmatpush3.bf16.msra.mxu1 %v16713_v17  ;;  %v16751_v17 = vld [vmem:[%s20199_s1 + $0x1fe0] sm:$0xff]  }
 0x3cf   :  { %15665 = vmatprep.subr.bf16.mxu1 %v16715_v19  ;;  %v16754_v19 = vld [vmem:[%s20199_s1 + $0x1f68] sm:$0xff]  }
 0x3d0   :  { %15644 = vmatpush3.bf16.msra.mxu0 %v16716_v20  ;;  %v16753_v20 = vld [vmem:[%s20199_s1 + $0x1fa0] sm:$0xff]  }
 0x3d1   :  { %15645 = vmatprep.subr.bf16.mxu0 %v16718_v22  ;;  %v16755_v22 = vld [vmem:[%s20199_s1 + $0x1fe8] sm:$0xff]  }
 0x3d2   :  { %15666 = vmatpush3.bf16.msra.mxu1 %v16717_v21 }
 0x3d3   :  { %15667 = vmatprep.subr.bf16.mxu1 %v16719_v23 }
 0x3d4   :  { %15646 = vmatpush3.bf16.msra.mxu0 %v16720_v24  ;;  %v16756_v24 = vld [vmem:[%s20199_s1 + $0x1f28] sm:$0xff]  }
 0x3d5   :  { %15647 = vmatprep.subr.bf16.mxu0 %v16722_v26 }
 0x3d6   :  { %v15345_v28 = vpop.f32.mrb[92].mxu0  ;;  %15668 = vmatpush3.bf16.msra.mxu1 %v16721_v25 }
 0x3d7   :  { %v15346_v30 = vpop.f32.mrb[93].mxu0  ;;  %15669 = vmatprep.subr.bf16.mxu1 %v16723_v27 }
 0x3d8   :  { %v15367_v32 = vpop.f32.mrb[92].mxu1  ;;  %v15347_v33 = vadd.f32 %v15346_v30, %v15345_v28  ;;  %v15348_v34 = vpop.f32.mrb[94].mxu0  ;;  %15648 = vmatpush3.bf16.msra.mxu0 %v16724_v29  ;;  %v16757_v28 = vld [vmem:[%s20199_s1 + $0x1fa8] sm:$0xff]   ;;  %v16758_v29 = vld [vmem:[%s20199_s1 + $0x1f70] sm:$0xff]  }
 0x3d9   :  { %v15368_v37 = vpop.f32.mrb[93].mxu1  ;;  %v15349_v38 = vpop.f32.mrb[95].mxu0  ;;  %15649 = vmatprep.subr.bf16.mxu0 %v16726_v35  ;;  %v16759_v34 = vld [vmem:[%s20199_s1 + $0x1ff0] sm:$0xff]  }
 0x3da   :  { %v8747_v39 = vadd.f32 %v15347_v33, %v19956_v62  ;;  %v15369_v40 = vadd.f32 %v15368_v37, %v15367_v32  ;;  %v15370_v42 = vpop.f32.mrb[94].mxu1  ;;  %15670 = vmatpush3.bf16.msra.mxu1 %v16725_v31  ;;  %v9507_v62 = vcombine.high %v9485_v54, %v9485_v54  ;;  %v16762_v38 = vld [vmem:[%s20199_s1 + $0x1f78] sm:$0xff]  }
 0x3db   :  { %v15371_v44 = vpop.f32.mrb[95].mxu1  ;;  %15671 = vmatprep.subr.bf16.mxu1 %v16727_v36  ;;  %v16760_v36 = vld [vmem:[%s20199_s1 + $0x1f30] sm:$0xff]  }
 0x3dc   :  { %v8787_v46 = vadd.f32 %v15369_v40, %v8747_v39  ;;  %15650 = vmatpush3.bf16.msra.mxu0 %v16728_v43  ;;  %v16761_v39 = vld [vmem:[%s20199_s1 + $0x1fb0] sm:$0xff]   ;;  %v16763_v40 = vld [vmem:[%s20199_s1 + $0x1ff8] sm:$0xff]  }
 0x3dd   :  { %15651 = vmatprep.subr.bf16.mxu0 %v16730_v47 }
 0x3de   :  { %v20064_v49 = vadd.f32 %v8787_v46, %v19213_v11  ;;  %15672 = vmatpush3.bf16.msra.mxu1 %v16729_v45  ;;  %v16733_v11 = vld [vmem:[%s20199_s1 + $0x1eb8] sm:$0xff]  }
 0x3df   :  { %15673 = vmatprep.subr.bf16.mxu1 %v16731_v48 }
 0x3e0   :  { %15652 = vmatpush3.bf16.msra.mxu0 %v16732_v50 }
 0x3e1   :  { %15681 = vmatprep.subr.bf16.mxu0 %v16734_v53 }
 0x3e2   :  { %15674 = vmatpush3.bf16.msra.mxu1 %v16733_v11 }
 0x3e3   :  { %15703 = vmatprep.subr.bf16.mxu1 %v16735_v57  ;;  %11592 = vmatmul.mubr.bf16.vlgmr.msra.gmra.mrb[120].mxu0 %v9485_v54 }
 0x3e4   :  { %15682 = vmatpush3.bf16.msra.mxu0 %v16736_v60  ;;  %11671 = vmatprep.mubr.bf16.mxu0 %v9506_v2 }
 0x3e5   :  { %11632 = vmatmul.mubr.bf16.vlgmr.msra.gmra.mrb[120].mxu1 %v9507_v62  ;;  %15683 = vmatprep.subr.bf16.mxu0 %v16738_v63 }
 0x3e6   :  { %15704 = vmatpush3.bf16.msra.mxu1 %v16737_v1  ;;  %11711 = vmatprep.mubr.bf16.mxu1 %v9510_v5 }
 0x3e7   :  { %15705 = vmatprep.subr.bf16.mxu1 %v16739_v3 }
 0x3e8   :  { %15684 = vmatpush3.bf16.msra.mxu0 %v16740_v4 }
 0x3e9   :  { %15685 = vmatprep.subr.bf16.mxu0 %v16742_v6 }
 0x3ea   :  { %15706 = vmatpush3.bf16.msra.mxu1 %v16741_v7 }
 0x3eb   :  { %15707 = vmatprep.subr.bf16.mxu1 %v16743_v8 }
 0x3ec   :  { %15686 = vmatpush3.bf16.msra.mxu0 %v16744_v9 }
 0x3ed   :  { %15687 = vmatprep.subr.bf16.mxu0 %v16746_v10 }
 0x3ee   :  { %15708 = vmatpush3.bf16.msra.mxu1 %v16745_v12 }
 0x3ef   :  { %15709 = vmatprep.subr.bf16.mxu1 %v16747_v13 }
 0x3f0   :  { %15688 = vmatpush3.bf16.msra.mxu0 %v16748_v14 }
 0x3f1   :  { %15689 = vmatprep.subr.bf16.mxu0 %v16750_v15 }
 0x3f2   :  { %15710 = vmatpush3.bf16.msra.mxu1 %v16749_v16 }
 0x3f3   :  { %15711 = vmatprep.subr.bf16.mxu1 %v16751_v17 }
 0x3f4   :  { %15690 = vmatpush3.bf16.msra.mxu0 %v16752_v18 }
 0x3f5   :  { %15691 = vmatprep.subr.bf16.mxu0 %v16754_v19 }
 0x3f6   :  { %v15389_v21 = vpop.f32.mrb[96].mxu0  ;;  %15712 = vmatpush3.bf16.msra.mxu1 %v16753_v20 }
 0x3f7   :  { %v15390_v23 = vpop.f32.mrb[97].mxu0  ;;  %15713 = vmatprep.subr.bf16.mxu1 %v16755_v22 }
 0x3f8   :  { %v15411_v25 = vpop.f32.mrb[96].mxu1  ;;  %v15391_v26 = vadd.f32 %v15390_v23, %v15389_v21  ;;  %v15392_v27 = vpop.f32.mrb[98].mxu0  ;;  %15692 = vmatpush3.bf16.msra.mxu0 %v16756_v24 }
 0x3f9   :  { %v15412_v30 = vpop.f32.mrb[97].mxu1  ;;  %v15393_v31 = vpop.f32.mrb[99].mxu0  ;;  %15693 = vmatprep.subr.bf16.mxu0 %v16758_v29 }
 0x3fa   :  { %v15413_v32 = vadd.f32 %v15412_v30, %v15411_v25  ;;  %v15414_v33 = vpop.f32.mrb[98].mxu1  ;;  %15714 = vmatpush3.bf16.msra.mxu1 %v16757_v28 }
 0x3fb   :  { %v15415_v35 = vpop.f32.mrb[99].mxu1  ;;  %15715 = vmatprep.subr.bf16.mxu1 %v16759_v34 }
 0x3fc   :  { %v11154_v37 = vadd.f32 %v15413_v32, %v15391_v26 }
 0x3fd   :  { %8 = vsyncpa [#allocation3], 0  ;;  %15694 = vmatpush3.bf16.msra.mxu0 %v16760_v36  ;;  %v16764_v42 = vld [vmem:[%s20199_s1 + $0x1f38] sm:$0xff]   ;;  %v9492_v43 = vrot.slane %v20084_v58, %v16918_v41  ;;  %s16792_s11 = smov [#allocation2]   ;;  %vm11728_vm0 = vcmask 74752  }
 0x3fe   :  { %15695 = vmatprep.subr.bf16.mxu0 %v16762_v38  ;;  %15716 = vmatpush3.bf16.msra.mxu1 %v16761_v39  ;;  %v16765_v44 = vld [vmem:[%s20199_s1 + $0x1fb8] sm:$0xff]   ;;  %s11736_s12 = sshll.u32 %s16792_s11, 4  ;;  %s11737_s12 = int_to_ptr.vmem [resolvable:$true] %s11736_s12 }
 0x3ff   :  { %15717 = vmatprep.subr.bf16.mxu1 %v16763_v40  ;;  %v9508_v45 = vcombine.high %v9492_v43, %v9492_v43  ;;  %s16767_s13 = scalar_lea.vmem %s11737_s12, 32  ;;  %p16772_p1 = scmp.lt.s32.totalorder %s11737_s12, %s11737_s12 }
 0x400   :  { %p16768_p0 = scmp.ne.s32.totalorder %s11737_s12, %s16767_s13  ;;  %p16773_p2 = scmp.lt.s32.totalorder %s16767_s13, %s16767_s13 }
 0x401   :  { %15696 = vmatpush3.bf16.msra.mxu0 %v16764_v42 }
 0x402   :  { %15718 = vmatpush3.bf16.msra.mxu1 %v16765_v44  ;;  %p16774_p3 = por %p16773_p2, %p16772_p1 }
 0x404   :  { %11672 = vmatmul.mubr.bf16.vlgmr.msra.gmra.mrb[124].mxu0 %v9492_v43  ;;  %p16775_p4 = pnand %p16774_p3, %p16768_p0 }
 0x405   :  { %11712 = vmatmul.mubr.bf16.vlgmr.msra.gmra.mrb[124].mxu1 %v9508_v45 }
 0x416   :  { %v15433_v46 = vpop.f32.mrb[100].mxu0 }
 0x417   :  { %v15434_v47 = vpop.f32.mrb[101].mxu0 }
 0x418   :  { %v15455_v48 = vpop.f32.mrb[100].mxu1  ;;  %v15435_v50 = vadd.f32 %v15434_v47, %v15433_v46  ;;  %v15436_v51 = vpop.f32.mrb[102].mxu0 }
 0x419   :  { %v15456_v52 = vpop.f32.mrb[101].mxu1  ;;  %v15437_v53 = vpop.f32.mrb[103].mxu0 }
 0x41a   :  { %v11194_v55 = vadd.f32 %v15435_v50, %v11154_v37  ;;  %v15457_v41 = vadd.f32 %v15456_v52, %v15455_v48  ;;  %v15458_v11 = vpop.f32.mrb[102].mxu1 }
 0x41b   :  { %v15459_v56 = vpop.f32.mrb[103].mxu1 }
 0x41c   :  { %v11234_v54 = vadd.f32 %v15457_v41, %v11194_v55 }
 0x436   :  { %v15477_v57 = vpop.f32.mrb[104].mxu0 }
 0x437   :  { %v15478_v58 = vpop.f32.mrb[105].mxu0 }
 0x438   :  { %v15499_v59 = vpop.f32.mrb[104].mxu1  ;;  %v15479_v60 = vadd.f32 %v15478_v58, %v15477_v57  ;;  %v15480_v61 = vpop.f32.mrb[106].mxu0 }
 0x439   :  { %v15500_v62 = vpop.f32.mrb[105].mxu1  ;;  %v15481_v63 = vpop.f32.mrb[107].mxu0 }
 0x43a   :  { %v11274_v0 = vadd.f32 %v15479_v60, %v11234_v54  ;;  %v15501_v1 = vadd.f32 %v15500_v62, %v15499_v59  ;;  %v15502_v2 = vpop.f32.mrb[106].mxu1 }
 0x43b   :  { %v15503_v3 = vpop.f32.mrb[107].mxu1  ;;  %v14316_v2 = vld [vmem:[%s20200_s2] ss:$0 sm:$0xff] }
 0x43c   :  { %v11314_v4 = vadd.f32 %v15501_v1, %v11274_v0 }
 0x456   :  { %v15521_v5 = vpop.f32.mrb[108].mxu0 }
 0x457   :  { %v15522_v6 = vpop.f32.mrb[109].mxu0 }
 0x458   :  { %v15543_v7 = vpop.f32.mrb[108].mxu1  ;;  %v15523_v8 = vadd.f32 %v15522_v6, %v15521_v5  ;;  %v15524_v9 = vpop.f32.mrb[110].mxu0 }
 0x459   :  { %v15544_v10 = vpop.f32.mrb[109].mxu1  ;;  %v15525_v12 = vpop.f32.mrb[111].mxu0 }
 0x45a   :  { %v11354_v13 = vadd.f32 %v15523_v8, %v11314_v4  ;;  %v15545_v14 = vadd.f32 %v15544_v10, %v15543_v7  ;;  %v15546_v15 = vpop.f32.mrb[110].mxu1 }
 0x45b   :  { %v15547_v16 = vpop.f32.mrb[111].mxu1 }
 0x45c   :  { %v11394_v17 = vadd.f32 %v15545_v14, %v11354_v13 }
 0x476   :  { %v15565_v18 = vpop.f32.mrb[112].mxu0 }
 0x477   :  { %v15566_v19 = vpop.f32.mrb[113].mxu0 }
 0x478   :  { %v15587_v20 = vpop.f32.mrb[112].mxu1  ;;  %v15567_v21 = vadd.f32 %v15566_v19, %v15565_v18  ;;  %v15568_v22 = vpop.f32.mrb[114].mxu0 }
 0x479   :  { %v15588_v23 = vpop.f32.mrb[113].mxu1  ;;  %v15569_v24 = vpop.f32.mrb[115].mxu0 }
 0x47a   :  { %v11434_v25 = vadd.f32 %v15567_v21, %v11394_v17  ;;  %v15589_v26 = vadd.f32 %v15588_v23, %v15587_v20  ;;  %v15590_v27 = vpop.f32.mrb[114].mxu1 }
 0x47b   :  { %v15591_v28 = vpop.f32.mrb[115].mxu1 }
 0x47c   :  { %v11474_v29 = vadd.f32 %v15589_v26, %v11434_v25 }
 0x496   :  { %v15609_v30 = vpop.f32.mrb[116].mxu0 }
 0x497   :  { %v15610_v31 = vpop.f32.mrb[117].mxu0 }
 0x498   :  { %v15631_v32 = vpop.f32.mrb[116].mxu1  ;;  %v15611_v33 = vadd.f32 %v15610_v31, %v15609_v30  ;;  %v15612_v34 = vpop.f32.mrb[118].mxu0 }
 0x499   :  { %v15632_v35 = vpop.f32.mrb[117].mxu1  ;;  %v15613_v36 = vpop.f32.mrb[119].mxu0 }
 0x49a   :  { %v11514_v37 = vadd.f32 %v15611_v33, %v11474_v29  ;;  %v15633_v38 = vadd.f32 %v15632_v35, %v15631_v32  ;;  %v15634_v39 = vpop.f32.mrb[118].mxu1 }
 0x49b   :  { %v15635_v40 = vpop.f32.mrb[119].mxu1 }
 0x49c   :  { %v11554_v42 = vadd.f32 %v15633_v38, %v11514_v37 }
 0x4b6   :  { %v15653_v43 = vpop.f32.mrb[120].mxu0 }
 0x4b7   :  { %v15654_v44 = vpop.f32.mrb[121].mxu0 }
 0x4b8   :  { %v15675_v45 = vpop.f32.mrb[120].mxu1  ;;  %v15655_v46 = vadd.f32 %v15654_v44, %v15653_v43  ;;  %v15656_v47 = vpop.f32.mrb[122].mxu0 }
 0x4b9   :  { %v15676_v48 = vpop.f32.mrb[121].mxu1  ;;  %v15657_v50 = vpop.f32.mrb[123].mxu0 }
 0x4ba   :  { %v11594_v51 = vadd.f32 %v15655_v46, %v11554_v42  ;;  %v15677_v52 = vadd.f32 %v15676_v48, %v15675_v45  ;;  %v15678_v53 = vpop.f32.mrb[122].mxu1 }
 0x4bb   :  { %v15679_v55 = vpop.f32.mrb[123].mxu1 }
 0x4bc   :  { %v11634_v41 = vadd.f32 %v15677_v52, %v11594_v51 }
 0x4d7   :  { %v15697_v11 = vpop.f32.mrb[124].mxu0 }
 0x4d8   :  { %v15698_v56 = vpop.f32.mrb[125].mxu0  ;;  %v15719_v54 = vpop.f32.mrb[124].mxu1 }
 0x4d9   :  { %v15699_v57 = vadd.f32 %v15698_v56, %v15697_v11  ;;  %v15700_v58 = vpop.f32.mrb[126].mxu0  ;;  %v15720_v59 = vpop.f32.mrb[125].mxu1 }
 0x4da   :  { %v15701_v60 = vpop.f32.mrb[127].mxu0  ;;  %v15721_v62 = vadd.f32 %v15720_v59, %v15719_v54  ;;  %v15722_v63 = vpop.f32.mrb[126].mxu1 }
 0x4db   :  { %v11674_v61 = vadd.f32 %v15699_v57, %v11634_v41  ;;  %v15723_v0 = vpop.f32.mrb[127].mxu1 }
 0x4dd   :  { %v11714_v1 = vadd.f32 %v15721_v62, %v11674_v61 }
 0x4df   :  { %v11719_v3 = vadd.f32 %v11714_v1, %v20064_v49 }
 0x4e1   :  { %v11727_v4 = vadd.f32 %v14316_v2, %v11719_v3 }
 0x4e3   :  { %11729 = vst.msk [vmem:[#allocation2] sm:$0x3] %vm11728_vm0, %v11727_v4 }
 0x4e4   :  { %16778 = shalt.err (!%p16775_p4)
}
 0x4e5   :  { %s16779_s16 = scalar_lea.hbm %s20201_s3, 32 }
 0x4e6   :  { %p16780_p5 = scmp.ne.s32.totalorder %s20201_s3, %s16779_s16  ;;  %p16783_p6 = scmp.lt.u32.totalorder %s16779_s16, %s20201_s3 }
 0x4e8   :  { %p16785_p7 = pnand %p16783_p6, %p16780_p5 }
 0x4ea   :  { %16788 = shalt.err (!%p16785_p7)
}
 0x4eb   :  { %11739 = dma.vmem_to_hbm [thread:$0]  %s11737_s12, 32, %s20201_s3, [#allocation3]  }
 0x4ec   :  { %16789 = dma.done.wait [#allocation3], 32  }
 0x4ed   :  { %16790 = vsyncadd [#allocation3], 4294967264 }
 0x4ee   :  { %11743 = vsyncpa [#allocation3], 1 }

</bundles_post_ra>
